<compile_context>
chip_gen: v7x
topology: tpu7x:2x2x1
jax: 0.10.0
libtpu: 0.0.40
codegen_flags: <defaults>
</compile_context>

<pallas_src>
import numpy as np
import jax
import jax.numpy as jnp
from jax import lax
from jax.experimental import pallas as pl
from jax.experimental.pallas import tpu as pltpu


def _round_up(n, m):
    return -(-n // m) * m


# ----------------------------- fused Pallas kernel -----------------------------

def lenet5_kernel(x_ref, m1_ref, b1_ref, m2_ref, b2_ref,
                  w1_ref, fb1_ref, w2_ref, fb2_ref, w3_ref, fb3_ref,
                  out_ref, rp1_ref):
    """One batch tile (B_T images) per grid step; everything stays in VMEM.

    x_ref is H-major: (28, B_T, 28).  All activations keep the batch on the
    sublane/M axis, so every matmul has a large M and every pooling access is
    a plain leading-axis slice.
    """
    f32 = jnp.float32
    bt = x_ref.shape[1]

    # ---- conv1 (1->6, 5x5) + tanh -----------------------------------------
    # K-concatenated band matmul: one (B_T*24, 140) @ (140, 144) MXU op.
    lhs1 = jnp.concatenate([x_ref[kh:kh + 24] for kh in range(5)], axis=-1)
    a1 = jnp.tanh(jnp.dot(lhs1.reshape(24 * bt, 140), m1_ref[...],
                          preferred_element_type=f32) + b1_ref[...])
    a1 = a1.reshape(24, bt, 144)          # lanes = ow*6 + co

    # ---- pool1 row-pool (VPU adds; lane-pool + 0.25 folded into m2) --------
    for r in range(12):
        rp1_ref[r] = a1[2 * r] + a1[2 * r + 1]

    # ---- conv2 (6->16, 5x5) + tanh ------------------------------------------
    # One (B_T*8, 720) @ (720, 128) MXU op; output is lane-dense (., 128).
    lhs2 = jnp.concatenate([rp1_ref[kh:kh + 8] for kh in range(5)], axis=-1)
    a2 = jnp.tanh(jnp.dot(lhs2.reshape(8 * bt, 720), m2_ref[...],
                          preferred_element_type=f32) + b2_ref[...])
    a2 = a2.reshape(8, bt, 128)           # lanes = ow*16 + co

    # ---- pool2 + NCHW flatten folded into w1_ref; FC stack -----------------
    lhs3 = jnp.concatenate([a2[2 * h] + a2[2 * h + 1] for h in range(4)],
                           axis=-1)                                 # (B_T, 512)
    h1 = jnp.tanh(jnp.dot(lhs3, w1_ref[...], preferred_element_type=f32)
                  + fb1_ref[...])
    h2 = jnp.tanh(jnp.dot(h1, w2_ref[...], preferred_element_type=f32)
                  + fb2_ref[...])
    # fc3 is padded to 128 output lanes -> unmasked lane-dense store.
    out_ref[...] = (jnp.dot(h2, w3_ref[...], preferred_element_type=f32)
                    + fb3_ref[...])


# ------------------- one-time parameter re-layout (host side) ------------------

def prepare_params(p):
    """Re-layout PyTorch-convention parameters into kernel-ready slabs (once)."""
    f32 = np.float32
    w1 = np.asarray(p["conv1_w"], f32)    # (6,1,5,5)   OIHW
    w2 = np.asarray(p["conv2_w"], f32)    # (16,6,5,5)
    fc1 = np.asarray(p["fc1_w"], f32)     # (120,256)
    fc2 = np.asarray(p["fc2_w"], f32)     # (84,120)
    fc3 = np.asarray(p["fc3_w"], f32)     # (10,84)

    # conv1 K-concat band matrix: row = kh*28 + iw, col = ow*6 + co
    m1 = np.zeros((5, 28, 24, 6), f32)
    for kh in range(5):
        for kw in range(5):
            for ow in range(24):
                m1[kh, ow + kw, ow, :] = w1[:, 0, kh, kw]
    m1 = m1.reshape(140, 144)

    # conv2 K-concat band matrix with pool1's lane-pool + 0.25 avg factor
    # folded in: row = kh*144 + wfull*6 + ci (wfull = full-res column after the
    # row-pool), col = ow*16 + co.
    m2 = np.zeros((5, 24, 6, 8, 16), f32)
    for kh in range(5):
        for wf in range(24):
            for ow in range(8):
                kw = wf // 2 - ow
                if 0 <= kw <= 4:
                    m2[kh, wf, :, ow, :] = 0.25 * w2[:, :, kh, kw].T   # (ci, co)
    m2 = m2.reshape(720, 128)

    # fc1 with pool2 (lane-pool + 0.25) and the PyTorch NCHW flatten folded in:
    # row = h*128 + ow*16 + c  (h = pooled row, ow = full-res column).
    w1c = np.zeros((4, 8, 16, 120), f32)
    for h in range(4):
        for ow in range(8):
            for c in range(16):
                w1c[h, ow, c, :] = 0.25 * fc1[:, c * 16 + h * 4 + ow // 2]
    w1c = w1c.reshape(512, 120)

    # fc3 zero-padded to 128 output lanes (lane-dense final store)
    w3p = np.zeros((84, 128), f32)
    w3p[:, :10] = fc3.T
    b3p = np.zeros((1, 128), f32)
    b3p[0, :10] = np.asarray(p["fc3_b"], f32)

    return {
        "m1": jnp.asarray(m1),
        "b1": jnp.asarray(np.tile(np.asarray(p["conv1_b"], f32), 24).reshape(1, 144)),
        "m2": jnp.asarray(m2),
        "b2": jnp.asarray(np.tile(np.asarray(p["conv2_b"], f32), 8).reshape(1, 128)),
        "w1": jnp.asarray(w1c),
        "fb1": jnp.asarray(np.asarray(p["fc1_b"], f32).reshape(1, 120)),
        "w2": jnp.asarray(fc2.T),
        "fb2": jnp.asarray(np.asarray(p["fc2_b"], f32).reshape(1, 84)),
        "w3": jnp.asarray(w3p),
        "fb3": jnp.asarray(b3p),
    }


# --------------------------------- forward ---------------------------------

def lenet5_forward(x_nchw, w, block_b=128):
    """block_b ~128 suits v5e's 128-wide MXU; use 256 on v6e/v7x."""
    B = x_nchw.shape[0]
    x = x_nchw.reshape(B, 28, 28).astype(jnp.float32)   # Cin == 1

    bt = min(block_b, _round_up(B, 8))
    bt = max(8, (bt // 8) * 8)                           # sublane-aligned tile
    b_pad = _round_up(B, bt)
    if b_pad != B:
        x = jnp.pad(x, ((0, b_pad - B), (0, 0), (0, 0)))
    x_hm = jnp.transpose(x, (1, 0, 2))                   # (28, B_pad, 28) H-major

    weights = (w["m1"], w["b1"], w["m2"], w["b2"],
               w["w1"], w["fb1"], w["w2"], w["fb2"], w["w3"], w["fb3"])

    def resident(a):            # full-array block, resident across the batch grid
        nd = a.ndim
        return pl.BlockSpec(a.shape, lambda i, _nd=nd: (0,) * _nd)

    out = pl.pallas_call(
        lenet5_kernel,
        out_shape=jax.ShapeDtypeStruct((b_pad, 128), jnp.float32),
        grid=(b_pad // bt,),
        in_specs=[pl.BlockSpec((28, bt, 28), lambda i: (0, i, 0))]
                 + [resident(a) for a in weights],
        out_specs=pl.BlockSpec((bt, 128), lambda i: (i, 0)),
        scratch_shapes=[pltpu.VMEM((12, bt, 144), jnp.float32)],   # pooled conv1
        compiler_params=pltpu.CompilerParams(
            dimension_semantics=("parallel",),      # batch tiles split across cores
            vmem_limit_bytes=48 * 1024 * 1024),
    )(x_hm, *weights)
    return out[:B, :10]


# --------------------------- pure-JAX reference ----------------------------

def lenet5_reference(x_nchw, p):
    hp = lax.Precision.HIGHEST
    x = jnp.transpose(x_nchw, (0, 2, 3, 1))

    def conv(x, w_oihw, b):
        w = jnp.transpose(w_oihw, (2, 3, 1, 0))                  # HWIO
        y = lax.conv_general_dilated(x, w, (1, 1), "VALID",
                                     dimension_numbers=("NHWC", "HWIO", "NHWC"),
                                     precision=hp)
        return jnp.tanh(y + b)

    def pool(x):
        B, H, W, C = x.shape
        return x.reshape(B, H // 2, 2, W // 2, 2, C).mean(axis=(2, 4))

    h = pool(conv(x, p["conv1_w"], p["conv1_b"]))
    h = pool(conv(h, p["conv2_w"], p["conv2_b"]))
    h = jnp.transpose(h, (0, 3, 1, 2)).reshape(x.shape[0], 256)  # NCHW flatten
    h = jnp.tanh(jnp.dot(h, p["fc1_w"].T, precision=hp) + p["fc1_b"])
    h = jnp.tanh(jnp.dot(h, p["fc2_w"].T, precision=hp) + p["fc2_b"])
    return jnp.dot(h, p["fc3_w"].T, precision=hp) + p["fc3_b"]


# --------------------------------- main ------------------------------------

if __name__ == "__main__":
    key = jax.random.PRNGKey(0)
    ks = jax.random.split(key, 11)

    def init(k, shape, s):
        return (s * jax.random.normal(k, shape)).astype(jnp.float32)

    params = {
        "conv1_w": init(ks[0], (6, 1, 5, 5), 0.2),
        "conv1_b": init(ks[1], (6,), 0.1),
        "conv2_w": init(ks[2], (16, 6, 5, 5), 0.1),
        "conv2_b": init(ks[3], (16,), 0.1),
        "fc1_w": init(ks[4], (120, 256), 0.05),
        "fc1_b": init(ks[5], (120,), 0.05),
        "fc2_w": init(ks[6], (84, 120), 0.05),
        "fc2_b": init(ks[7], (84,), 0.05),
        "fc3_w": init(ks[8], (10, 84), 0.05),
        "fc3_b": init(ks[9], (10,), 0.05),
    }

    # LeNet-5 expects 1x28x28 inputs (28 -> conv5 24 -> pool 12 -> conv5 8 -> pool 4).
    # Batch 48 with block_b=32 exercises padding (48 -> 64) and a 2-step grid.
    x = jax.random.normal(ks[10], (48, 1, 28, 28), jnp.float32)

    prepped = prepare_params(params)              # one-time weight re-layout
    out = jax.block_until_ready(lenet5_forward(x, prepped, block_b=32))
    ref = jax.block_until_ready(lenet5_reference(x, params))

    assert out.shape == (48, 10), out.shape
    assert bool(jnp.all(jnp.isfinite(out)))
    np.testing.assert_allclose(np.asarray(out), np.asarray(ref),
                               rtol=1e-3, atol=2e-3)
    print("KERNEL_OK")
</pallas_src>

<mosaic_0001>
module attributes {stable_mosaic.version = 11 : i64} {
  func.func @lenet5_kernel(%arg0: i32, %arg1: memref<28x32x28xf32, #tpu.memory_space<vmem>>, %arg2: memref<140x144xf32, #tpu.memory_space<vmem>>, %arg3: memref<1x144xf32, #tpu.memory_space<vmem>>, %arg4: memref<720x128xf32, #tpu.memory_space<vmem>>, %arg5: memref<1x128xf32, #tpu.memory_space<vmem>>, %arg6: memref<512x120xf32, #tpu.memory_space<vmem>>, %arg7: memref<1x120xf32, #tpu.memory_space<vmem>>, %arg8: memref<120x84xf32, #tpu.memory_space<vmem>>, %arg9: memref<1x84xf32, #tpu.memory_space<vmem>>, %arg10: memref<84x128xf32, #tpu.memory_space<vmem>>, %arg11: memref<1x128xf32, #tpu.memory_space<vmem>>, %arg12: memref<32x128xf32, #tpu.memory_space<vmem>>, %arg13: memref<12x32x144xf32, #tpu.memory_space<vmem>>) attributes {dimension_semantics = [#tpu.dimension_semantics<parallel>], iteration_bounds = array<i64: 2>, scalar_prefetch = 0 : i64, scratch_operands = 1 : i64, tpu.core_type = #tpu.core_type<tc>, window_params = [{transform_indices = @transform_0, window_bounds = array<i64: 28, 32, 28>}, {pipeline_mode = #tpu.pipeline_mode<synchronous>, transform_indices = @transform_1, window_bounds = array<i64: 140, 144>}, {pipeline_mode = #tpu.pipeline_mode<synchronous>, transform_indices = @transform_2, window_bounds = array<i64: 1, 144>}, {pipeline_mode = #tpu.pipeline_mode<synchronous>, transform_indices = @transform_3, window_bounds = array<i64: 720, 128>}, {pipeline_mode = #tpu.pipeline_mode<synchronous>, transform_indices = @transform_4, window_bounds = array<i64: 1, 128>}, {pipeline_mode = #tpu.pipeline_mode<synchronous>, transform_indices = @transform_5, window_bounds = array<i64: 512, 120>}, {pipeline_mode = #tpu.pipeline_mode<synchronous>, transform_indices = @transform_6, window_bounds = array<i64: 1, 120>}, {pipeline_mode = #tpu.pipeline_mode<synchronous>, transform_indices = @transform_7, window_bounds = array<i64: 120, 84>}, {pipeline_mode = #tpu.pipeline_mode<synchronous>, transform_indices = @transform_8, window_bounds = array<i64: 1, 84>}, {pipeline_mode = #tpu.pipeline_mode<synchronous>, transform_indices = @transform_9, window_bounds = array<i64: 84, 128>}, {pipeline_mode = #tpu.pipeline_mode<synchronous>, transform_indices = @transform_10, window_bounds = array<i64: 1, 128>}, {transform_indices = @transform_11, window_bounds = array<i64: 32, 128>}]} {
    %c0 = arith.constant 0 : index
    %c0_0 = arith.constant 0 : index
    %c0_1 = arith.constant 0 : index
    %0 = vector.load %arg1[%c0, %c0_0, %c0_1] : memref<28x32x28xf32, #tpu.memory_space<vmem>>, vector<24x32x28xf32>
    %c1 = arith.constant 1 : index
    %c0_2 = arith.constant 0 : index
    %c0_3 = arith.constant 0 : index
    %1 = vector.load %arg1[%c1, %c0_2, %c0_3] : memref<28x32x28xf32, #tpu.memory_space<vmem>>, vector<24x32x28xf32>
    %c2 = arith.constant 2 : index
    %c0_4 = arith.constant 0 : index
    %c0_5 = arith.constant 0 : index
    %2 = vector.load %arg1[%c2, %c0_4, %c0_5] : memref<28x32x28xf32, #tpu.memory_space<vmem>>, vector<24x32x28xf32>
    %c3 = arith.constant 3 : index
    %c0_6 = arith.constant 0 : index
    %c0_7 = arith.constant 0 : index
    %3 = vector.load %arg1[%c3, %c0_6, %c0_7] : memref<28x32x28xf32, #tpu.memory_space<vmem>>, vector<24x32x28xf32>
    %c4 = arith.constant 4 : index
    %c0_8 = arith.constant 0 : index
    %c0_9 = arith.constant 0 : index
    %4 = vector.load %arg1[%c4, %c0_8, %c0_9] : memref<28x32x28xf32, #tpu.memory_space<vmem>>, vector<24x32x28xf32>
    %5 = tpu.concatenate %0, %1, %2, %3, %4 in 2 : vector<24x32x28xf32>, vector<24x32x28xf32>, vector<24x32x28xf32>, vector<24x32x28xf32>, vector<24x32x28xf32> -> vector<24x32x140xf32>
    %6 = vector.shape_cast %5 : vector<24x32x140xf32> to vector<768x140xf32>
    %c0_10 = arith.constant 0 : index
    %c0_11 = arith.constant 0 : index
    %7 = vector.load %arg2[%c0_10, %c0_11] : memref<140x144xf32, #tpu.memory_space<vmem>>, vector<140x144xf32>
    %cst = arith.constant dense<0.000000e+00> : vector<768x144xf32>
    %8 = tpu.matmul %6, %7, %cst {dimension_numbers = #tpu.dot_dimension_numbers<[1], [0], [0], [1], [0, 0, 1, 1], [], []>} : vector<768x140xf32>, vector<140x144xf32>, vector<768x144xf32> -> vector<768x144xf32>
    %c0_12 = arith.constant 0 : index
    %c0_13 = arith.constant 0 : index
    %9 = vector.load %arg3[%c0_12, %c0_13] : memref<1x144xf32, #tpu.memory_space<vmem>>, vector<1x144xf32>
    %10 = vector.broadcast %9 : vector<1x144xf32> to vector<768x144xf32>
    %11 = arith.addf %8, %10 : vector<768x144xf32>
    %12 = math.tanh %11 : vector<768x144xf32>
    %13 = vector.shape_cast %12 : vector<768x144xf32> to vector<24x32x144xf32>
    %14 = vector.extract_strided_slice %13 {offsets = [0, 0, 0], sizes = [1, 32, 144], strides = [1, 1, 1]} : vector<24x32x144xf32> to vector<1x32x144xf32>
    %15 = vector.shape_cast %14 : vector<1x32x144xf32> to vector<32x144xf32>
    %16 = vector.extract_strided_slice %13 {offsets = [1, 0, 0], sizes = [1, 32, 144], strides = [1, 1, 1]} : vector<24x32x144xf32> to vector<1x32x144xf32>
    %17 = vector.shape_cast %16 : vector<1x32x144xf32> to vector<32x144xf32>
    %18 = arith.addf %15, %17 : vector<32x144xf32>
    %c0_14 = arith.constant 0 : index
    %c0_15 = arith.constant 0 : index
    %c0_16 = arith.constant 0 : index
    %19 = vector.load %arg13[%c0_14, %c0_15, %c0_16] : memref<12x32x144xf32, #tpu.memory_space<vmem>>, vector<1x32x144xf32>
    %20 = vector.shape_cast %19 : vector<1x32x144xf32> to vector<32x144xf32>
    %21 = vector.shape_cast %18 : vector<32x144xf32> to vector<1x32x144xf32>
    tpu.vector_store %arg13[%c0_14, %c0_15, %c0_16], %21 {strides = array<i32>} : memref<12x32x144xf32, #tpu.memory_space<vmem>>, vector<1x32x144xf32>,
    %22 = vector.extract_strided_slice %13 {offsets = [2, 0, 0], sizes = [1, 32, 144], strides = [1, 1, 1]} : vector<24x32x144xf32> to vector<1x32x144xf32>
    %23 = vector.shape_cast %22 : vector<1x32x144xf32> to vector<32x144xf32>
    %24 = vector.extract_strided_slice %13 {offsets = [3, 0, 0], sizes = [1, 32, 144], strides = [1, 1, 1]} : vector<24x32x144xf32> to vector<1x32x144xf32>
    %25 = vector.shape_cast %24 : vector<1x32x144xf32> to vector<32x144xf32>
    %26 = arith.addf %23, %25 : vector<32x144xf32>
    %c1_17 = arith.constant 1 : index
    %c0_18 = arith.constant 0 : index
    %c0_19 = arith.constant 0 : index
    %27 = vector.load %arg13[%c1_17, %c0_18, %c0_19] : memref<12x32x144xf32, #tpu.memory_space<vmem>>, vector<1x32x144xf32>
    %28 = vector.shape_cast %27 : vector<1x32x144xf32> to vector<32x144xf32>
    %29 = vector.shape_cast %26 : vector<32x144xf32> to vector<1x32x144xf32>
    tpu.vector_store %arg13[%c1_17, %c0_18, %c0_19], %29 {strides = array<i32>} : memref<12x32x144xf32, #tpu.memory_space<vmem>>, vector<1x32x144xf32>,
    %30 = vector.extract_strided_slice %13 {offsets = [4, 0, 0], sizes = [1, 32, 144], strides = [1, 1, 1]} : vector<24x32x144xf32> to vector<1x32x144xf32>
    %31 = vector.shape_cast %30 : vector<1x32x144xf32> to vector<32x144xf32>
    %32 = vector.extract_strided_slice %13 {offsets = [5, 0, 0], sizes = [1, 32, 144], strides = [1, 1, 1]} : vector<24x32x144xf32> to vector<1x32x144xf32>
    %33 = vector.shape_cast %32 : vector<1x32x144xf32> to vector<32x144xf32>
    %34 = arith.addf %31, %33 : vector<32x144xf32>
    %c2_20 = arith.constant 2 : index
    %c0_21 = arith.constant 0 : index
    %c0_22 = arith.constant 0 : index
    %35 = vector.load %arg13[%c2_20, %c0_21, %c0_22] : memref<12x32x144xf32, #tpu.memory_space<vmem>>, vector<1x32x144xf32>
    %36 = vector.shape_cast %35 : vector<1x32x144xf32> to vector<32x144xf32>
    %37 = vector.shape_cast %34 : vector<32x144xf32> to vector<1x32x144xf32>
    tpu.vector_store %arg13[%c2_20, %c0_21, %c0_22], %37 {strides = array<i32>} : memref<12x32x144xf32, #tpu.memory_space<vmem>>, vector<1x32x144xf32>,
    %38 = vector.extract_strided_slice %13 {offsets = [6, 0, 0], sizes = [1, 32, 144], strides = [1, 1, 1]} : vector<24x32x144xf32> to vector<1x32x144xf32>
    %39 = vector.shape_cast %38 : vector<1x32x144xf32> to vector<32x144xf32>
    %40 = vector.extract_strided_slice %13 {offsets = [7, 0, 0], sizes = [1, 32, 144], strides = [1, 1, 1]} : vector<24x32x144xf32> to vector<1x32x144xf32>
    %41 = vector.shape_cast %40 : vector<1x32x144xf32> to vector<32x144xf32>
    %42 = arith.addf %39, %41 : vector<32x144xf32>
    %c3_23 = arith.constant 3 : index
    %c0_24 = arith.constant 0 : index
    %c0_25 = arith.constant 0 : index
    %43 = vector.load %arg13[%c3_23, %c0_24, %c0_25] : memref<12x32x144xf32, #tpu.memory_space<vmem>>, vector<1x32x144xf32>
    %44 = vector.shape_cast %43 : vector<1x32x144xf32> to vector<32x144xf32>
    %45 = vector.shape_cast %42 : vector<32x144xf32> to vector<1x32x144xf32>
    tpu.vector_store %arg13[%c3_23, %c0_24, %c0_25], %45 {strides = array<i32>} : memref<12x32x144xf32, #tpu.memory_space<vmem>>, vector<1x32x144xf32>,
    %46 = vector.extract_strided_slice %13 {offsets = [8, 0, 0], sizes = [1, 32, 144], strides = [1, 1, 1]} : vector<24x32x144xf32> to vector<1x32x144xf32>
    %47 = vector.shape_cast %46 : vector<1x32x144xf32> to vector<32x144xf32>
    %48 = vector.extract_strided_slice %13 {offsets = [9, 0, 0], sizes = [1, 32, 144], strides = [1, 1, 1]} : vector<24x32x144xf32> to vector<1x32x144xf32>
    %49 = vector.shape_cast %48 : vector<1x32x144xf32> to vector<32x144xf32>
    %50 = arith.addf %47, %49 : vector<32x144xf32>
    %c4_26 = arith.constant 4 : index
    %c0_27 = arith.constant 0 : index
    %c0_28 = arith.constant 0 : index
    %51 = vector.load %arg13[%c4_26, %c0_27, %c0_28] : memref<12x32x144xf32, #tpu.memory_space<vmem>>, vector<1x32x144xf32>
    %52 = vector.shape_cast %51 : vector<1x32x144xf32> to vector<32x144xf32>
    %53 = vector.shape_cast %50 : vector<32x144xf32> to vector<1x32x144xf32>
    tpu.vector_store %arg13[%c4_26, %c0_27, %c0_28], %53 {strides = array<i32>} : memref<12x32x144xf32, #tpu.memory_space<vmem>>, vector<1x32x144xf32>,
    %54 = vector.extract_strided_slice %13 {offsets = [10, 0, 0], sizes = [1, 32, 144], strides = [1, 1, 1]} : vector<24x32x144xf32> to vector<1x32x144xf32>
    %55 = vector.shape_cast %54 : vector<1x32x144xf32> to vector<32x144xf32>
    %56 = vector.extract_strided_slice %13 {offsets = [11, 0, 0], sizes = [1, 32, 144], strides = [1, 1, 1]} : vector<24x32x144xf32> to vector<1x32x144xf32>
    %57 = vector.shape_cast %56 : vector<1x32x144xf32> to vector<32x144xf32>
    %58 = arith.addf %55, %57 : vector<32x144xf32>
    %c5 = arith.constant 5 : index
    %c0_29 = arith.constant 0 : index
    %c0_30 = arith.constant 0 : index
    %59 = vector.load %arg13[%c5, %c0_29, %c0_30] : memref<12x32x144xf32, #tpu.memory_space<vmem>>, vector<1x32x144xf32>
    %60 = vector.shape_cast %59 : vector<1x32x144xf32> to vector<32x144xf32>
    %61 = vector.shape_cast %58 : vector<32x144xf32> to vector<1x32x144xf32>
    tpu.vector_store %arg13[%c5, %c0_29, %c0_30], %61 {strides = array<i32>} : memref<12x32x144xf32, #tpu.memory_space<vmem>>, vector<1x32x144xf32>,
    %62 = vector.extract_strided_slice %13 {offsets = [12, 0, 0], sizes = [1, 32, 144], strides = [1, 1, 1]} : vector<24x32x144xf32> to vector<1x32x144xf32>
    %63 = vector.shape_cast %62 : vector<1x32x144xf32> to vector<32x144xf32>
    %64 = vector.extract_strided_slice %13 {offsets = [13, 0, 0], sizes = [1, 32, 144], strides = [1, 1, 1]} : vector<24x32x144xf32> to vector<1x32x144xf32>
    %65 = vector.shape_cast %64 : vector<1x32x144xf32> to vector<32x144xf32>
    %66 = arith.addf %63, %65 : vector<32x144xf32>
    %c6 = arith.constant 6 : index
    %c0_31 = arith.constant 0 : index
    %c0_32 = arith.constant 0 : index
    %67 = vector.load %arg13[%c6, %c0_31, %c0_32] : memref<12x32x144xf32, #tpu.memory_space<vmem>>, vector<1x32x144xf32>
    %68 = vector.shape_cast %67 : vector<1x32x144xf32> to vector<32x144xf32>
    %69 = vector.shape_cast %66 : vector<32x144xf32> to vector<1x32x144xf32>
    tpu.vector_store %arg13[%c6, %c0_31, %c0_32], %69 {strides = array<i32>} : memref<12x32x144xf32, #tpu.memory_space<vmem>>, vector<1x32x144xf32>,
    %70 = vector.extract_strided_slice %13 {offsets = [14, 0, 0], sizes = [1, 32, 144], strides = [1, 1, 1]} : vector<24x32x144xf32> to vector<1x32x144xf32>
    %71 = vector.shape_cast %70 : vector<1x32x144xf32> to vector<32x144xf32>
    %72 = vector.extract_strided_slice %13 {offsets = [15, 0, 0], sizes = [1, 32, 144], strides = [1, 1, 1]} : vector<24x32x144xf32> to vector<1x32x144xf32>
    %73 = vector.shape_cast %72 : vector<1x32x144xf32> to vector<32x144xf32>
    %74 = arith.addf %71, %73 : vector<32x144xf32>
    %c7 = arith.constant 7 : index
    %c0_33 = arith.constant 0 : index
    %c0_34 = arith.constant 0 : index
    %75 = vector.load %arg13[%c7, %c0_33, %c0_34] : memref<12x32x144xf32, #tpu.memory_space<vmem>>, vector<1x32x144xf32>
    %76 = vector.shape_cast %75 : vector<1x32x144xf32> to vector<32x144xf32>
    %77 = vector.shape_cast %74 : vector<32x144xf32> to vector<1x32x144xf32>
    tpu.vector_store %arg13[%c7, %c0_33, %c0_34], %77 {strides = array<i32>} : memref<12x32x144xf32, #tpu.memory_space<vmem>>, vector<1x32x144xf32>,
    %78 = vector.extract_strided_slice %13 {offsets = [16, 0, 0], sizes = [1, 32, 144], strides = [1, 1, 1]} : vector<24x32x144xf32> to vector<1x32x144xf32>
    %79 = vector.shape_cast %78 : vector<1x32x144xf32> to vector<32x144xf32>
    %80 = vector.extract_strided_slice %13 {offsets = [17, 0, 0], sizes = [1, 32, 144], strides = [1, 1, 1]} : vector<24x32x144xf32> to vector<1x32x144xf32>
    %81 = vector.shape_cast %80 : vector<1x32x144xf32> to vector<32x144xf32>
    %82 = arith.addf %79, %81 : vector<32x144xf32>
    %c8 = arith.constant 8 : index
    %c0_35 = arith.constant 0 : index
    %c0_36 = arith.constant 0 : index
    %83 = vector.load %arg13[%c8, %c0_35, %c0_36] : memref<12x32x144xf32, #tpu.memory_space<vmem>>, vector<1x32x144xf32>
    %84 = vector.shape_cast %83 : vector<1x32x144xf32> to vector<32x144xf32>
    %85 = vector.shape_cast %82 : vector<32x144xf32> to vector<1x32x144xf32>
    tpu.vector_store %arg13[%c8, %c0_35, %c0_36], %85 {strides = array<i32>} : memref<12x32x144xf32, #tpu.memory_space<vmem>>, vector<1x32x144xf32>,
    %86 = vector.extract_strided_slice %13 {offsets = [18, 0, 0], sizes = [1, 32, 144], strides = [1, 1, 1]} : vector<24x32x144xf32> to vector<1x32x144xf32>
    %87 = vector.shape_cast %86 : vector<1x32x144xf32> to vector<32x144xf32>
    %88 = vector.extract_strided_slice %13 {offsets = [19, 0, 0], sizes = [1, 32, 144], strides = [1, 1, 1]} : vector<24x32x144xf32> to vector<1x32x144xf32>
    %89 = vector.shape_cast %88 : vector<1x32x144xf32> to vector<32x144xf32>
    %90 = arith.addf %87, %89 : vector<32x144xf32>
    %c9 = arith.constant 9 : index
    %c0_37 = arith.constant 0 : index
    %c0_38 = arith.constant 0 : index
    %91 = vector.load %arg13[%c9, %c0_37, %c0_38] : memref<12x32x144xf32, #tpu.memory_space<vmem>>, vector<1x32x144xf32>
    %92 = vector.shape_cast %91 : vector<1x32x144xf32> to vector<32x144xf32>
    %93 = vector.shape_cast %90 : vector<32x144xf32> to vector<1x32x144xf32>
    tpu.vector_store %arg13[%c9, %c0_37, %c0_38], %93 {strides = array<i32>} : memref<12x32x144xf32, #tpu.memory_space<vmem>>, vector<1x32x144xf32>,
    %94 = vector.extract_strided_slice %13 {offsets = [20, 0, 0], sizes = [1, 32, 144], strides = [1, 1, 1]} : vector<24x32x144xf32> to vector<1x32x144xf32>
    %95 = vector.shape_cast %94 : vector<1x32x144xf32> to vector<32x144xf32>
    %96 = vector.extract_strided_slice %13 {offsets = [21, 0, 0], sizes = [1, 32, 144], strides = [1, 1, 1]} : vector<24x32x144xf32> to vector<1x32x144xf32>
    %97 = vector.shape_cast %96 : vector<1x32x144xf32> to vector<32x144xf32>
    %98 = arith.addf %95, %97 : vector<32x144xf32>
    %c10 = arith.constant 10 : index
    %c0_39 = arith.constant 0 : index
    %c0_40 = arith.constant 0 : index
    %99 = vector.load %arg13[%c10, %c0_39, %c0_40] : memref<12x32x144xf32, #tpu.memory_space<vmem>>, vector<1x32x144xf32>
    %100 = vector.shape_cast %99 : vector<1x32x144xf32> to vector<32x144xf32>
    %101 = vector.shape_cast %98 : vector<32x144xf32> to vector<1x32x144xf32>
    tpu.vector_store %arg13[%c10, %c0_39, %c0_40], %101 {strides = array<i32>} : memref<12x32x144xf32, #tpu.memory_space<vmem>>, vector<1x32x144xf32>,
    %102 = vector.extract_strided_slice %13 {offsets = [22, 0, 0], sizes = [1, 32, 144], strides = [1, 1, 1]} : vector<24x32x144xf32> to vector<1x32x144xf32>
    %103 = vector.shape_cast %102 : vector<1x32x144xf32> to vector<32x144xf32>
    %104 = vector.extract_strided_slice %13 {offsets = [23, 0, 0], sizes = [1, 32, 144], strides = [1, 1, 1]} : vector<24x32x144xf32> to vector<1x32x144xf32>
    %105 = vector.shape_cast %104 : vector<1x32x144xf32> to vector<32x144xf32>
    %106 = arith.addf %103, %105 : vector<32x144xf32>
    %c11 = arith.constant 11 : index
    %c0_41 = arith.constant 0 : index
    %c0_42 = arith.constant 0 : index
    %107 = vector.load %arg13[%c11, %c0_41, %c0_42] : memref<12x32x144xf32, #tpu.memory_space<vmem>>, vector<1x32x144xf32>
    %108 = vector.shape_cast %107 : vector<1x32x144xf32> to vector<32x144xf32>
    %109 = vector.shape_cast %106 : vector<32x144xf32> to vector<1x32x144xf32>
    tpu.vector_store %arg13[%c11, %c0_41, %c0_42], %109 {strides = array<i32>} : memref<12x32x144xf32, #tpu.memory_space<vmem>>, vector<1x32x144xf32>,
    %c0_43 = arith.constant 0 : index
    %c0_44 = arith.constant 0 : index
    %c0_45 = arith.constant 0 : index
    %110 = vector.load %arg13[%c0_43, %c0_44, %c0_45] : memref<12x32x144xf32, #tpu.memory_space<vmem>>, vector<8x32x144xf32>
    %c1_46 = arith.constant 1 : index
    %c0_47 = arith.constant 0 : index
    %c0_48 = arith.constant 0 : index
    %111 = vector.load %arg13[%c1_46, %c0_47, %c0_48] : memref<12x32x144xf32, #tpu.memory_space<vmem>>, vector<8x32x144xf32>
    %c2_49 = arith.constant 2 : index
    %c0_50 = arith.constant 0 : index
    %c0_51 = arith.constant 0 : index
    %112 = vector.load %arg13[%c2_49, %c0_50, %c0_51] : memref<12x32x144xf32, #tpu.memory_space<vmem>>, vector<8x32x144xf32>
    %c3_52 = arith.constant 3 : index
    %c0_53 = arith.constant 0 : index
    %c0_54 = arith.constant 0 : index
    %113 = vector.load %arg13[%c3_52, %c0_53, %c0_54] : memref<12x32x144xf32, #tpu.memory_space<vmem>>, vector<8x32x144xf32>
    %c4_55 = arith.constant 4 : index
    %c0_56 = arith.constant 0 : index
    %c0_57 = arith.constant 0 : index
    %114 = vector.load %arg13[%c4_55, %c0_56, %c0_57] : memref<12x32x144xf32, #tpu.memory_space<vmem>>, vector<8x32x144xf32>
    %115 = tpu.concatenate %110, %111, %112, %113, %114 in 2 : vector<8x32x144xf32>, vector<8x32x144xf32>, vector<8x32x144xf32>, vector<8x32x144xf32>, vector<8x32x144xf32> -> vector<8x32x720xf32>
    %116 = vector.shape_cast %115 : vector<8x32x720xf32> to vector<256x720xf32>
    %c0_58 = arith.constant 0 : index
    %c0_59 = arith.constant 0 : index
    %117 = vector.load %arg4[%c0_58, %c0_59] : memref<720x128xf32, #tpu.memory_space<vmem>>, vector<720x128xf32>
    %cst_60 = arith.constant dense<0.000000e+00> : vector<256x128xf32>
    %118 = tpu.matmul %116, %117, %cst_60 {dimension_numbers = #tpu.dot_dimension_numbers<[1], [0], [0], [1], [0, 0, 1, 1], [], []>} : vector<256x720xf32>, vector<720x128xf32>, vector<256x128xf32> -> vector<256x128xf32>
    %c0_61 = arith.constant 0 : index
    %c0_62 = arith.constant 0 : index
    %119 = vector.load %arg5[%c0_61, %c0_62] : memref<1x128xf32, #tpu.memory_space<vmem>>, vector<1x128xf32>
    %120 = vector.broadcast %119 : vector<1x128xf32> to vector<256x128xf32>
    %121 = arith.addf %118, %120 : vector<256x128xf32>
    %122 = math.tanh %121 : vector<256x128xf32>
    %123 = vector.shape_cast %122 : vector<256x128xf32> to vector<8x32x128xf32>
    %124 = vector.extract_strided_slice %123 {offsets = [0, 0, 0], sizes = [1, 32, 128], strides = [1, 1, 1]} : vector<8x32x128xf32> to vector<1x32x128xf32>
    %125 = vector.shape_cast %124 : vector<1x32x128xf32> to vector<32x128xf32>
    %126 = vector.extract_strided_slice %123 {offsets = [1, 0, 0], sizes = [1, 32, 128], strides = [1, 1, 1]} : vector<8x32x128xf32> to vector<1x32x128xf32>
    %127 = vector.shape_cast %126 : vector<1x32x128xf32> to vector<32x128xf32>
    %128 = arith.addf %125, %127 : vector<32x128xf32>
    %129 = vector.extract_strided_slice %123 {offsets = [2, 0, 0], sizes = [1, 32, 128], strides = [1, 1, 1]} : vector<8x32x128xf32> to vector<1x32x128xf32>
    %130 = vector.shape_cast %129 : vector<1x32x128xf32> to vector<32x128xf32>
    %131 = vector.extract_strided_slice %123 {offsets = [3, 0, 0], sizes = [1, 32, 128], strides = [1, 1, 1]} : vector<8x32x128xf32> to vector<1x32x128xf32>
    %132 = vector.shape_cast %131 : vector<1x32x128xf32> to vector<32x128xf32>
    %133 = arith.addf %130, %132 : vector<32x128xf32>
    %134 = vector.extract_strided_slice %123 {offsets = [4, 0, 0], sizes = [1, 32, 128], strides = [1, 1, 1]} : vector<8x32x128xf32> to vector<1x32x128xf32>
    %135 = vector.shape_cast %134 : vector<1x32x128xf32> to vector<32x128xf32>
    %136 = vector.extract_strided_slice %123 {offsets = [5, 0, 0], sizes = [1, 32, 128], strides = [1, 1, 1]} : vector<8x32x128xf32> to vector<1x32x128xf32>
    %137 = vector.shape_cast %136 : vector<1x32x128xf32> to vector<32x128xf32>
    %138 = arith.addf %135, %137 : vector<32x128xf32>
    %139 = vector.extract_strided_slice %123 {offsets = [6, 0, 0], sizes = [1, 32, 128], strides = [1, 1, 1]} : vector<8x32x128xf32> to vector<1x32x128xf32>
    %140 = vector.shape_cast %139 : vector<1x32x128xf32> to vector<32x128xf32>
    %141 = vector.extract_strided_slice %123 {offsets = [7, 0, 0], sizes = [1, 32, 128], strides = [1, 1, 1]} : vector<8x32x128xf32> to vector<1x32x128xf32>
    %142 = vector.shape_cast %141 : vector<1x32x128xf32> to vector<32x128xf32>
    %143 = arith.addf %140, %142 : vector<32x128xf32>
    %144 = tpu.concatenate %128, %133, %138, %143 in 1 : vector<32x128xf32>, vector<32x128xf32>, vector<32x128xf32>, vector<32x128xf32> -> vector<32x512xf32>
    %c0_63 = arith.constant 0 : index
    %c0_64 = arith.constant 0 : index
    %145 = vector.load %arg6[%c0_63, %c0_64] : memref<512x120xf32, #tpu.memory_space<vmem>>, vector<512x120xf32>
    %cst_65 = arith.constant dense<0.000000e+00> : vector<32x120xf32>
    %146 = tpu.matmul %144, %145, %cst_65 {dimension_numbers = #tpu.dot_dimension_numbers<[1], [0], [0], [1], [0, 0, 1, 1], [], []>} : vector<32x512xf32>, vector<512x120xf32>, vector<32x120xf32> -> vector<32x120xf32>
    %c0_66 = arith.constant 0 : index
    %c0_67 = arith.constant 0 : index
    %147 = vector.load %arg7[%c0_66, %c0_67] : memref<1x120xf32, #tpu.memory_space<vmem>>, vector<1x120xf32>
    %148 = vector.broadcast %147 : vector<1x120xf32> to vector<32x120xf32>
    %149 = arith.addf %146, %148 : vector<32x120xf32>
    %150 = math.tanh %149 : vector<32x120xf32>
    %c0_68 = arith.constant 0 : index
    %c0_69 = arith.constant 0 : index
    %151 = vector.load %arg8[%c0_68, %c0_69] : memref<120x84xf32, #tpu.memory_space<vmem>>, vector<120x84xf32>
    %cst_70 = arith.constant dense<0.000000e+00> : vector<32x84xf32>
    %152 = tpu.matmul %150, %151, %cst_70 {dimension_numbers = #tpu.dot_dimension_numbers<[1], [0], [0], [1], [0, 0, 1, 1], [], []>} : vector<32x120xf32>, vector<120x84xf32>, vector<32x84xf32> -> vector<32x84xf32>
    %c0_71 = arith.constant 0 : index
    %c0_72 = arith.constant 0 : index
    %153 = vector.load %arg9[%c0_71, %c0_72] : memref<1x84xf32, #tpu.memory_space<vmem>>, vector<1x84xf32>
    %154 = vector.broadcast %153 : vector<1x84xf32> to vector<32x84xf32>
    %155 = arith.addf %152, %154 : vector<32x84xf32>
    %156 = math.tanh %155 : vector<32x84xf32>
    %c0_73 = arith.constant 0 : index
    %c0_74 = arith.constant 0 : index
    %157 = vector.load %arg10[%c0_73, %c0_74] : memref<84x128xf32, #tpu.memory_space<vmem>>, vector<84x128xf32>
    %cst_75 = arith.constant dense<0.000000e+00> : vector<32x128xf32>
    %158 = tpu.matmul %156, %157, %cst_75 {dimension_numbers = #tpu.dot_dimension_numbers<[1], [0], [0], [1], [0, 0, 1, 1], [], []>} : vector<32x84xf32>, vector<84x128xf32>, vector<32x128xf32> -> vector<32x128xf32>
    %c0_76 = arith.constant 0 : index
    %c0_77 = arith.constant 0 : index
    %159 = vector.load %arg11[%c0_76, %c0_77] : memref<1x128xf32, #tpu.memory_space<vmem>>, vector<1x128xf32>
    %160 = vector.broadcast %159 : vector<1x128xf32> to vector<32x128xf32>
    %161 = arith.addf %158, %160 : vector<32x128xf32>
    %c0_78 = arith.constant 0 : index
    %c0_79 = arith.constant 0 : index
    %162 = vector.load %arg12[%c0_78, %c0_79] : memref<32x128xf32, #tpu.memory_space<vmem>>, vector<32x128xf32>
    tpu.vector_store %arg12[%c0_78, %c0_79], %161 {strides = array<i32>} : memref<32x128xf32, #tpu.memory_space<vmem>>, vector<32x128xf32>,
    return
  }
  func.func @transform_0(%arg0: i32) -> (i32, i32, i32) {
    %c0_i32 = arith.constant 0 : i32
    %c0_i32_0 = arith.constant 0 : i32
    %c0_i32_1 = arith.constant 0 : i32
    return %c0_i32, %arg0, %c0_i32_0 : i32, i32, i32
  }
  func.func @transform_1(%arg0: i32) -> (i32, i32) {
    %c0_i32 = arith.constant 0 : i32
    %c0_i32_0 = arith.constant 0 : i32
    %c0_i32_1 = arith.constant 0 : i32
    return %c0_i32, %c0_i32_0 : i32, i32
  }
  func.func @transform_2(%arg0: i32) -> (i32, i32) {
    %c0_i32 = arith.constant 0 : i32
    %c0_i32_0 = arith.constant 0 : i32
    %c0_i32_1 = arith.constant 0 : i32
    return %c0_i32, %c0_i32_0 : i32, i32
  }
  func.func @transform_3(%arg0: i32) -> (i32, i32) {
    %c0_i32 = arith.constant 0 : i32
    %c0_i32_0 = arith.constant 0 : i32
    %c0_i32_1 = arith.constant 0 : i32
    return %c0_i32, %c0_i32_0 : i32, i32
  }
  func.func @transform_4(%arg0: i32) -> (i32, i32) {
    %c0_i32 = arith.constant 0 : i32
    %c0_i32_0 = arith.constant 0 : i32
    %c0_i32_1 = arith.constant 0 : i32
    return %c0_i32, %c0_i32_0 : i32, i32
  }
  func.func @transform_5(%arg0: i32) -> (i32, i32) {
    %c0_i32 = arith.constant 0 : i32
    %c0_i32_0 = arith.constant 0 : i32
    %c0_i32_1 = arith.constant 0 : i32
    return %c0_i32, %c0_i32_0 : i32, i32
  }
  func.func @transform_6(%arg0: i32) -> (i32, i32) {
    %c0_i32 = arith.constant 0 : i32
    %c0_i32_0 = arith.constant 0 : i32
    %c0_i32_1 = arith.constant 0 : i32
    return %c0_i32, %c0_i32_0 : i32, i32
  }
  func.func @transform_7(%arg0: i32) -> (i32, i32) {
    %c0_i32 = arith.constant 0 : i32
    %c0_i32_0 = arith.constant 0 : i32
    %c0_i32_1 = arith.constant 0 : i32
    return %c0_i32, %c0_i32_0 : i32, i32
  }
  func.func @transform_8(%arg0: i32) -> (i32, i32) {
    %c0_i32 = arith.constant 0 : i32
    %c0_i32_0 = arith.constant 0 : i32
    %c0_i32_1 = arith.constant 0 : i32
    return %c0_i32, %c0_i32_0 : i32, i32
  }
  func.func @transform_9(%arg0: i32) -> (i32, i32) {
    %c0_i32 = arith.constant 0 : i32
    %c0_i32_0 = arith.constant 0 : i32
    %c0_i32_1 = arith.constant 0 : i32
    return %c0_i32, %c0_i32_0 : i32, i32
  }
  func.func @transform_10(%arg0: i32) -> (i32, i32) {
    %c0_i32 = arith.constant 0 : i32
    %c0_i32_0 = arith.constant 0 : i32
    %c0_i32_1 = arith.constant 0 : i32
    return %c0_i32, %c0_i32_0 : i32, i32
  }
  func.func @transform_11(%arg0: i32) -> (i32, i32) {
    %c0_i32 = arith.constant 0 : i32
    %c0_i32_0 = arith.constant 0 : i32
    return %arg0, %c0_i32 : i32, i32
  }
}

</mosaic_0001>

<bundles_post_ra>
// kernel: tpu_custom_call.1
= control target key start
LH: loop header
LB: loop body
LE: loop exit
PB: predicated region body
PF: predicated region fallthrough
CT: control target
= control target key end

     0   :  { %s15036_s0 = inlined_call_operand.vmem [shape: f32[28,64,28], index: 0, kind: input, shape index: {}]   ;;  %s15037_s1 = inlined_call_operand.vmem [shape: f32[140,144], index: 1, kind: input, shape index: {}]   ;;  %s15038_s2 = inlined_call_operand.vmem [shape: f32[1,144], index: 2, kind: input, shape index: {}]   ;;  %s15039_s3 = inlined_call_operand.vmem [shape: f32[720,128], index: 3, kind: input, shape index: {}]   ;;  %s15040_s4 = inlined_call_operand.vmem [shape: f32[1,128], index: 4, kind: input, shape index: {}]   ;;  %s15041_s5 = inlined_call_operand.vmem [shape: f32[512,120], index: 5, kind: input, shape index: {}]   ;;  %s15042_s6 = inlined_call_operand.vmem [shape: f32[1,120], index: 6, kind: input, shape index: {}]   ;;  %s15043_s7 = inlined_call_operand.vmem [shape: f32[120,84], index: 7, kind: input, shape index: {}]   ;;  %s15044_s8 = inlined_call_operand.vmem [shape: f32[1,84], index: 8, kind: input, shape index: {}]   ;;  %s15045_s9 = inlined_call_operand.vmem [shape: f32[84,128], index: 9, kind: input, shape index: {}]   ;;  %s15046_s10 = inlined_call_operand.vmem [shape: f32[1,128], index: 10, kind: input, shape index: {}]   ;;  %s15047_s11 = inlined_call_operand.hbm [shape: f32[64,128], index: 11, kind: output, shape index: {}]  }
   0x1   :  { %15136 = sst [smem:[#allocation19_spill]] %s15036_s0 }
   0x2   :  { %16 = vsyncpa [#allocation5], 0 }
   0x3   :  { %18 = vsyncpa [#allocation5 + $0x1], 0  ;;  %s10627_s17 = smov 0   ;;  %s10629_s18 = smov 0  }
   0x4   :  { %s10631_s19 = smov 0   ;;  %s10633_s20 = smov 0  }
   0x5 LB: > { %15137 = sst [smem:[#allocation7_spill]] %s10548_s19  ;;  %s15048_s21 = sadd.s32 4294967295, %s10552_s20   ;;  %s10552_s20 = sphi %s10633_s20, %s15233_s20   ;;  %s10548_s19 = sphi %s10631_s19, %s15230_s19   ;;  %s10544_s18 = sphi %s10629_s18, %s15232_s18   ;;  %s10540_s17 = sphi %s10627_s17, %s15231_s17  }
   0x6   : > { %s7588_s22 = sadd.s32 4294967294, %s10552_s20   ;;  %s10650_s23 = sadd.s32 1, %s10552_s20  }
   0x7   : > { %s31_s24 = sadd.s32 1, %s10548_s19  ;;  %s28_s25 = ssub.s32 %s10552_s20, %s10650_s23 }
   0x8   : > { %p38_p0 = scmp.ne.s32.totalorder %s10548_s19, %s10544_s18  ;;  %p29_p1 = scmp.eq.s32.totalorder %s28_s25, 0 }
   0x9   : > { %p39_p2 = scmp.eq.s32.totalorder %s10552_s20, 0  ;;  %p278_p3 = scmp.eq.s32.totalorder %s15048_s21, 1 }
   0xa   : > { %p283_p4 = scmp.ne.s32.totalorder %s10544_s18, %s10540_s17  ;;  %p284_p7 = scmp.eq.s32.totalorder %s7588_s22, 1 }
   0xb   : > { %s10663_s26 = scalar_select %p29_p1, %s10548_s19, %s31_s24  }
   0xc   : > { %p40_p5 = por %p39_p2, %p38_p0  ;;  %p10665_p6 = por %p278_p3, %p38_p0 }
   0xd   : > { %15138 = sst [smem:[#allocation8_spill]] %s10663_s26  ;;  %p10669_p8 = por %p284_p7, %p283_p4 }
   0xe   : > { %p7590_p9 = scmp.ge.s32.totalorder %s10552_s20, 2 }
  0x10   : > { %330 = sbr.rel (%p7590_p9) target bundleno = 90 (0x5a), region = 56 }
  0x17   : > { %333 = sbr.rel (!%p40_p5) target bundleno = 90 (0x5a), region = 60  ;;  %s335_s29 = sand.u32 (%p40_p5), 1, %s10548_s19  }
  0x18   : > { %s8127_s30 = sshll.u32 (%p40_p5), %s10552_s20, 5  ;;  %s8772_s12 = smul.u32 (%p40_p5), 896, %s335_s29 }
  0x19   : > { %s15141_s0 = sld [smem:[#allocation19_spill]] (%p40_p5) }
  0x1a   : > { %s10689_s16 = scalar_lea.vmem (%p40_p5), [#allocation3], %s8772_s12 }
  0x1f   : > { %s10681_s15 = scalar_lea.vmem %s15141_s0, %s8127_s30 }
  0x20   : > { %v590_v0 = vld [vmem:[%s10681_s15] sm:$0xff]  ;;  %v592_v1 = vld [vmem:[%s10681_s15 + $0x8] sm:$0xff]  ;;  %v594_v2 = vld [vmem:[%s10681_s15 + $0x10] sm:$0xff] }
  0x21   : > { %v596_v3 = vld [vmem:[%s10681_s15 + $0x18] sm:$0xff]  ;;  %v598_v4 = vld [vmem:[%s10681_s15 + $0x40] sm:$0xff]  ;;  %v600_v5 = vld [vmem:[%s10681_s15 + $0x48] sm:$0xff]  ;;  %591 = vst [vmem:[%s10689_s16] sm:$0xff] %v590_v0 }
  0x22   : > { %593 = vst [vmem:[%s10689_s16 + $0x8] sm:$0xff] %v592_v1  ;;  %595 = vst [vmem:[%s10689_s16 + $0x10] sm:$0xff] %v594_v2  ;;  %v602_v6 = vld [vmem:[%s10681_s15 + $0x50] sm:$0xff]  ;;  %v604_v7 = vld [vmem:[%s10681_s15 + $0x58] sm:$0xff] }
  0x23   : > { %597 = vst [vmem:[%s10689_s16 + $0x18] sm:$0xff] %v596_v3  ;;  %599 = vst [vmem:[%s10689_s16 + $0x20] sm:$0xff] %v598_v4  ;;  %v606_v8 = vld [vmem:[%s10681_s15 + $0x80] sm:$0xff]  ;;  %v608_v9 = vld [vmem:[%s10681_s15 + $0x88] sm:$0xff] }
  0x24   : > { %601 = vst [vmem:[%s10689_s16 + $0x28] sm:$0xff] %v600_v5  ;;  %603 = vst [vmem:[%s10689_s16 + $0x30] sm:$0xff] %v602_v6  ;;  %v610_v10 = vld [vmem:[%s10681_s15 + $0x90] sm:$0xff]  ;;  %v612_v11 = vld [vmem:[%s10681_s15 + $0x98] sm:$0xff] }
  0x25   : > { %605 = vst [vmem:[%s10689_s16 + $0x38] sm:$0xff] %v604_v7  ;;  %607 = vst [vmem:[%s10689_s16 + $0x40] sm:$0xff] %v606_v8  ;;  %v614_v12 = vld [vmem:[%s10681_s15 + $0xc0] sm:$0xff]  ;;  %v616_v13 = vld [vmem:[%s10681_s15 + $0xc8] sm:$0xff] }
  0x26   : > { %609 = vst [vmem:[%s10689_s16 + $0x48] sm:$0xff] %v608_v9  ;;  %611 = vst [vmem:[%s10689_s16 + $0x50] sm:$0xff] %v610_v10  ;;  %v618_v14 = vld [vmem:[%s10681_s15 + $0xd0] sm:$0xff]  ;;  %v620_v15 = vld [vmem:[%s10681_s15 + $0xd8] sm:$0xff] }
  0x27   : > { %613 = vst [vmem:[%s10689_s16 + $0x58] sm:$0xff] %v612_v11  ;;  %615 = vst [vmem:[%s10689_s16 + $0x60] sm:$0xff] %v614_v12  ;;  %v622_v16 = vld [vmem:[%s10681_s15 + $0x100] sm:$0xff]  ;;  %v624_v17 = vld [vmem:[%s10681_s15 + $0x108] sm:$0xff] }
  0x28   : > { %617 = vst [vmem:[%s10689_s16 + $0x68] sm:$0xff] %v616_v13  ;;  %619 = vst [vmem:[%s10689_s16 + $0x70] sm:$0xff] %v618_v14  ;;  %v626_v18 = vld [vmem:[%s10681_s15 + $0x110] sm:$0xff]  ;;  %v628_v19 = vld [vmem:[%s10681_s15 + $0x118] sm:$0xff] }
  0x29   : > { %621 = vst [vmem:[%s10689_s16 + $0x78] sm:$0xff] %v620_v15  ;;  %623 = vst [vmem:[%s10689_s16 + $0x80] sm:$0xff] %v622_v16  ;;  %v630_v20 = vld [vmem:[%s10681_s15 + $0x140] sm:$0xff]  ;;  %v632_v21 = vld [vmem:[%s10681_s15 + $0x148] sm:$0xff] }
  0x2a   : > { %625 = vst [vmem:[%s10689_s16 + $0x88] sm:$0xff] %v624_v17  ;;  %627 = vst [vmem:[%s10689_s16 + $0x90] sm:$0xff] %v626_v18  ;;  %v634_v22 = vld [vmem:[%s10681_s15 + $0x150] sm:$0xff]  ;;  %v636_v23 = vld [vmem:[%s10681_s15 + $0x158] sm:$0xff] }
  0x2b   : > { %629 = vst [vmem:[%s10689_s16 + $0x98] sm:$0xff] %v628_v19  ;;  %631 = vst [vmem:[%s10689_s16 + $0xa0] sm:$0xff] %v630_v20  ;;  %v638_v24 = vld [vmem:[%s10681_s15 + $0x180] sm:$0xff]  ;;  %v640_v25 = vld [vmem:[%s10681_s15 + $0x188] sm:$0xff] }
  0x2c   : > { %633 = vst [vmem:[%s10689_s16 + $0xa8] sm:$0xff] %v632_v21  ;;  %635 = vst [vmem:[%s10689_s16 + $0xb0] sm:$0xff] %v634_v22  ;;  %v642_v26 = vld [vmem:[%s10681_s15 + $0x190] sm:$0xff]  ;;  %v644_v27 = vld [vmem:[%s10681_s15 + $0x198] sm:$0xff] }
  0x2d   : > { %637 = vst [vmem:[%s10689_s16 + $0xb8] sm:$0xff] %v636_v23  ;;  %639 = vst [vmem:[%s10689_s16 + $0xc0] sm:$0xff] %v638_v24  ;;  %v646_v28 = vld [vmem:[%s10681_s15 + $0x1c0] sm:$0xff]  ;;  %v648_v29 = vld [vmem:[%s10681_s15 + $0x1c8] sm:$0xff] }
  0x2e   : > { %641 = vst [vmem:[%s10689_s16 + $0xc8] sm:$0xff] %v640_v25  ;;  %643 = vst [vmem:[%s10689_s16 + $0xd0] sm:$0xff] %v642_v26  ;;  %v650_v30 = vld [vmem:[%s10681_s15 + $0x1d0] sm:$0xff]  ;;  %v652_v31 = vld [vmem:[%s10681_s15 + $0x1d8] sm:$0xff] }
  0x2f   : > { %645 = vst [vmem:[%s10689_s16 + $0xd8] sm:$0xff] %v644_v27  ;;  %647 = vst [vmem:[%s10689_s16 + $0xe0] sm:$0xff] %v646_v28  ;;  %v654_v32 = vld [vmem:[%s10681_s15 + $0x200] sm:$0xff]  ;;  %v656_v33 = vld [vmem:[%s10681_s15 + $0x208] sm:$0xff] }
  0x30   : > { %649 = vst [vmem:[%s10689_s16 + $0xe8] sm:$0xff] %v648_v29  ;;  %651 = vst [vmem:[%s10689_s16 + $0xf0] sm:$0xff] %v650_v30  ;;  %v658_v34 = vld [vmem:[%s10681_s15 + $0x210] sm:$0xff]  ;;  %v660_v35 = vld [vmem:[%s10681_s15 + $0x218] sm:$0xff] }
  0x31   : > { %653 = vst [vmem:[%s10689_s16 + $0xf8] sm:$0xff] %v652_v31  ;;  %655 = vst [vmem:[%s10689_s16 + $0x100] sm:$0xff] %v654_v32  ;;  %v662_v36 = vld [vmem:[%s10681_s15 + $0x240] sm:$0xff]  ;;  %v664_v37 = vld [vmem:[%s10681_s15 + $0x248] sm:$0xff] }
  0x32   : > { %657 = vst [vmem:[%s10689_s16 + $0x108] sm:$0xff] %v656_v33  ;;  %659 = vst [vmem:[%s10689_s16 + $0x110] sm:$0xff] %v658_v34  ;;  %v666_v38 = vld [vmem:[%s10681_s15 + $0x250] sm:$0xff]  ;;  %v668_v39 = vld [vmem:[%s10681_s15 + $0x258] sm:$0xff] }
  0x33   : > { %661 = vst [vmem:[%s10689_s16 + $0x118] sm:$0xff] %v660_v35  ;;  %663 = vst [vmem:[%s10689_s16 + $0x120] sm:$0xff] %v662_v36  ;;  %v670_v40 = vld [vmem:[%s10681_s15 + $0x280] sm:$0xff]  ;;  %v672_v41 = vld [vmem:[%s10681_s15 + $0x288] sm:$0xff] }
  0x34   : > { %665 = vst [vmem:[%s10689_s16 + $0x128] sm:$0xff] %v664_v37  ;;  %667 = vst [vmem:[%s10689_s16 + $0x130] sm:$0xff] %v666_v38  ;;  %v674_v42 = vld [vmem:[%s10681_s15 + $0x290] sm:$0xff]  ;;  %v676_v43 = vld [vmem:[%s10681_s15 + $0x298] sm:$0xff] }
  0x35   : > { %669 = vst [vmem:[%s10689_s16 + $0x138] sm:$0xff] %v668_v39  ;;  %671 = vst [vmem:[%s10689_s16 + $0x140] sm:$0xff] %v670_v40  ;;  %v678_v44 = vld [vmem:[%s10681_s15 + $0x2c0] sm:$0xff]  ;;  %v680_v45 = vld [vmem:[%s10681_s15 + $0x2c8] sm:$0xff] }
  0x36   : > { %673 = vst [vmem:[%s10689_s16 + $0x148] sm:$0xff] %v672_v41  ;;  %675 = vst [vmem:[%s10689_s16 + $0x150] sm:$0xff] %v674_v42  ;;  %v682_v46 = vld [vmem:[%s10681_s15 + $0x2d0] sm:$0xff]  ;;  %v684_v47 = vld [vmem:[%s10681_s15 + $0x2d8] sm:$0xff] }
  0x37   : > { %677 = vst [vmem:[%s10689_s16 + $0x158] sm:$0xff] %v676_v43  ;;  %679 = vst [vmem:[%s10689_s16 + $0x160] sm:$0xff] %v678_v44  ;;  %v686_v48 = vld [vmem:[%s10681_s15 + $0x300] sm:$0xff]  ;;  %v688_v49 = vld [vmem:[%s10681_s15 + $0x308] sm:$0xff] }
  0x38   : > { %681 = vst [vmem:[%s10689_s16 + $0x168] sm:$0xff] %v680_v45  ;;  %683 = vst [vmem:[%s10689_s16 + $0x170] sm:$0xff] %v682_v46  ;;  %v690_v50 = vld [vmem:[%s10681_s15 + $0x310] sm:$0xff]  ;;  %v692_v51 = vld [vmem:[%s10681_s15 + $0x318] sm:$0xff] }
  0x39   : > { %685 = vst [vmem:[%s10689_s16 + $0x178] sm:$0xff] %v684_v47  ;;  %687 = vst [vmem:[%s10689_s16 + $0x180] sm:$0xff] %v686_v48  ;;  %v694_v52 = vld [vmem:[%s10681_s15 + $0x340] sm:$0xff]  ;;  %v696_v53 = vld [vmem:[%s10681_s15 + $0x348] sm:$0xff] }
  0x3a   : > { %689 = vst [vmem:[%s10689_s16 + $0x188] sm:$0xff] %v688_v49  ;;  %691 = vst [vmem:[%s10689_s16 + $0x190] sm:$0xff] %v690_v50  ;;  %v698_v54 = vld [vmem:[%s10681_s15 + $0x350] sm:$0xff]  ;;  %v700_v55 = vld [vmem:[%s10681_s15 + $0x358] sm:$0xff] }
  0x3b   : > { %693 = vst [vmem:[%s10689_s16 + $0x198] sm:$0xff] %v692_v51  ;;  %695 = vst [vmem:[%s10689_s16 + $0x1a0] sm:$0xff] %v694_v52  ;;  %v702_v56 = vld [vmem:[%s10681_s15 + $0x380] sm:$0xff]  ;;  %v704_v57 = vld [vmem:[%s10681_s15 + $0x388] sm:$0xff] }
  0x3c   : > { %697 = vst [vmem:[%s10689_s16 + $0x1a8] sm:$0xff] %v696_v53  ;;  %699 = vst [vmem:[%s10689_s16 + $0x1b0] sm:$0xff] %v698_v54  ;;  %v706_v58 = vld [vmem:[%s10681_s15 + $0x390] sm:$0xff]  ;;  %v708_v59 = vld [vmem:[%s10681_s15 + $0x398] sm:$0xff] }
  0x3d   : > { %701 = vst [vmem:[%s10689_s16 + $0x1b8] sm:$0xff] %v700_v55  ;;  %703 = vst [vmem:[%s10689_s16 + $0x1c0] sm:$0xff] %v702_v56  ;;  %v710_v60 = vld [vmem:[%s10681_s15 + $0x3c0] sm:$0xff]  ;;  %v712_v61 = vld [vmem:[%s10681_s15 + $0x3c8] sm:$0xff] }
  0x3e   : > { %705 = vst [vmem:[%s10689_s16 + $0x1c8] sm:$0xff] %v704_v57  ;;  %707 = vst [vmem:[%s10689_s16 + $0x1d0] sm:$0xff] %v706_v58  ;;  %v714_v62 = vld [vmem:[%s10681_s15 + $0x3d0] sm:$0xff]  ;;  %v716_v63 = vld [vmem:[%s10681_s15 + $0x3d8] sm:$0xff] }
  0x3f   : > { %709 = vst [vmem:[%s10689_s16 + $0x1d8] sm:$0xff] %v708_v59  ;;  %711 = vst [vmem:[%s10689_s16 + $0x1e0] sm:$0xff] %v710_v60  ;;  %v718_v0 = vld [vmem:[%s10681_s15 + $0x400] sm:$0xff]  ;;  %v720_v1 = vld [vmem:[%s10681_s15 + $0x408] sm:$0xff] }
  0x40   : > { %713 = vst [vmem:[%s10689_s16 + $0x1e8] sm:$0xff] %v712_v61  ;;  %715 = vst [vmem:[%s10689_s16 + $0x1f0] sm:$0xff] %v714_v62  ;;  %v722_v2 = vld [vmem:[%s10681_s15 + $0x410] sm:$0xff]  ;;  %v724_v3 = vld [vmem:[%s10681_s15 + $0x418] sm:$0xff] }
  0x41   : > { %717 = vst [vmem:[%s10689_s16 + $0x1f8] sm:$0xff] %v716_v63  ;;  %719 = vst [vmem:[%s10689_s16 + $0x200] sm:$0xff] %v718_v0  ;;  %v726_v4 = vld [vmem:[%s10681_s15 + $0x440] sm:$0xff]  ;;  %v728_v5 = vld [vmem:[%s10681_s15 + $0x448] sm:$0xff] }
  0x42   : > { %721 = vst [vmem:[%s10689_s16 + $0x208] sm:$0xff] %v720_v1  ;;  %723 = vst [vmem:[%s10689_s16 + $0x210] sm:$0xff] %v722_v2  ;;  %v730_v6 = vld [vmem:[%s10681_s15 + $0x450] sm:$0xff]  ;;  %v732_v7 = vld [vmem:[%s10681_s15 + $0x458] sm:$0xff] }
  0x43   : > { %725 = vst [vmem:[%s10689_s16 + $0x218] sm:$0xff] %v724_v3  ;;  %727 = vst [vmem:[%s10689_s16 + $0x220] sm:$0xff] %v726_v4  ;;  %v734_v8 = vld [vmem:[%s10681_s15 + $0x480] sm:$0xff]  ;;  %v736_v9 = vld [vmem:[%s10681_s15 + $0x488] sm:$0xff] }
  0x44   : > { %729 = vst [vmem:[%s10689_s16 + $0x228] sm:$0xff] %v728_v5  ;;  %731 = vst [vmem:[%s10689_s16 + $0x230] sm:$0xff] %v730_v6  ;;  %v738_v10 = vld [vmem:[%s10681_s15 + $0x490] sm:$0xff]  ;;  %v740_v11 = vld [vmem:[%s10681_s15 + $0x498] sm:$0xff] }
  0x45   : > { %733 = vst [vmem:[%s10689_s16 + $0x238] sm:$0xff] %v732_v7  ;;  %735 = vst [vmem:[%s10689_s16 + $0x240] sm:$0xff] %v734_v8  ;;  %v742_v12 = vld [vmem:[%s10681_s15 + $0x4c0] sm:$0xff]  ;;  %v744_v13 = vld [vmem:[%s10681_s15 + $0x4c8] sm:$0xff] }
  0x46   : > { %737 = vst [vmem:[%s10689_s16 + $0x248] sm:$0xff] %v736_v9  ;;  %739 = vst [vmem:[%s10689_s16 + $0x250] sm:$0xff] %v738_v10  ;;  %v746_v14 = vld [vmem:[%s10681_s15 + $0x4d0] sm:$0xff]  ;;  %v748_v15 = vld [vmem:[%s10681_s15 + $0x4d8] sm:$0xff] }
  0x47   : > { %741 = vst [vmem:[%s10689_s16 + $0x258] sm:$0xff] %v740_v11  ;;  %743 = vst [vmem:[%s10689_s16 + $0x260] sm:$0xff] %v742_v12  ;;  %v750_v16 = vld [vmem:[%s10681_s15 + $0x500] sm:$0xff]  ;;  %v752_v17 = vld [vmem:[%s10681_s15 + $0x508] sm:$0xff] }
  0x48   : > { %745 = vst [vmem:[%s10689_s16 + $0x268] sm:$0xff] %v744_v13  ;;  %747 = vst [vmem:[%s10689_s16 + $0x270] sm:$0xff] %v746_v14  ;;  %v754_v18 = vld [vmem:[%s10681_s15 + $0x510] sm:$0xff]  ;;  %v756_v19 = vld [vmem:[%s10681_s15 + $0x518] sm:$0xff] }
  0x49   : > { %749 = vst [vmem:[%s10689_s16 + $0x278] sm:$0xff] %v748_v15  ;;  %751 = vst [vmem:[%s10689_s16 + $0x280] sm:$0xff] %v750_v16  ;;  %v758_v20 = vld [vmem:[%s10681_s15 + $0x540] sm:$0xff]  ;;  %v760_v21 = vld [vmem:[%s10681_s15 + $0x548] sm:$0xff] }
  0x4a   : > { %753 = vst [vmem:[%s10689_s16 + $0x288] sm:$0xff] %v752_v17  ;;  %755 = vst [vmem:[%s10689_s16 + $0x290] sm:$0xff] %v754_v18  ;;  %v762_v22 = vld [vmem:[%s10681_s15 + $0x550] sm:$0xff]  ;;  %v764_v23 = vld [vmem:[%s10681_s15 + $0x558] sm:$0xff] }
  0x4b   : > { %757 = vst [vmem:[%s10689_s16 + $0x298] sm:$0xff] %v756_v19  ;;  %759 = vst [vmem:[%s10689_s16 + $0x2a0] sm:$0xff] %v758_v20  ;;  %v766_v24 = vld [vmem:[%s10681_s15 + $0x580] sm:$0xff]  ;;  %v768_v25 = vld [vmem:[%s10681_s15 + $0x588] sm:$0xff] }
  0x4c   : > { %761 = vst [vmem:[%s10689_s16 + $0x2a8] sm:$0xff] %v760_v21  ;;  %763 = vst [vmem:[%s10689_s16 + $0x2b0] sm:$0xff] %v762_v22  ;;  %v770_v26 = vld [vmem:[%s10681_s15 + $0x590] sm:$0xff]  ;;  %v772_v27 = vld [vmem:[%s10681_s15 + $0x598] sm:$0xff] }
  0x4d   : > { %765 = vst [vmem:[%s10689_s16 + $0x2b8] sm:$0xff] %v764_v23  ;;  %767 = vst [vmem:[%s10689_s16 + $0x2c0] sm:$0xff] %v766_v24  ;;  %v774_v28 = vld [vmem:[%s10681_s15 + $0x5c0] sm:$0xff]  ;;  %v776_v29 = vld [vmem:[%s10681_s15 + $0x5c8] sm:$0xff] }
  0x4e   : > { %769 = vst [vmem:[%s10689_s16 + $0x2c8] sm:$0xff] %v768_v25  ;;  %771 = vst [vmem:[%s10689_s16 + $0x2d0] sm:$0xff] %v770_v26  ;;  %v778_v30 = vld [vmem:[%s10681_s15 + $0x5d0] sm:$0xff]  ;;  %v780_v31 = vld [vmem:[%s10681_s15 + $0x5d8] sm:$0xff] }
  0x4f   : > { %773 = vst [vmem:[%s10689_s16 + $0x2d8] sm:$0xff] %v772_v27  ;;  %775 = vst [vmem:[%s10689_s16 + $0x2e0] sm:$0xff] %v774_v28  ;;  %v782_v32 = vld [vmem:[%s10681_s15 + $0x600] sm:$0xff]  ;;  %v784_v33 = vld [vmem:[%s10681_s15 + $0x608] sm:$0xff] }
  0x50   : > { %777 = vst [vmem:[%s10689_s16 + $0x2e8] sm:$0xff] %v776_v29  ;;  %779 = vst [vmem:[%s10689_s16 + $0x2f0] sm:$0xff] %v778_v30  ;;  %v786_v34 = vld [vmem:[%s10681_s15 + $0x610] sm:$0xff]  ;;  %v788_v35 = vld [vmem:[%s10681_s15 + $0x618] sm:$0xff] }
  0x51   : > { %781 = vst [vmem:[%s10689_s16 + $0x2f8] sm:$0xff] %v780_v31  ;;  %783 = vst [vmem:[%s10689_s16 + $0x300] sm:$0xff] %v782_v32  ;;  %v790_v36 = vld [vmem:[%s10681_s15 + $0x640] sm:$0xff]  ;;  %v792_v37 = vld [vmem:[%s10681_s15 + $0x648] sm:$0xff] }
  0x52   : > { %785 = vst [vmem:[%s10689_s16 + $0x308] sm:$0xff] %v784_v33  ;;  %787 = vst [vmem:[%s10689_s16 + $0x310] sm:$0xff] %v786_v34  ;;  %v794_v38 = vld [vmem:[%s10681_s15 + $0x650] sm:$0xff]  ;;  %v796_v39 = vld [vmem:[%s10681_s15 + $0x658] sm:$0xff] }
  0x53   : > { %789 = vst [vmem:[%s10689_s16 + $0x318] sm:$0xff] %v788_v35  ;;  %791 = vst [vmem:[%s10689_s16 + $0x320] sm:$0xff] %v790_v36  ;;  %v798_v40 = vld [vmem:[%s10681_s15 + $0x680] sm:$0xff]  ;;  %v800_v41 = vld [vmem:[%s10681_s15 + $0x688] sm:$0xff] }
  0x54   : > { %793 = vst [vmem:[%s10689_s16 + $0x328] sm:$0xff] %v792_v37  ;;  %795 = vst [vmem:[%s10689_s16 + $0x330] sm:$0xff] %v794_v38  ;;  %v802_v42 = vld [vmem:[%s10681_s15 + $0x690] sm:$0xff]  ;;  %v804_v43 = vld [vmem:[%s10681_s15 + $0x698] sm:$0xff] }
  0x55   : > { %797 = vst [vmem:[%s10689_s16 + $0x338] sm:$0xff] %v796_v39  ;;  %799 = vst [vmem:[%s10689_s16 + $0x340] sm:$0xff] %v798_v40  ;;  %v806_v44 = vld [vmem:[%s10681_s15 + $0x6c0] sm:$0xff]  ;;  %v808_v45 = vld [vmem:[%s10681_s15 + $0x6c8] sm:$0xff] }
  0x56   : > { %801 = vst [vmem:[%s10689_s16 + $0x348] sm:$0xff] %v800_v41  ;;  %803 = vst [vmem:[%s10689_s16 + $0x350] sm:$0xff] %v802_v42  ;;  %v810_v46 = vld [vmem:[%s10681_s15 + $0x6d0] sm:$0xff]  ;;  %v812_v47 = vld [vmem:[%s10681_s15 + $0x6d8] sm:$0xff] }
  0x57   : > { %805 = vst [vmem:[%s10689_s16 + $0x358] sm:$0xff] %v804_v43  ;;  %807 = vst [vmem:[%s10689_s16 + $0x360] sm:$0xff] %v806_v44 }
  0x58   : > { %809 = vst [vmem:[%s10689_s16 + $0x368] sm:$0xff] %v808_v45  ;;  %811 = vst [vmem:[%s10689_s16 + $0x370] sm:$0xff] %v810_v46 }
  0x59   : > { %813 = vst [vmem:[%s10689_s16 + $0x378] sm:$0xff] %v812_v47 }
  0x5a PF: > { %p7593_p10 = scmp.ge.s32.totalorder %s10552_s20, 1  ;;  %p818_p11 = scmp.lt.s32.totalorder %s10552_s20, 3 }
  0x5c   : > { %p819_p12 = pnand %p7593_p10, %p818_p11 }
  0x5e   : > { %822 = sbr.rel (%p819_p12) target bundleno = 2112 (0x840), region = 98 }
  0x65   : > { %s10912_s22 = sand.u32 1, %s10544_s18   ;;  %v3275_v48 = vld [vmem:[%s15037_s1 + $0x8] sm:$0xff]  ;;  %v3277_v49 = vld [vmem:[%s15037_s1 + $0x18] sm:$0xff]  ;;  %v3274_v50 = vld [vmem:[%s15037_s1] sm:$0xff]  ;;  %s15055_s30 = smov 84   ;;  %vm3515_vm0 = vcmask 1043456  }
  0x66   : > { %s8773_s14 = smul.u32 896, %s10912_s22  ;;  %v8315_v51 = vpack.c.bf16 %v3277_v49, %v3275_v48  ;;  %v3276_v52 = vld [vmem:[%s15037_s1 + $0x10] sm:$0xff]  ;;  %v3279_v53 = vld [vmem:[%s15037_s1 + $0x28] sm:$0xff]  ;;  %v3281_v54 = vld [vmem:[%s15037_s1 + $0x38] sm:$0xff]  ;;  %s15051_s12 = smov 28   ;;  %vm10558_vm1 = vmmov 1  }
  0x67   : > { %v8317_v55 = vpack.c.bf16 %v3276_v52, %v3274_v50  ;;  %v8319_v56 = vpack.c.bf16 %v3281_v54, %v3279_v53  ;;  %v3278_v57 = vld [vmem:[%s15037_s1 + $0x20] sm:$0xff]  ;;  %v3280_v58 = vld [vmem:[%s15037_s1 + $0x30] sm:$0xff]  ;;  %v3283_v59 = vld [vmem:[%s15037_s1 + $0x48] sm:$0xff]  ;;  %s15053_s13 = smov 112   ;;  %s15049_s15 = smov 56   ;;  %vm3322_vm3 = vcmask 97280  }
  0x68   : > { %8316 = vmatprep.subr.bf16.mxu0 %v8315_v51  ;;  %v3285_v60 = vld [vmem:[%s15037_s1 + $0x58] sm:$0xff]  ;;  %v3282_v61 = vld [vmem:[%s15037_s1 + $0x40] sm:$0xff]  ;;  %s10948_s26 = scalar_lea.vmem [#allocation3], %s8773_s14  ;;  %v8321_v1 = vpack.c.bf16 %v3280_v58, %v3278_v57  ;;  %v3284_v6 = vld [vmem:[%s15037_s1 + $0x50] sm:$0xff]  ;;  %s15142_s21 = smov 56   ;;  %vm2886_vm4 = vcmask 228352  }
  0x69   : > { %v7787_v62 = vld [vmem:[%s10948_s26 + $0x60] sm:$0xff]  ;;  %v7788_v63 = vld [vmem:[%s10948_s26 + $0x68] sm:$0xff]  ;;  %8318 = vmatpush1.bf16.msra.mxu0 %v8317_v55  ;;  %v8323_v5 = vpack.c.bf16 %v3285_v60, %v3283_v59  ;;  %v10980_v11 = vld [vmem:[%s10948_s26 + $0x30] sm:$0xff]  ;;  %v8325_v13 = vpack.c.bf16 %v3284_v6, %v3282_v61  ;;  %s15143_s0 = smov 112   ;;  %s15145_s19 = smov 84   ;;  %vm2983_vm5 = vcmask 457728  }
  0x6a   : > { %v10953_v0 = vld [vmem:[%s10948_s26 + $0x20] sm:$0xff]  ;;  %v10955_v2 = vpack.i.bf16 %v7788_v63, %v7787_v62  ;;  %v10958_v3 = vld [vmem:[%s10948_s26 + $0x28] sm:$0xff]  ;;  %8320 = vmatprep.subr.bf16.mxu0 %v8319_v56  ;;  %v10983_v12 = vld [vmem:[%s10948_s26 + $0x38] sm:$0xff]  ;;  %vm3080_vm6 = vcmask 687104   ;;  %vm3177_vm7 = vcmask 916480   ;;  %vm4364_vm8 = vcmask 130048  }
  0x6b   : > { %v10961_v4 = vld [vmem:[%s10948_s26 + $0x40] sm:$0xff]  ;;  %v8825_v7 = vpack.i.bf16 %v10958_v3, %v10953_v0  ;;  %v10969_v8 = vld [vmem:[%s10948_s26 + $0x48] sm:$0xff]  ;;  %v8840_v14 = vpack.i.bf16 %v10983_v12, %v10980_v11  ;;  %v7789_v15 = vld [vmem:[%s10948_s26 + $0x70] sm:$0xff]  ;;  %s10560_s29 = smov 16   ;;  %vm5359_vm9 = vcmask 261120   ;;  %vm5648_vm10 = vcmask 392192  }
  0x6c   : > { %8836 = vrot.lane.b32.xlu1 %v10955_v2, %s15055_s30  ;;  %v10975_v9 = vld [vmem:[%s10948_s26 + $0x80] sm:$0xff]  ;;  %v8830_v10 = vpack.i.bf16 %v10969_v8, %v10961_v4  ;;  %v7790_v16 = vld [vmem:[%s10948_s26 + $0x78] sm:$0xff]  ;;  %v7884_v17 = vld [vmem:[%s10948_s26 + $0x88] sm:$0xff]  ;;  %vm5937_vm11 = vcmask 523264   ;;  %vm6227_vm12 = vcmask 654336   ;;  %vm7282_vm13 = vcmask 982016  }
  0x6d   : > { %8826 = vrot.lane.b32.xlu0 %v8825_v7, %s15051_s12  ;;  %8322 = vmatpush1.bf16.msra.mxu0 %v8321_v1  ;;  %v10994_v18 = vld [vmem:[%s10948_s26 + $0x50] sm:$0xff]  ;;  %v10997_v19 = vld [vmem:[%s10948_s26 + $0x58] sm:$0xff]  ;;  %v3287_v20 = vld [vmem:[%s15037_s1 + $0x68] sm:$0xff]  ;;  %v11003_v21 = vpack.i.bf16 %v7790_v16, %v7789_v15  ;;  %v8865_v51 = vpack.i.bf16 %v7884_v17, %v10975_v9 }
  0x6e   : > { %8324 = vmatprep.subr.bf16.mxu0 %v8323_v5  ;;  %v3289_v22 = vld [vmem:[%s15037_s1 + $0x78] sm:$0xff]  ;;  %v3286_v23 = vld [vmem:[%s15037_s1 + $0x60] sm:$0xff]  ;;  %v3288_v24 = vld [vmem:[%s15037_s1 + $0x70] sm:$0xff]  ;;  %v8845_v25 = vpack.i.bf16 %v10997_v19, %v10994_v18 }
  0x6f   : > { %v8327_v26 = vpack.c.bf16 %v3289_v22, %v3287_v20  ;;  %v8329_v27 = vpack.c.bf16 %v3288_v24, %v3286_v23  ;;  %v3291_v28 = vld [vmem:[%s15037_s1 + $0x88] sm:$0xff]  ;;  %v3293_v29 = vld [vmem:[%s15037_s1 + $0x98] sm:$0xff]  ;;  %v3290_v31 = vld [vmem:[%s15037_s1 + $0x80] sm:$0xff] }
  0x70   : > { %2598 = vrot.lane.b32.xlu1 %v10975_v9, %s15053_s13  ;;  %v8331_v30 = vpack.c.bf16 %v3293_v29, %v3291_v28  ;;  %v3292_v32 = vld [vmem:[%s15037_s1 + $0x90] sm:$0xff]  ;;  %v3295_v33 = vld [vmem:[%s15037_s1 + $0xa8] sm:$0xff]  ;;  %v3297_v34 = vld [vmem:[%s15037_s1 + $0xb8] sm:$0xff] }
  0x71   : > { %8831 = vrot.lane.b32.xlu0 %v8830_v10, %s15049_s15  ;;  %8326 = vmatpush1.bf16.msra.mxu0 %v8325_v13  ;;  %v8333_v35 = vpack.c.bf16 %v3292_v32, %v3290_v31  ;;  %v7886_v36 = vld [vmem:[%s10948_s26 + $0x98] sm:$0xff]  ;;  %v8335_v37 = vpack.c.bf16 %v3297_v34, %v3295_v33  ;;  %v3294_v38 = vld [vmem:[%s15037_s1 + $0xa0] sm:$0xff]  ;;  %v3296_v39 = vld [vmem:[%s15037_s1 + $0xb0] sm:$0xff]  ;;  %s10562_s15 = smov 48  }
  0x72   : > { %8328 = vmatprep.subr.bf16.mxu0 %v8327_v26  ;;  %v7885_v40 = vld [vmem:[%s10948_s26 + $0x90] sm:$0xff]  ;;  %v3299_v41 = vld [vmem:[%s15037_s1 + $0xc8] sm:$0xff]  ;;  %v3301_v42 = vld [vmem:[%s15037_s1 + $0xd8] sm:$0xff]  ;;  %v8337_v43 = vpack.c.bf16 %v3296_v39, %v3294_v38 }
  0x73   : > { %v8339_v44 = vpack.c.bf16 %v3301_v42, %v3299_v41  ;;  %v3298_v45 = vld [vmem:[%s15037_s1 + $0xc0] sm:$0xff]  ;;  %v3300_v46 = vld [vmem:[%s15037_s1 + $0xd0] sm:$0xff]  ;;  %v3303_v47 = vld [vmem:[%s15037_s1 + $0xe8] sm:$0xff]  ;;  %v8880_v62 = vpack.i.bf16 %v7886_v36, %v7885_v40 }
  0x74   : > { %8841 = vrot.lane.b32.xlu1 %v8840_v14, %s15051_s12  ;;  %v3305_v48 = vld [vmem:[%s15037_s1 + $0xf8] sm:$0xff]  ;;  %v8341_v49 = vpack.c.bf16 %v3300_v46, %v3298_v45  ;;  %v7887_v50 = vld [vmem:[%s10948_s26 + $0xa0] sm:$0xff]  ;;  %v3304_v54 = vld [vmem:[%s15037_s1 + $0xf0] sm:$0xff]  ;;  %s10564_s12 = smov [#allocation4]  }
  0x75   : > { %2600 = vrot.lane.b32.xlu0 %v7884_v17, %s15053_s13  ;;  %8330 = vmatpush1.bf16.msra.mxu0 %v8329_v27  ;;  %v8343_v52 = vpack.c.bf16 %v3305_v48, %v3303_v47  ;;  %v3302_v53 = vld [vmem:[%s15037_s1 + $0xe0] sm:$0xff]  ;;  %v3307_v55 = vld [vmem:[%s15037_s1 + $0x108] sm:$0xff]  ;;  %v3309_v56 = vld [vmem:[%s15037_s1 + $0x118] sm:$0xf]  ;;  %s7594_s13 = sshll.u32 %s10912_s22, 5 }
  0x76   : > { %8332 = vmatprep.subr.bf16.mxu0 %v8331_v30  ;;  %v8345_v57 = vpack.c.bf16 %v3304_v54, %v3302_v53  ;;  %v8347_v58 = vpack.c.bf16 %v3309_v56, %v3307_v55  ;;  %v3306_v59 = vld [vmem:[%s15037_s1 + $0x100] sm:$0xff]  ;;  %v3308_v60 = vld [vmem:[%s15037_s1 + $0x110] sm:$0xf]  ;;  %v7888_v61 = vld [vmem:[%s10948_s26 + $0xa8] sm:$0xff] }
  0x77   : > { %vm8348_vm2 = vmpackc.low %vm3515_vm0, %vm10558_vm1  ;;  %v8350_v63 = vpack.c.bf16 %v3308_v60, %v3306_v59  ;;  %v7890_v1 = vld [vmem:[%s10948_s26 + $0xb8] sm:$0xff]  ;;  %v7889_v5 = vld [vmem:[%s10948_s26 + $0xb0] sm:$0xff]  ;;  %v8895_v7 = vpack.i.bf16 %v7888_v61, %v7887_v50 }
  0x78   : > { %8851 = vrot.lane.b32.xlu1 %v11003_v21, %s15055_s30  ;;  %s15144_s30 = smov 28   ;;  %v7891_v6 = vld [vmem:[%s10948_s26 + $0xc0] sm:$0xff]  ;;  %v7892_v9 = vld [vmem:[%s10948_s26 + $0xc8] sm:$0xff]  ;;  %v7893_v13 = vld [vmem:[%s10948_s26 + $0xd0] sm:$0xff] }
  0x79   : > { %8846 = vrot.lane.b32.xlu0 %v8845_v25, %s15142_s21  ;;  %8334 = vmatpush1.bf16.msra.mxu0 %v8333_v35  ;;  %v7895_v14 = vld [vmem:[%s10948_s26 + $0xe0] sm:$0xff]  ;;  %v8925_v15 = vpack.i.bf16 %v7892_v9, %v7891_v6  ;;  %v7896_v16 = vld [vmem:[%s10948_s26 + $0xe8] sm:$0xff]  ;;  %v7898_v20 = vld [vmem:[%s10948_s26 + $0xf8] sm:$0xff] }
  0x7a   : > { %8336 = vmatprep.subr.bf16.mxu0 %v8335_v37  ;;  %v7899_v22 = vld [vmem:[%s10948_s26 + $0x100] sm:$0xff]  ;;  %v8955_v23 = vpack.i.bf16 %v7896_v16, %v7895_v14  ;;  %v7900_v24 = vld [vmem:[%s10948_s26 + $0x108] sm:$0xff]  ;;  %v7902_v26 = vld [vmem:[%s10948_s26 + $0x118] sm:$0xff] }
  0x7b   : > { %v7901_v27 = vld [vmem:[%s10948_s26 + $0x110] sm:$0xff]  ;;  %v7903_v28 = vld [vmem:[%s10948_s26 + $0x120] sm:$0xff]  ;;  %v11152_v29 = vpack.i.bf16 %v7900_v24, %v7899_v22  ;;  %v7904_v30 = vld [vmem:[%s10948_s26 + $0x128] sm:$0xff] }
  0x7c   : > { %2604 = vrot.lane.b32.xlu1 %v7886_v36, %s15143_s0  ;;  %v11159_v31 = vpack.i.bf16 %v7902_v26, %v7901_v27  ;;  %v7906_v32 = vld [vmem:[%s10948_s26 + $0x138] sm:$0xff]  ;;  %v7905_v34 = vld [vmem:[%s10948_s26 + $0x130] sm:$0xff]  ;;  %v866_v38 = vld [vmem:[%s10948_s26] sm:$0xff]  ;;  %v11181_v48 = vpack.i.bf16 %v7904_v30, %v7903_v28 }
  0x7d   : > { %2602 = vrot.lane.b32.xlu0 %v7885_v40, %s15143_s0  ;;  %8338 = vmatpush1.bf16.msra.mxu0 %v8337_v43  ;;  %v867_v39 = vld [vmem:[%s10948_s26 + $0x8] sm:$0xff]  ;;  %v11179_v47 = vld [vmem:[%s10948_s26 + $0x140] sm:$0xff] }
  0x7e   : > { %8340 = vmatprep.subr.bf16.mxu0 %v8339_v44 }
  0x80   : > { %8861 = vrot.lane.b32.xlu1 %v10955_v2, %s15142_s21 }
  0x81   : > { %8856 = vrot.lane.b32.xlu0 %v8830_v10, %s15144_s30  ;;  %8342 = vmatpush1.bf16.msra.mxu0 %v8341_v49  ;;  %v8910_v10 = vpack.i.bf16 %v7890_v1, %v7889_v5 }
  0x82   : > { %8344 = vmatprep.subr.bf16.mxu0 %v8343_v52 }
  0x84   : > { %2606 = vrot.lane.b32.xlu1 %v7887_v50, %s15143_s0 }
  0x85   : > { %8866 = vrot.lane.b32.xlu0 %v8865_v51, %s15145_s19  ;;  %8346 = vmatpush1.bf16.msra.mxu0 %v8345_v57  ;;  %v868_v57 = vld [vmem:[%s10948_s26 + $0x10] sm:$0xff] }
  0x86   : > { %8349 = vmatprep.subr.msk.bf16.mxu0 %vm8348_vm2, %v8347_v58  ;;  %v869_v58 = vld [vmem:[%s10948_s26 + $0x18] sm:$0xff] }
  0x88   : > { %8871 = vrot.lane.b32.xlu1 %v8845_v25, %s15144_s30 }
  0x89   : > { %2608 = vrot.lane.b32.xlu0 %v7888_v61, %s15143_s0  ;;  %8352 = vmatpush1.bf16.msk.msra.mxu0 %vm8348_vm2, %v8350_v63 }
  0x8c   : > { %8881 = vrot.lane.b32.xlu1 %v8880_v62, %s15145_s19 }
  0x8d   : > { %8876 = vrot.lane.b32.xlu0 %v11003_v21, %s15142_s21 }
  0x90   : > { %2612 = vrot.lane.b32.xlu1 %v7890_v1, %s15143_s0 }
  0x91   : > { %2610 = vrot.lane.b32.xlu0 %v7889_v5, %s15143_s0 }
  0x94   : > { %8891 = vrot.lane.b32.xlu1 %v8865_v51, %s15142_s21 }
  0x95   : > { %8886 = vrot.lane.b32.xlu0 %v10955_v2, %s15144_s30  ;;  %v7894_v2 = vld [vmem:[%s10948_s26 + $0xd8] sm:$0xff] }
  0x96   : > { %v8940_v17 = vpack.i.bf16 %v7894_v2, %v7893_v13 }
  0x98   : > { %2614 = vrot.lane.b32.xlu1 %v7891_v6, %s15143_s0 }
  0x99   : > { %8896 = vrot.lane.b32.xlu0 %v8895_v7, %s15145_s19 }
  0x9c   : > { %8901 = vrot.lane.b32.xlu1 %v11003_v21, %s15144_s30  ;;  %v7897_v21 = vld [vmem:[%s10948_s26 + $0xf0] sm:$0xff] }
  0x9d   : > { %2616 = vrot.lane.b32.xlu0 %v7892_v9, %s15143_s0  ;;  %v11139_v25 = vpack.i.bf16 %v7898_v20, %v7897_v21 }
  0xa0   : > { %8911 = vrot.lane.b32.xlu1 %v8910_v10, %s15145_s19 }
  0xa1   : > { %8906 = vrot.lane.b32.xlu0 %v8880_v62, %s15142_s21 }
  0xa4   : > { %2620 = vrot.lane.b32.xlu1 %v7894_v2, %s15143_s0  ;;  %v11201_v2 = vpack.i.bf16 %v7906_v32, %v7905_v34 }
  0xa5   : > { %2618 = vrot.lane.b32.xlu0 %v7893_v13, %s15143_s0 }
  0xa8   : > { %8921 = vrot.lane.b32.xlu1 %v8895_v7, %s15142_s21 }
  0xa9   : > { %8916 = vrot.lane.b32.xlu0 %v8865_v51, %s15144_s30 }
  0xac   : > { %2622 = vrot.lane.b32.xlu1 %v7895_v14, %s15143_s0 }
  0xad   : > { %8926 = vrot.lane.b32.xlu0 %v8925_v15, %s15145_s19 }
  0xb0   : > { %8931 = vrot.lane.b32.xlu1 %v8880_v62, %s15144_s30  ;;  %v7908_v62 = vld [vmem:[%s10948_s26 + $0x148] sm:$0xff] }
  0xb1   : > { %2624 = vrot.lane.b32.xlu0 %v7896_v16, %s15143_s0 }
  0xb4   : > { %8941 = vrot.lane.b32.xlu1 %v8940_v17, %s15145_s19 }
  0xb5   : > { %8936 = vrot.lane.b32.xlu0 %v8910_v10, %s15142_s21 }
  0xb8   : > { %2628 = vrot.lane.b32.xlu1 %v7898_v20, %s15143_s0 }
  0xb9   : > { %2626 = vrot.lane.b32.xlu0 %v7897_v21, %s15143_s0 }
  0xbc   : > { %8951 = vrot.lane.b32.xlu1 %v8925_v15, %s15142_s21 }
  0xbd   : > { %8946 = vrot.lane.b32.xlu0 %v8895_v7, %s15144_s30 }
  0xc0   : > { %2630 = vrot.lane.b32.xlu1 %v7899_v22, %s15143_s0  ;;  %v7910_v22 = vld [vmem:[%s10948_s26 + $0x158] sm:$0xff] }
  0xc1   : > { %8956 = vrot.lane.b32.xlu0 %v8955_v23, %s15145_s19 }
  0xc4   : > { %8961 = vrot.lane.b32.xlu1 %v8910_v10, %s15144_s30 }
  0xc5   : > { %2632 = vrot.lane.b32.xlu0 %v7900_v24, %s15143_s0 }
  0xc8   : > { %8971 = vrot.lane.b32.xlu1 %v11139_v25, %s15145_s19 }
  0xc9   : > { %8966 = vrot.lane.b32.xlu0 %v8940_v17, %s15142_s21 }
  0xcc   : > { %2636 = vrot.lane.b32.xlu1 %v7902_v26, %s15143_s0 }
  0xcd   : > { %2634 = vrot.lane.b32.xlu0 %v7901_v27, %s15143_s0 }
  0xd0   : > { %8981 = vrot.lane.b32.xlu1 %v8955_v23, %s15142_s21 }
  0xd1   : > { %8976 = vrot.lane.b32.xlu0 %v8925_v15, %s15144_s30 }
  0xd4   : > { %2638 = vrot.lane.b32.xlu1 %v7903_v28, %s15143_s0 }
  0xd5   : > { %8986 = vrot.lane.b32.xlu0 %v11152_v29, %s15145_s19 }
  0xd8   : > { %8991 = vrot.lane.b32.xlu1 %v8940_v17, %s15144_s30 }
  0xd9   : > { %2640 = vrot.lane.b32.xlu0 %v7904_v30, %s15143_s0 }
  0xdc   : > { %9001 = vrot.lane.b32.xlu1 %v11159_v31, %s15145_s19 }
  0xdd   : > { %8996 = vrot.lane.b32.xlu0 %v11139_v25, %s15142_s21 }
  0xde   : > { %v8837_v33 = vpop.permute.xlu1 %8836 }
  0xdf   : > { %v8827_v35 = vpop.permute.xlu0 %8826  ;;  %v8838_v44 = vunpack.i.l.bf16 %v8837_v33  ;;  %v8839_v52 = vunpack.i.h.bf16 %v8837_v33 }
  0xe0   : > { %2644 = vrot.lane.b32.xlu1 %v7906_v32, %s15143_s0  ;;  %v8829_v36 = vunpack.i.h.bf16 %v8827_v35  ;;  %v8828_v37 = vunpack.i.l.bf16 %v8827_v35 }
  0xe1   : > { %2642 = vrot.lane.b32.xlu0 %v7905_v34, %s15143_s0 }
  0xe2   : > { %v2599_v40 = vpop.permute.xlu1 %2598  ;;  %v2887_v45 = vsel %vm2886_vm4, %v866_v38, %v8828_v37  ;;  %v2888_v46 = vsel %vm2886_vm4, %v867_v39, %v8829_v36 }
  0xe3   : > { %v8832_v41 = vpop.permute.xlu0 %8831  ;;  %7981 = vmatprep.mubr.msk.f32.mxu0 %vm3322_vm3, %v2599_v40 }
  0xe4   : > { %v8834_v42 = vunpack.i.h.bf16 %v8832_v41  ;;  %v8833_v43 = vunpack.i.l.bf16 %v8832_v41  ;;  %9011 = vrot.lane.b32.xlu1 %v11152_v29, %s15142_s21  ;;  %v11234_v41 = vpack.i.bf16 %v7908_v62, %v11179_v47 }
  0xe5   : > { %9006 = vrot.lane.b32.xlu0 %v8955_v23, %s15144_s30 }
  0xe6   : > { %v8842_v49 = vpop.permute.xlu1 %8841  ;;  %v2984_v50 = vsel %vm2983_vm5, %v2887_v45, %v8833_v43  ;;  %v2985_v51 = vsel %vm2983_vm5, %v2888_v46, %v8834_v42 }
  0xe7   : > { %v8844_v53 = vunpack.i.h.bf16 %v8842_v49  ;;  %v8843_v54 = vunpack.i.l.bf16 %v8842_v49  ;;  %v2601_v55 = vpop.permute.xlu0 %2600  ;;  %v3081_v56 = vsel %vm3080_vm6, %v2984_v50, %v8838_v44  ;;  %v3082_v60 = vsel %vm3080_vm6, %v2985_v51, %v8839_v52  ;;  %v7912_v50 = vld [vmem:[%s10948_s26 + $0x168] sm:$0xff] }
  0xe8   : > { %2646 = vrot.lane.b32.xlu1 %v11179_v47, %s15143_s0  ;;  %v3178_v59 = vsel %vm3177_vm7, %v3081_v56, %v2599_v40  ;;  %v3179_v10 = vsel %vm3177_vm7, %v3082_v60, %v2601_v55 }
  0xe9   : > { %9016 = vrot.lane.b32.xlu0 %v11181_v48, %s15145_s19  ;;  %3587 = vmatmul.mubr.f32.vlgmr.msra.gmra.mrb[0].mxu0 %v3178_v59  ;;  %v2889_v63 = vsel %vm2886_vm4, %v868_v57, %v8843_v54  ;;  %v2890_v1 = vsel %vm2886_vm4, %v869_v58, %v8844_v53 }
  0xea   : > { %7982 = vmatprep.mubr.msk.f32.mxu0 %vm3322_vm3, %v2601_v55  ;;  %v8852_v61 = vpop.permute.xlu1 %8851 }
  0xeb   : > { %v8853_v5 = vunpack.i.l.bf16 %v8852_v61  ;;  %v8847_v6 = vpop.permute.xlu0 %8846  ;;  %v8854_v13 = vunpack.i.h.bf16 %v8852_v61 }
  0xec   : > { %v8849_v7 = vunpack.i.h.bf16 %v8847_v6  ;;  %v8848_v9 = vunpack.i.l.bf16 %v8847_v6  ;;  %9021 = vrot.lane.b32.xlu1 %v11139_v25, %s15144_s30  ;;  %v7909_v25 = vld [vmem:[%s10948_s26 + $0x150] sm:$0xff] }
  0xed   : > { %2648 = vrot.lane.b32.xlu0 %v7908_v62, %s15143_s0  ;;  %3593 = vmatmul.mubr.f32.gmra.mrb[2].mxu0 %v3179_v10  ;;  %v11253_v58 = vpack.i.bf16 %v7910_v22, %v7909_v25  ;;  %v7913_v6 = vld [vmem:[%s10948_s26 + $0x170] sm:$0xff] }
  0xee   : > { %v2605_v14 = vpop.permute.xlu1 %2604  ;;  %v2986_v15 = vsel %vm2983_vm5, %v2889_v63, %v8848_v9  ;;  %v2987_v16 = vsel %vm2983_vm5, %v2890_v1, %v8849_v7  ;;  %v7914_v63 = vld [vmem:[%s10948_s26 + $0x178] sm:$0xff] }
  0xef   : > { %v2603_v17 = vpop.permute.xlu0 %2602  ;;  %v3083_v20 = vsel %vm3080_vm6, %v2986_v15, %v8853_v5  ;;  %v3084_v23 = vsel %vm3080_vm6, %v2987_v16, %v8854_v13 }
  0xf0   : > { %7983 = vmatprep.mubr.msk.f32.mxu0 %vm3322_vm3, %v2603_v17  ;;  %9031 = vrot.lane.b32.xlu1 %v11201_v2, %s15145_s19  ;;  %v3180_v21 = vsel %vm3177_vm7, %v3083_v20, %v2603_v17  ;;  %v3181_v30 = vsel %vm3177_vm7, %v3084_v23, %v2605_v14 }
  0xf1   : > { %9026 = vrot.lane.b32.xlu0 %v11159_v31, %s15142_s21  ;;  %3599 = vmatmul.mubr.f32.gmra.mrb[4].mxu0 %v3180_v21 }
  0xf2   : > { %v8862_v24 = vpop.permute.xlu1 %8861  ;;  %7984 = vmatprep.mubr.msk.f32.mxu0 %vm3322_vm3, %v2605_v14 }
  0xf3   : > { %v8857_v26 = vpop.permute.xlu0 %8856  ;;  %v8863_v32 = vunpack.i.l.bf16 %v8862_v24  ;;  %v8864_v35 = vunpack.i.h.bf16 %v8862_v24 }
  0xf4   : > { %v8859_v27 = vunpack.i.h.bf16 %v8857_v26  ;;  %v8858_v28 = vunpack.i.l.bf16 %v8857_v26  ;;  %2652 = vrot.lane.b32.xlu1 %v7910_v22, %s15143_s0 }
  0xf5   : > { %2650 = vrot.lane.b32.xlu0 %v7909_v25, %s15143_s0  ;;  %3605 = vmatmul.mubr.f32.gmra.mrb[6].mxu0 %v3181_v30 }
  0xf6   : > { %v2891_v33 = vsel %vm2886_vm4, %v10953_v0, %v8858_v28  ;;  %v2607_v34 = vpop.permute.xlu1 %2606  ;;  %v2892_v37 = vsel %vm2886_vm4, %v10958_v3, %v8859_v27  ;;  %v11231_v0 = vld [vmem:[%s10948_s26 + $0x160] sm:$0xff] }
  0xf7   : > { %v8867_v36 = vpop.permute.xlu0 %8866  ;;  %7985 = vmatprep.mubr.msk.f32.mxu0 %vm3322_vm3, %v2607_v34  ;;  %v2988_v40 = vsel %vm2983_vm5, %v2891_v33, %v8863_v32  ;;  %v2989_v49 = vsel %vm2983_vm5, %v2892_v37, %v8864_v35  ;;  %v11286_v25 = vpack.i.bf16 %v7912_v50, %v11231_v0  ;;  %v7916_v35 = vld [vmem:[%s10948_s26 + $0x188] sm:$0xff] }
  0xf8   : > { %v8869_v38 = vunpack.i.h.bf16 %v8867_v36  ;;  %v8868_v39 = vunpack.i.l.bf16 %v8867_v36  ;;  %9041 = vrot.lane.b32.xlu1 %v11181_v48, %s15142_s21 }
  0xf9   : > { %9036 = vrot.lane.b32.xlu0 %v11152_v29, %s15144_s30 }
  0xfa   : > { %v8872_v42 = vpop.permute.xlu1 %8871  ;;  %v3085_v43 = vsel %vm3080_vm6, %v2988_v40, %v8868_v39  ;;  %v3086_v29 = vsel %vm3080_vm6, %v2989_v49, %v8869_v38  ;;  %v7918_v49 = vld [vmem:[%s10948_s26 + $0x198] sm:$0xff] }
  0xfb   : > { %v8874_v3 = vunpack.i.h.bf16 %v8872_v42  ;;  %v8873_v44 = vunpack.i.l.bf16 %v8872_v42  ;;  %v2609_v45 = vpop.permute.xlu0 %2608  ;;  %v3182_v46 = vsel %vm3177_vm7, %v3085_v43, %v2607_v34  ;;  %v11305_v43 = vpack.i.bf16 %v7914_v63, %v7913_v6 }
  0xfc   : > { %3611 = vmatmul.mubr.f32.gmra.mrb[8].mxu0 %v3182_v46  ;;  %2654 = vrot.lane.b32.xlu1 %v11231_v0, %s15143_s0  ;;  %v3183_v55 = vsel %vm3177_vm7, %v3086_v29, %v2609_v45 }
  0xfd   : > { %9046 = vrot.lane.b32.xlu0 %v11234_v41, %s15145_s19  ;;  %7986 = vmatprep.mubr.msk.f32.mxu0 %vm3322_vm3, %v2609_v45  ;;  %v2893_v51 = vsel %vm2886_vm4, %v10980_v11, %v8873_v44  ;;  %v2894_v52 = vsel %vm2886_vm4, %v10983_v12, %v8874_v3 }
  0xfe   : > { %v8882_v47 = vpop.permute.xlu1 %8881 }
  0xff   : > { %v8883_v53 = vunpack.i.l.bf16 %v8882_v47  ;;  %v8877_v54 = vpop.permute.xlu0 %8876  ;;  %v8884_v59 = vunpack.i.h.bf16 %v8882_v47 }
 0x100   : > { %v8879_v56 = vunpack.i.h.bf16 %v8877_v54  ;;  %v8878_v57 = vunpack.i.l.bf16 %v8877_v54  ;;  %3617 = vmatmul.mubr.f32.gmra.mrb[10].mxu0 %v3183_v55  ;;  %9051 = vrot.lane.b32.xlu1 %v11159_v31, %s15144_s30 }
 0x101   : > { %2656 = vrot.lane.b32.xlu0 %v7912_v50, %s15143_s0  ;;  %v7917_v50 = vld [vmem:[%s10948_s26 + $0x190] sm:$0xff] }
 0x102   : > { %v2613_v11 = vpop.permute.xlu1 %2612  ;;  %v2990_v12 = vsel %vm2983_vm5, %v2893_v51, %v8878_v57  ;;  %v2991_v60 = vsel %vm2983_vm5, %v2894_v52, %v8879_v56  ;;  %v878_v52 = vld [vmem:[%s10948_s26 + $0x60] sm:$0xff]  ;;  %v879_v57 = vld [vmem:[%s10948_s26 + $0x68] sm:$0xff] }
 0x103   : > { %v2611_v61 = vpop.permute.xlu0 %2610  ;;  %v3087_v62 = vsel %vm3080_vm6, %v2990_v12, %v8883_v53  ;;  %v3088_v1 = vsel %vm3080_vm6, %v2991_v60, %v8884_v59 }
 0x104   : > { %7987 = vmatprep.mubr.msk.f32.mxu0 %vm3322_vm3, %v2611_v61  ;;  %9061 = vrot.lane.b32.xlu1 %v11253_v58, %s15145_s19  ;;  %v3184_v31 = vsel %vm3177_vm7, %v3087_v62, %v2611_v61  ;;  %v3185_v13 = vsel %vm3177_vm7, %v3088_v1, %v2613_v11  ;;  %v11335_v1 = vld [vmem:[%s10948_s26 + $0x1a0] sm:$0xff] }
 0x105   : > { %9056 = vrot.lane.b32.xlu0 %v11201_v2, %s15142_s21  ;;  %3623 = vmatmul.mubr.f32.gmra.mrb[12].mxu0 %v3184_v31 }
 0x106   : > { %v8892_v5 = vpop.permute.xlu1 %8891  ;;  %7988 = vmatprep.mubr.msk.f32.mxu0 %vm3322_vm3, %v2613_v11 }
 0x107   : > { %v8887_v7 = vpop.permute.xlu0 %8886  ;;  %v8893_v14 = vunpack.i.l.bf16 %v8892_v5  ;;  %v8894_v17 = vunpack.i.h.bf16 %v8892_v5 }
 0x108   : > { %v8889_v9 = vunpack.i.h.bf16 %v8887_v7  ;;  %v8888_v10 = vunpack.i.l.bf16 %v8887_v7  ;;  %2660 = vrot.lane.b32.xlu1 %v7914_v63, %s15143_s0 }
 0x109   : > { %2658 = vrot.lane.b32.xlu0 %v7913_v6, %s15143_s0  ;;  %3629 = vmatmul.mubr.f32.gmra.mrb[14].mxu0 %v3185_v13 }
 0x10a   : > { %v2895_v15 = vsel %vm2886_vm4, %v10961_v4, %v8888_v10  ;;  %v2615_v16 = vpop.permute.xlu1 %2614  ;;  %v2896_v21 = vsel %vm2886_vm4, %v10969_v8, %v8889_v9  ;;  %v11283_v4 = vld [vmem:[%s10948_s26 + $0x180] sm:$0xff] }
 0x10b   : > { %v8897_v20 = vpop.permute.xlu0 %8896  ;;  %7989 = vmatprep.mubr.msk.f32.mxu0 %vm3322_vm3, %v2615_v16  ;;  %v2992_v24 = vsel %vm2983_vm5, %v2895_v15, %v8893_v14  ;;  %v2993_v33 = vsel %vm2983_vm5, %v2896_v21, %v8894_v17  ;;  %v11338_v5 = vpack.i.bf16 %v7916_v35, %v11283_v4  ;;  %v7920_v21 = vld [vmem:[%s10948_s26 + $0x1a8] sm:$0xff] }
 0x10c   : > { %v8899_v22 = vunpack.i.h.bf16 %v8897_v20  ;;  %v8898_v23 = vunpack.i.l.bf16 %v8897_v20  ;;  %9071 = vrot.lane.b32.xlu1 %v11234_v41, %s15142_s21 }
 0x10d   : > { %9066 = vrot.lane.b32.xlu0 %v11181_v48, %s15144_s30 }
 0x10e   : > { %v8902_v26 = vpop.permute.xlu1 %8901  ;;  %v3089_v27 = vsel %vm3080_vm6, %v2992_v24, %v8898_v23  ;;  %v3090_v48 = vsel %vm3080_vm6, %v2993_v33, %v8899_v22 }
 0x10f   : > { %v8904_v8 = vunpack.i.h.bf16 %v8902_v26  ;;  %v8903_v28 = vunpack.i.l.bf16 %v8902_v26  ;;  %v2617_v30 = vpop.permute.xlu0 %2616  ;;  %v3186_v32 = vsel %vm3177_vm7, %v3089_v27, %v2615_v16  ;;  %v880_v16 = vld [vmem:[%s10948_s26 + $0x70] sm:$0xff] }
 0x110   : > { %3635 = vmatmul.mubr.f32.gmra.mrb[16].mxu0 %v3186_v32  ;;  %2662 = vrot.lane.b32.xlu1 %v11283_v4, %s15143_s0  ;;  %v3187_v40 = vsel %vm3177_vm7, %v3090_v48, %v2617_v30 }
 0x111   : > { %9076 = vrot.lane.b32.xlu0 %v11286_v25, %s15145_s19  ;;  %7990 = vmatprep.mubr.msk.f32.mxu0 %vm3322_vm3, %v2617_v30  ;;  %v2897_v36 = vsel %vm2886_vm4, %v10994_v18, %v8903_v28  ;;  %v2898_v37 = vsel %vm2886_vm4, %v10997_v19, %v8904_v8  ;;  %v11357_v28 = vpack.i.bf16 %v7918_v49, %v7917_v50 }
 0x112   : > { %v8912_v34 = vpop.permute.xlu1 %8911 }
 0x113   : > { %v8913_v38 = vunpack.i.l.bf16 %v8912_v34  ;;  %v8907_v39 = vpop.permute.xlu0 %8906  ;;  %v8914_v3 = vunpack.i.h.bf16 %v8912_v34 }
 0x114   : > { %v8909_v0 = vunpack.i.h.bf16 %v8907_v39  ;;  %v8908_v42 = vunpack.i.l.bf16 %v8907_v39  ;;  %3641 = vmatmul.mubr.f32.gmra.mrb[18].mxu0 %v3187_v40  ;;  %9081 = vrot.lane.b32.xlu1 %v11201_v2, %s15144_s30  ;;  %v7921_v39 = vld [vmem:[%s10948_s26 + $0x1b0] sm:$0xff] }
 0x115   : > { %2664 = vrot.lane.b32.xlu0 %v7916_v35, %s15143_s0 }
 0x116   : > { %v2621_v18 = vpop.permute.xlu1 %2620  ;;  %v2994_v19 = vsel %vm2983_vm5, %v2897_v36, %v8908_v42  ;;  %v2995_v44 = vsel %vm2983_vm5, %v2898_v37, %v8909_v0  ;;  %v7922_v36 = vld [vmem:[%s10948_s26 + $0x1b8] sm:$0xff]  ;;  %v882_v0 = vld [vmem:[%s10948_s26 + $0x80] sm:$0xff] }
 0x117   : > { %v2619_v45 = vpop.permute.xlu0 %2618  ;;  %v3091_v46 = vsel %vm3080_vm6, %v2994_v19, %v8913_v38  ;;  %v3092_v29 = vsel %vm3080_vm6, %v2995_v44, %v8914_v3  ;;  %v883_v44 = vld [vmem:[%s10948_s26 + $0x88] sm:$0xff] }
 0x118   : > { %7991 = vmatprep.mubr.msk.f32.mxu0 %vm3322_vm3, %v2619_v45  ;;  %9091 = vrot.lane.b32.xlu1 %v11305_v43, %s15145_s19  ;;  %v3188_v2 = vsel %vm3177_vm7, %v3091_v46, %v2619_v45  ;;  %v3189_v55 = vsel %vm3177_vm7, %v3092_v29, %v2621_v18 }
 0x119   : > { %9086 = vrot.lane.b32.xlu0 %v11253_v58, %s15142_s21  ;;  %3647 = vmatmul.mubr.f32.gmra.mrb[20].mxu0 %v3188_v2 }
 0x11a   : > { %v8922_v47 = vpop.permute.xlu1 %8921  ;;  %7992 = vmatprep.mubr.msk.f32.mxu0 %vm3322_vm3, %v2621_v18 }
 0x11b   : > { %v8917_v51 = vpop.permute.xlu0 %8916  ;;  %v8923_v56 = vunpack.i.l.bf16 %v8922_v47  ;;  %v8924_v12 = vunpack.i.h.bf16 %v8922_v47 }
 0x11c   : > { %v8919_v53 = vunpack.i.h.bf16 %v8917_v51  ;;  %v8918_v54 = vunpack.i.l.bf16 %v8917_v51  ;;  %2668 = vrot.lane.b32.xlu1 %v7918_v49, %s15143_s0 }
 0x11d   : > { %2666 = vrot.lane.b32.xlu0 %v7917_v50, %s15143_s0  ;;  %3653 = vmatmul.mubr.f32.gmra.mrb[22].mxu0 %v3189_v55 }
 0x11e   : > { %v2899_v59 = vsel %vm2886_vm4, %v878_v52, %v8918_v54  ;;  %v2623_v11 = vpop.permute.xlu1 %2622  ;;  %v2900_v61 = vsel %vm2886_vm4, %v879_v57, %v8919_v53  ;;  %v11387_v52 = vld [vmem:[%s10948_s26 + $0x1c0] sm:$0xff]  ;;  %v11390_v53 = vpack.i.bf16 %v7920_v21, %v11335_v1 }
 0x11f   : > { %v8927_v60 = vpop.permute.xlu0 %8926  ;;  %7993 = vmatprep.mubr.msk.f32.mxu0 %vm3322_vm3, %v2623_v11  ;;  %v2996_v63 = vsel %vm2983_vm5, %v2899_v59, %v8923_v56  ;;  %v2997_v15 = vsel %vm2983_vm5, %v2900_v61, %v8924_v12 }
 0x120   : > { %v8929_v62 = vunpack.i.h.bf16 %v8927_v60  ;;  %v8928_v31 = vunpack.i.l.bf16 %v8927_v60  ;;  %9101 = vrot.lane.b32.xlu1 %v11286_v25, %s15142_s21  ;;  %v884_v60 = vld [vmem:[%s10948_s26 + $0x90] sm:$0xff] }
 0x121   : > { %9096 = vrot.lane.b32.xlu0 %v11234_v41, %s15144_s30  ;;  %v881_v41 = vld [vmem:[%s10948_s26 + $0x78] sm:$0xff] }
 0x122   : > { %v8932_v6 = vpop.permute.xlu1 %8931  ;;  %v3093_v7 = vsel %vm3080_vm6, %v2996_v63, %v8928_v31  ;;  %v3094_v17 = vsel %vm3080_vm6, %v2997_v15, %v8929_v62  ;;  %v7924_v31 = vld [vmem:[%s10948_s26 + $0x1c8] sm:$0xff] }
 0x123   : > { %v8934_v9 = vunpack.i.h.bf16 %v8932_v6  ;;  %v8933_v10 = vunpack.i.l.bf16 %v8932_v6  ;;  %v2625_v13 = vpop.permute.xlu0 %2624  ;;  %v3190_v14 = vsel %vm3177_vm7, %v3093_v7, %v2623_v11 }
 0x124   : > { %3659 = vmatmul.mubr.f32.gmra.mrb[24].mxu0 %v3190_v14  ;;  %2670 = vrot.lane.b32.xlu1 %v11335_v1, %s15143_s0  ;;  %v3191_v26 = vsel %vm3177_vm7, %v3094_v17, %v2625_v13  ;;  %v11409_v14 = vpack.i.bf16 %v7922_v36, %v7921_v39 }
 0x125   : > { %9106 = vrot.lane.b32.xlu0 %v11338_v5, %s15145_s19  ;;  %7994 = vmatprep.mubr.msk.f32.mxu0 %vm3322_vm3, %v2625_v13  ;;  %v2901_v22 = vsel %vm2886_vm4, %v880_v16, %v8933_v10  ;;  %v2902_v23 = vsel %vm2886_vm4, %v881_v41, %v8934_v9 }
 0x126   : > { %v8942_v20 = vpop.permute.xlu1 %8941 }
 0x127   : > { %v8943_v24 = vunpack.i.l.bf16 %v8942_v20  ;;  %v8937_v4 = vpop.permute.xlu0 %8936  ;;  %v8944_v30 = vunpack.i.h.bf16 %v8942_v20 }
 0x128   : > { %v8939_v27 = vunpack.i.h.bf16 %v8937_v4  ;;  %v8938_v8 = vunpack.i.l.bf16 %v8937_v4  ;;  %3665 = vmatmul.mubr.f32.gmra.mrb[26].mxu0 %v3191_v26  ;;  %9111 = vrot.lane.b32.xlu1 %v11253_v58, %s15144_s30  ;;  %v7925_v4 = vld [vmem:[%s10948_s26 + $0x1d0] sm:$0xff] }
 0x129   : > { %2672 = vrot.lane.b32.xlu0 %v7920_v21, %s15143_s0 }
 0x12a   : > { %v2629_v32 = vpop.permute.xlu1 %2628  ;;  %v2998_v33 = vsel %vm2983_vm5, %v2901_v22, %v8938_v8  ;;  %v2999_v48 = vsel %vm2983_vm5, %v2902_v23, %v8939_v27  ;;  %v7926_v22 = vld [vmem:[%s10948_s26 + $0x1d8] sm:$0xff]  ;;  %v886_v27 = vld [vmem:[%s10948_s26 + $0xa0] sm:$0xff] }
 0x12b   : > { %v2627_v34 = vpop.permute.xlu0 %2626  ;;  %v3095_v35 = vsel %vm3080_vm6, %v2998_v33, %v8943_v24  ;;  %v3096_v37 = vsel %vm3080_vm6, %v2999_v48, %v8944_v30  ;;  %v887_v48 = vld [vmem:[%s10948_s26 + $0xa8] sm:$0xff] }
 0x12c   : > { %7995 = vmatprep.mubr.msk.f32.mxu0 %vm3322_vm3, %v2627_v34  ;;  %9121 = vrot.lane.b32.xlu1 %v11357_v28, %s15145_s19  ;;  %v3192_v58 = vsel %vm3177_vm7, %v3095_v35, %v2627_v34  ;;  %v3193_v18 = vsel %vm3177_vm7, %v3096_v37, %v2629_v32 }
 0x12d   : > { %9116 = vrot.lane.b32.xlu0 %v11305_v43, %s15142_s21  ;;  %3671 = vmatmul.mubr.f32.gmra.mrb[28].mxu0 %v3192_v58 }
 0x12e   : > { %v8952_v38 = vpop.permute.xlu1 %8951  ;;  %7996 = vmatprep.mubr.msk.f32.mxu0 %vm3322_vm3, %v2629_v32 }
 0x12f   : > { %v8947_v40 = vpop.permute.xlu0 %8946  ;;  %v8953_v19 = vunpack.i.l.bf16 %v8952_v38  ;;  %v8954_v2 = vunpack.i.h.bf16 %v8952_v38 }
 0x130   : > { %v8949_v42 = vunpack.i.h.bf16 %v8947_v40  ;;  %v8948_v3 = vunpack.i.l.bf16 %v8947_v40  ;;  %2676 = vrot.lane.b32.xlu1 %v7922_v36, %s15143_s0 }
 0x131   : > { %2674 = vrot.lane.b32.xlu0 %v7921_v39, %s15143_s0  ;;  %3677 = vmatmul.mubr.f32.gmra.mrb[30].mxu0 %v3193_v18 }
 0x132   : > { %v2903_v45 = vsel %vm2886_vm4, %v882_v0, %v8948_v3  ;;  %v2631_v46 = vpop.permute.xlu1 %2630  ;;  %v2904_v29 = vsel %vm2886_vm4, %v883_v44, %v8949_v42  ;;  %v11439_v0 = vld [vmem:[%s10948_s26 + $0x1e0] sm:$0xff]  ;;  %v11442_v42 = vpack.i.bf16 %v7924_v31, %v11387_v52 }
 0x133   : > { %v8957_v49 = vpop.permute.xlu0 %8956  ;;  %7997 = vmatprep.mubr.msk.f32.mxu0 %vm3322_vm3, %v2631_v46  ;;  %v3000_v51 = vsel %vm2983_vm5, %v2903_v45, %v8953_v19  ;;  %v3001_v12 = vsel %vm2983_vm5, %v2904_v29, %v8954_v2 }
 0x134   : > { %v8959_v47 = vunpack.i.h.bf16 %v8957_v49  ;;  %v8958_v50 = vunpack.i.l.bf16 %v8957_v49  ;;  %9131 = vrot.lane.b32.xlu1 %v11338_v5, %s15142_s21  ;;  %v888_v49 = vld [vmem:[%s10948_s26 + $0xb0] sm:$0xff] }
 0x135   : > { %9126 = vrot.lane.b32.xlu0 %v11286_v25, %s15144_s30  ;;  %v885_v25 = vld [vmem:[%s10948_s26 + $0x98] sm:$0xff] }
 0x136   : > { %v8962_v54 = vpop.permute.xlu1 %8961  ;;  %v3097_v55 = vsel %vm3080_vm6, %v3000_v51, %v8958_v50  ;;  %v3098_v61 = vsel %vm3080_vm6, %v3001_v12, %v8959_v47  ;;  %v7928_v50 = vld [vmem:[%s10948_s26 + $0x1e8] sm:$0xff] }
 0x137   : > { %v8964_v56 = vunpack.i.h.bf16 %v8962_v54  ;;  %v8963_v57 = vunpack.i.l.bf16 %v8962_v54  ;;  %v2633_v59 = vpop.permute.xlu0 %2632  ;;  %v3194_v11 = vsel %vm3177_vm7, %v3097_v55, %v2631_v46 }
 0x138   : > { %3683 = vmatmul.mubr.f32.gmra.mrb[32].mxu0 %v3194_v11  ;;  %2678 = vrot.lane.b32.xlu1 %v11387_v52, %s15143_s0  ;;  %v3195_v9 = vsel %vm3177_vm7, %v3098_v61, %v2633_v59  ;;  %v11461_v11 = vpack.i.bf16 %v7926_v22, %v7925_v4 }
 0x139   : > { %9136 = vrot.lane.b32.xlu0 %v11390_v53, %s15145_s19  ;;  %7998 = vmatprep.mubr.msk.f32.mxu0 %vm3322_vm3, %v2633_v59  ;;  %v2905_v63 = vsel %vm2886_vm4, %v884_v60, %v8963_v57  ;;  %v2906_v1 = vsel %vm2886_vm4, %v885_v25, %v8964_v56 }
 0x13a   : > { %v8972_v62 = vpop.permute.xlu1 %8971 }
 0x13b   : > { %v8973_v6 = vunpack.i.l.bf16 %v8972_v62  ;;  %v8967_v7 = vpop.permute.xlu0 %8966  ;;  %v8974_v15 = vunpack.i.h.bf16 %v8972_v62 }
 0x13c   : > { %v8969_v10 = vunpack.i.h.bf16 %v8967_v7  ;;  %v8968_v13 = vunpack.i.l.bf16 %v8967_v7  ;;  %3689 = vmatmul.mubr.f32.gmra.mrb[34].mxu0 %v3195_v9  ;;  %9141 = vrot.lane.b32.xlu1 %v11305_v43, %s15144_s30  ;;  %v7929_v7 = vld [vmem:[%s10948_s26 + $0x1f0] sm:$0xff] }
 0x13d   : > { %2680 = vrot.lane.b32.xlu0 %v7924_v31, %s15143_s0 }
 0x13e   : > { %v2637_v16 = vpop.permute.xlu1 %2636  ;;  %v3002_v41 = vsel %vm2983_vm5, %v2905_v63, %v8968_v13  ;;  %v3003_v17 = vsel %vm2983_vm5, %v2906_v1, %v8969_v10  ;;  %v7930_v63 = vld [vmem:[%s10948_s26 + $0x1f8] sm:$0xff]  ;;  %v890_v10 = vld [vmem:[%s10948_s26 + $0xc0] sm:$0xff] }
 0x13f   : > { %v2635_v20 = vpop.permute.xlu0 %2634  ;;  %v3099_v21 = vsel %vm3080_vm6, %v3002_v41, %v8973_v6  ;;  %v3100_v23 = vsel %vm3080_vm6, %v3003_v17, %v8974_v15  ;;  %v891_v17 = vld [vmem:[%s10948_s26 + $0xc8] sm:$0xff] }
 0x140   : > { %7999 = vmatprep.mubr.msk.f32.mxu0 %vm3322_vm3, %v2635_v20  ;;  %9151 = vrot.lane.b32.xlu1 %v11409_v14, %s15145_s19  ;;  %v3196_v43 = vsel %vm3177_vm7, %v3099_v21, %v2635_v20  ;;  %v3197_v32 = vsel %vm3177_vm7, %v3100_v23, %v2637_v16 }
 0x141   : > { %9146 = vrot.lane.b32.xlu0 %v11357_v28, %s15142_s21  ;;  %3695 = vmatmul.mubr.f32.gmra.mrb[36].mxu0 %v3196_v43 }
 0x142   : > { %v8982_v24 = vpop.permute.xlu1 %8981  ;;  %8000 = vmatprep.mubr.msk.f32.mxu0 %vm3322_vm3, %v2637_v16 }
 0x143   : > { %v8977_v26 = vpop.permute.xlu0 %8976  ;;  %v8983_v33 = vunpack.i.l.bf16 %v8982_v24  ;;  %v8984_v58 = vunpack.i.h.bf16 %v8982_v24 }
 0x144   : > { %v8979_v8 = vunpack.i.h.bf16 %v8977_v26  ;;  %v8978_v30 = vunpack.i.l.bf16 %v8977_v26  ;;  %2684 = vrot.lane.b32.xlu1 %v7926_v22, %s15143_s0 }
 0x145   : > { %2682 = vrot.lane.b32.xlu0 %v7925_v4, %s15143_s0  ;;  %3701 = vmatmul.mubr.f32.gmra.mrb[38].mxu0 %v3197_v32 }
 0x146   : > { %v2907_v34 = vsel %vm2886_vm4, %v886_v27, %v8978_v30  ;;  %v2639_v35 = vpop.permute.xlu1 %2638  ;;  %v2908_v37 = vsel %vm2886_vm4, %v887_v48, %v8979_v8  ;;  %v11491_v27 = vld [vmem:[%s10948_s26 + $0x200] sm:$0xff]  ;;  %v11494_v8 = vpack.i.bf16 %v7928_v50, %v11439_v0 }
 0x147   : > { %v8987_v36 = vpop.permute.xlu0 %8986  ;;  %8001 = vmatprep.mubr.msk.f32.mxu0 %vm3322_vm3, %v2639_v35  ;;  %v3004_v40 = vsel %vm2983_vm5, %v2907_v34, %v8983_v33  ;;  %v3005_v2 = vsel %vm2983_vm5, %v2908_v37, %v8984_v58 }
 0x148   : > { %v8989_v38 = vunpack.i.h.bf16 %v8987_v36  ;;  %v8988_v39 = vunpack.i.l.bf16 %v8987_v36  ;;  %9161 = vrot.lane.b32.xlu1 %v11390_v53, %s15142_s21  ;;  %v892_v36 = vld [vmem:[%s10948_s26 + $0xd0] sm:$0xff] }
 0x149   : > { %9156 = vrot.lane.b32.xlu0 %v11338_v5, %s15144_s30  ;;  %v889_v5 = vld [vmem:[%s10948_s26 + $0xb8] sm:$0xff] }
 0x14a   : > { %v8992_v3 = vpop.permute.xlu1 %8991  ;;  %v3101_v18 = vsel %vm3080_vm6, %v3004_v40, %v8988_v39  ;;  %v3102_v29 = vsel %vm3080_vm6, %v3005_v2, %v8989_v38  ;;  %v7932_v39 = vld [vmem:[%s10948_s26 + $0x208] sm:$0xff] }
 0x14b   : > { %v8994_v19 = vunpack.i.h.bf16 %v8992_v3  ;;  %v8993_v44 = vunpack.i.l.bf16 %v8992_v3  ;;  %v2641_v45 = vpop.permute.xlu0 %2640  ;;  %v3198_v46 = vsel %vm3177_vm7, %v3101_v18, %v2639_v35 }
 0x14c   : > { %3707 = vmatmul.mubr.f32.gmra.mrb[40].mxu0 %v3198_v46  ;;  %2686 = vrot.lane.b32.xlu1 %v11439_v0, %s15143_s0  ;;  %v3199_v56 = vsel %vm3177_vm7, %v3102_v29, %v2641_v45  ;;  %v11513_v46 = vpack.i.bf16 %v7930_v63, %v7929_v7 }
 0x14d   : > { %9166 = vrot.lane.b32.xlu0 %v11442_v42, %s15145_s19  ;;  %8002 = vmatprep.mubr.msk.f32.mxu0 %vm3322_vm3, %v2641_v45  ;;  %v2909_v51 = vsel %vm2886_vm4, %v888_v49, %v8993_v44  ;;  %v2910_v52 = vsel %vm2886_vm4, %v889_v5, %v8994_v19 }
 0x14e   : > { %v9002_v47 = vpop.permute.xlu1 %9001 }
 0x14f   : > { %v9003_v54 = vunpack.i.l.bf16 %v9002_v47  ;;  %v8997_v55 = vpop.permute.xlu0 %8996  ;;  %v9004_v12 = vunpack.i.h.bf16 %v9002_v47 }
 0x150   : > { %v8999_v57 = vunpack.i.h.bf16 %v8997_v55  ;;  %v8998_v59 = vunpack.i.l.bf16 %v8997_v55  ;;  %3713 = vmatmul.mubr.f32.gmra.mrb[42].mxu0 %v3199_v56  ;;  %9171 = vrot.lane.b32.xlu1 %v11357_v28, %s15144_s30  ;;  %v7933_v55 = vld [vmem:[%s10948_s26 + $0x210] sm:$0xff] }
 0x151   : > { %2688 = vrot.lane.b32.xlu0 %v7928_v50, %s15143_s0 }
 0x152   : > { %v2645_v60 = vpop.permute.xlu1 %2644  ;;  %v3006_v25 = vsel %vm2983_vm5, %v2909_v51, %v8998_v59  ;;  %v3007_v61 = vsel %vm2983_vm5, %v2910_v52, %v8999_v57  ;;  %v7934_v51 = vld [vmem:[%s10948_s26 + $0x218] sm:$0xff]  ;;  %v894_v57 = vld [vmem:[%s10948_s26 + $0xe0] sm:$0xff] }
 0x153   : > { %v2643_v62 = vpop.permute.xlu0 %2642  ;;  %v3103_v31 = vsel %vm3080_vm6, %v3006_v25, %v9003_v54  ;;  %v3104_v1 = vsel %vm3080_vm6, %v3007_v61, %v9004_v12  ;;  %v895_v61 = vld [vmem:[%s10948_s26 + $0xe8] sm:$0xff] }
 0x154   : > { %8003 = vmatprep.mubr.msk.f32.mxu0 %vm3322_vm3, %v2643_v62  ;;  %9181 = vrot.lane.b32.xlu1 %v11461_v11, %s15145_s19  ;;  %v3200_v28 = vsel %vm3177_vm7, %v3103_v31, %v2643_v62  ;;  %v3201_v16 = vsel %vm3177_vm7, %v3104_v1, %v2645_v60 }
 0x155   : > { %9176 = vrot.lane.b32.xlu0 %v11409_v14, %s15142_s21  ;;  %3719 = vmatmul.mubr.f32.gmra.mrb[44].mxu0 %v3200_v28 }
 0x156   : > { %v9012_v6 = vpop.permute.xlu1 %9011  ;;  %8004 = vmatprep.mubr.msk.f32.mxu0 %vm3322_vm3, %v2645_v60 }
 0x157   : > { %v9007_v9 = vpop.permute.xlu0 %9006  ;;  %v9013_v41 = vunpack.i.l.bf16 %v9012_v6  ;;  %v9014_v43 = vunpack.i.h.bf16 %v9012_v6 }
 0x158   : > { %v9009_v13 = vunpack.i.h.bf16 %v9007_v9  ;;  %v9008_v15 = vunpack.i.l.bf16 %v9007_v9  ;;  %2692 = vrot.lane.b32.xlu1 %v7930_v63, %s15143_s0 }
 0x159   : > { %2690 = vrot.lane.b32.xlu0 %v7929_v7, %s15143_s0  ;;  %3725 = vmatmul.mubr.f32.gmra.mrb[46].mxu0 %v3201_v16 }
 0x15a   : > { %v2911_v20 = vsel %vm2886_vm4, %v890_v10, %v9008_v15  ;;  %v2647_v21 = vpop.permute.xlu1 %2646  ;;  %v2912_v23 = vsel %vm2886_vm4, %v891_v17, %v9009_v13  ;;  %v11543_v10 = vld [vmem:[%s10948_s26 + $0x220] sm:$0xff]  ;;  %v11546_v13 = vpack.i.bf16 %v7932_v39, %v11491_v27 }
 0x15b   : > { %v9017_v22 = vpop.permute.xlu0 %9016  ;;  %8005 = vmatprep.mubr.msk.f32.mxu0 %vm3322_vm3, %v2647_v21  ;;  %v3008_v26 = vsel %vm2983_vm5, %v2911_v20, %v9013_v41  ;;  %v3009_v58 = vsel %vm2983_vm5, %v2912_v23, %v9014_v43 }
 0x15c   : > { %v9019_v24 = vunpack.i.h.bf16 %v9017_v22  ;;  %v9018_v4 = vunpack.i.l.bf16 %v9017_v22  ;;  %9191 = vrot.lane.b32.xlu1 %v11442_v42, %s15142_s21  ;;  %v896_v22 = vld [vmem:[%s10948_s26 + $0xf0] sm:$0xff] }
 0x15d   : > { %9186 = vrot.lane.b32.xlu0 %v11390_v53, %s15144_s30  ;;  %v893_v53 = vld [vmem:[%s10948_s26 + $0xd8] sm:$0xff] }
 0x15e   : > { %v9022_v30 = vpop.permute.xlu1 %9021  ;;  %v3105_v32 = vsel %vm3080_vm6, %v3008_v26, %v9018_v4  ;;  %v3106_v37 = vsel %vm3080_vm6, %v3009_v58, %v9019_v24  ;;  %v7936_v4 = vld [vmem:[%s10948_s26 + $0x228] sm:$0xff] }
 0x15f   : > { %v9024_v33 = vunpack.i.h.bf16 %v9022_v30  ;;  %v9023_v48 = vunpack.i.l.bf16 %v9022_v30  ;;  %v2649_v34 = vpop.permute.xlu0 %2648  ;;  %v3202_v35 = vsel %vm3177_vm7, %v3105_v32, %v2647_v21 }
 0x160   : > { %3731 = vmatmul.mubr.f32.gmra.mrb[48].mxu0 %v3202_v35  ;;  %2694 = vrot.lane.b32.xlu1 %v11491_v27, %s15143_s0  ;;  %v3203_v19 = vsel %vm3177_vm7, %v3106_v37, %v2649_v34  ;;  %v11565_v35 = vpack.i.bf16 %v7934_v51, %v7933_v55 }
 0x161   : > { %9196 = vrot.lane.b32.xlu0 %v11494_v8, %s15145_s19  ;;  %8006 = vmatprep.mubr.msk.f32.mxu0 %vm3322_vm3, %v2649_v34  ;;  %v2913_v40 = vsel %vm2886_vm4, %v892_v36, %v9023_v48  ;;  %v2914_v0 = vsel %vm2886_vm4, %v893_v53, %v9024_v33 }
 0x162   : > { %v9032_v38 = vpop.permute.xlu1 %9031 }
 0x163   : > { %v9033_v3 = vunpack.i.l.bf16 %v9032_v38  ;;  %v9027_v18 = vpop.permute.xlu0 %9026  ;;  %v9034_v2 = vunpack.i.h.bf16 %v9032_v38 }
 0x164   : > { %v9029_v44 = vunpack.i.h.bf16 %v9027_v18  ;;  %v9028_v45 = vunpack.i.l.bf16 %v9027_v18  ;;  %3737 = vmatmul.mubr.f32.gmra.mrb[50].mxu0 %v3203_v19  ;;  %9201 = vrot.lane.b32.xlu1 %v11409_v14, %s15144_s30  ;;  %v7937_v18 = vld [vmem:[%s10948_s26 + $0x230] sm:$0xff] }
 0x165   : > { %2696 = vrot.lane.b32.xlu0 %v7932_v39, %s15143_s0 }
 0x166   : > { %v2653_v49 = vpop.permute.xlu1 %2652  ;;  %v3010_v5 = vsel %vm2983_vm5, %v2913_v40, %v9028_v45  ;;  %v3011_v29 = vsel %vm2983_vm5, %v2914_v0, %v9029_v44  ;;  %v7938_v40 = vld [vmem:[%s10948_s26 + $0x238] sm:$0xff]  ;;  %v898_v44 = vld [vmem:[%s10948_s26 + $0x100] sm:$0xff] }
 0x167   : > { %v2651_v47 = vpop.permute.xlu0 %2650  ;;  %v3107_v50 = vsel %vm3080_vm6, %v3010_v5, %v9033_v3  ;;  %v3108_v52 = vsel %vm3080_vm6, %v3011_v29, %v9034_v2  ;;  %v899_v29 = vld [vmem:[%s10948_s26 + $0x108] sm:$0xff] }
 0x168   : > { %8007 = vmatprep.mubr.msk.f32.mxu0 %vm3322_vm3, %v2651_v47  ;;  %9211 = vrot.lane.b32.xlu1 %v11513_v46, %s15145_s19  ;;  %v3204_v14 = vsel %vm3177_vm7, %v3107_v50, %v2651_v47  ;;  %v3205_v60 = vsel %vm3177_vm7, %v3108_v52, %v2653_v49 }
 0x169   : > { %9206 = vrot.lane.b32.xlu0 %v11461_v11, %s15142_s21  ;;  %3743 = vmatmul.mubr.f32.gmra.mrb[52].mxu0 %v3204_v14 }
 0x16a   : > { %v9042_v54 = vpop.permute.xlu1 %9041  ;;  %8008 = vmatprep.mubr.msk.f32.mxu0 %vm3322_vm3, %v2653_v49 }
 0x16b   : > { %v9037_v56 = vpop.permute.xlu0 %9036  ;;  %v9043_v25 = vunpack.i.l.bf16 %v9042_v54  ;;  %v9044_v28 = vunpack.i.h.bf16 %v9042_v54 }
 0x16c   : > { %v9039_v59 = vunpack.i.h.bf16 %v9037_v56  ;;  %v9038_v12 = vunpack.i.l.bf16 %v9037_v56  ;;  %2700 = vrot.lane.b32.xlu1 %v7934_v51, %s15143_s0 }
 0x16d   : > { %2698 = vrot.lane.b32.xlu0 %v7933_v55, %s15143_s0  ;;  %3749 = vmatmul.mubr.f32.gmra.mrb[54].mxu0 %v3205_v60 }
 0x16e   : > { %v2915_v62 = vsel %vm2886_vm4, %v894_v57, %v9038_v12  ;;  %v2655_v31 = vpop.permute.xlu1 %2654  ;;  %v2916_v1 = vsel %vm2886_vm4, %v895_v61, %v9039_v59  ;;  %v11595_v57 = vld [vmem:[%s10948_s26 + $0x240] sm:$0xff]  ;;  %v11598_v59 = vpack.i.bf16 %v7936_v4, %v11543_v10 }
 0x16f   : > { %v9047_v63 = vpop.permute.xlu0 %9046  ;;  %8009 = vmatprep.mubr.msk.f32.mxu0 %vm3322_vm3, %v2655_v31  ;;  %v3012_v9 = vsel %vm2983_vm5, %v2915_v62, %v9043_v25  ;;  %v3013_v43 = vsel %vm2983_vm5, %v2916_v1, %v9044_v28 }
 0x170   : > { %v9049_v6 = vunpack.i.h.bf16 %v9047_v63  ;;  %v9048_v7 = vunpack.i.l.bf16 %v9047_v63  ;;  %9221 = vrot.lane.b32.xlu1 %v11494_v8, %s15142_s21  ;;  %v900_v63 = vld [vmem:[%s10948_s26 + $0x110] sm:$0xff] }
 0x171   : > { %9216 = vrot.lane.b32.xlu0 %v11442_v42, %s15144_s30  ;;  %v897_v42 = vld [vmem:[%s10948_s26 + $0xf8] sm:$0xff] }
 0x172   : > { %v9052_v15 = vpop.permute.xlu1 %9051  ;;  %v3109_v16 = vsel %vm3080_vm6, %v3012_v9, %v9048_v7  ;;  %v3110_v23 = vsel %vm3080_vm6, %v3013_v43, %v9049_v6  ;;  %v7940_v7 = vld [vmem:[%s10948_s26 + $0x248] sm:$0xff] }
 0x173   : > { %v9054_v41 = vunpack.i.h.bf16 %v9052_v15  ;;  %v9053_v17 = vunpack.i.l.bf16 %v9052_v15  ;;  %v2657_v20 = vpop.permute.xlu0 %2656  ;;  %v3206_v21 = vsel %vm3177_vm7, %v3109_v16, %v2655_v31 }
 0x174   : > { %3755 = vmatmul.mubr.f32.gmra.mrb[56].mxu0 %v3206_v21  ;;  %2702 = vrot.lane.b32.xlu1 %v11543_v10, %s15143_s0  ;;  %v3207_v33 = vsel %vm3177_vm7, %v3110_v23, %v2657_v20  ;;  %v11617_v21 = vpack.i.bf16 %v7938_v40, %v7937_v18 }
 0x175   : > { %9226 = vrot.lane.b32.xlu0 %v11546_v13, %s15145_s19  ;;  %8010 = vmatprep.mubr.msk.f32.mxu0 %vm3322_vm3, %v2657_v20  ;;  %v2917_v26 = vsel %vm2886_vm4, %v896_v22, %v9053_v17  ;;  %v2918_v27 = vsel %vm2886_vm4, %v897_v42, %v9054_v41 }
 0x176   : > { %v9062_v24 = vpop.permute.xlu1 %9061 }
 0x177   : > { %v9063_v30 = vunpack.i.l.bf16 %v9062_v24  ;;  %v9057_v32 = vpop.permute.xlu0 %9056  ;;  %v9064_v58 = vunpack.i.h.bf16 %v9062_v24 }
 0x178   : > { %v9059_v48 = vunpack.i.h.bf16 %v9057_v32  ;;  %v9058_v34 = vunpack.i.l.bf16 %v9057_v32  ;;  %3761 = vmatmul.mubr.f32.gmra.mrb[58].mxu0 %v3207_v33  ;;  %9231 = vrot.lane.b32.xlu1 %v11461_v11, %s15144_s30  ;;  %v7941_v32 = vld [vmem:[%s10948_s26 + $0x250] sm:$0xff] }
 0x179   : > { %2704 = vrot.lane.b32.xlu0 %v7936_v4, %s15143_s0 }
 0x17a   : > { %v2661_v36 = vpop.permute.xlu1 %2660  ;;  %v3014_v53 = vsel %vm2983_vm5, %v2917_v26, %v9058_v34  ;;  %v3015_v37 = vsel %vm2983_vm5, %v2918_v27, %v9059_v48  ;;  %v7942_v26 = vld [vmem:[%s10948_s26 + $0x258] sm:$0xff]  ;;  %v902_v48 = vld [vmem:[%s10948_s26 + $0x120] sm:$0xff] }
 0x17b   : > { %v2659_v38 = vpop.permute.xlu0 %2658  ;;  %v3111_v39 = vsel %vm3080_vm6, %v3014_v53, %v9063_v30  ;;  %v3112_v0 = vsel %vm3080_vm6, %v3015_v37, %v9064_v58  ;;  %v903_v37 = vld [vmem:[%s10948_s26 + $0x128] sm:$0xff] }
 0x17c   : > { %8011 = vmatprep.mubr.msk.f32.mxu0 %vm3322_vm3, %v2659_v38  ;;  %9241 = vrot.lane.b32.xlu1 %v11565_v35, %s15145_s19  ;;  %v3208_v11 = vsel %vm3177_vm7, %v3111_v39, %v2659_v38  ;;  %v3209_v49 = vsel %vm3177_vm7, %v3112_v0, %v2661_v36 }
 0x17d   : > { %9236 = vrot.lane.b32.xlu0 %v11513_v46, %s15142_s21  ;;  %3767 = vmatmul.mubr.f32.gmra.mrb[60].mxu0 %v3208_v11 }
 0x17e   : > { %v9072_v3 = vpop.permute.xlu1 %9071  ;;  %8012 = vmatprep.mubr.msk.f32.mxu0 %vm3322_vm3, %v2661_v36 }
 0x17f   : > { %v9067_v19 = vpop.permute.xlu0 %9066  ;;  %v9073_v5 = vunpack.i.l.bf16 %v9072_v3  ;;  %v9074_v14 = vunpack.i.h.bf16 %v9072_v3 }
 0x180   : > { %v9069_v45 = vunpack.i.h.bf16 %v9067_v19  ;;  %v9068_v2 = vunpack.i.l.bf16 %v9067_v19  ;;  %2708 = vrot.lane.b32.xlu1 %v7938_v40, %s15143_s0 }
 0x181   : > { %2706 = vrot.lane.b32.xlu0 %v7937_v18, %s15143_s0  ;;  %3773 = vmatmul.mubr.f32.gmra.mrb[62].mxu0 %v3209_v49 }
 0x182   : > { %v2919_v47 = vsel %vm2886_vm4, %v898_v44, %v9068_v2  ;;  %v2663_v50 = vpop.permute.xlu1 %2662  ;;  %v2920_v52 = vsel %vm2886_vm4, %v899_v29, %v9069_v45  ;;  %v11647_v44 = vld [vmem:[%s10948_s26 + $0x260] sm:$0xff]  ;;  %v11650_v45 = vpack.i.bf16 %v7940_v7, %v11595_v57 }
 0x183   : > { %v9077_v51 = vpop.permute.xlu0 %9076  ;;  %8013 = vmatprep.mubr.msk.f32.mxu0 %vm3322_vm3, %v2663_v50  ;;  %v3016_v56 = vsel %vm2983_vm5, %v2919_v47, %v9073_v5  ;;  %v3017_v28 = vsel %vm2983_vm5, %v2920_v52, %v9074_v14 }
 0x184   : > { %v9079_v54 = vunpack.i.h.bf16 %v9077_v51  ;;  %v9078_v55 = vunpack.i.l.bf16 %v9077_v51  ;;  %9251 = vrot.lane.b32.xlu1 %v11546_v13, %s15142_s21  ;;  %v904_v51 = vld [vmem:[%s10948_s26 + $0x130] sm:$0xff] }
 0x185   : > { %9246 = vrot.lane.b32.xlu0 %v11494_v8, %s15144_s30  ;;  %v901_v8 = vld [vmem:[%s10948_s26 + $0x118] sm:$0xff] }
 0x186   : > { %v9082_v12 = vpop.permute.xlu1 %9081  ;;  %v3113_v60 = vsel %vm3080_vm6, %v3016_v56, %v9078_v55  ;;  %v3114_v1 = vsel %vm3080_vm6, %v3017_v28, %v9079_v54  ;;  %v7944_v55 = vld [vmem:[%s10948_s26 + $0x268] sm:$0xff] }
 0x187   : > { %v9084_v25 = vunpack.i.h.bf16 %v9082_v12  ;;  %v9083_v61 = vunpack.i.l.bf16 %v9082_v12  ;;  %v2665_v62 = vpop.permute.xlu0 %2664  ;;  %v3210_v31 = vsel %vm3177_vm7, %v3113_v60, %v2663_v50 }
 0x188   : > { %3779 = vmatmul.mubr.f32.gmra.mrb[64].mxu0 %v3210_v31  ;;  %2710 = vrot.lane.b32.xlu1 %v11595_v57, %s15143_s0  ;;  %v3211_v41 = vsel %vm3177_vm7, %v3114_v1, %v2665_v62  ;;  %v11669_v31 = vpack.i.bf16 %v7942_v26, %v7941_v32 }
 0x189   : > { %9256 = vrot.lane.b32.xlu0 %v11598_v59, %s15145_s19  ;;  %8014 = vmatprep.mubr.msk.f32.mxu0 %vm3322_vm3, %v2665_v62  ;;  %v2921_v9 = vsel %vm2886_vm4, %v900_v63, %v9083_v61  ;;  %v2922_v10 = vsel %vm2886_vm4, %v901_v8, %v9084_v25 }
 0x18a   : > { %v9092_v6 = vpop.permute.xlu1 %9091 }
 0x18b   : > { %v9093_v15 = vunpack.i.l.bf16 %v9092_v6  ;;  %v9087_v16 = vpop.permute.xlu0 %9086  ;;  %v9094_v43 = vunpack.i.h.bf16 %v9092_v6 }
 0x18c   : > { %v9089_v17 = vunpack.i.h.bf16 %v9087_v16  ;;  %v9088_v20 = vunpack.i.l.bf16 %v9087_v16  ;;  %3785 = vmatmul.mubr.f32.gmra.mrb[66].mxu0 %v3211_v41  ;;  %9261 = vrot.lane.b32.xlu1 %v11513_v46, %s15144_s30  ;;  %v7945_v16 = vld [vmem:[%s10948_s26 + $0x270] sm:$0xff] }
 0x18d   : > { %2712 = vrot.lane.b32.xlu0 %v7940_v7, %s15143_s0 }
 0x18e   : > { %v2669_v22 = vpop.permute.xlu1 %2668  ;;  %v3018_v42 = vsel %vm2983_vm5, %v2921_v9, %v9088_v20  ;;  %v3019_v23 = vsel %vm2983_vm5, %v2922_v10, %v9089_v17  ;;  %v7946_v9 = vld [vmem:[%s10948_s26 + $0x278] sm:$0xff]  ;;  %v906_v17 = vld [vmem:[%s10948_s26 + $0x140] sm:$0xff] }
 0x18f   : > { %v2667_v24 = vpop.permute.xlu0 %2666  ;;  %v3115_v4 = vsel %vm3080_vm6, %v3018_v42, %v9093_v15  ;;  %v3116_v27 = vsel %vm3080_vm6, %v3019_v23, %v9094_v43  ;;  %v907_v23 = vld [vmem:[%s10948_s26 + $0x148] sm:$0xff] }
 0x190   : > { %8015 = vmatprep.mubr.msk.f32.mxu0 %vm3322_vm3, %v2667_v24  ;;  %9271 = vrot.lane.b32.xlu1 %v11617_v21, %s15145_s19  ;;  %v3212_v46 = vsel %vm3177_vm7, %v3115_v4, %v2667_v24  ;;  %v3213_v36 = vsel %vm3177_vm7, %v3116_v27, %v2669_v22 }
 0x191   : > { %9266 = vrot.lane.b32.xlu0 %v11565_v35, %s15142_s21  ;;  %3791 = vmatmul.mubr.f32.gmra.mrb[68].mxu0 %v3212_v46 }
 0x192   : > { %v9102_v30 = vpop.permute.xlu1 %9101  ;;  %8016 = vmatprep.mubr.msk.f32.mxu0 %vm3322_vm3, %v2669_v22 }
 0x193   : > { %v9097_v33 = vpop.permute.xlu0 %9096  ;;  %v9103_v53 = vunpack.i.l.bf16 %v9102_v30  ;;  %v9104_v11 = vunpack.i.h.bf16 %v9102_v30 }
 0x194   : > { %v9099_v34 = vunpack.i.h.bf16 %v9097_v33  ;;  %v9098_v58 = vunpack.i.l.bf16 %v9097_v33  ;;  %2716 = vrot.lane.b32.xlu1 %v7942_v26, %s15143_s0 }
 0x195   : > { %2714 = vrot.lane.b32.xlu0 %v7941_v32, %s15143_s0  ;;  %3797 = vmatmul.mubr.f32.gmra.mrb[70].mxu0 %v3213_v36 }
 0x196   : > { %v2923_v38 = vsel %vm2886_vm4, %v902_v48, %v9098_v58  ;;  %v2671_v39 = vpop.permute.xlu1 %2670  ;;  %v2924_v0 = vsel %vm2886_vm4, %v903_v37, %v9099_v34  ;;  %v11699_v48 = vld [vmem:[%s10948_s26 + $0x280] sm:$0xff]  ;;  %v11702_v34 = vpack.i.bf16 %v7944_v55, %v11647_v44 }
 0x197   : > { %v9107_v40 = vpop.permute.xlu0 %9106  ;;  %8017 = vmatprep.mubr.msk.f32.mxu0 %vm3322_vm3, %v2671_v39  ;;  %v3020_v19 = vsel %vm2983_vm5, %v2923_v38, %v9103_v53  ;;  %v3021_v14 = vsel %vm2983_vm5, %v2924_v0, %v9104_v11 }
 0x198   : > { %v9109_v3 = vunpack.i.h.bf16 %v9107_v40  ;;  %v9108_v18 = vunpack.i.l.bf16 %v9107_v40  ;;  %9281 = vrot.lane.b32.xlu1 %v11598_v59, %s15142_s21  ;;  %v908_v40 = vld [vmem:[%s10948_s26 + $0x150] sm:$0xff] }
 0x199   : > { %9276 = vrot.lane.b32.xlu0 %v11546_v13, %s15144_s30  ;;  %v905_v13 = vld [vmem:[%s10948_s26 + $0x138] sm:$0xff] }
 0x19a   : > { %v9112_v2 = vpop.permute.xlu1 %9111  ;;  %v3117_v49 = vsel %vm3080_vm6, %v3020_v19, %v9108_v18  ;;  %v3118_v52 = vsel %vm3080_vm6, %v3021_v14, %v9109_v3  ;;  %v7948_v18 = vld [vmem:[%s10948_s26 + $0x288] sm:$0xff] }
 0x19b   : > { %v9114_v5 = vunpack.i.h.bf16 %v9112_v2  ;;  %v9113_v29 = vunpack.i.l.bf16 %v9112_v2  ;;  %v2673_v47 = vpop.permute.xlu0 %2672  ;;  %v3214_v50 = vsel %vm3177_vm7, %v3117_v49, %v2671_v39 }
 0x19c   : > { %3803 = vmatmul.mubr.f32.gmra.mrb[72].mxu0 %v3214_v50  ;;  %2718 = vrot.lane.b32.xlu1 %v11647_v44, %s15143_s0  ;;  %v3215_v25 = vsel %vm3177_vm7, %v3118_v52, %v2673_v47  ;;  %v11721_v50 = vpack.i.bf16 %v7946_v9, %v7945_v16 }
 0x19d   : > { %9286 = vrot.lane.b32.xlu0 %v11650_v45, %s15145_s19  ;;  %8018 = vmatprep.mubr.msk.f32.mxu0 %vm3322_vm3, %v2673_v47  ;;  %v2925_v56 = vsel %vm2886_vm4, %v904_v51, %v9113_v29  ;;  %v2926_v57 = vsel %vm2886_vm4, %v905_v13, %v9114_v5 }
 0x19e   : > { %v9122_v54 = vpop.permute.xlu1 %9121 }
 0x19f   : > { %v9123_v12 = vunpack.i.l.bf16 %v9122_v54  ;;  %v9117_v60 = vpop.permute.xlu0 %9116  ;;  %v9124_v28 = vunpack.i.h.bf16 %v9122_v54 }
 0x1a0   : > { %v9119_v61 = vunpack.i.h.bf16 %v9117_v60  ;;  %v9118_v62 = vunpack.i.l.bf16 %v9117_v60  ;;  %3809 = vmatmul.mubr.f32.gmra.mrb[74].mxu0 %v3215_v25  ;;  %9291 = vrot.lane.b32.xlu1 %v11565_v35, %s15144_s30  ;;  %v7949_v25 = vld [vmem:[%s10948_s26 + $0x290] sm:$0xff] }
 0x1a1   : > { %2720 = vrot.lane.b32.xlu0 %v7944_v55, %s15143_s0 }
 0x1a2   : > { %v2677_v63 = vpop.permute.xlu1 %2676  ;;  %v3022_v8 = vsel %vm2983_vm5, %v2925_v56, %v9118_v62  ;;  %v3023_v1 = vsel %vm2983_vm5, %v2926_v57, %v9119_v61  ;;  %v3312_v56 = vlaneseq  ;;  %v11734_v57 = vld [vmem:[%s10948_s26 + $0x298] sm:$0xff]  ;;  %v910_v62 = vld [vmem:[%s10948_s26 + $0x160] sm:$0xff] }
 0x1a3   : > { %v2675_v6 = vpop.permute.xlu0 %2674  ;;  %v3119_v7 = vsel %vm3080_vm6, %v3022_v8, %v9123_v12  ;;  %v3120_v10 = vsel %vm3080_vm6, %v3023_v1, %v9124_v28 }
 0x1a4   : > { %8019 = vmatprep.mubr.msk.f32.mxu0 %vm3322_vm3, %v2675_v6  ;;  %9301 = vrot.lane.b32.xlu1 %v11669_v31, %s15145_s19  ;;  %v3216_v35 = vsel %vm3177_vm7, %v3119_v7, %v2675_v6  ;;  %v3217_v22 = vsel %vm3177_vm7, %v3120_v10, %v2677_v63  ;;  %v911_v7 = vld [vmem:[%s10948_s26 + $0x168] sm:$0xff] }
 0x1a5   : > { %9296 = vrot.lane.b32.xlu0 %v11617_v21, %s15142_s21  ;;  %3815 = vmatmul.mubr.f32.gmra.mrb[76].mxu0 %v3216_v35  ;;  %v3313_v35 = vshrl.u32 %v3312_v56, 7 }
 0x1a6   : > { %v9132_v15 = vpop.permute.xlu1 %9131  ;;  %8020 = vmatprep.mubr.msk.f32.mxu0 %vm3322_vm3, %v2677_v63 }
 0x1a7   : > { %v9127_v41 = vpop.permute.xlu0 %9126  ;;  %v9133_v42 = vunpack.i.l.bf16 %v9132_v15  ;;  %v9134_v46 = vunpack.i.h.bf16 %v9132_v15 }
 0x1a8   : > { %v9129_v20 = vunpack.i.h.bf16 %v9127_v41  ;;  %v9128_v43 = vunpack.i.l.bf16 %v9127_v41  ;;  %2724 = vrot.lane.b32.xlu1 %v7946_v9, %s15143_s0 }
 0x1a9   : > { %2722 = vrot.lane.b32.xlu0 %v7945_v16, %s15143_s0  ;;  %3821 = vmatmul.mubr.f32.gmra.mrb[78].mxu0 %v3217_v22 }
 0x1aa   : > { %v2927_v24 = vsel %vm2886_vm4, %v906_v17, %v9128_v43  ;;  %v2679_v4 = vpop.permute.xlu1 %2678  ;;  %v2928_v27 = vsel %vm2886_vm4, %v907_v23, %v9129_v20 }
 0x1ab   : > { %v9137_v26 = vpop.permute.xlu0 %9136  ;;  %8021 = vmatprep.mubr.msk.f32.mxu0 %vm3322_vm3, %v2679_v4  ;;  %v3024_v33 = vsel %vm2983_vm5, %v2927_v24, %v9133_v42  ;;  %v3025_v11 = vsel %vm2983_vm5, %v2928_v27, %v9134_v46  ;;  %v3314_v42 = vsub.s32 0, %v3313_v35  ;;  %v11757_v46 = vpack.i.bf16 %v7948_v18, %v11699_v48 }
 0x1ac   : > { %v9139_v30 = vunpack.i.h.bf16 %v9137_v26  ;;  %v9138_v32 = vunpack.i.l.bf16 %v9137_v26  ;;  %9311 = vrot.lane.b32.xlu1 %v11650_v45, %s15142_s21  ;;  %v3310_v26 = vld [vmem:[%s15038_s2] sm:$0x3]  ;;  %v3318_v27 = vsub.s32 1, %v3313_v35 }
 0x1ad   : > { %9306 = vrot.lane.b32.xlu0 %v11598_v59, %s15144_s30  ;;  %v909_v59 = vld [vmem:[%s10948_s26 + $0x158] sm:$0xff] }
 0x1ae   : > { %v9142_v58 = vpop.permute.xlu1 %9141  ;;  %v3121_v36 = vsel %vm3080_vm6, %v3024_v33, %v9138_v32  ;;  %v3122_v0 = vsel %vm3080_vm6, %v3025_v11, %v9139_v30  ;;  %v11770_v11 = vrot.slane %v3310_v26, %v3314_v42 }
 0x1af   : > { %v9144_v53 = vunpack.i.h.bf16 %v9142_v58  ;;  %v9143_v37 = vunpack.i.l.bf16 %v9142_v58  ;;  %v2681_v38 = vpop.permute.xlu0 %2680  ;;  %v3218_v39 = vsel %vm3177_vm7, %v3121_v36, %v2679_v4  ;;  %v11754_v4 = vld [vmem:[%s10948_s26 + $0x2a0] sm:$0xff] }
 0x1b0   : > { %3827 = vmatmul.mubr.f32.gmra.mrb[80].mxu0 %v3218_v39  ;;  %2726 = vrot.lane.b32.xlu1 %v11699_v48, %s15143_s0  ;;  %v3219_v5 = vsel %vm3177_vm7, %v3122_v0, %v2681_v38  ;;  %15146 = vst [vmem:[#allocation9_spill] sm:$0xff] %v11770_v11 }
 0x1b1   : > { %9316 = vrot.lane.b32.xlu0 %v11702_v34, %s15145_s19  ;;  %8022 = vmatprep.mubr.msk.f32.mxu0 %vm3322_vm3, %v2681_v38  ;;  %v2929_v19 = vsel %vm2886_vm4, %v908_v40, %v9143_v37  ;;  %v2930_v44 = vsel %vm2886_vm4, %v909_v59, %v9144_v53  ;;  %v912_v37 = vld [vmem:[%s10948_s26 + $0x170] sm:$0xff]  ;;  %v913_v38 = vld [vmem:[%s10948_s26 + $0x178] sm:$0xff]  ;;  %v11775_v59 = vrot.slane %v3310_v26, %v3318_v27 }
 0x1b2   : > { %v9152_v3 = vpop.permute.xlu1 %9151 }
 0x1b3   : > { %v9153_v2 = vunpack.i.l.bf16 %v9152_v3  ;;  %v9147_v49 = vpop.permute.xlu0 %9146  ;;  %v9154_v14 = vunpack.i.h.bf16 %v9152_v3  ;;  %15147 = vst [vmem:[#allocation10_spill] sm:$0xff] %v11775_v59  ;;  %v11778_v3 = vld [vmem:[%s10948_s26 + $0x2a8] sm:$0xff] }
 0x1b4   : > { %v9149_v29 = vunpack.i.h.bf16 %v9147_v49  ;;  %v9148_v47 = vunpack.i.l.bf16 %v9147_v49  ;;  %3833 = vmatmul.mubr.f32.gmra.mrb[82].mxu0 %v3219_v5  ;;  %9321 = vrot.lane.b32.xlu1 %v11617_v21, %s15144_s30 }
 0x1b5   : > { %2728 = vrot.lane.b32.xlu0 %v7948_v18, %s15143_s0 }
 0x1b6   : > { %v2685_v51 = vpop.permute.xlu1 %2684  ;;  %v3026_v13 = vsel %vm2983_vm5, %v2929_v19, %v9148_v47  ;;  %v3027_v52 = vsel %vm2983_vm5, %v2930_v44, %v9149_v29 }
 0x1b7   : > { %v2683_v54 = vpop.permute.xlu0 %2682  ;;  %v3123_v55 = vsel %vm3080_vm6, %v3026_v13, %v9153_v2  ;;  %v3124_v12 = vsel %vm3080_vm6, %v3027_v52, %v9154_v14  ;;  %v11786_v14 = vpack.i.bf16 %v11734_v57, %v7949_v25 }
 0x1b8   : > { %8023 = vmatprep.mubr.msk.f32.mxu0 %vm3322_vm3, %v2683_v54  ;;  %9331 = vrot.lane.b32.xlu1 %v11721_v50, %s15145_s19  ;;  %v3220_v21 = vsel %vm3177_vm7, %v3123_v55, %v2683_v54  ;;  %v3221_v1 = vsel %vm3177_vm7, %v3124_v12, %v2685_v51 }
 0x1b9   : > { %9326 = vrot.lane.b32.xlu0 %v11669_v31, %s15142_s21  ;;  %3839 = vmatmul.mubr.f32.gmra.mrb[84].mxu0 %v3220_v21 }
 0x1ba   : > { %v9162_v60 = vpop.permute.xlu1 %9161  ;;  %8024 = vmatprep.mubr.msk.f32.mxu0 %vm3322_vm3, %v2685_v51 }
 0x1bb   : > { %v9157_v61 = vpop.permute.xlu0 %9156  ;;  %v9163_v6 = vunpack.i.l.bf16 %v9162_v60  ;;  %v9164_v16 = vunpack.i.h.bf16 %v9162_v60 }
 0x1bc   : > { %v9159_v28 = vunpack.i.h.bf16 %v9157_v61  ;;  %v9158_v63 = vunpack.i.l.bf16 %v9157_v61  ;;  %v3588_v8 = vpop.f32.mrb[0].mxu0  ;;  %2732 = vrot.lane.b32.xlu1 %v11734_v57, %s15143_s0  ;;  %v11804_v61 = vld [vmem:[%s10948_s26 + $0x2b8] sm:$0xff] }
 0x1bd   : > { %2730 = vrot.lane.b32.xlu0 %v7949_v25, %s15143_s0  ;;  %v3590_v9 = vpop.f32.mrb[1].mxu0  ;;  %3845 = vmatmul.mubr.f32.gmra.mrb[86].mxu0 %v3221_v1  ;;  %v3589_v51 = vadd.f32 %v3588_v8, %v11770_v11 }
 0x1be   : > { %v2931_v10 = vsel %vm2886_vm4, %v910_v62, %v9158_v63  ;;  %v2687_v15 = vpop.permute.xlu1 %2686  ;;  %v2932_v17 = vsel %vm2886_vm4, %v911_v7, %v9159_v28  ;;  %v3591_v54 = vadd.f32 %v3590_v9, %v11775_v59  ;;  %v11809_v63 = vld [vmem:[%s10948_s26 + $0x2b0] sm:$0xff]  ;;  %v915_v7 = vld [vmem:[%s10948_s26 + $0x188] sm:$0xff] }
 0x1bf   : > { %v9167_v41 = vpop.permute.xlu0 %9166  ;;  %8025 = vmatprep.mubr.msk.f32.mxu0 %vm3322_vm3, %v2687_v15  ;;  %v3028_v24 = vsel %vm2983_vm5, %v2931_v10, %v9163_v6  ;;  %v3029_v53 = vsel %vm2983_vm5, %v2932_v17, %v9164_v16  ;;  %10025 = vtanh.f32 %v3589_v51  ;;  %v914_v6 = vld [vmem:[%s10948_s26 + $0x180] sm:$0xff] }
 0x1c0   : > { %v9169_v20 = vunpack.i.h.bf16 %v9167_v41  ;;  %v9168_v43 = vunpack.i.l.bf16 %v9167_v41  ;;  %v3594_v22 = vpop.f32.mrb[2].mxu0  ;;  %9341 = vrot.lane.b32.xlu1 %v11702_v34, %s15142_s21  ;;  %10027 = vtanh.f32 %v3591_v54 }
 0x1c1   : > { %9336 = vrot.lane.b32.xlu0 %v11650_v45, %s15144_s30  ;;  %v3596_v23 = vpop.f32.mrb[3].mxu0 }
 0x1c2   : > { %v9172_v30 = vpop.permute.xlu1 %9171  ;;  %v3125_v32 = vsel %vm3080_vm6, %v3028_v24, %v9168_v43  ;;  %v3126_v39 = vsel %vm3080_vm6, %v3029_v53, %v9169_v20  ;;  %v3597_v25 = vadd.f32 %v3596_v23, %v11775_v59 }
 0x1c3   : > { %v9174_v33 = vunpack.i.h.bf16 %v9172_v30  ;;  %v9173_v58 = vunpack.i.l.bf16 %v9172_v30  ;;  %v2689_v45 = vpop.permute.xlu0 %2688  ;;  %v3222_v36 = vsel %vm3177_vm7, %v3125_v32, %v2687_v15  ;;  %v11827_v30 = vpack.i.bf16 %v11778_v3, %v11754_v4 }
 0x1c4   : > { %v3600_v48 = vpop.f32.mrb[4].mxu0  ;;  %3851 = vmatmul.mubr.f32.gmra.mrb[88].mxu0 %v3222_v36  ;;  %2734 = vrot.lane.b32.xlu1 %v11754_v4, %s15143_s0  ;;  %v3223_v49 = vsel %vm3177_vm7, %v3126_v39, %v2689_v45  ;;  %v11838_v4 = vld [vmem:[%s10948_s26 + $0x2c0] sm:$0xff] }
 0x1c5   : > { %9346 = vrot.lane.b32.xlu0 %v11757_v46, %s15145_s19  ;;  %v3602_v40 = vpop.f32.mrb[5].mxu0  ;;  %8026 = vmatprep.mubr.msk.f32.mxu0 %vm3322_vm3, %v2689_v45  ;;  %v2933_v18 = vsel %vm2886_vm4, %v912_v37, %v9173_v58  ;;  %v2934_v19 = vsel %vm2886_vm4, %v913_v38, %v9174_v33  ;;  %v3601_v8 = vadd.f32 %v3600_v48, %v11770_v11 }
 0x1c6   : > { %v9182_v0 = vpop.permute.xlu1 %9181  ;;  %v3603_v24 = vadd.f32 %v3602_v40, %v11775_v59 }
 0x1c7   : > { %v9183_v44 = vunpack.i.l.bf16 %v9182_v0  ;;  %v9177_v2 = vpop.permute.xlu0 %9176  ;;  %v9184_v13 = vunpack.i.h.bf16 %v9182_v0 }
 0x1c8   : > { %v9179_v5 = vunpack.i.h.bf16 %v9177_v2  ;;  %v9178_v29 = vunpack.i.l.bf16 %v9177_v2  ;;  %v3606_v47 = vpop.f32.mrb[6].mxu0  ;;  %3857 = vmatmul.mubr.f32.gmra.mrb[90].mxu0 %v3223_v49  ;;  %9351 = vrot.lane.b32.xlu1 %v11669_v31, %s15144_s30  ;;  %v3595_v31 = vadd.f32 %v3594_v22, %v11770_v11  ;;  %v916_v49 = vld [vmem:[%s10948_s26 + $0x190] sm:$0xff] }
 0x1c9   : > { %2736 = vrot.lane.b32.xlu0 %v11778_v3, %s15143_s0  ;;  %v3608_v52 = vpop.f32.mrb[7].mxu0  ;;  %v3607_v36 = vadd.f32 %v3606_v47, %v11770_v11  ;;  %v10026_v3 = vpop.eup %10025 }
 0x1ca   : > { %v2693_v55 = vpop.permute.xlu1 %2692  ;;  %v3030_v21 = vsel %vm2983_vm5, %v2933_v18, %v9178_v29  ;;  %v3031_v56 = vsel %vm2983_vm5, %v2934_v19, %v9179_v5  ;;  %10029 = vtanh.f32 %v3595_v31  ;;  %v3609_v48 = vadd.f32 %v3608_v52, %v11775_v59  ;;  %v10028_v2 = vpop.eup %10027  ;;  %v917_v5 = vld [vmem:[%s10948_s26 + $0x198] sm:$0xff] }
 0x1cb   : > { %v2691_v57 = vpop.permute.xlu0 %2690  ;;  %v3127_v12 = vsel %vm3080_vm6, %v3030_v21, %v9183_v44  ;;  %v3128_v62 = vsel %vm3080_vm6, %v3031_v56, %v9184_v13  ;;  %10031 = vtanh.f32 %v3597_v25  ;;  %v11856_v21 = vld [vmem:[%s10948_s26 + $0x2c8] sm:$0xff]  ;;  %v11860_v56 = vpack.i.bf16 %v11804_v61, %v11809_v63 }
 0x1cc   : > { %8027 = vmatprep.mubr.msk.f32.mxu0 %vm3322_vm3, %v2691_v57  ;;  %9361 = vrot.lane.b32.xlu1 %v11786_v14, %s15145_s19  ;;  %v3224_v60 = vsel %vm3177_vm7, %v3127_v12, %v2691_v57  ;;  %v3225_v41 = vsel %vm3177_vm7, %v3128_v62, %v2693_v55  ;;  %v6130_v62 = vld [vmem:[%s15039_s3] sm:$0xff] }
 0x1cd   : > { %9356 = vrot.lane.b32.xlu0 %v11721_v50, %s15142_s21  ;;  %3863 = vmatmul.mubr.f32.gmra.mrb[92].mxu0 %v3224_v60 }
 0x1ce   : > { %v9192_v28 = vpop.permute.xlu1 %9191  ;;  %8028 = vmatprep.mubr.msk.f32.mxu0 %vm3322_vm3, %v2693_v55 }
 0x1cf   : > { %v9187_v1 = vpop.permute.xlu0 %9186  ;;  %v3612_v35 = vpop.f32.mrb[8].mxu0  ;;  %v9194_v17 = vunpack.i.h.bf16 %v9192_v28  ;;  %v9193_v20 = vunpack.i.l.bf16 %v9192_v28  ;;  %v6131_v28 = vld [vmem:[%s15039_s3 + $0x8] sm:$0xff] }
 0x1d0   : > { %v9189_v9 = vunpack.i.h.bf16 %v9187_v1  ;;  %v9188_v10 = vunpack.i.l.bf16 %v9187_v1  ;;  %v3613_v15 = vadd.f32 %v3612_v35, %v11770_v11  ;;  %v3614_v16 = vpop.f32.mrb[9].mxu0  ;;  %2740 = vrot.lane.b32.xlu1 %v11804_v61, %s15143_s0 }
 0x1d1   : > { %v3615_v43 = vadd.f32 %v3614_v16, %v11775_v59  ;;  %2738 = vrot.lane.b32.xlu0 %v11809_v63, %s15143_s0  ;;  %3869 = vmatmul.mubr.f32.gmra.mrb[94].mxu0 %v3225_v41  ;;  %v8354_v16 = vpack.c.bf16 %v6131_v28, %v6130_v62  ;;  %v6136_v62 = vld [vmem:[%s15039_s3 + $0x30] sm:$0xff]  ;;  %v6137_v28 = vld [vmem:[%s15039_s3 + $0x38] sm:$0xff] }
 0x1d2   : > { %v2935_v22 = vsel %vm2886_vm4, %v914_v6, %v9188_v10  ;;  %v2936_v42 = vsel %vm2886_vm4, %v915_v7, %v9189_v9  ;;  %10033 = vtanh.f32 %v3613_v15  ;;  %v2695_v23 = vpop.permute.xlu1 %2694  ;;  %v15080_v15 = vmov 0.0|0.0  }
 0x1d3   : > { %10035 = vtanh.f32 %v3615_v43  ;;  %v9197_v26 = vpop.permute.xlu0 %9196  ;;  %v3618_v27 = vpop.f32.mrb[10].mxu0  ;;  %8029 = vmatprep.mubr.msk.f32.mxu0 %vm3322_vm3, %v2695_v23  ;;  %v3032_v37 = vsel %vm2983_vm5, %v2935_v22, %v9193_v20  ;;  %v3033_v38 = vsel %vm2983_vm5, %v2936_v42, %v9194_v17  ;;  %8353 = vmatprep.subr.bf16.mxu1 %v15080_v15 }
 0x1d4   : > { %10037 = vtanh.f32 %v3601_v8  ;;  %v9199_v32 = vunpack.i.h.bf16 %v9197_v26  ;;  %v9198_v33 = vunpack.i.l.bf16 %v9197_v26  ;;  %v3619_v58 = vadd.f32 %v3618_v27, %v11770_v11  ;;  %v3620_v45 = vpop.f32.mrb[11].mxu0  ;;  %9371 = vrot.lane.b32.xlu1 %v11757_v46, %s15142_s21  ;;  %v10030_v47 = vpop.eup %10029  ;;  %8355 = vmatpush1.bf16.msra.mxu1 %v8354_v16  ;;  %v6133_v26 = vld [vmem:[%s15039_s3 + $0x18] sm:$0xff] }
 0x1d5   : > { %v3621_v53 = vadd.f32 %v3620_v45, %v11775_v59  ;;  %9366 = vrot.lane.b32.xlu0 %v11702_v34, %s15144_s30  ;;  %v10032_v31 = vpop.eup %10031  ;;  %8356 = vmatprep.subr.bf16.mxu1 %v15080_v15  ;;  %v11950_v16 = vpack.i.bf16 %v11856_v21, %v11838_v4 }
 0x1d6   : > { %10039 = vtanh.f32 %v3619_v58  ;;  %v9202_v39 = vpop.permute.xlu1 %9201  ;;  %v3129_v40 = vsel %vm3080_vm6, %v3032_v37, %v9198_v33  ;;  %v3130_v0 = vsel %vm3080_vm6, %v3033_v38, %v9199_v32 }
 0x1d7   : > { %10041 = vtanh.f32 %v3621_v53  ;;  %v9204_v18 = vunpack.i.h.bf16 %v9202_v39  ;;  %v9203_v34 = vunpack.i.l.bf16 %v9202_v39  ;;  %v2697_v19 = vpop.permute.xlu0 %2696  ;;  %v3226_v44 = vsel %vm3177_vm7, %v3129_v40, %v2695_v23  ;;  %v11901_v39 = vld [vmem:[%s10948_s26 + $0x2d0] sm:$0xff] }
 0x1d8   : > { %10043 = vtanh.f32 %v3603_v24  ;;  %v3624_v29 = vpop.f32.mrb[12].mxu0  ;;  %3875 = vmatmul.mubr.f32.gmra.mrb[96].mxu0 %v3226_v44  ;;  %2742 = vrot.lane.b32.xlu1 %v11838_v4, %s15143_s0  ;;  %v3227_v55 = vsel %vm3177_vm7, %v3130_v0, %v2697_v19  ;;  %v6132_v24 = vld [vmem:[%s15039_s3 + $0x10] sm:$0xff] }
 0x1d9   : > { %10045 = vtanh.f32 %v3607_v36  ;;  %v3625_v51 = vadd.f32 %v3624_v29, %v11770_v11  ;;  %9376 = vrot.lane.b32.xlu0 %v11827_v30, %s15145_s19  ;;  %v3626_v13 = vpop.f32.mrb[13].mxu0  ;;  %8030 = vmatprep.mubr.msk.f32.mxu0 %vm3322_vm3, %v2697_v19  ;;  %v2937_v57 = vsel %vm2886_vm4, %v916_v49, %v9203_v34  ;;  %v2938_v12 = vsel %vm2886_vm4, %v917_v5, %v9204_v18  ;;  %v11894_v36 = vld [vmem:[%s10948_s26 + $0x2d8] sm:$0xff]  ;;  %v6134_v34 = vld [vmem:[%s15039_s3 + $0x20] sm:$0xff]  ;;  %v6135_v19 = vld [vmem:[%s15039_s3 + $0x28] sm:$0xff] }
 0x1da   : > { %10047 = vtanh.f32 %v3609_v48  ;;  %v3627_v52 = vadd.f32 %v3626_v13, %v11775_v59  ;;  %v9212_v54 = vpop.permute.xlu1 %9211  ;;  %v8357_v33 = vpack.c.bf16 %v6133_v26, %v6132_v24  ;;  %v8360_v29 = vpack.c.bf16 %v6135_v19, %v6134_v34  ;;  %v6139_v24 = vld [vmem:[%s15039_s3 + $0x48] sm:$0xff]  ;;  %v920_v4 = vld [vmem:[%s10948_s26 + $0x1b0] sm:$0xff] }
 0x1db   : > { %10049 = vtanh.f32 %v3625_v51  ;;  %v9213_v60 = vunpack.i.l.bf16 %v9212_v54  ;;  %v9207_v25 = vpop.permute.xlu0 %9206  ;;  %v9214_v35 = vunpack.i.h.bf16 %v9212_v54  ;;  %v6140_v19 = vld [vmem:[%s15039_s3 + $0x50] sm:$0xff] }
 0x1dc   : > { %v10034_v8 = vpop.eup %10033  ;;  %10051 = vtanh.f32 %v3627_v52  ;;  %v9209_v61 = vunpack.i.h.bf16 %v9207_v25  ;;  %v9208_v63 = vunpack.i.l.bf16 %v9207_v25  ;;  %v3630_v1 = vpop.f32.mrb[14].mxu0  ;;  %3881 = vmatmul.mubr.f32.gmra.mrb[98].mxu0 %v3227_v55  ;;  %9381 = vrot.lane.b32.xlu1 %v11721_v50, %s15144_s30  ;;  %v919_v55 = vld [vmem:[%s10948_s26 + $0x1a8] sm:$0xff] }
 0x1dd   : > { %v10036_v6 = vpop.eup %10035  ;;  %v4355_v7 = vadd.f32 %v10034_v8, %v10026_v3  ;;  %v3631_v9 = vadd.f32 %v3630_v1, %v11770_v11  ;;  %2744 = vrot.lane.b32.xlu0 %v11856_v21, %s15143_s0  ;;  %v3632_v10 = vpop.f32.mrb[15].mxu0  ;;  %v918_v3 = vld [vmem:[%s10948_s26 + $0x1a0] sm:$0xff]  ;;  %8358 = vmatpush1.bf16.msra.mxu1 %v8357_v33  ;;  %v8363_v1 = vpack.c.bf16 %v6137_v28, %v6136_v62  ;;  %v921_v21 = vld [vmem:[%s10948_s26 + $0x1b8] sm:$0xff]  ;;  %v6143_v28 = vld [vmem:[%s15039_s3 + $0x68] sm:$0xff] }
 0x1de   : > { %v10038_v41 = vpop.eup %10037  ;;  %v4356_v17 = vadd.f32 %v10036_v6, %v10028_v2  ;;  %v3633_v20 = vadd.f32 %v3632_v10, %v11775_v59  ;;  %v2701_v43 = vpop.permute.xlu1 %2700  ;;  %v3034_v50 = vsel %vm2983_vm5, %v2937_v57, %v9208_v63  ;;  %v3035_v22 = vsel %vm2983_vm5, %v2938_v12, %v9209_v61  ;;  %8359 = vmatprep.subr.bf16.mxu1 %v15080_v15  ;;  %v11946_v10 = vld [vmem:[%s10948_s26 + $0x2e0] sm:$0xff] }
 0x1df   : > { %4363 = vst [vmem:[#allocation2] sm:$0xff] %v4355_v7  ;;  %10053 = vtanh.f32 %v3631_v9  ;;  %v2699_v42 = vpop.permute.xlu0 %2698  ;;  %v3131_v23 = vsel %vm3080_vm6, %v3034_v50, %v9213_v60  ;;  %v3132_v53 = vsel %vm3080_vm6, %v3035_v22, %v9214_v35 }
 0x1e0   : > { %v10040_v27 = vpop.eup %10039  ;;  %4365 = vst.msk [vmem:[#allocation2 + $0x8] sm:$0xff] %vm4364_vm8, %v4356_v17  ;;  %10055 = vtanh.f32 %v3633_v20  ;;  %8031 = vmatprep.mubr.msk.f32.mxu0 %vm3322_vm3, %v2699_v42  ;;  %9391 = vrot.lane.b32.xlu1 %v11860_v56, %s15145_s19  ;;  %v3228_v32 = vsel %vm3177_vm7, %v3131_v23, %v2699_v42  ;;  %v3229_v5 = vsel %vm3177_vm7, %v3132_v53, %v2701_v43 }
 0x1e1   : > { %v10042_v58 = vpop.eup %10041  ;;  %v4357_v45 = vadd.f32 %v10040_v27, %v10030_v47  ;;  %9386 = vrot.lane.b32.xlu0 %v11786_v14, %s15142_s21  ;;  %3887 = vmatmul.mubr.f32.gmra.mrb[100].mxu0 %v3228_v32 }
 0x1e2   : > { %v10044_v37 = vpop.eup %10043  ;;  %v4358_v38 = vadd.f32 %v10042_v58, %v10032_v31  ;;  %v11897_v48 = vpop.permute.xlu1 %9221  ;;  %8032 = vmatprep.mubr.msk.f32.mxu0 %vm3322_vm3, %v2701_v43  ;;  %8361 = vmatpush1.bf16.msra.mxu1 %v8360_v29  ;;  %v11996_v29 = vld [vmem:[%s10948_s26 + $0x338] sm:$0xff] }
 0x1e3   : > { %v10046_v40 = vpop.eup %10045  ;;  %4366 = vst [vmem:[#allocation2 + $0x10] sm:$0xff] %v4357_v45  ;;  %v9217_v0 = vpop.permute.xlu0 %9216  ;;  %v9223_v51 = vunpack.i.l.bf16 %v11897_v48  ;;  %v9224_v8 = vunpack.i.h.bf16 %v11897_v48  ;;  %8362 = vmatprep.subr.bf16.mxu1 %v15080_v15 }
 0x1e4   : > { %v11905_v18 = vpop.f32.mrb[16].mxu0  ;;  %v10048_v44 = vpop.eup %10047  ;;  %4367 = vst.msk [vmem:[#allocation2 + $0x18] sm:$0xff] %vm4364_vm8, %v4358_v38  ;;  %v9218_v2 = vunpack.i.l.bf16 %v9217_v0  ;;  %2748 = vrot.lane.b32.xlu1 %v11894_v36, %s15143_s0  ;;  %v9219_v13 = vunpack.i.h.bf16 %v9217_v0  ;;  %v11980_v38 = vpack.i.bf16 %v11894_v36, %v11901_v39 }
 0x1e5   : > { %v11914_v49 = vpop.f32.mrb[17].mxu0  ;;  %v10050_v47 = vpop.eup %10049  ;;  %2746 = vrot.lane.b32.xlu0 %v11901_v39, %s15143_s0  ;;  %3893 = vmatmul.mubr.f32.gmra.mrb[102].mxu0 %v3229_v5 }
 0x1e6   : > { %v10052_v52 = vpop.eup %10051  ;;  %v4359_v54 = vadd.f32 %v10050_v47, %v10038_v41  ;;  %v2939_v31 = vsel %vm2886_vm4, %v918_v3, %v9218_v2  ;;  %v2703_v57 = vpop.permute.xlu1 %2702  ;;  %v2940_v7 = vsel %vm2886_vm4, %v919_v55, %v9219_v13  ;;  %8364 = vmatpush1.bf16.msra.mxu1 %v8363_v1  ;;  %v11999_v47 = vld [vmem:[%s10948_s26 + $0x330] sm:$0xff]  ;;  %v12031_v1 = vld [vmem:[%s10948_s26 + $0x2f8] sm:$0xff] }
 0x1e7   : > { %v4360_v12 = vadd.f32 %v10052_v52, %v10044_v37  ;;  %v9227_v60 = vpop.permute.xlu0 %9226  ;;  %v11925_v25 = vpop.f32.mrb[18].mxu0  ;;  %8033 = vmatprep.mubr.msk.f32.mxu0 %vm3322_vm3, %v2703_v57  ;;  %v3036_v9 = vsel %vm2983_vm5, %v2939_v31, %v9223_v51  ;;  %v3037_v32 = vsel %vm2983_vm5, %v2940_v7, %v9224_v8  ;;  %8365 = vmatprep.subr.bf16.mxu1 %v15080_v15  ;;  %v11976_v37 = vld [vmem:[%s10948_s26 + $0x2e8] sm:$0xff]  ;;  %v922_v7 = vld [vmem:[%s10948_s26 + $0x1c0] sm:$0xff] }
 0x1e8   : > { %4368 = vst [vmem:[#allocation2 + $0x20] sm:$0xff] %v4359_v54  ;;  %v9228_v61 = vunpack.i.l.bf16 %v9227_v60  ;;  %v11935_v63 = vpop.f32.mrb[19].mxu0  ;;  %9401 = vrot.lane.b32.xlu1 %v11827_v30, %s15142_s21  ;;  %v9229_v35 = vunpack.i.h.bf16 %v9227_v60  ;;  %v9540_v52 = vpack.i.bf16 %v11996_v29, %v11999_v47  ;;  %v3637_v54 = vadd.f32 %v11905_v18, %v11770_v11  ;;  %v6142_v18 = vld [vmem:[%s15039_s3 + $0x60] sm:$0xff] }
 0x1e9   : > { %v10054_v6 = vpop.eup %10053  ;;  %4369 = vst.msk [vmem:[#allocation2 + $0x28] sm:$0xff] %vm4364_vm8, %v4360_v12  ;;  %9396 = vrot.lane.b32.xlu0 %v11757_v46, %s15144_s30  ;;  %v6138_v46 = vld [vmem:[%s15039_s3 + $0x40] sm:$0xff]  ;;  %v8372_v8 = vpack.c.bf16 %v6143_v28, %v6142_v18  ;;  %v925_v28 = vld [vmem:[%s10948_s26 + $0x1d8] sm:$0xff] }
 0x1ea   : > { %v10056_v41 = vpop.eup %10055  ;;  %v4361_v17 = vadd.f32 %v10054_v6, %v10046_v40  ;;  %v9232_v20 = vpop.permute.xlu1 %9231  ;;  %v3133_v43 = vsel %vm3080_vm6, %v3036_v9, %v9228_v61  ;;  %v8366_v33 = vpack.c.bf16 %v6139_v24, %v6138_v46  ;;  %v3134_v45 = vsel %vm3080_vm6, %v3037_v32, %v9229_v35  ;;  %v12036_v35 = vld [vmem:[%s10948_s26 + $0x2f0] sm:$0xff] }
 0x1eb   : > { %v4362_v50 = vadd.f32 %v10056_v41, %v10048_v44  ;;  %v9234_v22 = vunpack.i.h.bf16 %v9232_v20  ;;  %v9233_v42 = vunpack.i.l.bf16 %v9232_v20  ;;  %v2705_v23 = vpop.permute.xlu0 %2704  ;;  %v3230_v27 = vsel %vm3177_vm7, %v3133_v43, %v2703_v57  ;;  %v6141_v44 = vld [vmem:[%s15039_s3 + $0x58] sm:$0xff]  ;;  %v923_v20 = vld [vmem:[%s10948_s26 + $0x1c8] sm:$0xff] }
 0x1ec   : > { %4370 = vst [vmem:[#allocation2 + $0x30] sm:$0xff] %v4361_v17  ;;  %v11961_v26 = vpop.f32.mrb[20].mxu0  ;;  %2750 = vrot.lane.b32.xlu1 %v11946_v10, %s15143_s0  ;;  %3899 = vmatmul.mubr.f32.gmra.mrb[104].mxu0 %v3230_v27  ;;  %v3231_v39 = vsel %vm3177_vm7, %v3134_v45, %v2705_v23  ;;  %v8369_v51 = vpack.c.bf16 %v6141_v44, %v6140_v19  ;;  %10057 = vtanh.f32 %v3637_v54  ;;  %v12079_v54 = vld [vmem:[%s10948_s26 + $0x300] sm:$0xff] }
 0x1ed   : > { %4371 = vst.msk [vmem:[#allocation2 + $0x38] sm:$0xff] %vm4364_vm8, %v4362_v50  ;;  %9406 = vrot.lane.b32.xlu0 %v11950_v16, %s15145_s19  ;;  %v11971_v58 = vpop.f32.mrb[21].mxu0  ;;  %8034 = vmatprep.mubr.msk.f32.mxu0 %vm3322_vm3, %v2705_v23  ;;  %v2941_v48 = vsel %vm2886_vm4, %v920_v4, %v9233_v42  ;;  %v2942_v40 = vsel %vm2886_vm4, %v921_v21, %v9234_v22  ;;  %v6144_v50 = vld [vmem:[%s15039_s3 + $0x70] sm:$0xff]  ;;  %v6145_v22 = vld [vmem:[%s15039_s3 + $0x78] sm:$0xff] }
 0x1ee   : > { %v9242_v53 = vpop.permute.xlu1 %9241  ;;  %8367 = vmatpush1.bf16.msra.mxu1 %v8366_v33  ;;  %v3639_v57 = vadd.f32 %v11914_v49, %v11775_v59  ;;  %v3643_v61 = vadd.f32 %v11925_v25, %v11770_v11  ;;  %v8375_v4 = vpack.c.bf16 %v6145_v22, %v6144_v50  ;;  %v3645_v21 = vadd.f32 %v11935_v63, %v11775_v59 }
 0x1ef   : > { %v9244_v0 = vunpack.i.h.bf16 %v9242_v53  ;;  %v9243_v3 = vunpack.i.l.bf16 %v9242_v53  ;;  %v9237_v34 = vpop.permute.xlu0 %9236  ;;  %8368 = vmatprep.subr.bf16.mxu1 %v15080_v15  ;;  %v3649_v53 = vadd.f32 %v11961_v26, %v11770_v11 }
 0x1f0   : > { %v9239_v2 = vunpack.i.h.bf16 %v9237_v34  ;;  %v9238_v5 = vunpack.i.l.bf16 %v9237_v34  ;;  %v11990_v36 = vpop.f32.mrb[22].mxu0  ;;  %9411 = vrot.lane.b32.xlu1 %v11786_v14, %s15144_s30  ;;  %3905 = vmatmul.mubr.f32.gmra.mrb[106].mxu0 %v3231_v39  ;;  %10059 = vtanh.f32 %v3639_v57  ;;  %v6147_v34 = vld [vmem:[%s15039_s3 + $0x88] sm:$0xff]  ;;  %v3651_v39 = vadd.f32 %v11971_v58, %v11775_v59 }
 0x1f1   : > { %2752 = vrot.lane.b32.xlu0 %v11976_v37, %s15143_s0  ;;  %v12004_v13 = vpop.f32.mrb[23].mxu0  ;;  %10061 = vtanh.f32 %v3643_v61 }
 0x1f2   : > { %v2709_v14 = vpop.permute.xlu1 %2708  ;;  %v3038_v55 = vsel %vm2983_vm5, %v2941_v48, %v9238_v5  ;;  %v3039_v31 = vsel %vm2983_vm5, %v2942_v40, %v9239_v2  ;;  %8370 = vmatpush1.bf16.msra.mxu1 %v8369_v51 }
 0x1f3   : > { %v2707_v12 = vpop.permute.xlu0 %2706  ;;  %v3135_v60 = vsel %vm3080_vm6, %v3038_v55, %v9243_v3  ;;  %v3136_v62 = vsel %vm3080_vm6, %v3039_v31, %v9244_v0  ;;  %8371 = vmatprep.subr.bf16.mxu1 %v15080_v15  ;;  %v6146_v3 = vld [vmem:[%s15039_s3 + $0x80] sm:$0xff]  ;;  %v3655_v55 = vadd.f32 %v11990_v36, %v11770_v11 }
 0x1f4   : > { %8035 = vmatprep.mubr.msk.f32.mxu0 %vm3322_vm3, %v2707_v12  ;;  %9421 = vrot.lane.b32.xlu1 %v11980_v38, %s15145_s19  ;;  %v3232_v49 = vsel %vm3177_vm7, %v3135_v60, %v2707_v12  ;;  %v3233_v9 = vsel %vm3177_vm7, %v3136_v62, %v2709_v14  ;;  %v8378_v5 = vpack.c.bf16 %v6147_v34, %v6146_v3 }
 0x1f5   : > { %9416 = vrot.lane.b32.xlu0 %v11860_v56, %s15142_s21  ;;  %3911 = vmatmul.mubr.f32.gmra.mrb[108].mxu0 %v3232_v49 }
 0x1f6   : > { %v9252_v6 = vpop.permute.xlu1 %9251  ;;  %8036 = vmatprep.mubr.msk.f32.mxu0 %vm3322_vm3, %v2709_v14  ;;  %8373 = vmatpush1.bf16.msra.mxu1 %v8372_v8  ;;  %v12083_v14 = vpack.i.bf16 %v11976_v37, %v11946_v10  ;;  %v6148_v10 = vld [vmem:[%s15039_s3 + $0x90] sm:$0xff]  ;;  %v6149_v37 = vld [vmem:[%s15039_s3 + $0x98] sm:$0xff]  ;;  %v10058_v36 = vpop.eup %10057 }
 0x1f7   : > { %v9254_v41 = vunpack.i.h.bf16 %v9252_v6  ;;  %v9253_v25 = vunpack.i.l.bf16 %v9252_v6  ;;  %v9247_v17 = vpop.permute.xlu0 %9246  ;;  %v3660_v43 = vpop.f32.mrb[24].mxu0  ;;  %8374 = vmatprep.subr.bf16.mxu1 %v15080_v15  ;;  %v8381_v8 = vpack.c.bf16 %v6149_v37, %v6148_v10  ;;  %v3657_v6 = vadd.f32 %v12004_v13, %v11775_v59 }
 0x1f8   : > { %v9249_v42 = vunpack.i.h.bf16 %v9247_v17  ;;  %v9248_v23 = vunpack.i.l.bf16 %v9247_v17  ;;  %v3661_v46 = vadd.f32 %v3660_v43, %v11770_v11  ;;  %v3662_v24 = vpop.f32.mrb[25].mxu0  ;;  %2756 = vrot.lane.b32.xlu1 %v12031_v1, %s15143_s0  ;;  %v12110_v43 = vld [vmem:[%s10948_s26 + $0x308] sm:$0xff]  ;;  %v12114_v13 = vpack.i.bf16 %v12031_v1, %v12036_v35 }
 0x1f9   : > { %v3663_v27 = vadd.f32 %v3662_v24, %v11775_v59  ;;  %2754 = vrot.lane.b32.xlu0 %v12036_v35, %s15143_s0  ;;  %3917 = vmatmul.mubr.f32.gmra.mrb[110].mxu0 %v3233_v9  ;;  %v6150_v24 = vld [vmem:[%s15039_s3 + $0xa0] sm:$0xff] }
 0x1fa   : > { %v2943_v32 = vsel %vm2886_vm4, %v922_v7, %v9248_v23  ;;  %v2944_v33 = vsel %vm2886_vm4, %v923_v20, %v9249_v42  ;;  %10063 = vtanh.f32 %v3661_v46  ;;  %v2711_v45 = vpop.permute.xlu1 %2710  ;;  %8376 = vmatpush1.bf16.msra.mxu1 %v8375_v4  ;;  %v10060_v61 = vpop.eup %10059  ;;  %v6151_v4 = vld [vmem:[%s15039_s3 + $0xa8] sm:$0xff] }
 0x1fb   : > { %10065 = vtanh.f32 %v3663_v27  ;;  %v9257_v48 = vpop.permute.xlu0 %9256  ;;  %v3666_v40 = vpop.f32.mrb[26].mxu0  ;;  %8037 = vmatprep.mubr.msk.f32.mxu0 %vm3322_vm3, %v2711_v45  ;;  %v3040_v63 = vsel %vm2983_vm5, %v2943_v32, %v9253_v25  ;;  %v3041_v0 = vsel %vm2983_vm5, %v2944_v33, %v9254_v41  ;;  %8377 = vmatprep.subr.bf16.mxu1 %v15080_v15  ;;  %v8384_v32 = vpack.c.bf16 %v6151_v4, %v6150_v24 }
 0x1fc   : > { %v9259_v26 = vunpack.i.h.bf16 %v9257_v48  ;;  %v9258_v19 = vunpack.i.l.bf16 %v9257_v48  ;;  %v3667_v44 = vadd.f32 %v3666_v40, %v11770_v11  ;;  %v3668_v2 = vpop.f32.mrb[27].mxu0  ;;  %9431 = vrot.lane.b32.xlu1 %v11950_v16, %s15142_s21  ;;  %10067 = vtanh.f32 %v3645_v21  ;;  %v10062_v50 = vpop.eup %10061 }
 0x1fd   : > { %v3669_v51 = vadd.f32 %v3668_v2, %v11775_v59  ;;  %9426 = vrot.lane.b32.xlu0 %v11827_v30, %s15144_s30  ;;  %v924_v30 = vld [vmem:[%s10948_s26 + $0x1d0] sm:$0xff] }
 0x1fe   : > { %10069 = vtanh.f32 %v3667_v44  ;;  %v9262_v31 = vpop.permute.xlu1 %9261  ;;  %v3137_v57 = vsel %vm3080_vm6, %v3040_v63, %v9258_v19  ;;  %v3138_v58 = vsel %vm3080_vm6, %v3041_v0, %v9259_v26  ;;  %8379 = vmatpush1.bf16.msra.mxu1 %v8378_v5  ;;  %v6152_v2 = vld [vmem:[%s15039_s3 + $0xb0] sm:$0xff]  ;;  %v6153_v5 = vld [vmem:[%s15039_s3 + $0xb8] sm:$0xff] }
 0x1ff   : > { %10071 = vtanh.f32 %v3669_v51  ;;  %v9264_v12 = vunpack.i.h.bf16 %v9262_v31  ;;  %v9263_v60 = vunpack.i.l.bf16 %v9262_v31  ;;  %v2713_v62 = vpop.permute.xlu0 %2712  ;;  %v3234_v18 = vsel %vm3177_vm7, %v3137_v57, %v2711_v45  ;;  %8380 = vmatprep.subr.bf16.mxu1 %v15080_v15 }
 0x200   : > { %10073 = vtanh.f32 %v3649_v53  ;;  %v3672_v49 = vpop.f32.mrb[28].mxu0  ;;  %3923 = vmatmul.mubr.f32.gmra.mrb[112].mxu0 %v3234_v18  ;;  %2758 = vrot.lane.b32.xlu1 %v12079_v54, %s15143_s0  ;;  %v3235_v41 = vsel %vm3177_vm7, %v3138_v58, %v2713_v62  ;;  %v12154_v58 = vld [vmem:[%s10948_s26 + $0x318] sm:$0xff]  ;;  %v12159_v18 = vld [vmem:[%s10948_s26 + $0x310] sm:$0xff] }
 0x201   : > { %10075 = vtanh.f32 %v3651_v39  ;;  %v3673_v7 = vadd.f32 %v3672_v49, %v11770_v11  ;;  %9436 = vrot.lane.b32.xlu0 %v12083_v14, %s15145_s19  ;;  %v3674_v9 = vpop.f32.mrb[29].mxu0  ;;  %8038 = vmatprep.mubr.msk.f32.mxu0 %vm3322_vm3, %v2713_v62  ;;  %v2945_v25 = vsel %vm2886_vm4, %v924_v30, %v9263_v60  ;;  %v2946_v22 = vsel %vm2886_vm4, %v925_v28, %v9264_v12  ;;  %v926_v62 = vld [vmem:[%s10948_s26 + $0x1e0] sm:$0xff]  ;;  %v927_v49 = vld [vmem:[%s10948_s26 + $0x1e8] sm:$0xff] }
 0x202   : > { %10077 = vtanh.f32 %v3655_v55  ;;  %v3675_v17 = vadd.f32 %v3674_v9, %v11775_v59  ;;  %v9272_v20 = vpop.permute.xlu1 %9271  ;;  %8382 = vmatpush1.bf16.msra.mxu1 %v8381_v8  ;;  %v8387_v55 = vpack.c.bf16 %v6153_v5, %v6152_v2 }
 0x203   : > { %10079 = vtanh.f32 %v3673_v7  ;;  %v9274_v42 = vunpack.i.h.bf16 %v9272_v20  ;;  %v9273_v23 = vunpack.i.l.bf16 %v9272_v20  ;;  %v9267_v46 = vpop.permute.xlu0 %9266  ;;  %8383 = vmatprep.subr.bf16.mxu1 %v15080_v15  ;;  %v6155_v7 = vld [vmem:[%s15039_s3 + $0xc8] sm:$0xff] }
 0x204   : > { %v10064_v1 = vpop.eup %10063  ;;  %10081 = vtanh.f32 %v3675_v17  ;;  %v9269_v35 = vunpack.i.h.bf16 %v9267_v46  ;;  %v9268_v21 = vunpack.i.l.bf16 %v9267_v46  ;;  %v3678_v27 = vpop.f32.mrb[30].mxu0  ;;  %3929 = vmatmul.mubr.f32.gmra.mrb[114].mxu0 %v3235_v41  ;;  %9441 = vrot.lane.b32.xlu1 %v11860_v56, %s15144_s30 }
 0x205   : > { %v10066_v33 = vpop.eup %10065  ;;  %10083 = vtanh.f32 %v3657_v6  ;;  %v12126_v45 = vadd.f32 %v10064_v1, %v10058_v36  ;;  %v3679_v53 = vadd.f32 %v3678_v27, %v11770_v11  ;;  %2760 = vrot.lane.b32.xlu0 %v12110_v43, %s15143_s0  ;;  %v3680_v48 = vpop.f32.mrb[31].mxu0  ;;  %v6154_v6 = vld [vmem:[%s15039_s3 + $0xc0] sm:$0xff] }
 0x206   : > { %v4373_v40 = vadd.f32 %v10066_v33, %v10060_v61  ;;  %v3681_v63 = vadd.f32 %v3680_v48, %v11775_v59  ;;  %v2717_v0 = vpop.permute.xlu1 %2716  ;;  %v3042_v3 = vsel %vm2983_vm5, %v2945_v25, %v9268_v21  ;;  %v3043_v56 = vsel %vm2983_vm5, %v2946_v22, %v9269_v35  ;;  %v10068_v34 = vpop.eup %10067  ;;  %8385 = vmatpush1.bf16.msra.mxu1 %v8384_v32  ;;  %v6156_v33 = vld [vmem:[%s15039_s3 + $0xd0] sm:$0xff] }
 0x207   : > { %4381 = vst [vmem:[#allocation2 + $0x40] sm:$0xff] %v12126_v45  ;;  %10085 = vtanh.f32 %v3679_v53  ;;  %v2715_v26 = vpop.permute.xlu0 %2714  ;;  %v3139_v19 = vsel %vm3080_vm6, %v3042_v3, %v9273_v23  ;;  %v3140_v44 = vsel %vm3080_vm6, %v3043_v56, %v9274_v42  ;;  %8386 = vmatprep.subr.bf16.mxu1 %v15080_v15  ;;  %v6157_v53 = vld [vmem:[%s15039_s3 + $0xd8] sm:$0xff] }
 0x208   : > { %v10070_v39 = vpop.eup %10069  ;;  %4382 = vst.msk [vmem:[#allocation2 + $0x48] sm:$0xff] %vm4364_vm8, %v4373_v40  ;;  %10087 = vtanh.f32 %v3681_v63  ;;  %8039 = vmatprep.mubr.msk.f32.mxu0 %vm3322_vm3, %v2715_v26  ;;  %9451 = vrot.lane.b32.xlu1 %v12114_v13, %s15145_s19  ;;  %v3236_v51 = vsel %vm3177_vm7, %v3139_v19, %v2715_v26  ;;  %v3237_v10 = vsel %vm3177_vm7, %v3140_v44, %v2717_v0 }
 0x209   : > { %v10072_v31 = vpop.eup %10071  ;;  %v12149_v57 = vadd.f32 %v10070_v39, %v10062_v50  ;;  %9446 = vrot.lane.b32.xlu0 %v11980_v38, %s15142_s21  ;;  %3935 = vmatmul.mubr.f32.gmra.mrb[116].mxu0 %v3236_v51  ;;  %v8390_v50 = vpack.c.bf16 %v6155_v7, %v6154_v6  ;;  %v8393_v3 = vpack.c.bf16 %v6157_v53, %v6156_v33 }
 0x20a   : > { %v10074_v12 = vpop.eup %10073  ;;  %v4375_v60 = vadd.f32 %v10072_v31, %v10068_v34  ;;  %v9282_v30 = vpop.permute.xlu1 %9281  ;;  %8040 = vmatprep.mubr.msk.f32.mxu0 %vm3322_vm3, %v2717_v0  ;;  %8388 = vmatpush1.bf16.msra.mxu1 %v8387_v55  ;;  %v12208_v34 = vld [vmem:[%s10948_s26 + $0x320] sm:$0xff]  ;;  %v9465_v26 = vpack.i.bf16 %v12110_v43, %v12079_v54  ;;  %v6159_v54 = vld [vmem:[%s15039_s3 + $0xe8] sm:$0xff]  ;;  %v928_v43 = vld [vmem:[%s10948_s26 + $0x1f0] sm:$0xff] }
 0x20b   : > { %v10076_v37 = vpop.eup %10075  ;;  %4383 = vst [vmem:[#allocation2 + $0x50] sm:$0xff] %v12149_v57  ;;  %v9283_v36 = vunpack.i.l.bf16 %v9282_v30  ;;  %v9277_v28 = vpop.permute.xlu0 %9276  ;;  %v9485_v61 = vpack.i.bf16 %v12149_v57, %v12126_v45  ;;  %v9284_v41 = vunpack.i.h.bf16 %v9282_v30  ;;  %8389 = vmatprep.subr.bf16.mxu1 %v15080_v15 }
 0x20c   : > { %v12165_v8 = vpop.f32.mrb[32].mxu0  ;;  %v10078_v9 = vpop.eup %10077  ;;  %4384 = vst.msk [vmem:[#allocation2 + $0x58] sm:$0xff] %vm4364_vm8, %v4375_v60  ;;  %v9279_v25 = vunpack.i.h.bf16 %v9277_v28  ;;  %v9278_v17 = vunpack.i.l.bf16 %v9277_v28  ;;  %2764 = vrot.lane.b32.xlu1 %v12154_v58, %s15143_s0  ;;  %v12240_v28 = vld [vmem:[%s10948_s26 + $0x328] sm:$0xff] }
 0x20d   : > { %v12176_v20 = vpop.f32.mrb[33].mxu0  ;;  %v10080_v22 = vpop.eup %10079  ;;  %2762 = vrot.lane.b32.xlu0 %v12159_v18, %s15143_s0  ;;  %3941 = vmatmul.mubr.f32.gmra.mrb[118].mxu0 %v3237_v10 }
 0x20e   : > { %v10082_v42 = vpop.eup %10081  ;;  %v12183_v23 = vadd.f32 %v10080_v22, %v10074_v12  ;;  %v2947_v46 = vsel %vm2886_vm4, %v926_v62, %v9278_v17  ;;  %v2948_v24 = vsel %vm2886_vm4, %v927_v49, %v9279_v25  ;;  %v2719_v4 = vpop.permute.xlu1 %2718  ;;  %8391 = vmatpush1.bf16.msra.mxu1 %v8390_v50  ;;  %v929_v12 = vld [vmem:[%s10948_s26 + $0x1f8] sm:$0xff]  ;;  %v6160_v17 = vld [vmem:[%s15039_s3 + $0xf0] sm:$0xff]  ;;  %v3687_v53 = vadd.f32 %v12176_v20, %v11775_v59 }
 0x20f   : > { %v10084_v1 = vpop.eup %10083  ;;  %v4377_v35 = vadd.f32 %v10082_v42, %v10076_v37  ;;  %v9287_v21 = vpop.permute.xlu0 %9286  ;;  %8041 = vmatprep.mubr.msk.f32.mxu0 %vm3322_vm3, %v2719_v4  ;;  %v3044_v32 = vsel %vm2983_vm5, %v2947_v46, %v9283_v36  ;;  %v3045_v0 = vsel %vm2983_vm5, %v2948_v24, %v9284_v41  ;;  %8392 = vmatprep.subr.bf16.mxu1 %v15080_v15  ;;  %v6161_v50 = vld [vmem:[%s15039_s3 + $0xf8] sm:$0xff] }
 0x210   : > { %v12187_v27 = vpop.f32.mrb[34].mxu0  ;;  %4385 = vst [vmem:[#allocation2 + $0x60] sm:$0xff] %v12183_v23  ;;  %v9289_v48 = vunpack.i.h.bf16 %v9287_v21  ;;  %v9288_v40 = vunpack.i.l.bf16 %v9287_v21  ;;  %9461 = vrot.lane.b32.xlu1 %v12083_v14, %s15142_s21  ;;  %v9480_v24 = vpack.i.bf16 %v12154_v58, %v12159_v18 }
 0x211   : > { %v12198_v63 = vpop.f32.mrb[35].mxu0  ;;  %v10086_v56 = vpop.eup %10085  ;;  %4386 = vst.msk [vmem:[#allocation2 + $0x68] sm:$0xff] %vm4364_vm8, %v4377_v35  ;;  %9456 = vrot.lane.b32.xlu0 %v11950_v16, %s15144_s30  ;;  %v6158_v16 = vld [vmem:[%s15039_s3 + $0xe0] sm:$0xff] }
 0x212   : > { %v10088_v19 = vpop.eup %10087  ;;  %v12212_v14 = vadd.f32 %v10086_v56, %v10078_v9  ;;  %v9292_v44 = vpop.permute.xlu1 %9291  ;;  %v3141_v2 = vsel %vm3080_vm6, %v3044_v32, %v9288_v40  ;;  %v3142_v31 = vsel %vm3080_vm6, %v3045_v0, %v9289_v48  ;;  %8394 = vmatpush1.bf16.msra.mxu1 %v8393_v3  ;;  %v8396_v49 = vpack.c.bf16 %v6159_v54, %v6158_v16 }
 0x213   : > { %v4379_v5 = vadd.f32 %v10088_v19, %v10084_v1  ;;  %v9294_v39 = vunpack.i.h.bf16 %v9292_v44  ;;  %v9293_v51 = vunpack.i.l.bf16 %v9292_v44  ;;  %v2721_v55 = vpop.permute.xlu0 %2720  ;;  %v3238_v30 = vsel %vm3177_vm7, %v3141_v2, %v2719_v4  ;;  %8395 = vmatprep.subr.bf16.mxu1 %v15080_v15  ;;  %v931_v19 = vld [vmem:[%s10948_s26 + $0x208] sm:$0xff] }
 0x214   : > { %4387 = vst [vmem:[#allocation2 + $0x70] sm:$0xff] %v12212_v14  ;;  %v12225_v60 = vpop.f32.mrb[36].mxu0  ;;  %2766 = vrot.lane.b32.xlu1 %v12208_v34, %s15143_s0  ;;  %v9490_v62 = vpack.i.bf16 %v12212_v14, %v12183_v23  ;;  %3947 = vmatmul.mubr.f32.gmra.mrb[120].mxu0 %v3238_v30  ;;  %v3239_v36 = vsel %vm3177_vm7, %v3142_v31, %v2721_v55 }
 0x215   : > { %4388 = vst.msk [vmem:[#allocation2 + $0x78] sm:$0xff] %vm4364_vm8, %v4379_v5  ;;  %9466 = vrot.lane.b32.xlu0 %v9465_v26, %s15145_s19  ;;  %v12235_v10 = vpop.f32.mrb[37].mxu0  ;;  %8042 = vmatprep.mubr.msk.f32.mxu0 %vm3322_vm3, %v2721_v55  ;;  %v2949_v6 = vsel %vm2886_vm4, %v928_v43, %v9293_v51  ;;  %v2950_v7 = vsel %vm2886_vm4, %v929_v12, %v9294_v39  ;;  %v930_v26 = vld [vmem:[%s10948_s26 + $0x200] sm:$0xff] }
 0x216   : > { %v9302_v37 = vpop.permute.xlu1 %9301  ;;  %8397 = vmatpush1.bf16.msra.mxu1 %v8396_v49  ;;  %v8399_v32 = vpack.c.bf16 %v6161_v50, %v6160_v17  ;;  %v3691_v40 = vadd.f32 %v12187_v27, %v11770_v11  ;;  %v3693_v39 = vadd.f32 %v12198_v63, %v11775_v59  ;;  %v3697_v30 = vadd.f32 %v12225_v60, %v11770_v11 }
 0x217   : > { %v9304_v9 = vunpack.i.h.bf16 %v9302_v37  ;;  %v9303_v41 = vunpack.i.l.bf16 %v9302_v37  ;;  %v9297_v25 = vpop.permute.xlu0 %9296  ;;  %8398 = vmatprep.subr.bf16.mxu1 %v15080_v15 }
 0x218   : > { %v9299_v22 = vunpack.i.h.bf16 %v9297_v25  ;;  %v9298_v42 = vunpack.i.l.bf16 %v9297_v25  ;;  %v12250_v46 = vpop.f32.mrb[38].mxu0  ;;  %9471 = vrot.lane.b32.xlu1 %v11980_v38, %s15144_s30  ;;  %3953 = vmatmul.mubr.f32.gmra.mrb[122].mxu0 %v3239_v36  ;;  %v3685_v38 = vadd.f32 %v12165_v8, %v11770_v11 }
 0x219   : > { %2768 = vrot.lane.b32.xlu0 %v12240_v28, %s15143_s0  ;;  %v12258_v4 = vpop.f32.mrb[39].mxu0  ;;  %v3703_v60 = vadd.f32 %v12250_v46, %v11770_v11 }
 0x21a   : > { %v2725_v1 = vpop.permute.xlu1 %2724  ;;  %v3046_v35 = vsel %vm2983_vm5, %v2949_v6, %v9298_v42  ;;  %v3047_v21 = vsel %vm2983_vm5, %v2950_v7, %v9299_v22  ;;  %8400 = vmatpush1.bf16.msra.mxu1 %v8399_v32  ;;  %10089 = vtanh.f32 %v3685_v38  ;;  %v3699_v7 = vadd.f32 %v12235_v10, %v11775_v59  ;;  %v932_v10 = vld [vmem:[%s10948_s26 + $0x210] sm:$0xff]  ;;  %v933_v22 = vld [vmem:[%s10948_s26 + $0x218] sm:$0xff] }
 0x21b   : > { %v2723_v33 = vpop.permute.xlu0 %2722  ;;  %v3143_v58 = vsel %vm3080_vm6, %v3046_v35, %v9303_v41  ;;  %v3144_v18 = vsel %vm3080_vm6, %v3047_v21, %v9304_v9  ;;  %8401 = vmatprep.subr.bf16.mxu1 %v15080_v15  ;;  %10091 = vtanh.f32 %v3687_v53 }
 0x21c   : > { %8043 = vmatprep.mubr.msk.f32.mxu0 %vm3322_vm3, %v2723_v33  ;;  %9481 = vrot.lane.b32.xlu1 %v9480_v24, %s15145_s19  ;;  %v3240_v48 = vsel %vm3177_vm7, %v3143_v58, %v2723_v33  ;;  %v3241_v0 = vsel %vm3177_vm7, %v3144_v18, %v2725_v1  ;;  %10093 = vtanh.f32 %v3691_v40 }
 0x21d   : > { %9476 = vrot.lane.b32.xlu0 %v12114_v13, %s15142_s21  ;;  %3959 = vmatmul.mubr.f32.gmra.mrb[124].mxu0 %v3240_v48 }
 0x21e   : > { %v9312_v8 = vpop.permute.xlu1 %9311  ;;  %8044 = vmatprep.mubr.msk.f32.mxu0 %vm3322_vm3, %v2725_v1 }
 0x21f   : > { %v9314_v20 = vunpack.i.h.bf16 %v9312_v8  ;;  %v9313_v3 = vunpack.i.l.bf16 %v9312_v8  ;;  %v9307_v56 = vpop.permute.xlu0 %9306  ;;  %v3708_v44 = vpop.f32.mrb[40].mxu0 }
 0x220   : > { %v9309_v27 = vunpack.i.h.bf16 %v9307_v56  ;;  %v9308_v2 = vunpack.i.l.bf16 %v9307_v56  ;;  %v3709_v13 = vadd.f32 %v3708_v44, %v11770_v11  ;;  %v3710_v5 = vpop.f32.mrb[41].mxu0  ;;  %2772 = vrot.lane.b32.xlu1 %v11996_v29, %s15143_s0 }
 0x221   : > { %v3711_v51 = vadd.f32 %v3710_v5, %v11775_v59  ;;  %2770 = vrot.lane.b32.xlu0 %v11999_v47, %s15143_s0  ;;  %3965 = vmatmul.mubr.f32.gmra.mrb[126].mxu0 %v3241_v0 }
 0x222   : > { %v2951_v55 = vsel %vm2886_vm4, %v930_v26, %v9308_v2  ;;  %v2952_v31 = vsel %vm2886_vm4, %v931_v19, %v9309_v27  ;;  %10095 = vtanh.f32 %v3709_v13  ;;  %v2727_v16 = vpop.permute.xlu1 %2726 }
 0x223   : > { %10097 = vtanh.f32 %v3711_v51  ;;  %v9317_v54 = vpop.permute.xlu0 %9316  ;;  %v3714_v43 = vpop.f32.mrb[42].mxu0  ;;  %8045 = vmatprep.mubr.msk.f32.mxu0 %vm3322_vm3, %v2727_v16  ;;  %v3048_v12 = vsel %vm2983_vm5, %v2951_v55, %v9313_v3  ;;  %v3049_v63 = vsel %vm2983_vm5, %v2952_v31, %v9314_v20 }
 0x224   : > { %v9319_v37 = vunpack.i.h.bf16 %v9317_v54  ;;  %v9318_v36 = vunpack.i.l.bf16 %v9317_v54  ;;  %v3715_v49 = vadd.f32 %v3714_v43, %v11770_v11  ;;  %v3716_v6 = vpop.f32.mrb[43].mxu0  ;;  %9491 = vrot.lane.b32.xlu1 %v9490_v62, %s10560_s29  ;;  %10099 = vtanh.f32 %v3693_v39  ;;  %v10090_v57 = vpop.eup %10089 }
 0x225   : > { %v3717_v9 = vadd.f32 %v3716_v6, %v11775_v59  ;;  %9486 = vrot.lane.b32.xlu0 %v9485_v61, %s10560_s29  ;;  %v3705_v61 = vadd.f32 %v12258_v4, %v11775_v59  ;;  %v10092_v1 = vpop.eup %10091  ;;  %v934_v6 = vld [vmem:[%s10948_s26 + $0x220] sm:$0xff] }
 0x226   : > { %10101 = vtanh.f32 %v3715_v49  ;;  %v9322_v41 = vpop.permute.xlu1 %9321  ;;  %v3145_v23 = vsel %vm3080_vm6, %v3048_v12, %v9318_v36  ;;  %v3146_v14 = vsel %vm3080_vm6, %v3049_v63, %v9319_v37  ;;  %v10094_v38 = vpop.eup %10093 }
 0x227   : > { %10103 = vtanh.f32 %v3717_v9  ;;  %v9324_v62 = vunpack.i.h.bf16 %v9322_v41  ;;  %v9323_v25 = vunpack.i.l.bf16 %v9322_v41  ;;  %v2729_v17 = vpop.permute.xlu0 %2728  ;;  %v3242_v50 = vsel %vm3177_vm7, %v3145_v23, %v2727_v16 }
 0x228   : > { %10105 = vtanh.f32 %v3697_v30  ;;  %v3720_v45 = vpop.f32.mrb[44].mxu0  ;;  %3971 = vmatmul.mubr.f32.gmra.mrb[128].mxu0 %v3242_v50  ;;  %v3243_v24 = vsel %vm3177_vm7, %v3146_v14, %v2729_v17 }
 0x229   : > { %10107 = vtanh.f32 %v3699_v7  ;;  %v3721_v42 = vadd.f32 %v3720_v45, %v11770_v11  ;;  %v3722_v46 = vpop.f32.mrb[45].mxu0  ;;  %8046 = vmatprep.mubr.msk.f32.mxu0 %vm3322_vm3, %v2729_v17  ;;  %v2953_v35 = vsel %vm2886_vm4, %v932_v10, %v9323_v25  ;;  %v2954_v33 = vsel %vm2886_vm4, %v933_v22, %v9324_v62  ;;  %v935_v7 = vld [vmem:[%s10948_s26 + $0x228] sm:$0xff] }
 0x22a   : > { %10109 = vtanh.f32 %v3703_v60  ;;  %v3723_v21 = vadd.f32 %v3722_v46, %v11775_v59  ;;  %v9332_v32 = vpop.permute.xlu1 %9331 }
 0x22b   : > { %10111 = vtanh.f32 %v3721_v42  ;;  %v9334_v58 = vunpack.i.h.bf16 %v9332_v32  ;;  %v9333_v4 = vunpack.i.l.bf16 %v9332_v32  ;;  %v9327_v18 = vpop.permute.xlu0 %9326 }
 0x22c   : > { %v10096_v53 = vpop.eup %10095  ;;  %10113 = vtanh.f32 %v3723_v21  ;;  %v9329_v48 = vunpack.i.h.bf16 %v9327_v18  ;;  %v9328_v40 = vunpack.i.l.bf16 %v9327_v18  ;;  %v3726_v8 = vpop.f32.mrb[46].mxu0  ;;  %3977 = vmatmul.mubr.f32.gmra.mrb[130].mxu0 %v3243_v24 }
 0x22d   : > { %v10098_v0 = vpop.eup %10097  ;;  %10115 = vtanh.f32 %v3705_v61  ;;  %v4389_v20 = vadd.f32 %v10096_v53, %v10090_v57  ;;  %v3727_v3 = vadd.f32 %v3726_v8, %v11770_v11  ;;  %v3728_v56 = vpop.f32.mrb[47].mxu0 }
 0x22e   : > { %v4390_v26 = vadd.f32 %v10098_v0, %v10092_v1  ;;  %v3729_v19 = vadd.f32 %v3728_v56, %v11775_v59  ;;  %v2733_v44 = vpop.permute.xlu1 %2732  ;;  %v3050_v27 = vsel %vm2983_vm5, %v2953_v35, %v9328_v40  ;;  %v3051_v2 = vsel %vm2983_vm5, %v2954_v33, %v9329_v48  ;;  %v10100_v13 = vpop.eup %10099  ;;  %v7684_v56 = vld [vmem:[%s10948_s26 + $0x2e8] sm:$0xff] }
 0x22f   : > { %4398 = vst [vmem:[#allocation2 + $0x80] sm:$0xff] %v4389_v20  ;;  %10117 = vtanh.f32 %v3727_v3  ;;  %v2731_v5 = vpop.permute.xlu0 %2730  ;;  %v3147_v39 = vsel %vm3080_vm6, %v3050_v27, %v9333_v4  ;;  %v3148_v51 = vsel %vm3080_vm6, %v3051_v2, %v9334_v58  ;;  %v7683_v3 = vld [vmem:[%s10948_s26 + $0x2e0] sm:$0xff] }
 0x230   : > { %v10102_v55 = vpop.eup %10101  ;;  %4399 = vst.msk [vmem:[#allocation2 + $0x88] sm:$0xff] %vm4364_vm8, %v4390_v26  ;;  %10119 = vtanh.f32 %v3729_v19  ;;  %8047 = vmatprep.mubr.msk.f32.mxu0 %vm3322_vm3, %v2731_v5  ;;  %v3244_v31 = vsel %vm3177_vm7, %v3147_v39, %v2731_v5  ;;  %v3245_v30 = vsel %vm3177_vm7, %v3148_v51, %v2733_v44  ;;  %v936_v26 = vld [vmem:[%s10948_s26 + $0x230] sm:$0xff]  ;;  %v937_v19 = vld [vmem:[%s10948_s26 + $0x238] sm:$0xff]  ;;  %v9505_v51 = vpack.i.bf16 %v7684_v56, %v7683_v3 }
 0x231   : > { %v10104_v16 = vpop.eup %10103  ;;  %v4391_v54 = vadd.f32 %v10102_v55, %v10094_v38  ;;  %3983 = vmatmul.mubr.f32.gmra.mrb[132].mxu0 %v3244_v31 }
 0x232   : > { %v10106_v43 = vpop.eup %10105  ;;  %v4392_v12 = vadd.f32 %v10104_v16, %v10100_v13  ;;  %v9342_v63 = vpop.permute.xlu1 %9341  ;;  %8048 = vmatprep.mubr.msk.f32.mxu0 %vm3322_vm3, %v2733_v44 }
 0x233   : > { %v10108_v37 = vpop.eup %10107  ;;  %4400 = vst [vmem:[#allocation2 + $0x90] sm:$0xff] %v4391_v54  ;;  %v9343_v36 = vunpack.i.l.bf16 %v9342_v63  ;;  %v9337_v49 = vpop.permute.xlu0 %9336  ;;  %v9495_v60 = vpack.i.bf16 %v4391_v54, %v4389_v20  ;;  %v9344_v23 = vunpack.i.h.bf16 %v9342_v63 }
 0x234   : > { %v12336_v9 = vpop.f32.mrb[48].mxu0  ;;  %v10110_v41 = vpop.eup %10109  ;;  %4401 = vst.msk [vmem:[#allocation2 + $0x98] sm:$0xff] %vm4364_vm8, %v4392_v12  ;;  %v9339_v14 = vunpack.i.h.bf16 %v9337_v49  ;;  %v9338_v62 = vunpack.i.l.bf16 %v9337_v49 }
 0x235   : > { %v12339_v25 = vpop.f32.mrb[49].mxu0  ;;  %v10112_v10 = vpop.eup %10111  ;;  %3989 = vmatmul.mubr.f32.gmra.mrb[134].mxu0 %v3245_v30  ;;  %9496 = vrot.lane.b32.xlu0 %v9495_v60, %s10560_s29  ;;  %v3733_v60 = vadd.f32 %v12336_v9, %v11770_v11 }
 0x236   : > { %v10114_v17 = vpop.eup %10113  ;;  %v4393_v50 = vadd.f32 %v10112_v10, %v10106_v43  ;;  %v2955_v22 = vsel %vm2886_vm4, %v934_v6, %v9338_v62  ;;  %v2956_v45 = vsel %vm2886_vm4, %v935_v7, %v9339_v14  ;;  %v2735_v57 = vpop.permute.xlu1 %2734  ;;  %v9520_v7 = vpack.i.bf16 %v12240_v28, %v12208_v34 }
 0x237   : > { %v10116_v61 = vpop.eup %10115  ;;  %v4394_v42 = vadd.f32 %v10114_v17, %v10108_v37  ;;  %v9347_v46 = vpop.permute.xlu0 %9346  ;;  %8049 = vmatprep.mubr.msk.f32.mxu0 %vm3322_vm3, %v2735_v57  ;;  %v3052_v1 = vsel %vm2983_vm5, %v2955_v22, %v9343_v36  ;;  %v3053_v38 = vsel %vm2983_vm5, %v2956_v45, %v9344_v23  ;;  %v3735_v62 = vadd.f32 %v12339_v25, %v11775_v59  ;;  %v938_v45 = vld [vmem:[%s10948_s26 + $0x240] sm:$0xff]  ;;  %v939_v25 = vld [vmem:[%s10948_s26 + $0x248] sm:$0xff] }
 0x238   : > { %v3738_v24 = vpop.f32.mrb[50].mxu0  ;;  %4402 = vst [vmem:[#allocation2 + $0xa0] sm:$0xff] %v4393_v50  ;;  %v9349_v35 = vunpack.i.h.bf16 %v9347_v46  ;;  %v9348_v21 = vunpack.i.l.bf16 %v9347_v46  ;;  %10121 = vtanh.f32 %v3733_v60 }
 0x239   : > { %v12346_v32 = vpop.f32.mrb[51].mxu0  ;;  %v10118_v33 = vpop.eup %10117  ;;  %4403 = vst.msk [vmem:[#allocation2 + $0xa8] sm:$0xff] %vm4364_vm8, %v4394_v42  ;;  %v3739_v17 = vadd.f32 %v3738_v24, %v11770_v11  ;;  %10123 = vtanh.f32 %v3735_v62 }
 0x23a   : > { %v10120_v58 = vpop.eup %10119  ;;  %v4395_v4 = vadd.f32 %v10118_v33, %v10110_v41  ;;  %v9352_v18 = vpop.permute.xlu1 %9351  ;;  %v3149_v53 = vsel %vm3080_vm6, %v3052_v1, %v9348_v21  ;;  %v3150_v20 = vsel %vm3080_vm6, %v3053_v38, %v9349_v35  ;;  %v3741_v1 = vadd.f32 %v12346_v32, %v11775_v59 }
 0x23b   : > { %v4396_v48 = vadd.f32 %v10120_v58, %v10116_v61  ;;  %v9354_v40 = vunpack.i.h.bf16 %v9352_v18  ;;  %v9353_v8 = vunpack.i.l.bf16 %v9352_v18  ;;  %v2737_v0 = vpop.permute.xlu0 %2736  ;;  %v3246_v27 = vsel %vm3177_vm7, %v3149_v53, %v2735_v57 }
 0x23c   : > { %4404 = vst [vmem:[#allocation2 + $0xb0] sm:$0xff] %v4395_v4  ;;  %v12356_v44 = vpop.f32.mrb[52].mxu0  ;;  %v9500_v2 = vpack.i.bf16 %v4395_v4, %v4393_v50  ;;  %3995 = vmatmul.mubr.f32.gmra.mrb[136].mxu0 %v3246_v27  ;;  %v3247_v39 = vsel %vm3177_vm7, %v3150_v20, %v2737_v0  ;;  %10125 = vtanh.f32 %v3739_v17 }
 0x23d   : > { %4405 = vst.msk [vmem:[#allocation2 + $0xb8] sm:$0xff] %vm4364_vm8, %v4396_v48  ;;  %v12360_v13 = vpop.f32.mrb[53].mxu0  ;;  %8050 = vmatprep.mubr.msk.f32.mxu0 %vm3322_vm3, %v2737_v0  ;;  %v2957_v55 = vsel %vm2886_vm4, %v936_v26, %v9353_v8  ;;  %v2958_v31 = vsel %vm2886_vm4, %v937_v19, %v9354_v40  ;;  %v3745_v32 = vadd.f32 %v12356_v44, %v11770_v11 }
 0x23e   : > { %v9362_v5 = vpop.permute.xlu1 %9361  ;;  %9501 = vrot.lane.b32.xlu1 %v9500_v2, %s10560_s29  ;;  %v3747_v20 = vadd.f32 %v12360_v13, %v11775_v59 }
 0x23f   : > { %v9364_v16 = vunpack.i.h.bf16 %v9362_v5  ;;  %v9363_v54 = vunpack.i.l.bf16 %v9362_v5  ;;  %v9357_v43 = vpop.permute.xlu0 %9356  ;;  %v940_v5 = vld [vmem:[%s10948_s26 + $0x250] sm:$0xff] }
 0x240   : > { %v9359_v12 = vunpack.i.h.bf16 %v9357_v43  ;;  %v9358_v63 = vunpack.i.l.bf16 %v9357_v43  ;;  %v3750_v30 = vpop.f32.mrb[54].mxu0  ;;  %4001 = vmatmul.mubr.f32.gmra.mrb[138].mxu0 %v3247_v39 }
 0x241   : > { %v12367_v37 = vpop.f32.mrb[55].mxu0  ;;  %v3751_v56 = vadd.f32 %v3750_v30, %v11770_v11 }
 0x242   : > { %v2741_v36 = vpop.permute.xlu1 %2740  ;;  %v3054_v49 = vsel %vm2983_vm5, %v2957_v55, %v9358_v63  ;;  %v3055_v6 = vsel %vm2983_vm5, %v2958_v31, %v9359_v12  ;;  %9506 = vrot.lane.b32.xlu1 %v9505_v51, %s15144_s30  ;;  %v941_v55 = vld [vmem:[%s10948_s26 + $0x258] sm:$0xff]  ;;  %v10122_v31 = vpop.eup %10121 }
 0x243   : > { %v2739_v41 = vpop.permute.xlu0 %2738  ;;  %v3151_v23 = vsel %vm3080_vm6, %v3054_v49, %v9363_v54  ;;  %v3152_v14 = vsel %vm3080_vm6, %v3055_v6, %v9364_v16  ;;  %v3753_v16 = vadd.f32 %v12367_v37, %v11775_v59  ;;  %v10124_v63 = vpop.eup %10123 }
 0x244   : > { %8051 = vmatprep.mubr.msk.f32.mxu0 %vm3322_vm3, %v2739_v41  ;;  %v3248_v10 = vsel %vm3177_vm7, %v3151_v23, %v2739_v41  ;;  %v3249_v28 = vsel %vm3177_vm7, %v3152_v14, %v2741_v36 }
 0x245   : > { %4007 = vmatmul.mubr.f32.gmra.mrb[140].mxu0 %v3248_v10 }
 0x246   : > { %v9372_v34 = vpop.permute.xlu1 %9371  ;;  %8052 = vmatprep.mubr.msk.f32.mxu0 %vm3322_vm3, %v2741_v36  ;;  %9521 = vrot.lane.b32.xlu1 %v9520_v7, %s15145_s19  ;;  %v10126_v6 = vpop.eup %10125 }
 0x247   : > { %v9374_v9 = vunpack.i.h.bf16 %v9372_v34  ;;  %v9373_v50 = vunpack.i.l.bf16 %v9372_v34  ;;  %v9367_v22 = vpop.permute.xlu0 %9366  ;;  %v3756_v57 = vpop.f32.mrb[56].mxu0 }
 0x248   : > { %v9369_v61 = vunpack.i.h.bf16 %v9367_v22  ;;  %v9368_v42 = vunpack.i.l.bf16 %v9367_v22  ;;  %v3757_v46 = vadd.f32 %v3756_v57, %v11770_v11  ;;  %v3758_v24 = vpop.f32.mrb[57].mxu0 }
 0x249   : > { %v3759_v35 = vadd.f32 %v3758_v24, %v11775_v59  ;;  %4013 = vmatmul.mubr.f32.gmra.mrb[142].mxu0 %v3249_v28 }
 0x24a   : > { %v2959_v21 = vsel %vm2886_vm4, %v938_v45, %v9368_v42  ;;  %v2960_v38 = vsel %vm2886_vm4, %v939_v25, %v9369_v61  ;;  %10127 = vtanh.f32 %v3757_v46  ;;  %v2743_v33 = vpop.permute.xlu1 %2742 }
 0x24b   : > { %10129 = vtanh.f32 %v3759_v35  ;;  %v9377_v58 = vpop.permute.xlu0 %9376  ;;  %v3762_v4 = vpop.f32.mrb[58].mxu0  ;;  %8053 = vmatprep.mubr.msk.f32.mxu0 %vm3322_vm3, %v2743_v33  ;;  %v3056_v18 = vsel %vm2983_vm5, %v2959_v21, %v9373_v50  ;;  %v3057_v53 = vsel %vm2983_vm5, %v2960_v38, %v9374_v9 }
 0x24c   : > { %v9379_v48 = vunpack.i.h.bf16 %v9377_v58  ;;  %v9378_v40 = vunpack.i.l.bf16 %v9377_v58  ;;  %v3763_v8 = vadd.f32 %v3762_v4, %v11770_v11  ;;  %v3764_v0 = vpop.f32.mrb[59].mxu0  ;;  %10131 = vtanh.f32 %v3741_v1 }
 0x24d   : > { %v3765_v3 = vadd.f32 %v3764_v0, %v11775_v59  ;;  %v942_v0 = vld [vmem:[%s10948_s26 + $0x260] sm:$0xff] }
 0x24e   : > { %10133 = vtanh.f32 %v3763_v8  ;;  %v9382_v26 = vpop.permute.xlu1 %9381  ;;  %v3153_v19 = vsel %vm3080_vm6, %v3056_v18, %v9378_v40  ;;  %v3154_v44 = vsel %vm3080_vm6, %v3057_v53, %v9379_v48  ;;  %v7779_v53 = vld [vmem:[%s10948_s26 + $0x300] sm:$0xff] }
 0x24f   : > { %10135 = vtanh.f32 %v3765_v3  ;;  %v9384_v27 = vunpack.i.h.bf16 %v9382_v26  ;;  %v9383_v2 = vunpack.i.l.bf16 %v9382_v26  ;;  %v2745_v39 = vpop.permute.xlu0 %2744  ;;  %v3250_v51 = vsel %vm3177_vm7, %v3153_v19, %v2743_v33 }
 0x250   : > { %10137 = vtanh.f32 %v3745_v32  ;;  %v3768_v13 = vpop.f32.mrb[60].mxu0  ;;  %4019 = vmatmul.mubr.f32.gmra.mrb[144].mxu0 %v3250_v51  ;;  %v3251_v12 = vsel %vm3177_vm7, %v3154_v44, %v2745_v39  ;;  %v7780_v32 = vld [vmem:[%s10948_s26 + $0x308] sm:$0xff] }
 0x251   : > { %10139 = vtanh.f32 %v3747_v20  ;;  %v3769_v54 = vadd.f32 %v3768_v13, %v11770_v11  ;;  %v3770_v43 = vpop.f32.mrb[61].mxu0  ;;  %8054 = vmatprep.mubr.msk.f32.mxu0 %vm3322_vm3, %v2745_v39  ;;  %v2961_v30 = vsel %vm2886_vm4, %v940_v5, %v9383_v2  ;;  %v2962_v7 = vsel %vm2886_vm4, %v941_v55, %v9384_v27  ;;  %v943_v20 = vld [vmem:[%s10948_s26 + $0x268] sm:$0xff] }
 0x252   : > { %10141 = vtanh.f32 %v3751_v56  ;;  %v3771_v36 = vadd.f32 %v3770_v43, %v11775_v59  ;;  %v9392_v49 = vpop.permute.xlu1 %9391  ;;  %v12438_v39 = vpack.i.bf16 %v7780_v32, %v7779_v53  ;;  %v7685_v53 = vld [vmem:[%s10948_s26 + $0x2f0] sm:$0xff]  ;;  %v7686_v32 = vld [vmem:[%s10948_s26 + $0x2f8] sm:$0xff] }
 0x253   : > { %10143 = vtanh.f32 %v3769_v54  ;;  %v9394_v60 = vunpack.i.h.bf16 %v9392_v49  ;;  %v9393_v37 = vunpack.i.l.bf16 %v9392_v49  ;;  %v9387_v41 = vpop.permute.xlu0 %9386 }
 0x254   : > { %v10128_v23 = vpop.eup %10127  ;;  %10145 = vtanh.f32 %v3771_v36  ;;  %v9389_v14 = vunpack.i.h.bf16 %v9387_v41  ;;  %v9388_v62 = vunpack.i.l.bf16 %v9387_v41  ;;  %v3774_v10 = vpop.f32.mrb[62].mxu0  ;;  %4025 = vmatmul.mubr.f32.gmra.mrb[146].mxu0 %v3251_v12 }
 0x255   : > { %v10130_v17 = vpop.eup %10129  ;;  %10147 = vtanh.f32 %v3753_v16  ;;  %v4406_v34 = vadd.f32 %v10128_v23, %v10122_v31  ;;  %v3775_v28 = vadd.f32 %v3774_v10, %v11770_v11  ;;  %v3776_v9 = vpop.f32.mrb[63].mxu0  ;;  %v7781_v10 = vld [vmem:[%s10948_s26 + $0x310] sm:$0xff] }
 0x256   : > { %v4407_v50 = vadd.f32 %v10130_v17, %v10124_v63  ;;  %v3777_v22 = vadd.f32 %v3776_v9, %v11775_v59  ;;  %v2749_v45 = vpop.permute.xlu1 %2748  ;;  %v3058_v25 = vsel %vm2983_vm5, %v2961_v30, %v9388_v62  ;;  %v3059_v57 = vsel %vm2983_vm5, %v2962_v7, %v9389_v14  ;;  %v10132_v61 = vpop.eup %10131  ;;  %v12454_v62 = vld [vmem:[%s10948_s26 + $0x348] sm:$0xff]  ;;  %v7782_v17 = vld [vmem:[%s10948_s26 + $0x318] sm:$0xff] }
 0x257   : > { %4415 = vst [vmem:[#allocation2 + $0xc0] sm:$0xff] %v4406_v34  ;;  %10149 = vtanh.f32 %v3775_v28  ;;  %v2747_v42 = vpop.permute.xlu0 %2746  ;;  %v3155_v46 = vsel %vm3080_vm6, %v3058_v25, %v9393_v37  ;;  %v3156_v24 = vsel %vm3080_vm6, %v3059_v57, %v9394_v60  ;;  %v945_v25 = vld [vmem:[%s10948_s26 + $0x278] sm:$0xff] }
 0x258   : > { %v10134_v1 = vpop.eup %10133  ;;  %4416 = vst.msk [vmem:[#allocation2 + $0xc8] sm:$0xff] %vm4364_vm8, %v4407_v50  ;;  %10151 = vtanh.f32 %v3777_v22  ;;  %8055 = vmatprep.mubr.msk.f32.mxu0 %vm3322_vm3, %v2747_v42  ;;  %v3252_v35 = vsel %vm3177_vm7, %v3155_v46, %v2747_v42  ;;  %v3253_v18 = vsel %vm3177_vm7, %v3156_v24, %v2749_v45  ;;  %v12469_v24 = vpack.i.bf16 %v7782_v17, %v7781_v10 }
 0x259   : > { %v10136_v21 = vpop.eup %10135  ;;  %v4408_v38 = vadd.f32 %v10134_v1, %v10126_v6  ;;  %4031 = vmatmul.mubr.f32.gmra.mrb[148].mxu0 %v3252_v35 }
 0x25a   : > { %v10138_v33 = vpop.eup %10137  ;;  %v4409_v58 = vadd.f32 %v10136_v21, %v10132_v61  ;;  %v9402_v4 = vpop.permute.xlu1 %9401  ;;  %8056 = vmatprep.mubr.msk.f32.mxu0 %vm3322_vm3, %v2749_v45  ;;  %v944_v45 = vld [vmem:[%s10948_s26 + $0x270] sm:$0xff] }
 0x25b   : > { %v10140_v48 = vpop.eup %10139  ;;  %4417 = vst [vmem:[#allocation2 + $0xd0] sm:$0xff] %v4408_v38  ;;  %v9403_v40 = vunpack.i.l.bf16 %v9402_v4  ;;  %v9397_v8 = vpop.permute.xlu0 %9396  ;;  %v9510_v56 = vpack.i.bf16 %v4408_v38, %v4406_v34  ;;  %v9404_v19 = vunpack.i.h.bf16 %v9402_v4 }
 0x25c   : > { %v12432_v3 = vpop.f32.mrb[64].mxu0  ;;  %v10142_v26 = vpop.eup %10141  ;;  %4418 = vst.msk [vmem:[#allocation2 + $0xd8] sm:$0xff] %vm4364_vm8, %v4409_v58  ;;  %v9399_v44 = vunpack.i.h.bf16 %v9397_v8  ;;  %v9398_v27 = vunpack.i.l.bf16 %v9397_v8 }
 0x25d   : > { %v12435_v2 = vpop.f32.mrb[65].mxu0  ;;  %v10144_v5 = vpop.eup %10143  ;;  %9511 = vrot.lane.b32.xlu0 %v9510_v56, %s10560_s29  ;;  %4037 = vmatmul.mubr.f32.gmra.mrb[150].mxu0 %v3253_v18  ;;  %v12477_v18 = vld [vmem:[%s10948_s26 + $0x340] sm:$0xff]  ;;  %v9530_v56 = vpack.i.bf16 %v7686_v32, %v7685_v53 }
 0x25e   : > { %v10146_v51 = vpop.eup %10145  ;;  %v4410_v55 = vadd.f32 %v10144_v5, %v10138_v33  ;;  %v2963_v13 = vsel %vm2886_vm4, %v942_v0, %v9398_v27  ;;  %v2964_v31 = vsel %vm2886_vm4, %v943_v20, %v9399_v44  ;;  %v2751_v16 = vpop.permute.xlu1 %2750  ;;  %v3781_v44 = vadd.f32 %v12432_v3, %v11770_v11 }
 0x25f   : > { %v10148_v54 = vpop.eup %10147  ;;  %v4411_v43 = vadd.f32 %v10146_v51, %v10140_v48  ;;  %v9407_v12 = vpop.permute.xlu0 %9406  ;;  %8057 = vmatprep.mubr.msk.f32.mxu0 %vm3322_vm3, %v2751_v16  ;;  %v3060_v30 = vsel %vm2983_vm5, %v2963_v13, %v9403_v40  ;;  %v3061_v7 = vsel %vm2983_vm5, %v2964_v31, %v9404_v19 }
 0x260   : > { %v12442_v63 = vpop.f32.mrb[66].mxu0  ;;  %4419 = vst [vmem:[#allocation2 + $0xe0] sm:$0xff] %v4410_v55  ;;  %v9409_v36 = vunpack.i.h.bf16 %v9407_v12  ;;  %v9408_v49 = vunpack.i.l.bf16 %v9407_v12  ;;  %10153 = vtanh.f32 %v3781_v44 }
 0x261   : > { %v12446_v6 = vpop.f32.mrb[67].mxu0  ;;  %v10150_v60 = vpop.eup %10149  ;;  %4420 = vst.msk [vmem:[#allocation2 + $0xe8] sm:$0xff] %vm4364_vm8, %v4411_v43  ;;  %9516 = vrot.lane.b32.xlu0 %v12438_v39, %s15142_s21  ;;  %v3787_v31 = vadd.f32 %v12442_v63, %v11770_v11 }
 0x262   : > { %v10152_v37 = vpop.eup %10151  ;;  %v4412_v41 = vadd.f32 %v10150_v60, %v10142_v26  ;;  %v9412_v23 = vpop.permute.xlu1 %9411  ;;  %v3157_v14 = vsel %vm3080_vm6, %v3060_v30, %v9408_v49  ;;  %v3158_v22 = vsel %vm3080_vm6, %v3061_v7, %v9409_v36  ;;  %v947_v30 = vld [vmem:[%s10948_s26 + $0x288] sm:$0xff] }
 0x263   : > { %v4413_v34 = vadd.f32 %v10152_v37, %v10148_v54  ;;  %v9414_v28 = vunpack.i.h.bf16 %v9412_v23  ;;  %v9413_v9 = vunpack.i.l.bf16 %v9412_v23  ;;  %v2753_v50 = vpop.permute.xlu0 %2752  ;;  %v3254_v42 = vsel %vm3177_vm7, %v3157_v14, %v2751_v16 }
 0x264   : > { %4421 = vst [vmem:[#allocation2 + $0xf0] sm:$0xff] %v4412_v41  ;;  %v12461_v57 = vpop.f32.mrb[68].mxu0  ;;  %v9525_v61 = vpack.i.bf16 %v4412_v41, %v4410_v55  ;;  %4043 = vmatmul.mubr.f32.gmra.mrb[152].mxu0 %v3254_v42  ;;  %v3255_v35 = vsel %vm3177_vm7, %v3158_v22, %v2753_v50  ;;  %v3783_v55 = vadd.f32 %v12435_v2, %v11775_v59  ;;  %v946_v2 = vld [vmem:[%s10948_s26 + $0x280] sm:$0xff] }
 0x265   : > { %4422 = vst.msk [vmem:[#allocation2 + $0xf8] sm:$0xff] %vm4364_vm8, %v4413_v34  ;;  %v12465_v46 = vpop.f32.mrb[69].mxu0  ;;  %2776 = vrot.lane.b32.xlu0 %v12454_v62, %s15143_s0  ;;  %8058 = vmatprep.mubr.msk.f32.mxu0 %vm3322_vm3, %v2753_v50  ;;  %v2965_v21 = vsel %vm2886_vm4, %v944_v45, %v9413_v9  ;;  %v2966_v38 = vsel %vm2886_vm4, %v945_v25, %v9414_v28  ;;  %v12515_v28 = vld [vmem:[%s10948_s26 + $0x350] sm:$0xff] }
 0x266   : > { %v9422_v1 = vpop.permute.xlu1 %9421  ;;  %9526 = vrot.lane.b32.xlu1 %v9525_v61, %s10560_s29  ;;  %10155 = vtanh.f32 %v3783_v55  ;;  %v3789_v37 = vadd.f32 %v12446_v6, %v11775_v59  ;;  %v3793_v50 = vadd.f32 %v12461_v57, %v11770_v11 }
 0x267   : > { %v9424_v33 = vunpack.i.h.bf16 %v9422_v1  ;;  %v9423_v58 = vunpack.i.l.bf16 %v9422_v1  ;;  %v9417_v4 = vpop.permute.xlu0 %9416  ;;  %10157 = vtanh.f32 %v3787_v31 }
 0x268   : > { %v9419_v48 = vunpack.i.h.bf16 %v9417_v4  ;;  %v9418_v40 = vunpack.i.l.bf16 %v9417_v4  ;;  %v3798_v8 = vpop.f32.mrb[70].mxu0  ;;  %4049 = vmatmul.mubr.f32.gmra.mrb[154].mxu0 %v3255_v35 }
 0x269   : > { %v12481_v0 = vpop.f32.mrb[71].mxu0  ;;  %9536 = vrot.lane.b32.xlu0 %v12469_v24, %s15142_s21  ;;  %v3799_v61 = vadd.f32 %v3798_v8, %v11770_v11 }
 0x26a   : > { %v2757_v20 = vpop.permute.xlu1 %2756  ;;  %2774 = vrot.lane.b32.xlu1 %v12477_v18, %s15143_s0  ;;  %v3062_v26 = vsel %vm2983_vm5, %v2965_v21, %v9418_v40  ;;  %v3063_v19 = vsel %vm2983_vm5, %v2966_v38, %v9419_v48  ;;  %v948_v38 = vld [vmem:[%s10948_s26 + $0x290] sm:$0xff]  ;;  %v10154_v53 = vpop.eup %10153  ;;  %v3801_v32 = vadd.f32 %v12481_v0, %v11775_v59  ;;  %v9565_v0 = vpack.i.bf16 %v12454_v62, %v12477_v18 }
 0x26b   : > { %v2755_v27 = vpop.permute.xlu0 %2754  ;;  %v3159_v5 = vsel %vm3080_vm6, %v3062_v26, %v9423_v58  ;;  %v3160_v51 = vsel %vm3080_vm6, %v3063_v19, %v9424_v33  ;;  %v949_v58 = vld [vmem:[%s10948_s26 + $0x298] sm:$0xff] }
 0x26c   : > { %8059 = vmatprep.mubr.msk.f32.mxu0 %vm3322_vm3, %v2755_v27  ;;  %v3256_v13 = vsel %vm3177_vm7, %v3159_v5, %v2755_v27  ;;  %v3257_v3 = vsel %vm3177_vm7, %v3160_v51, %v2757_v20 }
 0x26d   : > { %4055 = vmatmul.mubr.f32.gmra.mrb[156].mxu0 %v3256_v13 }
 0x26e   : > { %v9432_v16 = vpop.permute.xlu1 %9431  ;;  %9531 = vrot.lane.b32.xlu1 %v9530_v56, %s15144_s30  ;;  %8060 = vmatprep.mubr.msk.f32.mxu0 %vm3322_vm3, %v2757_v20 }
 0x26f   : > { %v9434_v54 = vunpack.i.h.bf16 %v9432_v16  ;;  %v9433_v43 = vunpack.i.l.bf16 %v9432_v16  ;;  %v9427_v12 = vpop.permute.xlu0 %9426  ;;  %v3804_v36 = vpop.f32.mrb[72].mxu0 }
 0x270   : > { %v9429_v49 = vunpack.i.h.bf16 %v9427_v12  ;;  %v9428_v7 = vunpack.i.l.bf16 %v9427_v12  ;;  %v3805_v63 = vadd.f32 %v3804_v36, %v11770_v11  ;;  %v3806_v60 = vpop.f32.mrb[73].mxu0  ;;  %v10156_v20 = vpop.eup %10155 }
 0x271   : > { %v3807_v41 = vadd.f32 %v3806_v60, %v11775_v59  ;;  %4061 = vmatmul.mubr.f32.gmra.mrb[158].mxu0 %v3257_v3  ;;  %v10158_v44 = vpop.eup %10157 }
 0x272   : > { %v2967_v23 = vsel %vm2886_vm4, %v946_v2, %v9428_v7  ;;  %v2968_v14 = vsel %vm2886_vm4, %v947_v30, %v9429_v49  ;;  %10159 = vtanh.f32 %v3805_v63  ;;  %v2759_v10 = vpop.permute.xlu1 %2758  ;;  %9541 = vrot.lane.b32.xlu1 %v9540_v52, %s15145_s19  ;;  %v3795_v52 = vadd.f32 %v12465_v46, %v11775_v59  ;;  %v7975_v63 = vld [vmem:[%s10948_s26 + $0x360] sm:$0xff] }
 0x273   : > { %10161 = vtanh.f32 %v3807_v41  ;;  %v9437_v17 = vpop.permute.xlu0 %9436  ;;  %v3810_v34 = vpop.f32.mrb[74].mxu0  ;;  %8061 = vmatprep.mubr.msk.f32.mxu0 %vm3322_vm3, %v2759_v10  ;;  %v3064_v6 = vsel %vm2983_vm5, %v2967_v23, %v9433_v43  ;;  %v3065_v9 = vsel %vm2983_vm5, %v2968_v14, %v9434_v54 }
 0x274   : > { %v9439_v22 = vunpack.i.h.bf16 %v9437_v17  ;;  %v9438_v45 = vunpack.i.l.bf16 %v9437_v17  ;;  %v3811_v29 = vadd.f32 %v3810_v34, %v11770_v11  ;;  %v3812_v47 = vpop.f32.mrb[75].mxu0  ;;  %10163 = vtanh.f32 %v3789_v37 }
 0x275   : > { %v3813_v25 = vadd.f32 %v3812_v47, %v11775_v59  ;;  %v951_v47 = vld [vmem:[%s10948_s26 + $0x2a8] sm:$0xff] }
 0x276   : > { %10165 = vtanh.f32 %v3811_v29  ;;  %v9442_v42 = vpop.permute.xlu1 %9441  ;;  %2778 = vrot.lane.b32.xlu1 %v12515_v28, %s15143_s0  ;;  %v3161_v57 = vsel %vm3080_vm6, %v3064_v6, %v9438_v45  ;;  %v3162_v1 = vsel %vm3080_vm6, %v3065_v9, %v9439_v22  ;;  %v950_v29 = vld [vmem:[%s10948_s26 + $0x2a0] sm:$0xff] }
 0x277   : > { %10167 = vtanh.f32 %v3813_v25  ;;  %v9444_v35 = vunpack.i.h.bf16 %v9442_v42  ;;  %v9443_v21 = vunpack.i.l.bf16 %v9442_v42  ;;  %v2761_v33 = vpop.permute.xlu0 %2760  ;;  %v3258_v46 = vsel %vm3177_vm7, %v3161_v57, %v2759_v10 }
 0x278   : > { %10169 = vtanh.f32 %v3793_v50  ;;  %v3816_v4 = vpop.f32.mrb[76].mxu0  ;;  %4067 = vmatmul.mubr.f32.gmra.mrb[160].mxu0 %v3258_v46  ;;  %v3259_v8 = vsel %vm3177_vm7, %v3162_v1, %v2761_v33 }
 0x279   : > { %10171 = vtanh.f32 %v3795_v52  ;;  %v3817_v48 = vadd.f32 %v3816_v4, %v11770_v11  ;;  %v3818_v40 = vpop.f32.mrb[77].mxu0  ;;  %8062 = vmatprep.mubr.msk.f32.mxu0 %vm3322_vm3, %v2761_v33  ;;  %v2969_v56 = vsel %vm2886_vm4, %v948_v38, %v9443_v21  ;;  %v2970_v27 = vsel %vm2886_vm4, %v949_v58, %v9444_v35 }
 0x27a   : > { %10173 = vtanh.f32 %v3799_v61  ;;  %v3819_v26 = vadd.f32 %v3818_v40, %v11775_v59  ;;  %v9452_v19 = vpop.permute.xlu1 %9451  ;;  %9551 = vrot.lane.b32.xlu1 %v12438_v39, %s15144_s30  ;;  %v7882_v61 = vld [vmem:[%s10948_s26 + $0x358] sm:$0xff] }
 0x27b   : > { %10175 = vtanh.f32 %v3817_v48  ;;  %v9454_v5 = vunpack.i.h.bf16 %v9452_v19  ;;  %v9453_v51 = vunpack.i.l.bf16 %v9452_v19  ;;  %v9447_v55 = vpop.permute.xlu0 %9446 }
 0x27c   : > { %v10160_v13 = vpop.eup %10159  ;;  %10177 = vtanh.f32 %v3819_v26  ;;  %v9449_v31 = vunpack.i.h.bf16 %v9447_v55  ;;  %v9448_v16 = vunpack.i.l.bf16 %v9447_v55  ;;  %v3822_v3 = vpop.f32.mrb[78].mxu0  ;;  %4073 = vmatmul.mubr.f32.gmra.mrb[162].mxu0 %v3259_v8 }
 0x27d   : > { %v10162_v54 = vpop.eup %10161  ;;  %10179 = vtanh.f32 %v3801_v32  ;;  %v4423_v39 = vadd.f32 %v10160_v13, %v10154_v53  ;;  %v3823_v43 = vadd.f32 %v3822_v3, %v11770_v11  ;;  %v3824_v62 = vpop.f32.mrb[79].mxu0  ;;  %v9590_v32 = vpack.i.bf16 %v7882_v61, %v12515_v28  ;;  %v7977_v3 = vld [vmem:[%s10948_s26 + $0x370] sm:$0xff] }
 0x27e   : > { %v4424_v18 = vadd.f32 %v10162_v54, %v10156_v20  ;;  %v3825_v12 = vadd.f32 %v3824_v62, %v11775_v59  ;;  %v2765_v2 = vpop.permute.xlu1 %2764  ;;  %9566 = vrot.lane.b32.xlu1 %v9565_v0, %s15145_s19  ;;  %v3066_v30 = vsel %vm2983_vm5, %v2969_v56, %v9448_v16  ;;  %v3067_v36 = vsel %vm2983_vm5, %v2970_v27, %v9449_v31  ;;  %v10164_v49 = vpop.eup %10163  ;;  %v952_v62 = vld [vmem:[%s10948_s26 + $0x2b0] sm:$0xff] }
 0x27f   : > { %4432 = vst [vmem:[#allocation2 + $0x100] sm:$0xff] %v4423_v39  ;;  %10181 = vtanh.f32 %v3823_v43  ;;  %v2763_v7 = vpop.permute.xlu0 %2762  ;;  %v3163_v60 = vsel %vm3080_vm6, %v3066_v30, %v9453_v51  ;;  %v3164_v37 = vsel %vm3080_vm6, %v3067_v36, %v9454_v5  ;;  %v7784_v43 = vld [vmem:[%s10948_s26 + $0x328] sm:$0xff] }
 0x280   : > { %v10166_v41 = vpop.eup %10165  ;;  %4433 = vst.msk [vmem:[#allocation2 + $0x108] sm:$0xff] %vm4364_vm8, %v4424_v18  ;;  %10183 = vtanh.f32 %v3825_v12  ;;  %8063 = vmatprep.mubr.msk.f32.mxu0 %vm3322_vm3, %v2763_v7  ;;  %v3260_v23 = vsel %vm3177_vm7, %v3163_v60, %v2763_v7  ;;  %v3261_v9 = vsel %vm3177_vm7, %v3164_v37, %v2765_v2  ;;  %v953_v18 = vld [vmem:[%s10948_s26 + $0x2b8] sm:$0xff] }
 0x281   : > { %v10168_v14 = vpop.eup %10167  ;;  %v4425_v10 = vadd.f32 %v10166_v41, %v10158_v44  ;;  %4079 = vmatmul.mubr.f32.gmra.mrb[164].mxu0 %v3260_v23 }
 0x282   : > { %v10170_v17 = vpop.eup %10169  ;;  %v4426_v34 = vadd.f32 %v10168_v14, %v10164_v49  ;;  %v9462_v6 = vpop.permute.xlu1 %9461  ;;  %2782 = vrot.lane.b32.xlu1 %v7975_v63, %s15143_s0  ;;  %8064 = vmatprep.mubr.msk.f32.mxu0 %vm3322_vm3, %v2765_v2  ;;  %v12597_v49 = vld [vmem:[#allocation2 + $0x58] sm:$0xff] }
 0x283   : > { %v10172_v50 = vpop.eup %10171  ;;  %4434 = vst [vmem:[#allocation2 + $0x110] sm:$0xff] %v4425_v10  ;;  %v9463_v22 = vunpack.i.l.bf16 %v9462_v6  ;;  %v9457_v45 = vpop.permute.xlu0 %9456  ;;  %v9545_v25 = vpack.i.bf16 %v4425_v10, %v4423_v39  ;;  %v9464_v57 = vunpack.i.h.bf16 %v9462_v6  ;;  %v7783_v39 = vld [vmem:[%s10948_s26 + $0x320] sm:$0xff] }
 0x284   : > { %v12562_v52 = vpop.f32.mrb[80].mxu0  ;;  %v10174_v42 = vpop.eup %10173  ;;  %4435 = vst.msk [vmem:[#allocation2 + $0x118] sm:$0xff] %vm4364_vm8, %v4426_v34  ;;  %v9459_v1 = vunpack.i.h.bf16 %v9457_v45  ;;  %v9458_v35 = vunpack.i.l.bf16 %v9457_v45  ;;  %v9560_v60 = vpack.i.bf16 %v7784_v43, %v7783_v39 }
 0x285   : > { %v12566_v21 = vpop.f32.mrb[81].mxu0  ;;  %v10176_v38 = vpop.eup %10175  ;;  %9546 = vrot.lane.b32.xlu0 %v9545_v25, %s10560_s29  ;;  %4085 = vmatmul.mubr.f32.gmra.mrb[166].mxu0 %v3261_v9 }
 0x286   : > { %v10178_v33 = vpop.eup %10177  ;;  %v4427_v46 = vadd.f32 %v10176_v38, %v10170_v17  ;;  %v2971_v58 = vsel %vm2886_vm4, %v950_v29, %v9458_v35  ;;  %v2972_v4 = vsel %vm2886_vm4, %v951_v47, %v9459_v1  ;;  %v2767_v53 = vpop.permute.xlu1 %2766  ;;  %9576 = vrot.lane.b32.xlu1 %v12469_v24, %s15144_s30  ;;  %v12604_v17 = vld [vmem:[#allocation2 + $0x48] sm:$0xff]  ;;  %v3829_v47 = vadd.f32 %v12562_v52, %v11770_v11 }
 0x287   : > { %v10180_v48 = vpop.eup %10179  ;;  %v4428_v40 = vadd.f32 %v10178_v33, %v10172_v50  ;;  %v9467_v8 = vpop.permute.xlu0 %9466  ;;  %8065 = vmatprep.mubr.msk.f32.mxu0 %vm3322_vm3, %v2767_v53  ;;  %v3068_v56 = vsel %vm2983_vm5, %v2971_v58, %v9463_v22  ;;  %v3069_v24 = vsel %vm2983_vm5, %v2972_v4, %v9464_v57  ;;  %v9605_v50 = vpack.i.bf16 %v12597_v49, %v12604_v17 }
 0x288   : > { %v12574_v20 = vpop.f32.mrb[82].mxu0  ;;  %4436 = vst [vmem:[#allocation2 + $0x120] sm:$0xff] %v4427_v46  ;;  %v9469_v26 = vunpack.i.h.bf16 %v9467_v8  ;;  %v9468_v19 = vunpack.i.l.bf16 %v9467_v8  ;;  %v3831_v35 = vadd.f32 %v12566_v21, %v11775_v59  ;;  %10185 = vtanh.f32 %v3829_v47  ;;  %v4560_v8 = vld [vmem:[#allocation2 + $0x8] sm:$0xff] }
 0x289   : > { %v12578_v0 = vpop.f32.mrb[83].mxu0  ;;  %v10182_v28 = vpop.eup %10181  ;;  %4437 = vst.msk [vmem:[#allocation2 + $0x128] sm:$0xff] %vm4364_vm8, %v4428_v40  ;;  %2780 = vrot.lane.b32.xlu0 %v7882_v61, %s15143_s0 }
 0x28a   : > { %v10184_v44 = vpop.eup %10183  ;;  %v4429_v27 = vadd.f32 %v10182_v28, %v10174_v42  ;;  %v9472_v5 = vpop.permute.xlu1 %9471  ;;  %9591 = vrot.lane.b32.xlu1 %v9590_v32, %s15145_s19  ;;  %v3165_v51 = vsel %vm3080_vm6, %v3068_v56, %v9468_v19  ;;  %v3166_v54 = vsel %vm3080_vm6, %v3069_v24, %v9469_v26  ;;  %10187 = vtanh.f32 %v3831_v35  ;;  %v4559_v26 = vld [vmem:[#allocation2] sm:$0xff]  ;;  %v4562_v19 = vld [vmem:[#allocation2 + $0x18] sm:$0xff] }
 0x28b   : > { %v4430_v55 = vadd.f32 %v10184_v44, %v10180_v48  ;;  %v9474_v13 = vunpack.i.h.bf16 %v9472_v5  ;;  %v9473_v31 = vunpack.i.l.bf16 %v9472_v5  ;;  %v2769_v16 = vpop.permute.xlu0 %2768  ;;  %v3262_v30 = vsel %vm3177_vm7, %v3165_v51, %v2767_v53 }
 0x28c   : > { %4438 = vst [vmem:[#allocation2 + $0x130] sm:$0xff] %v4429_v27  ;;  %v12591_v12 = vpop.f32.mrb[84].mxu0  ;;  %v9555_v2 = vpack.i.bf16 %v4429_v27, %v4427_v46  ;;  %4091 = vmatmul.mubr.f32.gmra.mrb[168].mxu0 %v3262_v30  ;;  %v3263_v63 = vsel %vm3177_vm7, %v3166_v54, %v2769_v16  ;;  %v3835_v46 = vadd.f32 %v12574_v20, %v11770_v11  ;;  %v4563_v30 = vld [vmem:[#allocation2 + $0x20] sm:$0xff] }
 0x28d   : > { %4439 = vst.msk [vmem:[#allocation2 + $0x138] sm:$0xff] %vm4364_vm8, %v4430_v55  ;;  %v12595_v36 = vpop.f32.mrb[85].mxu0  ;;  %v2973_v37 = vsel %vm2886_vm4, %v952_v62, %v9473_v31  ;;  %v2974_v41 = vsel %vm2886_vm4, %v953_v18, %v9474_v13  ;;  %8066 = vmatprep.mubr.msk.f32.mxu0 %vm3322_vm3, %v2769_v16  ;;  %v3837_v21 = vadd.f32 %v12578_v0, %v11775_v59  ;;  %v4561_v55 = vld [vmem:[#allocation2 + $0x10] sm:$0xff]  ;;  %v4564_v13 = vld [vmem:[#allocation2 + $0x28] sm:$0xff] }
 0x28e   : > { %v9482_v7 = vpop.permute.xlu1 %9481  ;;  %2786 = vrot.lane.b32.xlu1 %v7977_v3, %s15143_s0  ;;  %9556 = vrot.lane.b32.xlu0 %v9555_v2, %s10560_s29  ;;  %v3841_v27 = vadd.f32 %v12591_v12, %v11770_v11  ;;  %v3843_v51 = vadd.f32 %v12595_v36, %v11775_v59  ;;  %v4566_v36 = vld [vmem:[#allocation2 + $0x38] sm:$0xff] }
 0x28f   : > { %v9484_v23 = vunpack.i.h.bf16 %v9482_v7  ;;  %v9483_v14 = vunpack.i.l.bf16 %v9482_v7  ;;  %v9477_v10 = vpop.permute.xlu0 %9476 }
 0x290   : > { %v9479_v34 = vunpack.i.h.bf16 %v9477_v10  ;;  %v9478_v6 = vunpack.i.l.bf16 %v9477_v10  ;;  %v3846_v9 = vpop.f32.mrb[86].mxu0  ;;  %4097 = vmatmul.mubr.f32.gmra.mrb[170].mxu0 %v3263_v63 }
 0x291   : > { %v12609_v22 = vpop.f32.mrb[87].mxu0  ;;  %v3847_v39 = vadd.f32 %v3846_v9, %v11770_v11 }
 0x292   : > { %9606 = vrot.lane.b32.xlu1 %v9605_v50, %s10560_s29  ;;  %9561 = vrot.lane.b32.xlu0 %v9560_v60, %s15142_s21  ;;  %v3070_v45 = vsel %vm2983_vm5, %v2973_v37, %v9478_v6  ;;  %v3071_v29 = vsel %vm2983_vm5, %v2974_v41, %v9479_v34  ;;  %v2773_v25 = vpop.permute.xlu1 %2772  ;;  %v10186_v54 = vpop.eup %10185  ;;  %v3849_v18 = vadd.f32 %v12609_v22, %v11775_v59  ;;  %v4565_v50 = vld [vmem:[#allocation2 + $0x30] sm:$0xff] }
 0x293   : > { %v2771_v61 = vpop.permute.xlu0 %2770  ;;  %v3167_v42 = vsel %vm3080_vm6, %v3070_v45, %v9483_v14  ;;  %v3168_v57 = vsel %vm3080_vm6, %v3071_v29, %v9484_v23 }
 0x294   : > { %8067 = vmatprep.mubr.msk.f32.mxu0 %vm3322_vm3, %v2771_v61  ;;  %v3264_v1 = vsel %vm3177_vm7, %v3167_v42, %v2771_v61  ;;  %v3265_v38 = vsel %vm3177_vm7, %v3168_v57, %v2773_v25  ;;  %v10188_v2 = vpop.eup %10187 }
 0x295   : > { %4103 = vmatmul.mubr.f32.gmra.mrb[172].mxu0 %v3264_v1 }
 0x296   : > { %8068 = vmatprep.mubr.msk.f32.mxu0 %vm3322_vm3, %v2773_v25  ;;  %v12634_v48 = vpop.permute.xlu1 %9491 }
 0x297   : > { %v3852_v52 = vpop.f32.mrb[88].mxu0  ;;  %v12625_v33 = vpop.permute.xlu0 %9486  ;;  %v15079_v24 = vunpack.i.l.bf16 %v12634_v48  ;;  %v15078_v31 = vunpack.i.h.bf16 %v12634_v48 }
 0x298   : > { %v3853_v58 = vadd.f32 %v3852_v52, %v11770_v11  ;;  %v15082_v4 = vunpack.i.h.bf16 %v12625_v33  ;;  %v15083_v53 = vunpack.i.l.bf16 %v12625_v33  ;;  %v3854_v32 = vpop.f32.mrb[89].mxu0 }
 0x299   : > { %v3855_v40 = vadd.f32 %v3854_v32, %v11775_v59  ;;  %4109 = vmatmul.mubr.f32.gmra.mrb[174].mxu0 %v3265_v38  ;;  %v6004_v3 = vsel %vm4364_vm8, %v4564_v13, %v15079_v24  ;;  %v6005_v60 = vsel %vm4364_vm8, %v4566_v36, %v15078_v31  ;;  %v4567_v38 = vld [vmem:[#allocation2 + $0x40] sm:$0xff]  ;;  %v12686_v13 = vld [vmem:[#allocation2 + $0x68] sm:$0xff] }
 0x29a   : > { %10189 = vtanh.f32 %v3853_v58  ;;  %v6002_v20 = vsel %vm4364_vm8, %v4560_v8, %v15083_v53  ;;  %v6003_v44 = vsel %vm4364_vm8, %v4562_v19, %v15082_v4  ;;  %v7976_v8 = vld [vmem:[%s10948_s26 + $0x368] sm:$0xff]  ;;  %v4569_v19 = vld [vmem:[#allocation2 + $0x50] sm:$0xff] }
 0x29b   : > { %10191 = vtanh.f32 %v3855_v40  ;;  %v3858_v56 = vpop.f32.mrb[90].mxu0  ;;  %6356 = vmatprep.mubr.f32.mxu1 %v6002_v20 }
 0x29c   : > { %10193 = vtanh.f32 %v3835_v46  ;;  %v3859_v0 = vadd.f32 %v3858_v56, %v11770_v11  ;;  %v3860_v28 = vpop.f32.mrb[91].mxu0  ;;  %6357 = vmatmul.mubr.f32.vlgmr.msra.gmra.mrb[0].mxu1 %v4559_v26 }
 0x29d   : > { %10195 = vtanh.f32 %v3837_v21  ;;  %v3861_v5 = vadd.f32 %v3860_v28, %v11775_v59  ;;  %6361 = vmatprep.mubr.f32.mxu1 %v6003_v44 }
 0x29e   : > { %10197 = vtanh.f32 %v3859_v0 }
 0x29f   : > { %10199 = vtanh.f32 %v3861_v5 }
 0x2a0   : > { %v3864_v16 = vpop.f32.mrb[92].mxu0  ;;  %6362 = vmatmul.mubr.f32.gmra.mrb[2].mxu1 %v4561_v55  ;;  %10201 = vtanh.f32 %v3841_v27 }
 0x2a1   : > { %v3865_v43 = vadd.f32 %v3864_v16, %v11770_v11  ;;  %v3866_v62 = vpop.f32.mrb[93].mxu0  ;;  %6366 = vmatprep.mubr.f32.mxu1 %v6004_v3  ;;  %10203 = vtanh.f32 %v3843_v51  ;;  %v7785_v16 = vld [vmem:[%s10948_s26 + $0x330] sm:$0xff] }
 0x2a2   : > { %v3867_v12 = vadd.f32 %v3866_v62, %v11775_v59  ;;  %v6163_v62 = vld [vmem:[%s15039_s3 + $0x108] sm:$0xff] }
 0x2a3   : > { %10205 = vtanh.f32 %v3865_v43  ;;  %v6162_v43 = vld [vmem:[%s15039_s3 + $0x100] sm:$0xff] }
 0x2a4   : > { %v10190_v7 = vpop.eup %10189  ;;  %10207 = vtanh.f32 %v3867_v12  ;;  %v3870_v63 = vpop.f32.mrb[94].mxu0  ;;  %6367 = vmatmul.mubr.f32.gmra.mrb[4].mxu1 %v4563_v30  ;;  %v4571_v12 = vld [vmem:[#allocation2 + $0x60] sm:$0xff]  ;;  %v12700_v30 = vld [vmem:[#allocation2 + $0x78] sm:$0xff]  ;;  %v8402_v36 = vpack.c.bf16 %v6163_v62, %v6162_v43 }
 0x2a5   : > { %v10192_v37 = vpop.eup %10191  ;;  %10209 = vtanh.f32 %v3847_v39  ;;  %v4440_v41 = vadd.f32 %v10190_v7, %v10186_v54  ;;  %v3871_v23 = vadd.f32 %v3870_v63, %v11770_v11  ;;  %v3872_v14 = vpop.f32.mrb[95].mxu0  ;;  %6371 = vmatprep.mubr.f32.mxu1 %v6005_v60  ;;  %v7786_v39 = vld [vmem:[%s10948_s26 + $0x338] sm:$0xff] }
 0x2a6   : > { %v10194_v10 = vpop.eup %10193  ;;  %10211 = vtanh.f32 %v3849_v18  ;;  %v4441_v34 = vadd.f32 %v10192_v37, %v10188_v2  ;;  %v3873_v6 = vadd.f32 %v3872_v14, %v11775_v59  ;;  %v9585_v60 = vpack.i.bf16 %v7786_v39, %v7785_v16  ;;  %8403 = vmatpush1.bf16.msra.mxu1 %v8402_v36  ;;  %v6164_v14 = vld [vmem:[%s15039_s3 + $0x110] sm:$0xff] }
 0x2a7   : > { %v10196_v9 = vpop.eup %10195  ;;  %4449 = vst [vmem:[#allocation2 + $0x140] sm:$0xff] %v4440_v41  ;;  %10213 = vtanh.f32 %v3871_v23  ;;  %v12664_v22 = vpop.permute.xlu0 %9496  ;;  %8404 = vmatprep.subr.bf16.mxu1 %v15080_v15 }
 0x2a8   : > { %v10198_v45 = vpop.eup %10197  ;;  %4450 = vst.msk [vmem:[#allocation2 + $0x148] sm:$0xff] %vm4364_vm8, %v4441_v34  ;;  %10215 = vtanh.f32 %v3873_v6  ;;  %6372 = vmatmul.mubr.f32.gmra.mrb[6].mxu1 %v4565_v50  ;;  %v15074_v29 = vunpack.i.h.bf16 %v12664_v22  ;;  %v15075_v47 = vunpack.i.l.bf16 %v12664_v22 }
 0x2a9   : > { %v10200_v25 = vpop.eup %10199  ;;  %v4442_v61 = vadd.f32 %v10198_v45, %v10194_v10  ;;  %v6165_v10 = vld [vmem:[%s15039_s3 + $0x118] sm:$0xff] }
 0x2aa   : > { %v4443_v42 = vadd.f32 %v10200_v25, %v10196_v9  ;;  %v6006_v57 = vsel %vm4364_vm8, %v12604_v17, %v15075_v47  ;;  %v10202_v1 = vpop.eup %10201  ;;  %v6007_v32 = vsel %vm4364_vm8, %v12597_v49, %v15074_v29  ;;  %v8405_v34 = vpack.c.bf16 %v6165_v10, %v6164_v14  ;;  %v954_v14 = vld [vmem:[%s10948_s26 + $0x2c0] sm:$0xff]  ;;  %v12753_v10 = vld [vmem:[#allocation2 + $0x88] sm:$0xff] }
 0x2ab   : > { %4451 = vst [vmem:[#allocation2 + $0x150] sm:$0xff] %v4442_v61  ;;  %v3876_v35 = vpop.f32.mrb[96].mxu0  ;;  %6376 = vmatprep.mubr.f32.mxu1 %v6006_v57  ;;  %v9570_v52 = vpack.i.bf16 %v4442_v61, %v4440_v41  ;;  %v10204_v46 = vpop.eup %10203  ;;  %v4573_v41 = vld [vmem:[#allocation2 + $0x70] sm:$0xff] }
 0x2ac   : > { %4452 = vst.msk [vmem:[#allocation2 + $0x158] sm:$0xff] %vm4364_vm8, %v4443_v42  ;;  %v3878_v58 = vpop.f32.mrb[97].mxu0  ;;  %6377 = vmatmul.mubr.f32.gmra.mrb[8].mxu1 %v4567_v38  ;;  %v3877_v6 = vadd.f32 %v3876_v35, %v11770_v11  ;;  %v6167_v35 = vld [vmem:[%s15039_s3 + $0x128] sm:$0xff] }
 0x2ad   : > { %v10206_v21 = vpop.eup %10205  ;;  %9571 = vrot.lane.b32.xlu0 %v9570_v52, %s10560_s29  ;;  %6381 = vmatprep.mubr.f32.mxu1 %v6007_v32  ;;  %v3879_v9 = vadd.f32 %v3878_v58, %v11775_v59 }
 0x2ae   : > { %v10208_v17 = vpop.eup %10207  ;;  %v4444_v40 = vadd.f32 %v10206_v21, %v10202_v1  ;;  %8406 = vmatpush1.bf16.msra.mxu1 %v8405_v34  ;;  %10217 = vtanh.f32 %v3877_v6  ;;  %v6166_v1 = vld [vmem:[%s15039_s3 + $0x120] sm:$0xff] }
 0x2af   : > { %v10210_v20 = vpop.eup %10209  ;;  %v4445_v56 = vadd.f32 %v10208_v17, %v10204_v46  ;;  %v3882_v26 = vpop.f32.mrb[98].mxu0  ;;  %8407 = vmatprep.subr.bf16.mxu1 %v15080_v15  ;;  %10219 = vtanh.f32 %v3879_v9  ;;  %v8408_v38 = vpack.c.bf16 %v6167_v35, %v6166_v1  ;;  %v12765_v1 = vld [vmem:[#allocation2 + $0x98] sm:$0xff] }
 0x2b0   : > { %v10212_v0 = vpop.eup %10211  ;;  %4453 = vst [vmem:[#allocation2 + $0x160] sm:$0xff] %v4444_v40  ;;  %v3884_v28 = vpop.f32.mrb[99].mxu0  ;;  %6382 = vmatmul.mubr.f32.gmra.mrb[10].mxu1 %v4569_v19  ;;  %v3883_v45 = vadd.f32 %v3882_v26, %v11770_v11 }
 0x2b1   : > { %v12680_v44 = vpop.permute.xlu1 %9501  ;;  %v10214_v49 = vpop.eup %10213  ;;  %4454 = vst.msk [vmem:[#allocation2 + $0x168] sm:$0xff] %vm4364_vm8, %v4445_v56  ;;  %2784 = vrot.lane.b32.xlu0 %v7976_v8, %s15143_s0  ;;  %v3885_v42 = vadd.f32 %v3884_v28, %v11775_v59  ;;  %v6169_v28 = vld [vmem:[%s15039_s3 + $0x138] sm:$0xff] }
 0x2b2   : > { %v15072_v27 = vunpack.i.h.bf16 %v12680_v44  ;;  %v15073_v5 = vunpack.i.l.bf16 %v12680_v44  ;;  %v10216_v51 = vpop.eup %10215  ;;  %v4446_v55 = vadd.f32 %v10214_v49, %v10210_v20  ;;  %8409 = vmatpush1.bf16.msra.mxu1 %v8408_v38  ;;  %v6170_v38 = vld [vmem:[%s15039_s3 + $0x140] sm:$0xff] }
 0x2b3   : > { %v4447_v3 = vadd.f32 %v10216_v51, %v10212_v0  ;;  %8410 = vmatprep.subr.bf16.mxu1 %v15080_v15  ;;  %v6168_v0 = vld [vmem:[%s15039_s3 + $0x130] sm:$0xff] }
 0x2b4   : > { %v6008_v54 = vsel %vm4364_vm8, %v12686_v13, %v15073_v5  ;;  %4455 = vst [vmem:[#allocation2 + $0x170] sm:$0xff] %v4446_v55  ;;  %v3888_v18 = vpop.f32.mrb[100].mxu0  ;;  %v9580_v2 = vpack.i.bf16 %v4446_v55, %v4444_v40  ;;  %v6009_v63 = vsel %vm4364_vm8, %v12700_v30, %v15072_v27  ;;  %v8411_v51 = vpack.c.bf16 %v6169_v28, %v6168_v0 }
 0x2b5   : > { %6386 = vmatprep.mubr.f32.mxu1 %v6008_v54  ;;  %4456 = vst.msk [vmem:[#allocation2 + $0x178] sm:$0xff] %vm4364_vm8, %v4447_v3  ;;  %v3890_v7 = vpop.f32.mrb[101].mxu0  ;;  %v3889_v46 = vadd.f32 %v3888_v18, %v11770_v11  ;;  %v9507_v3 = vpop.permute.xlu1 %9506 }
 0x2b6   : > { %6387 = vmatmul.mubr.f32.gmra.mrb[12].mxu1 %v4571_v12  ;;  %9581 = vrot.lane.b32.xlu0 %v9580_v2, %s10560_s29  ;;  %v3891_v21 = vadd.f32 %v3890_v7, %v11775_v59 }
 0x2b7   : > { %6391 = vmatprep.mubr.f32.mxu1 %v6009_v63  ;;  %8412 = vmatpush1.bf16.msra.mxu1 %v8411_v51 }
 0x2b8   : > { %v3894_v37 = vpop.f32.mrb[102].mxu0  ;;  %v10218_v49 = vpop.eup %10217  ;;  %8413 = vmatprep.subr.bf16.mxu1 %v15080_v15 }
 0x2b9   : > { %v3896_v23 = vpop.f32.mrb[103].mxu0  ;;  %v3895_v8 = vadd.f32 %v3894_v37, %v11770_v11  ;;  %v10220_v55 = vpop.eup %10219 }
 0x2ba   : > { %6392 = vmatmul.mubr.f32.gmra.mrb[14].mxu1 %v4573_v41  ;;  %9586 = vrot.lane.b32.xlu0 %v9585_v60, %s15142_s21  ;;  %v3897_v26 = vadd.f32 %v3896_v23, %v11775_v59  ;;  %v9508_v41 = vunpack.i.l.bf16 %v9507_v3 }
 0x2bf   : > { %v3900_v50 = vpop.f32.mrb[104].mxu0 }
 0x2c0   : > { %v3901_v25 = vadd.f32 %v3900_v50, %v11770_v11  ;;  %v3902_v61 = vpop.f32.mrb[105].mxu0  ;;  %v12759_v50 = vpop.permute.xlu1 %9521 }
 0x2c1   : > { %v3903_v57 = vadd.f32 %v3902_v61, %v11775_v59  ;;  %v9523_v0 = vunpack.i.l.bf16 %v12759_v50 }
 0x2c2   : > { %10221 = vtanh.f32 %v3901_v25 }
 0x2c3   : > { %10223 = vtanh.f32 %v3903_v57  ;;  %v3906_v52 = vpop.f32.mrb[106].mxu0  ;;  %v9509_v57 = vunpack.i.h.bf16 %v9507_v3  ;;  %v12791_v3 = vld [vmem:[#allocation2 + $0x90] sm:$0xff] }
 0x2c4   : > { %10225 = vtanh.f32 %v3883_v45  ;;  %v3907_v58 = vadd.f32 %v3906_v52, %v11770_v11  ;;  %v3908_v32 = vpop.f32.mrb[107].mxu0  ;;  %v12761_v45 = vld [vmem:[#allocation2 + $0x80] sm:$0xff]  ;;  %v6171_v52 = vld [vmem:[%s15039_s3 + $0x148] sm:$0xff] }
 0x2c5   : > { %10227 = vtanh.f32 %v3885_v42  ;;  %v3909_v17 = vadd.f32 %v3908_v32, %v11775_v59  ;;  %v955_v32 = vld [vmem:[%s10948_s26 + $0x2c8] sm:$0xff] }
 0x2c6   : > { %10229 = vtanh.f32 %v3907_v58 }
 0x2c7   : > { %10231 = vtanh.f32 %v3909_v17 }
 0x2c8   : > { %v3912_v40 = vpop.f32.mrb[108].mxu0  ;;  %10233 = vtanh.f32 %v3889_v46 }
 0x2c9   : > { %v3913_v20 = vadd.f32 %v3912_v40, %v11770_v11  ;;  %v3914_v56 = vpop.f32.mrb[109].mxu0  ;;  %10235 = vtanh.f32 %v3891_v21  ;;  %v2975_v21 = vsel %vm2886_vm4, %v954_v14, %v9508_v41 }
 0x2ca   : > { %v3915_v19 = vadd.f32 %v3914_v56, %v11775_v59  ;;  %v8414_v56 = vpack.c.bf16 %v6171_v52, %v6170_v38  ;;  %v9600_v52 = vpack.i.bf16 %v12753_v10, %v12761_v45 }
 0x2cb   : > { %10237 = vtanh.f32 %v3913_v20 }
 0x2cc   : > { %10239 = vtanh.f32 %v3915_v19  ;;  %v3918_v16 = vpop.f32.mrb[110].mxu0  ;;  %v10222_v54 = vpop.eup %10221  ;;  %8415 = vmatpush1.bf16.msra.mxu1 %v8414_v56 }
 0x2cd   : > { %10241 = vtanh.f32 %v3895_v8  ;;  %v3919_v39 = vadd.f32 %v3918_v16, %v11770_v11  ;;  %v3920_v43 = vpop.f32.mrb[111].mxu0  ;;  %v10224_v62 = vpop.eup %10223  ;;  %v4457_v18 = vadd.f32 %v10222_v54, %v10218_v49  ;;  %v2976_v16 = vsel %vm2886_vm4, %v955_v32, %v9509_v57  ;;  %v7978_v54 = vld [vmem:[%s10948_s26 + $0x378] sm:$0xff]  ;;  %8416 = vmatprep.subr.bf16.mxu1 %v15080_v15 }
 0x2ce   : > { %10243 = vtanh.f32 %v3897_v26  ;;  %v3921_v12 = vadd.f32 %v3920_v43, %v11775_v59  ;;  %v10226_v2 = vpop.eup %10225  ;;  %v4458_v36 = vadd.f32 %v10224_v62, %v10220_v55  ;;  %v6173_v57 = vld [vmem:[%s15039_s3 + $0x158] sm:$0xff] }
 0x2cf   : > { %10245 = vtanh.f32 %v3919_v39  ;;  %v12747_v7 = vpop.permute.xlu0 %9511  ;;  %v10228_v63 = vpop.eup %10227  ;;  %4466 = vst [vmem:[#allocation2 + $0x180] sm:$0xff] %v4457_v18 }
 0x2d0   : > { %10247 = vtanh.f32 %v3921_v12  ;;  %v15066_v60 = vunpack.i.h.bf16 %v12747_v7  ;;  %v15070_v37 = vunpack.i.l.bf16 %v12747_v7  ;;  %v10230_v23 = vpop.eup %10229  ;;  %4467 = vst.msk [vmem:[#allocation2 + $0x188] sm:$0xff] %vm4364_vm8, %v4458_v36 }
 0x2d1   : > { %v10232_v34 = vpop.eup %10231  ;;  %v4459_v6 = vadd.f32 %v10230_v23, %v10226_v2  ;;  %v9524_v2 = vunpack.i.h.bf16 %v12759_v50 }
 0x2d2   : > { %v6010_v9 = vsel %vm4364_vm8, %v12753_v10, %v15070_v37  ;;  %v10234_v25 = vpop.eup %10233  ;;  %v4460_v61 = vadd.f32 %v10232_v34, %v10228_v63  ;;  %v6011_v40 = vsel %vm4364_vm8, %v12765_v1, %v15066_v60  ;;  %v12806_v34 = vld [vmem:[#allocation2 + $0xa8] sm:$0xff] }
 0x2d3   : > { %v12763_v42 = vpop.f32.mrb[112].mxu0  ;;  %6396 = vmatprep.mubr.f32.mxu1 %v6010_v9  ;;  %v9517_v35 = vpop.permute.xlu0 %9516  ;;  %4468 = vst [vmem:[#allocation2 + $0x190] sm:$0xff] %v4459_v6  ;;  %v12778_v17 = vpack.i.bf16 %v4459_v6, %v4457_v18 }
 0x2d4   : > { %v10236_v46 = vpop.eup %10235  ;;  %v12773_v58 = vpop.f32.mrb[113].mxu0  ;;  %6397 = vmatmul.mubr.f32.gmra.mrb[16].mxu1 %v12761_v45  ;;  %v9518_v8 = vunpack.i.l.bf16 %v9517_v35  ;;  %4469 = vst.msk [vmem:[#allocation2 + $0x198] sm:$0xff] %vm4364_vm8, %v4460_v61  ;;  %v9519_v28 = vunpack.i.h.bf16 %v9517_v35  ;;  %v6172_v61 = vld [vmem:[%s15039_s3 + $0x150] sm:$0xff] }
 0x2d5   : > { %v10238_v20 = vpop.eup %10237  ;;  %6401 = vmatprep.mubr.f32.mxu1 %v6011_v40  ;;  %9596 = vrot.lane.b32.xlu0 %v12778_v17, %s10560_s29 }
 0x2d6   : > { %v10240_v26 = vpop.eup %10239  ;;  %v4461_v19 = vadd.f32 %v10238_v20, %v10234_v25  ;;  %v3072_v39 = vsel %vm2983_vm5, %v2975_v21, %v9518_v8  ;;  %v3073_v9 = vsel %vm2983_vm5, %v2976_v16, %v9519_v28  ;;  %v8417_v21 = vpack.c.bf16 %v6173_v57, %v6172_v61  ;;  %v12830_v8 = vld [vmem:[#allocation2 + $0xb8] sm:$0xff]  ;;  %v12832_v20 = vld [vmem:[#allocation2 + $0xd0] sm:$0xff] }
 0x2d7   : > { %v10242_v49 = vpop.eup %10241  ;;  %v4462_v51 = vadd.f32 %v10240_v26, %v10236_v46  ;;  %v12788_v55 = vpop.f32.mrb[114].mxu0  ;;  %v3169_v6 = vsel %vm3080_vm6, %v3072_v39, %v9523_v0  ;;  %v12824_v46 = vld [vmem:[#allocation2 + $0xa0] sm:$0xff]  ;;  %v3170_v45 = vsel %vm3080_vm6, %v3073_v9, %v9524_v2  ;;  %v9620_v39 = vpack.i.bf16 %v12765_v1, %v12791_v3 }
 0x2d8   : > { %v10244_v43 = vpop.eup %10243  ;;  %4470 = vst [vmem:[#allocation2 + $0x1a0] sm:$0xff] %v4461_v19  ;;  %v12795_v62 = vpop.f32.mrb[115].mxu0  ;;  %6402 = vmatmul.mubr.f32.gmra.mrb[18].mxu1 %v12791_v3  ;;  %v9635_v9 = vpack.i.bf16 %v12700_v30, %v12686_v13  ;;  %v3931_v30 = vadd.f32 %v12788_v55, %v11770_v11  ;;  %v6176_v55 = vld [vmem:[%s15039_s3 + $0x170] sm:$0xff] }
 0x2d9   : > { %v12797_v18 = vpop.permute.xlu1 %9526  ;;  %v10246_v12 = vpop.eup %10245  ;;  %4471 = vst.msk [vmem:[#allocation2 + $0x1a8] sm:$0xff] %vm4364_vm8, %v4462_v51  ;;  %2788 = vrot.lane.b32.xlu0 %v7978_v54, %s15143_s0  ;;  %s10561_s0 = smov 32   ;;  %v4581_v54 = vld [vmem:[#allocation2 + $0xb0] sm:$0xff]  ;;  %8418 = vmatpush1.bf16.msra.mxu1 %v8417_v21 }
 0x2da   : > { %15148 = vst [vmem:[#allocation11_spill] sm:$0xff] %v12797_v18  ;;  %v15065_v36 = vunpack.i.l.bf16 %v12797_v18  ;;  %v2777_v63 = vpop.permute.xlu0 %2776  ;;  %v10248_v41 = vpop.eup %10247  ;;  %v4463_v23 = vadd.f32 %v10246_v12, %v10242_v49  ;;  %v15064_v14 = vunpack.i.h.bf16 %v12797_v18  ;;  %v956_v49 = vld [vmem:[%s10948_s26 + $0x2d0] sm:$0xff]  ;;  %8419 = vmatprep.subr.bf16.mxu1 %v15080_v15  ;;  %v9645_v13 = vpack.i.bf16 %v12830_v8, %v4581_v54 }
 0x2db   : > { %v4464_v25 = vadd.f32 %v10248_v41, %v10244_v43  ;;  %v3267_v12 = vsel %vm3177_vm7, %v3170_v45, %v2777_v63  ;;  %v3933_v45 = vadd.f32 %v12795_v62, %v11775_v59 }
 0x2dc   : > { %v6012_v50 = vsel %vm4364_vm8, %v12806_v34, %v15065_v36  ;;  %4472 = vst [vmem:[#allocation2 + $0x1b0] sm:$0xff] %v4463_v23  ;;  %v12820_v35 = vpop.f32.mrb[116].mxu0  ;;  %v9615_v32 = vpack.i.bf16 %v4463_v23, %v4461_v19  ;;  %v6013_v26 = vsel %vm4364_vm8, %v12830_v8, %v15064_v14  ;;  %v12843_v19 = vld [vmem:[#allocation2 + $0xc0] sm:$0xff] }
 0x2dd   : > { %v2775_v38 = vpop.permute.xlu1 %2774  ;;  %6406 = vmatprep.mubr.f32.mxu1 %v6012_v50  ;;  %4473 = vst.msk [vmem:[#allocation2 + $0x1b8] sm:$0xff] %vm4364_vm8, %v4464_v25  ;;  %v12827_v40 = vpop.f32.mrb[117].mxu0  ;;  %9601 = vrot.lane.b32.xlu0 %v9600_v52, %s10561_s0  ;;  %v9610_v16 = vpack.i.bf16 %v12832_v20, %v12843_v19  ;;  %v6174_v23 = vld [vmem:[%s15039_s3 + $0x160] sm:$0xff]  ;;  %v3925_v50 = vadd.f32 %v12763_v42, %v11770_v11 }
 0x2de   : > { %6407 = vmatmul.mubr.f32.gmra.mrb[20].mxu1 %v12824_v46  ;;  %8069 = vmatprep.mubr.msk.f32.mxu0 %vm3322_vm3, %v2775_v38  ;;  %v3266_v56 = vsel %vm3177_vm7, %v3169_v6, %v2775_v38  ;;  %v12845_v0 = vpop.permute.xlu0 %9536  ;;  %v3927_v38 = vadd.f32 %v12773_v58, %v11775_v59  ;;  %v3937_v62 = vadd.f32 %v12820_v35, %v11770_v11  ;;  %v13181_v36 = vld [vmem:[#allocation2 + $0x120] sm:$0xff] }
 0x2df   : > { %9616 = vrot.lane.b32.xlu1 %v9615_v32, %s10560_s29  ;;  %6411 = vmatprep.mubr.f32.mxu1 %v6013_v26  ;;  %v9538_v43 = vunpack.i.l.bf16 %v12845_v0  ;;  %10249 = vtanh.f32 %v3925_v50 }
 0x2e0   : > { %4115 = vmatmul.mubr.f32.gmra.mrb[176].mxu0 %v3266_v56  ;;  %v12847_v28 = vpop.f32.mrb[118].mxu0  ;;  %10251 = vtanh.f32 %v3927_v38 }
 0x2e1   : > { %v12850_v51 = vpop.permute.xlu1 %9531  ;;  %8070 = vmatprep.mubr.msk.f32.mxu0 %vm3322_vm3, %v2777_v63  ;;  %v3944_v2 = vpop.f32.mrb[119].mxu0  ;;  %9611 = vrot.lane.b32.xlu0 %v9610_v16, %s10562_s15  ;;  %v6175_v63 = vld [vmem:[%s15039_s3 + $0x168] sm:$0xff]  ;;  %v3943_v35 = vadd.f32 %v12847_v28, %v11770_v11  ;;  %v6178_v28 = vld [vmem:[%s15039_s3 + $0x180] sm:$0xff] }
 0x2e2   : > { %v9533_v41 = vunpack.i.l.bf16 %v12850_v51  ;;  %6412 = vmatmul.mubr.f32.gmra.mrb[22].mxu1 %v4581_v54  ;;  %v8420_v57 = vpack.c.bf16 %v6175_v63, %v6174_v23  ;;  %v957_v23 = vld [vmem:[%s10948_s26 + $0x2d8] sm:$0xff] }
 0x2e3   : > { %9621 = vrot.lane.b32.xlu1 %v9620_v39, %s10561_s0 }
 0x2e4   : > { %v2977_v3 = vsel %vm2886_vm4, %v956_v49, %v9533_v41  ;;  %4121 = vmatmul.mubr.f32.gmra.mrb[178].mxu0 %v3267_v12  ;;  %8421 = vmatpush1.bf16.msra.mxu1 %v8420_v57  ;;  %v6177_v49 = vld [vmem:[%s15039_s3 + $0x178] sm:$0xff]  ;;  %v3939_v12 = vadd.f32 %v12827_v40, %v11775_v59  ;;  %v3945_v40 = vadd.f32 %v3944_v2, %v11775_v59 }
 0x2e5   : > { %v12870_v6 = vpop.permute.xlu1 %9541  ;;  %v3074_v25 = vsel %vm2983_vm5, %v2977_v3, %v9538_v43  ;;  %8422 = vmatprep.subr.bf16.mxu1 %v15080_v15  ;;  %v8423_v54 = vpack.c.bf16 %v6177_v49, %v6176_v55  ;;  %v9534_v3 = vunpack.i.h.bf16 %v12850_v51 }
 0x2e6   : > { %v9543_v61 = vunpack.i.l.bf16 %v12870_v6 }
 0x2e7   : > { %9636 = vrot.lane.b32.xlu1 %v9635_v9, %s10560_s29  ;;  %v3948_v32 = vpop.f32.mrb[120].mxu0  ;;  %v2978_v38 = vsel %vm2886_vm4, %v957_v23, %v9534_v3 }
 0x2e8   : > { %v3171_v52 = vsel %vm3080_vm6, %v3074_v25, %v9543_v61  ;;  %v3949_v42 = vadd.f32 %v3948_v32, %v11770_v11  ;;  %v3950_v56 = vpop.f32.mrb[121].mxu0  ;;  %8424 = vmatpush1.bf16.msra.mxu1 %v8423_v54  ;;  %v9539_v61 = vunpack.i.h.bf16 %v12845_v0  ;;  %v9544_v0 = vunpack.i.h.bf16 %v12870_v6 }
 0x2e9   : > { %v2779_v21 = vpop.permute.xlu1 %2778  ;;  %v3951_v26 = vadd.f32 %v3950_v56, %v11775_v59  ;;  %8425 = vmatprep.subr.bf16.mxu1 %v15080_v15  ;;  %v10250_v57 = vpop.eup %10249 }
 0x2ea   : > { %8071 = vmatprep.mubr.msk.f32.mxu0 %vm3322_vm3, %v2779_v21  ;;  %v3268_v58 = vsel %vm3177_vm7, %v3171_v52, %v2779_v21  ;;  %10253 = vtanh.f32 %v3949_v42  ;;  %v6179_v52 = vld [vmem:[%s15039_s3 + $0x188] sm:$0xff]  ;;  %v10252_v32 = vpop.eup %10251 }
 0x2eb   : > { %9646 = vrot.lane.b32.xlu1 %v9645_v13, %s10561_s0  ;;  %4127 = vmatmul.mubr.f32.gmra.mrb[180].mxu0 %v3268_v58  ;;  %10255 = vtanh.f32 %v3951_v26  ;;  %v3954_v16 = vpop.f32.mrb[122].mxu0  ;;  %v8426_v2 = vpack.c.bf16 %v6179_v52, %v6178_v28  ;;  %v3075_v26 = vsel %vm2983_vm5, %v2978_v38, %v9539_v61  ;;  %v6180_v61 = vld [vmem:[%s15039_s3 + $0x190] sm:$0xff] }
 0x2ec   : > { %10257 = vtanh.f32 %v3931_v30  ;;  %v3955_v39 = vadd.f32 %v3954_v16, %v11770_v11  ;;  %v3956_v43 = vpop.f32.mrb[123].mxu0 }
 0x2ed   : > { %10259 = vtanh.f32 %v3933_v45  ;;  %v3957_v41 = vadd.f32 %v3956_v43, %v11775_v59  ;;  %v12911_v50 = vpop.permute.xlu1 %9551  ;;  %8427 = vmatpush1.bf16.msra.mxu1 %v8426_v2 }
 0x2ee   : > { %10261 = vtanh.f32 %v3955_v39  ;;  %8428 = vmatprep.subr.bf16.mxu1 %v15080_v15 }
 0x2ef   : > { %10263 = vtanh.f32 %v3957_v41  ;;  %v3172_v41 = vsel %vm3080_vm6, %v3075_v26, %v9544_v0 }
 0x2f0   : > { %v3960_v63 = vpop.f32.mrb[124].mxu0  ;;  %10265 = vtanh.f32 %v3937_v62 }
 0x2f1   : > { %v3961_v9 = vadd.f32 %v3960_v63, %v11770_v11  ;;  %v3962_v25 = vpop.f32.mrb[125].mxu0  ;;  %10267 = vtanh.f32 %v3939_v12  ;;  %v12927_v16 = vpop.permute.xlu1 %9566  ;;  %v12935_v12 = vld [vmem:[#allocation2 + $0xc8] sm:$0xff] }
 0x2f2   : > { %v3963_v51 = vadd.f32 %v3962_v25, %v11775_v59 }
 0x2f3   : > { %10269 = vtanh.f32 %v3961_v9 }
 0x2f4   : > { %10271 = vtanh.f32 %v3963_v51  ;;  %v3966_v21 = vpop.f32.mrb[126].mxu0  ;;  %v10254_v13 = vpop.eup %10253  ;;  %v12946_v51 = vld [vmem:[#allocation2 + $0xd8] sm:$0xff] }
 0x2f5   : > { %10273 = vtanh.f32 %v3943_v35  ;;  %v3967_v30 = vadd.f32 %v3966_v21, %v11770_v11  ;;  %v3968_v42 = vpop.f32.mrb[127].mxu0  ;;  %v10256_v56 = vpop.eup %10255  ;;  %v4474_v58 = vadd.f32 %v10254_v13, %v10250_v57  ;;  %v6181_v57 = vld [vmem:[%s15039_s3 + $0x198] sm:$0xff] }
 0x2f6   : > { %10275 = vtanh.f32 %v3945_v40  ;;  %v3969_v45 = vadd.f32 %v3968_v42, %v11775_v59  ;;  %v10258_v55 = vpop.eup %10257  ;;  %v4475_v49 = vadd.f32 %v10256_v56, %v10252_v32  ;;  %v12966_v13 = vpop.permute.xlu1 %2782  ;;  %v8429_v0 = vpack.c.bf16 %v6181_v57, %v6180_v61 }
 0x2f7   : > { %10277 = vtanh.f32 %v3967_v30  ;;  %v12929_v54 = vpop.permute.xlu0 %9546  ;;  %v10260_v6 = vpop.eup %10259  ;;  %4483 = vst [vmem:[#allocation2 + $0x1c0] sm:$0xff] %v4474_v58 }
 0x2f8   : > { %15149 = vst [vmem:[#allocation12_spill] sm:$0xff] %v12929_v54  ;;  %10279 = vtanh.f32 %v3969_v45  ;;  %v15062_v62 = vunpack.i.h.bf16 %v12929_v54  ;;  %v15063_v39 = vunpack.i.l.bf16 %v12929_v54  ;;  %v10262_v43 = vpop.eup %10261  ;;  %4484 = vst.msk [vmem:[#allocation2 + $0x1c8] sm:$0xff] %vm4364_vm8, %v4475_v49  ;;  %8430 = vmatpush1.bf16.msra.mxu1 %v8429_v0  ;;  %v9630_v49 = vpack.i.bf16 %v12806_v34, %v12824_v46  ;;  %v12989_v46 = vld [vmem:[#allocation2 + $0xe0] sm:$0xff] }
 0x2f9   : > { %v10264_v3 = vpop.eup %10263  ;;  %v12938_v23 = vadd.f32 %v10262_v43, %v10258_v55  ;;  %8431 = vmatprep.subr.bf16.mxu1 %v15080_v15  ;;  %v9553_v43 = vunpack.i.l.bf16 %v12911_v50 }
 0x2fa   : > { %v6014_v63 = vsel %vm4364_vm8, %v12935_v12, %v15063_v39  ;;  %v10266_v35 = vpop.eup %10265  ;;  %v4477_v9 = vadd.f32 %v10264_v3, %v10260_v6  ;;  %v6015_v32 = vsel %vm4364_vm8, %v12946_v51, %v15062_v62  ;;  %v12983_v3 = vld [vmem:[#allocation2 + $0xf0] sm:$0xff]  ;;  %v6193_v62 = vld [vmem:[%s15039_s3 + $0x1f8] sm:$0xff] }
 0x2fb   : > { %v12944_v25 = vpop.f32.mrb[128].mxu0  ;;  %6416 = vmatprep.mubr.f32.mxu1 %v6014_v63  ;;  %v2781_v40 = vpop.permute.xlu0 %2780  ;;  %4485 = vst [vmem:[#allocation2 + $0x1d0] sm:$0xff] %v12938_v23  ;;  %v9625_v52 = vpack.i.bf16 %v12938_v23, %v4474_v58  ;;  %v9640_v0 = vpack.i.bf16 %v12983_v3, %v12989_v46 }
 0x2fc   : > { %v10268_v38 = vpop.eup %10267  ;;  %v12955_v28 = vpop.f32.mrb[129].mxu0  ;;  %6417 = vmatmul.mubr.f32.gmra.mrb[24].mxu1 %v12843_v19  ;;  %8072 = vmatprep.mubr.msk.f32.mxu0 %vm3322_vm3, %v2781_v40  ;;  %v3269_v21 = vsel %vm3177_vm7, %v3172_v41, %v2781_v40  ;;  %4486 = vst.msk [vmem:[#allocation2 + $0x1d8] sm:$0xff] %vm4364_vm8, %v4477_v9  ;;  %v958_v9 = vld [vmem:[%s10948_s26 + $0x2e0] sm:$0xff] }
 0x2fd   : > { %v10270_v2 = vpop.eup %10269  ;;  %6421 = vmatprep.mubr.f32.mxu1 %v6015_v32  ;;  %4133 = vmatmul.mubr.f32.gmra.mrb[182].mxu0 %v3269_v21  ;;  %v6183_v32 = vld [vmem:[%s15039_s3 + $0x1a8] sm:$0xff] }
 0x2fe   : > { %v10272_v30 = vpop.eup %10271  ;;  %v4478_v42 = vadd.f32 %v10270_v2, %v10266_v35  ;;  %9626 = vrot.lane.b32.xlu0 %v9625_v52, %s10560_s29  ;;  %8073 = vmatprep.mubr.msk.f32.mxu0 %vm3322_vm3, %v12966_v13  ;;  %v6182_v52 = vld [vmem:[%s15039_s3 + $0x1a0] sm:$0xff] }
 0x2ff   : > { %v10274_v56 = vpop.eup %10273  ;;  %v4479_v58 = vadd.f32 %v10272_v30, %v10268_v38  ;;  %v12971_v45 = vpop.f32.mrb[130].mxu0  ;;  %v12991_v38 = vld [vmem:[#allocation2 + $0xe8] sm:$0xff] }
 0x300   : > { %v10276_v26 = vpop.eup %10275  ;;  %4487 = vst [vmem:[#allocation2 + $0x1e0] sm:$0xff] %v4478_v42  ;;  %v12973_v55 = vpop.f32.mrb[131].mxu0  ;;  %6422 = vmatmul.mubr.f32.gmra.mrb[26].mxu1 %v12832_v20  ;;  %v13397_v24 = vld [vmem:[#allocation2 + $0x1c8] sm:$0xff] }
 0x301   : > { %v10278_v6 = vpop.eup %10277  ;;  %4488 = vst.msk [vmem:[#allocation2 + $0x1e8] sm:$0xff] %vm4364_vm8, %v4479_v58  ;;  %v12981_v41 = vpop.permute.xlu0 %9556  ;;  %v2979_v58 = vsel %vm2886_vm4, %v958_v9, %v9553_v43  ;;  %v9650_v9 = vpack.i.bf16 %v12935_v12, %v12843_v19  ;;  %v6184_v19 = vld [vmem:[%s15039_s3 + $0x1b0] sm:$0xff] }
 0x302   : > { %15150 = vst [vmem:[#allocation13_spill] sm:$0xff] %v12981_v41  ;;  %v10280_v63 = vpop.eup %10279  ;;  %v4480_v35 = vadd.f32 %v10278_v6, %v10274_v56  ;;  %v15060_v40 = vunpack.i.h.bf16 %v12981_v41  ;;  %v15061_v61 = vunpack.i.l.bf16 %v12981_v41  ;;  %9631 = vrot.lane.b32.xlu0 %v9630_v49, %s10561_s0  ;;  %v8432_v56 = vpack.c.bf16 %v6183_v32, %v6182_v52  ;;  %v13010_v6 = vld [vmem:[#allocation2 + $0xf8] sm:$0xff] }
 0x303   : > { %v4481_v57 = vadd.f32 %v10280_v63, %v10276_v26  ;;  %v9568_v26 = vunpack.i.l.bf16 %v12927_v16  ;;  %v9660_v32 = vpack.i.bf16 %v12765_v1, %v12753_v10  ;;  %v6185_v10 = vld [vmem:[%s15039_s3 + $0x1b8] sm:$0xff] }
 0x304   : > { %4489 = vst [vmem:[#allocation2 + $0x1f0] sm:$0xff] %v4480_v35  ;;  %v3984_v21 = vpop.f32.mrb[132].mxu0  ;;  %v6016_v2 = vsel %vm4364_vm8, %v12991_v38, %v15061_v61  ;;  %v13005_v30 = vpack.i.bf16 %v4480_v35, %v4478_v42  ;;  %v6017_v42 = vsel %vm4364_vm8, %v13010_v6, %v15060_v40  ;;  %8433 = vmatpush1.bf16.msra.mxu1 %v8432_v56  ;;  %v13163_v40 = vld [vmem:[#allocation2 + $0x128] sm:$0xff]  ;;  %v6192_v61 = vld [vmem:[%s15039_s3 + $0x1f0] sm:$0xff] }
 0x305   : > { %4490 = vst.msk [vmem:[#allocation2 + $0x1f8] sm:$0xff] %vm4364_vm8, %v4481_v57  ;;  %v3986_v49 = vpop.f32.mrb[133].mxu0  ;;  %6426 = vmatprep.mubr.f32.mxu1 %v6016_v2  ;;  %v13012_v63 = vpop.permute.xlu0 %9561  ;;  %8434 = vmatprep.subr.bf16.mxu1 %v15080_v15  ;;  %v8435_v1 = vpack.c.bf16 %v6185_v10, %v6184_v19  ;;  %v3973_v56 = vadd.f32 %v12944_v25, %v11770_v11  ;;  %v9554_v10 = vunpack.i.h.bf16 %v12911_v50 }
 0x306   : > { %9641 = vrot.lane.b32.xlu0 %v9640_v0, %s10562_s15  ;;  %6427 = vmatmul.mubr.f32.gmra.mrb[28].mxu1 %v12989_v46  ;;  %v9563_v43 = vunpack.i.l.bf16 %v13012_v63  ;;  %v9685_v25 = vpack.i.bf16 %v12830_v8, %v12806_v34  ;;  %v9564_v50 = vunpack.i.h.bf16 %v13012_v63  ;;  %v8447_v60 = vpack.c.bf16 %v6193_v62, %v6192_v61 }
 0x307   : > { %9656 = vrot.lane.b32.xlu1 %v13005_v30, %s10560_s29  ;;  %6431 = vmatprep.mubr.f32.mxu1 %v6017_v42  ;;  %10281 = vtanh.f32 %v3973_v56  ;;  %v3979_v42 = vadd.f32 %v12971_v45, %v11770_v11  ;;  %v6187_v45 = vld [vmem:[%s15039_s3 + $0x1c8] sm:$0xff] }
 0x308   : > { %v3990_v35 = vpop.f32.mrb[134].mxu0  ;;  %v3076_v57 = vsel %vm2983_vm5, %v2979_v58, %v9563_v43  ;;  %v9675_v58 = vpack.i.bf16 %v12946_v51, %v12832_v20  ;;  %8436 = vmatpush1.bf16.msra.mxu1 %v8435_v1  ;;  %v3981_v20 = vadd.f32 %v12973_v55, %v11775_v59  ;;  %v3985_v55 = vadd.f32 %v3984_v21, %v11770_v11  ;;  %v959_v1 = vld [vmem:[%s10948_s26 + $0x2e8] sm:$0xff] }
 0x309   : > { %v3992_v52 = vpop.f32.mrb[135].mxu0  ;;  %v3173_v2 = vsel %vm3080_vm6, %v3076_v57, %v9568_v26  ;;  %8437 = vmatprep.subr.bf16.mxu1 %v15080_v15  ;;  %v6186_v57 = vld [vmem:[%s15039_s3 + $0x1c0] sm:$0xff]  ;;  %v3991_v21 = vadd.f32 %v3990_v35, %v11770_v11  ;;  %v6189_v35 = vld [vmem:[%s15039_s3 + $0x1d8] sm:$0xff]  ;;  %v13428_v53 = vld [vmem:[#allocation2 + $0x1e8] sm:$0xff] }
 0x30a   : > { %9651 = vrot.lane.b32.xlu0 %v9650_v9, %s10561_s0  ;;  %6432 = vmatmul.mubr.f32.gmra.mrb[30].mxu1 %v12983_v3  ;;  %v3270_v0 = vsel %vm3177_vm7, %v3173_v2, %v12966_v13  ;;  %v3975_v13 = vadd.f32 %v12955_v28, %v11775_v59  ;;  %v8438_v8 = vpack.c.bf16 %v6187_v45, %v6186_v57  ;;  %v9569_v45 = vunpack.i.h.bf16 %v12927_v16 }
 0x30b   : > { %9661 = vrot.lane.b32.xlu1 %v9660_v32, %s10560_s29  ;;  %4139 = vmatmul.mubr.f32.gmra.mrb[184].mxu0 %v3270_v0  ;;  %v3987_v0 = vadd.f32 %v3986_v49, %v11775_v59  ;;  %v3993_v49 = vadd.f32 %v3992_v52, %v11775_v59 }
 0x30c   : > { %10283 = vtanh.f32 %v3975_v13  ;;  %8439 = vmatpush1.bf16.msra.mxu1 %v8438_v8 }
 0x30d   : > { %8440 = vmatprep.subr.bf16.mxu1 %v15080_v15 }
 0x30f   : > { %9676 = vrot.lane.b32.xlu1 %v9675_v58, %s10561_s0  ;;  %v3996_v26 = vpop.f32.mrb[136].mxu0  ;;  %v13071_v58 = vpop.permute.xlu1 %9576 }
 0x310   : > { %v3997_v43 = vadd.f32 %v3996_v26, %v11770_v11  ;;  %v3998_v9 = vpop.f32.mrb[137].mxu0 }
 0x311   : > { %v3999_v28 = vadd.f32 %v3998_v9, %v11775_v59  ;;  %v2980_v9 = vsel %vm2886_vm4, %v959_v1, %v9554_v10 }
 0x312   : > { %10285 = vtanh.f32 %v3997_v43  ;;  %v10282_v43 = vpop.eup %10281 }
 0x313   : > { %9686 = vrot.lane.b32.xlu1 %v9685_v25, %s10560_s29  ;;  %10287 = vtanh.f32 %v3999_v28  ;;  %v4002_v34 = vpop.f32.mrb[138].mxu0  ;;  %v6188_v25 = vld [vmem:[%s15039_s3 + $0x1d0] sm:$0xff] }
 0x314   : > { %10289 = vtanh.f32 %v3979_v42  ;;  %v4003_v32 = vadd.f32 %v4002_v34, %v11770_v11  ;;  %v4004_v2 = vpop.f32.mrb[139].mxu0  ;;  %v8441_v52 = vpack.c.bf16 %v6189_v35, %v6188_v25 }
 0x315   : > { %10291 = vtanh.f32 %v3981_v20  ;;  %v4005_v19 = vadd.f32 %v4004_v2, %v11775_v59  ;;  %v3077_v2 = vsel %vm2983_vm5, %v2980_v9, %v9564_v50  ;;  %v13109_v9 = vld [vmem:[#allocation2 + $0x100] sm:$0xff] }
 0x316   : > { %10293 = vtanh.f32 %v4003_v32  ;;  %v10284_v20 = vpop.eup %10283  ;;  %8442 = vmatpush1.bf16.msra.mxu1 %v8441_v52 }
 0x317   : > { %10295 = vtanh.f32 %v4005_v19  ;;  %v13091_v19 = vpop.permute.xlu1 %9591  ;;  %8443 = vmatprep.subr.bf16.mxu1 %v15080_v15 }
 0x318   : > { %v4008_v56 = vpop.f32.mrb[140].mxu0  ;;  %10297 = vtanh.f32 %v3985_v55 }
 0x319   : > { %v4009_v13 = vadd.f32 %v4008_v56, %v11770_v11  ;;  %v4010_v26 = vpop.f32.mrb[141].mxu0  ;;  %10299 = vtanh.f32 %v3987_v0 }
 0x31a   : > { %v4011_v42 = vadd.f32 %v4010_v26, %v11775_v59  ;;  %v13100_v26 = vld [vmem:[#allocation2 + $0x108] sm:$0xff] }
 0x31b   : > { %10301 = vtanh.f32 %v4009_v13 }
 0x31c   : > { %10303 = vtanh.f32 %v4011_v42  ;;  %v4014_v28 = vpop.f32.mrb[142].mxu0  ;;  %v10286_v57 = vpop.eup %10285 }
 0x31d   : > { %10305 = vtanh.f32 %v3991_v21  ;;  %v4015_v63 = vadd.f32 %v4014_v28, %v11770_v11  ;;  %v4016_v34 = vpop.f32.mrb[143].mxu0  ;;  %v10288_v8 = vpop.eup %10287  ;;  %v13087_v55 = vadd.f32 %v10286_v57, %v10282_v43  ;;  %v13111_v28 = vld [vmem:[#allocation2 + $0x118] sm:$0xff]  ;;  %v6190_v57 = vld [vmem:[%s15039_s3 + $0x1e0] sm:$0xff] }
 0x31e   : > { %10307 = vtanh.f32 %v3993_v49  ;;  %v4017_v32 = vadd.f32 %v4016_v34, %v11775_v59  ;;  %v10290_v0 = vpop.eup %10289  ;;  %v4492_v10 = vadd.f32 %v10288_v8, %v10284_v20  ;;  %v3174_v49 = vsel %vm3080_vm6, %v3077_v2, %v9569_v45  ;;  %v6191_v45 = vld [vmem:[%s15039_s3 + $0x1e8] sm:$0xff] }
 0x31f   : > { %10309 = vtanh.f32 %v4015_v63  ;;  %v13093_v1 = vpop.permute.xlu0 %9571  ;;  %v10292_v16 = vpop.eup %10291  ;;  %4500 = vst [vmem:[#allocation2 + $0x200] sm:$0xff] %v13087_v55 }
 0x320   : > { %15151 = vst [vmem:[#allocation14_spill] sm:$0xff] %v13093_v1  ;;  %10311 = vtanh.f32 %v4017_v32  ;;  %v15058_v56 = vunpack.i.h.bf16 %v13093_v1  ;;  %v15059_v21 = vunpack.i.l.bf16 %v13093_v1  ;;  %v10294_v13 = vpop.eup %10293  ;;  %4501 = vst.msk [vmem:[#allocation2 + $0x208] sm:$0xff] %vm4364_vm8, %v4492_v10  ;;  %v13135_v10 = vpop.permute.xlu1 %2786 }
 0x321   : > { %v10296_v42 = vpop.eup %10295  ;;  %v13103_v50 = vadd.f32 %v10294_v13, %v10290_v0  ;;  %v8444_v13 = vpack.c.bf16 %v6191_v45, %v6190_v57 }
 0x322   : > { %v6018_v43 = vsel %vm4364_vm8, %v13100_v26, %v15059_v21  ;;  %v10298_v25 = vpop.eup %10297  ;;  %v4494_v35 = vadd.f32 %v10296_v42, %v10292_v16  ;;  %v6019_v32 = vsel %vm4364_vm8, %v13111_v28, %v15058_v56  ;;  %v13138_v16 = vld [vmem:[#allocation2 + $0x110] sm:$0xff] }
 0x323   : > { %v2785_v20 = vpop.permute.xlu0 %2784  ;;  %6436 = vmatprep.mubr.f32.mxu1 %v6018_v43  ;;  %v13113_v52 = vpop.f32.mrb[144].mxu0  ;;  %4502 = vst [vmem:[#allocation2 + $0x210] sm:$0xff] %v13103_v50  ;;  %v13126_v34 = vpack.i.bf16 %v13103_v50, %v13087_v55  ;;  %8445 = vmatpush1.bf16.msra.mxu1 %v8444_v13 }
 0x324   : > { %v10300_v63 = vpop.eup %10299  ;;  %8074 = vmatprep.mubr.msk.f32.mxu0 %vm3322_vm3, %v2785_v20  ;;  %6437 = vmatmul.mubr.f32.gmra.mrb[32].mxu1 %v13109_v9  ;;  %v3271_v8 = vsel %vm3177_vm7, %v3174_v49, %v2785_v20  ;;  %v13133_v2 = vpop.f32.mrb[145].mxu0  ;;  %4503 = vst.msk [vmem:[#allocation2 + $0x218] sm:$0xff] %vm4364_vm8, %v4494_v35 }
 0x325   : > { %v10302_v0 = vpop.eup %10301  ;;  %4145 = vmatmul.mubr.f32.gmra.mrb[186].mxu0 %v3271_v8  ;;  %6441 = vmatprep.mubr.f32.mxu1 %v6019_v32  ;;  %v9578_v8 = vunpack.i.l.bf16 %v13071_v58  ;;  %v960_v32 = vld [vmem:[%s10948_s26 + $0x2f0] sm:$0xff] }
 0x326   : > { %v10304_v42 = vpop.eup %10303  ;;  %v13140_v43 = vadd.f32 %v10302_v0, %v10298_v25  ;;  %9666 = vrot.lane.b32.xlu0 %v13126_v34, %s10560_s29  ;;  %8075 = vmatprep.mubr.msk.f32.mxu0 %vm3322_vm3, %v13135_v10  ;;  %v9670_v25 = vpack.i.bf16 %v13138_v16, %v13109_v9 }
 0x327   : > { %v10306_v49 = vpop.eup %10305  ;;  %v4496_v20 = vadd.f32 %v10304_v42, %v10300_v63  ;;  %v13146_v56 = vpop.f32.mrb[146].mxu0  ;;  %8446 = vmatprep.subr.bf16.mxu1 %v15080_v15 }
 0x328   : > { %v10308_v35 = vpop.eup %10307  ;;  %4504 = vst [vmem:[#allocation2 + $0x220] sm:$0xff] %v13140_v43  ;;  %v13150_v57 = vpop.permute.xlu0 %9581  ;;  %6442 = vmatmul.mubr.f32.gmra.mrb[34].mxu1 %v13138_v16 }
 0x329   : > { %15152 = vst [vmem:[#allocation15_spill] sm:$0xff] %v13150_v57  ;;  %v13155_v45 = vpop.f32.mrb[147].mxu0  ;;  %v10310_v63 = vpop.eup %10309  ;;  %4505 = vst.msk [vmem:[#allocation2 + $0x228] sm:$0xff] %vm4364_vm8, %v4496_v20  ;;  %v15067_v0 = vunpack.i.l.bf16 %v13150_v57  ;;  %v15068_v21 = vunpack.i.h.bf16 %v13150_v57  ;;  %v9680_v20 = vpack.i.bf16 %v12991_v38, %v12989_v46  ;;  %v13187_v46 = vld [vmem:[#allocation2 + $0x138] sm:$0xff]  ;;  %8448 = vmatpush1.bf16.msra.mxu1 %v8447_v60  ;;  %v9705_v60 = vpack.i.bf16 %v13100_v26, %v13109_v9 }
 0x32a   : > { %v10312_v13 = vpop.eup %10311  ;;  %v4497_v42 = vadd.f32 %v10310_v63, %v10306_v49  ;;  %9671 = vrot.lane.b32.xlu0 %v9670_v25, %s10562_s15  ;;  %v2981_v25 = vsel %vm2886_vm4, %v960_v32, %v9578_v8  ;;  %v9593_v63 = vunpack.i.l.bf16 %v13091_v19  ;;  %v13189_v8 = vld [vmem:[#allocation2 + $0x130] sm:$0xff]  ;;  %8449 = vmatprep.subr.bf16.mxu1 %v15080_v15 }
 0x32b   : > { %v4498_v39 = vadd.f32 %v10312_v13, %v10308_v35  ;;  %v6020_v49 = vsel %vm4364_vm8, %v13163_v40, %v15067_v0  ;;  %v6021_v62 = vsel %vm4364_vm8, %v13187_v46, %v15068_v21  ;;  %v9690_v61 = vpack.i.bf16 %v13189_v8, %v13181_v36 }
 0x32c   : > { %4506 = vst [vmem:[#allocation2 + $0x230] sm:$0xff] %v4497_v42  ;;  %v13179_v14 = vpop.permute.xlu0 %9586  ;;  %6446 = vmatprep.mubr.f32.mxu1 %v6020_v49  ;;  %v9695_v35 = vpack.i.bf16 %v4497_v42, %v13140_v43  ;;  %v4032_v13 = vpop.f32.mrb[148].mxu0  ;;  %v9700_v42 = vpack.i.bf16 %v13010_v6, %v12983_v3  ;;  %v9710_v3 = vpack.i.bf16 %v12946_v51, %v12935_v12  ;;  %v9594_v21 = vunpack.i.h.bf16 %v13091_v19 }
 0x32d   : > { %4507 = vst.msk [vmem:[#allocation2 + $0x238] sm:$0xff] %vm4364_vm8, %v4498_v39  ;;  %v9588_v0 = vunpack.i.l.bf16 %v13179_v14  ;;  %6447 = vmatmul.mubr.f32.gmra.mrb[36].mxu1 %v13181_v36  ;;  %v4034_v32 = vpop.f32.mrb[149].mxu0  ;;  %v9720_v12 = vpack.i.bf16 %v13111_v28, %v13138_v16 }
 0x32e   : > { %9681 = vrot.lane.b32.xlu0 %v9680_v20, %s10561_s0  ;;  %9696 = vrot.lane.b32.xlu1 %v9695_v35, %s10560_s29 }
 0x32f   : > { %6451 = vmatprep.mubr.f32.mxu1 %v6021_v62  ;;  %v3078_v39 = vsel %vm2983_vm5, %v2981_v25, %v9588_v0  ;;  %v13213_v0 = vld [vmem:[#allocation2 + $0x150] sm:$0xff]  ;;  %v4021_v25 = vadd.f32 %v13113_v52, %v11770_v11  ;;  %v4027_v52 = vadd.f32 %v13146_v56, %v11770_v11  ;;  %v9730_v56 = vpack.i.bf16 %v13010_v6, %v12991_v38  ;;  %v13247_v38 = vld [vmem:[#allocation2 + $0x160] sm:$0xff] }
 0x330   : > { %v3175_v49 = vsel %vm3080_vm6, %v3078_v39, %v9593_v63  ;;  %v4038_v20 = vpop.f32.mrb[150].mxu0  ;;  %v13221_v63 = vld [vmem:[#allocation2 + $0x140] sm:$0xff] }
 0x331   : > { %6452 = vmatmul.mubr.f32.gmra.mrb[38].mxu1 %v13189_v8  ;;  %v3272_v35 = vsel %vm3177_vm7, %v3175_v49, %v13135_v10  ;;  %v4040_v62 = vpop.f32.mrb[151].mxu0  ;;  %v4023_v10 = vadd.f32 %v13133_v2, %v11775_v59  ;;  %v9715_v39 = vpack.i.bf16 %v13213_v0, %v13221_v63  ;;  %10313 = vtanh.f32 %v4021_v25 }
 0x332   : > { %9691 = vrot.lane.b32.xlu0 %v9690_v61, %s10562_s15  ;;  %9701 = vrot.lane.b32.xlu1 %v9700_v42, %s10561_s0  ;;  %v4029_v2 = vadd.f32 %v13155_v45, %v11775_v59  ;;  %v4033_v25 = vadd.f32 %v4032_v13, %v11770_v11  ;;  %v4035_v45 = vadd.f32 %v4034_v32, %v11775_v59 }
 0x333   : > { %4151 = vmatmul.mubr.f32.gmra.mrb[188].mxu0 %v3272_v35  ;;  %10315 = vtanh.f32 %v4023_v10  ;;  %v9725_v35 = vpack.i.bf16 %v13163_v40, %v13181_v36  ;;  %v9740_v13 = vpack.i.bf16 %v13187_v46, %v13189_v8 }
 0x336   : > { %9706 = vrot.lane.b32.xlu0 %v9705_v60, %s10561_s0  ;;  %9711 = vrot.lane.b32.xlu1 %v9710_v3, %s10560_s29  ;;  %v13239_v3 = vld [vmem:[#allocation2 + $0x170] sm:$0xff] }
 0x337   : > { %v4044_v51 = vpop.f32.mrb[152].mxu0  ;;  %v9735_v6 = vpack.i.bf16 %v13239_v3, %v13247_v38 }
 0x338   : > { %v4045_v61 = vadd.f32 %v4044_v51, %v11770_v11  ;;  %v4046_v42 = vpop.f32.mrb[153].mxu0 }
 0x339   : > { %v4047_v49 = vadd.f32 %v4046_v42, %v11775_v59 }
 0x33a   : > { %9716 = vrot.lane.b32.xlu0 %v9715_v39, %s10562_s15  ;;  %9721 = vrot.lane.b32.xlu1 %v9720_v12, %s10561_s0  ;;  %10317 = vtanh.f32 %v4045_v61  ;;  %v4039_v61 = vadd.f32 %v4038_v20, %v11770_v11 }
 0x33b   : > { %10319 = vtanh.f32 %v4047_v49  ;;  %v4050_v60 = vpop.f32.mrb[154].mxu0  ;;  %v4041_v49 = vadd.f32 %v4040_v62, %v11775_v59 }
 0x33c   : > { %10321 = vtanh.f32 %v4027_v52  ;;  %v4051_v10 = vadd.f32 %v4050_v60, %v11770_v11  ;;  %v4052_v39 = vpop.f32.mrb[155].mxu0  ;;  %v13253_v52 = vld [vmem:[#allocation2 + $0x148] sm:$0xff]  ;;  %v961_v60 = vld [vmem:[%s10948_s26 + $0x2f8] sm:$0xff]  ;;  %s10563_s26 = smov 64  }
 0x33d   : > { %10323 = vtanh.f32 %v4029_v2  ;;  %v4053_v12 = vadd.f32 %v4052_v39, %v11775_v59  ;;  %v9579_v2 = vunpack.i.h.bf16 %v13071_v58  ;;  %v9745_v20 = vpack.i.bf16 %v13253_v52, %v13221_v63 }
 0x33e   : > { %9726 = vrot.lane.b32.xlu0 %v9725_v35, %s10561_s0  ;;  %9731 = vrot.lane.b32.xlu1 %v9730_v56, %s10560_s29  ;;  %10325 = vtanh.f32 %v4051_v10  ;;  %v10314_v56 = vpop.eup %10313  ;;  %v9750_v10 = vpack.i.bf16 %v13111_v28, %v13100_v26 }
 0x33f   : > { %10327 = vtanh.f32 %v4053_v12  ;;  %v9589_v12 = vunpack.i.h.bf16 %v13179_v14 }
 0x340   : > { %v4056_v51 = vpop.f32.mrb[156].mxu0  ;;  %10329 = vtanh.f32 %v4033_v25  ;;  %v10316_v25 = vpop.eup %10315 }
 0x341   : > { %v4057_v32 = vadd.f32 %v4056_v51, %v11770_v11  ;;  %v4058_v42 = vpop.f32.mrb[157].mxu0  ;;  %10331 = vtanh.f32 %v4035_v45  ;;  %v13268_v45 = vld [vmem:[#allocation2 + $0x158] sm:$0xff]  ;;  %v2982_v51 = vsel %vm2886_vm4, %v961_v60, %v9579_v2 }
 0x342   : > { %9736 = vrot.lane.b32.xlu0 %v9735_v6, %s10562_s15  ;;  %9741 = vrot.lane.b32.xlu1 %v9740_v13, %s10561_s0  ;;  %v4059_v35 = vadd.f32 %v4058_v42, %v11775_v59  ;;  %v9760_v2 = vpack.i.bf16 %v13268_v45, %v13213_v0 }
 0x343   : > { %10333 = vtanh.f32 %v4057_v32 }
 0x344   : > { %10335 = vtanh.f32 %v4059_v35  ;;  %v4062_v58 = vpop.f32.mrb[158].mxu0  ;;  %v10318_v39 = vpop.eup %10317 }
 0x345   : > { %10337 = vtanh.f32 %v4039_v61  ;;  %v4063_v62 = vadd.f32 %v4062_v58, %v11770_v11  ;;  %v4064_v6 = vpop.f32.mrb[159].mxu0  ;;  %v10320_v13 = vpop.eup %10319  ;;  %v13274_v32 = vadd.f32 %v10318_v39, %v10314_v56  ;;  %v13285_v56 = vld [vmem:[#allocation2 + $0x168] sm:$0xff] }
 0x346   : > { %9746 = vrot.lane.b32.xlu0 %v9745_v20, %s10561_s0  ;;  %9751 = vrot.lane.b32.xlu1 %v9750_v10, %s10560_s29  ;;  %10339 = vtanh.f32 %v4041_v49  ;;  %v4065_v42 = vadd.f32 %v4064_v6, %v11775_v59  ;;  %v10322_v35 = vpop.eup %10321  ;;  %v4509_v14 = vadd.f32 %v10320_v13, %v10316_v25  ;;  %v3079_v25 = vsel %vm2983_vm5, %v2982_v51, %v9589_v12 }
 0x347   : > { %10341 = vtanh.f32 %v4063_v62  ;;  %v10324_v61 = vpop.eup %10323  ;;  %v13278_v58 = vpop.permute.xlu0 %9596  ;;  %4517 = vst [vmem:[#allocation2 + $0x240] sm:$0xff] %v13274_v32 }
 0x348   : > { %15153 = vst [vmem:[#allocation16_spill] sm:$0xff] %v13278_v58  ;;  %10343 = vtanh.f32 %v4065_v42  ;;  %v10326_v60 = vpop.eup %10325  ;;  %v15069_v49 = vunpack.i.l.bf16 %v13278_v58  ;;  %4518 = vst.msk [vmem:[#allocation2 + $0x248] sm:$0xff] %vm4364_vm8, %v4509_v14  ;;  %v15071_v19 = vunpack.i.h.bf16 %v13278_v58  ;;  %v13294_v62 = vpop.permute.xlu1 %9606 }
 0x349   : > { %v10328_v20 = vpop.eup %10327  ;;  %v13292_v10 = vadd.f32 %v10326_v60, %v10322_v35  ;;  %v3176_v35 = vsel %vm3080_vm6, %v3079_v25, %v9594_v21 }
 0x34a   : > { %9756 = vrot.lane.b32.xlu0 %v12778_v17, %s10562_s15  ;;  %9761 = vrot.lane.b32.xlu1 %v9760_v2, %s10561_s0  ;;  %v10330_v39 = vpop.eup %10329  ;;  %v6022_v6 = vsel %vm4364_vm8, %v13253_v52, %v15069_v49  ;;  %v4511_v13 = vadd.f32 %v10328_v20, %v10324_v61  ;;  %v9765_v17 = vpack.i.bf16 %v13285_v56, %v13247_v38  ;;  %v13323_v49 = vld [vmem:[#allocation2 + $0x178] sm:$0xff] }
 0x34b   : > { %v13300_v12 = vpop.f32.mrb[160].mxu0  ;;  %v10332_v51 = vpop.eup %10331  ;;  %6456 = vmatprep.mubr.f32.mxu1 %v6022_v6  ;;  %4519 = vst [vmem:[#allocation2 + $0x250] sm:$0xff] %v13292_v10  ;;  %v9770_v20 = vpack.i.bf16 %v13187_v46, %v13163_v40  ;;  %v13316_v6 = vld [vmem:[#allocation2 + $0x1b0] sm:$0xff]  ;;  %v6023_v25 = vsel %vm4364_vm8, %v13268_v45, %v15071_v19  ;;  %v13328_v46 = vld [vmem:[#allocation2 + $0x1a0] sm:$0xff] }
 0x34c   : > { %v2789_v42 = vpop.permute.xlu0 %2788  ;;  %v13306_v14 = vpop.f32.mrb[161].mxu0  ;;  %6457 = vmatmul.mubr.f32.gmra.mrb[40].mxu1 %v13221_v63  ;;  %4520 = vst.msk [vmem:[#allocation2 + $0x258] sm:$0xff] %vm4364_vm8, %v4511_v13 }
 0x34d   : > { %v10334_v60 = vpop.eup %10333  ;;  %8076 = vmatprep.mubr.msk.f32.mxu0 %vm3322_vm3, %v2789_v42  ;;  %v3273_v61 = vsel %vm3177_vm7, %v3176_v35, %v2789_v42  ;;  %6461 = vmatprep.mubr.f32.mxu1 %v6023_v25  ;;  %v4071_v31 = vadd.f32 %v13306_v14, %v11775_v59 }
 0x34e   : > { %v10336_v21 = vpop.eup %10335  ;;  %9766 = vrot.lane.b32.xlu0 %v9765_v17, %s10561_s0  ;;  %4157 = vmatmul.mubr.f32.gmra.mrb[190].mxu0 %v3273_v61  ;;  %v13325_v63 = vadd.f32 %v10334_v60, %v10330_v39  ;;  %v9775_v61 = vpack.i.bf16 %v13316_v6, %v13328_v46 }
 0x34f   : > { %v10338_v42 = vpop.eup %10337  ;;  %9771 = vrot.lane.b32.xlu1 %v9770_v20, %s10560_s29  ;;  %v4513_v13 = vadd.f32 %v10336_v21, %v10332_v51  ;;  %v4074_v35 = vpop.f32.mrb[162].mxu0  ;;  %v9780_v20 = vpack.i.bf16 %v13323_v49, %v13239_v3  ;;  %v13341_v51 = vld [vmem:[#allocation2 + $0x180] sm:$0xff]  ;;  %v13343_v21 = vld [vmem:[#allocation2 + $0x188] sm:$0xff] }
 0x350   : > { %v10340_v37 = vpop.eup %10339  ;;  %4521 = vst [vmem:[#allocation2 + $0x260] sm:$0xff] %v13325_v63  ;;  %6462 = vmatmul.mubr.f32.gmra.mrb[42].mxu1 %v13213_v0  ;;  %v4076_v25 = vpop.f32.mrb[163].mxu0  ;;  %v4075_v15 = vadd.f32 %v4074_v35, %v11770_v11 }
 0x351   : > { %v13330_v17 = vpop.permute.xlu1 %9616  ;;  %v10342_v19 = vpop.eup %10341  ;;  %4522 = vst.msk [vmem:[#allocation2 + $0x268] sm:$0xff] %vm4364_vm8, %v4513_v13  ;;  %v9785_v13 = vpack.i.bf16 %v13343_v21, %v13341_v51  ;;  %v4077_v14 = vadd.f32 %v4076_v25, %v11775_v59 }
 0x352   : > { %15154 = vst [vmem:[#allocation17_spill] sm:$0xff] %v13330_v17  ;;  %v15077_v39 = vunpack.i.h.bf16 %v13330_v17  ;;  %v15076_v60 = vunpack.i.l.bf16 %v13330_v17  ;;  %v10344_v27 = vpop.eup %10343  ;;  %9776 = vrot.lane.b32.xlu0 %v9775_v61, %s10562_s15  ;;  %v13346_v5 = vadd.f32 %v10342_v19, %v10338_v42  ;;  %v9790_v19 = vpack.i.bf16 %v13268_v45, %v13253_v52  ;;  %v13369_v61 = vld [vmem:[#allocation2 + $0x190] sm:$0xff]  ;;  %v13412_v25 = vpop.permute.xlu0 %9601  ;;  %v13449_v17 = vld [vmem:[#allocation2 + $0x1f8] sm:$0xff] }
 0x353   : > { %9781 = vrot.lane.b32.xlu1 %v9780_v20, %s10561_s0  ;;  %v4515_v29 = vadd.f32 %v10344_v27, %v10340_v37  ;;  %v13366_v27 = vld [vmem:[#allocation2 + $0x1c0] sm:$0xff]  ;;  %v13371_v20 = vld [vmem:[#allocation2 + $0x198] sm:$0xff] }
 0x354   : > { %v6024_v0 = vsel %vm4364_vm8, %v13285_v56, %v15076_v60  ;;  %4523 = vst [vmem:[#allocation2 + $0x270] sm:$0xff] %v13346_v5  ;;  %v6025_v42 = vsel %vm4364_vm8, %v13323_v49, %v15077_v39  ;;  %v4080_v37 = vpop.f32.mrb[164].mxu0  ;;  %v13379_v39 = vld [vmem:[#allocation2 + $0x1a8] sm:$0xff]  ;;  %v9830_v35 = vpack.i.bf16 %v13371_v20, %v13343_v21 }
 0x355   : > { %6466 = vmatprep.mubr.f32.mxu1 %v6024_v0  ;;  %4524 = vst.msk [vmem:[#allocation2 + $0x278] sm:$0xff] %vm4364_vm8, %v4515_v29  ;;  %v9795_v0 = vpack.i.bf16 %v12938_v23, %v13366_v27  ;;  %v9800_v29 = vpack.i.bf16 %v13371_v20, %v13369_v61  ;;  %v4069_v23 = vadd.f32 %v13300_v12, %v11770_v11 }
 0x356   : > { %6467 = vmatmul.mubr.f32.gmra.mrb[44].mxu1 %v13247_v38  ;;  %9786 = vrot.lane.b32.xlu0 %v9785_v13, %s10561_s0  ;;  %v4082_v38 = vpop.f32.mrb[165].mxu0  ;;  %v13437_v2 = vpop.permute.xlu0 %9611 }
 0x357   : > { %6471 = vmatprep.mubr.f32.mxu1 %v6025_v42  ;;  %9791 = vrot.lane.b32.xlu1 %v9790_v19, %s10560_s29  ;;  %v9805_v42 = vpack.i.bf16 %v13379_v39, %v13328_v46  ;;  %v9810_v19 = vpack.i.bf16 %v13323_v49, %v13285_v56  ;;  %10345 = vtanh.f32 %v4069_v23 }
 0x358   : > { %v4086_v60 = vpop.f32.mrb[166].mxu0  ;;  %10347 = vtanh.f32 %v4071_v31 }
 0x359   : > { %v4088_v13 = vpop.f32.mrb[167].mxu0 }
 0x35a   : > { %6472 = vmatmul.mubr.f32.gmra.mrb[46].mxu1 %v13239_v3  ;;  %9796 = vrot.lane.b32.xlu0 %v9795_v0, %s10562_s15  ;;  %v13390_v3 = vld [vmem:[#allocation2 + $0x1b8] sm:$0xff] }
 0x35b   : > { %9801 = vrot.lane.b32.xlu1 %v9800_v29, %s10561_s0  ;;  %v9820_v29 = vpack.i.bf16 %v13390_v3, %v13316_v6 }
 0x35e   : > { %9806 = vrot.lane.b32.xlu0 %v9805_v42, %s10561_s0 }
 0x35f   : > { %9811 = vrot.lane.b32.xlu1 %v9810_v19, %s10560_s29  ;;  %v4092_v0 = vpop.f32.mrb[168].mxu0  ;;  %v9825_v19 = vpack.i.bf16 %v13397_v24, %v13366_v27 }
 0x360   : > { %v4093_v12 = vadd.f32 %v4092_v0, %v11770_v11  ;;  %v4094_v4 = vpop.f32.mrb[169].mxu0  ;;  %v4081_v0 = vadd.f32 %v4080_v37, %v11770_v11  ;;  %v13422_v37 = vpop.permute.xlu1 %9621 }
 0x361   : > { %v4095_v42 = vadd.f32 %v4094_v4, %v11775_v59  ;;  %v13415_v4 = vld [vmem:[#allocation2 + $0x1d0] sm:$0xff] }
 0x362   : > { %9816 = vrot.lane.b32.xlu0 %v13005_v30, %s10562_s15  ;;  %10349 = vtanh.f32 %v4093_v12  ;;  %v4083_v12 = vadd.f32 %v4082_v38, %v11775_v59 }
 0x363   : > { %9821 = vrot.lane.b32.xlu1 %v9820_v29, %s10561_s0  ;;  %10351 = vtanh.f32 %v4095_v42  ;;  %v4098_v23 = vpop.f32.mrb[170].mxu0  ;;  %v13417_v29 = vld [vmem:[#allocation2 + $0x1d8] sm:$0xff] }
 0x364   : > { %10353 = vtanh.f32 %v4075_v15  ;;  %v4099_v31 = vadd.f32 %v4098_v23, %v11770_v11  ;;  %v4100_v30 = vpop.f32.mrb[171].mxu0  ;;  %v9840_v23 = vpack.i.bf16 %v13417_v29, %v13415_v4  ;;  %v13454_v1 = vpop.permute.xlu1 %9636 }
 0x365   : > { %10355 = vtanh.f32 %v4077_v14  ;;  %v4101_v42 = vadd.f32 %v4100_v30, %v11775_v59  ;;  %v4087_v14 = vadd.f32 %v4086_v60, %v11770_v11 }
 0x366   : > { %9826 = vrot.lane.b32.xlu0 %v9825_v19, %s10561_s0  ;;  %10357 = vtanh.f32 %v4099_v31  ;;  %v13426_v19 = vld [vmem:[#allocation2 + $0x1e0] sm:$0xff] }
 0x367   : > { %9831 = vrot.lane.b32.xlu1 %v9830_v35, %s10560_s29  ;;  %10359 = vtanh.f32 %v4101_v42  ;;  %v4089_v35 = vadd.f32 %v4088_v13, %v11775_v59  ;;  %v10346_v42 = vpop.eup %10345  ;;  %v9845_v60 = vpack.i.bf16 %v13428_v53, %v13426_v19  ;;  %v13443_v13 = vld [vmem:[#allocation2 + $0x208] sm:$0xff] }
 0x368   : > { %v4104_v15 = vpop.f32.mrb[172].mxu0  ;;  %10361 = vtanh.f32 %v4081_v0  ;;  %v10348_v47 = vpop.eup %10347 }
 0x369   : > { %v4105_v38 = vadd.f32 %v4104_v15, %v11770_v11  ;;  %v4106_v30 = vpop.f32.mrb[173].mxu0  ;;  %10363 = vtanh.f32 %v4083_v12 }
 0x36a   : > { %9836 = vrot.lane.b32.xlu0 %v13126_v34, %s10562_s15  ;;  %v4107_v31 = vadd.f32 %v4106_v30, %v11775_v59  ;;  %v9850_v34 = vpack.i.bf16 %v13390_v3, %v13379_v39 }
 0x36b   : > { %9841 = vrot.lane.b32.xlu1 %v9840_v23, %s10561_s0  ;;  %10365 = vtanh.f32 %v4105_v38  ;;  %v13447_v38 = vld [vmem:[#allocation2 + $0x1f0] sm:$0xff] }
 0x36c   : > { %10367 = vtanh.f32 %v4107_v31  ;;  %v4110_v0 = vpop.f32.mrb[174].mxu0  ;;  %v10350_v15 = vpop.eup %10349 }
 0x36d   : > { %10369 = vtanh.f32 %v4087_v14  ;;  %v4111_v12 = vadd.f32 %v4110_v0, %v11770_v11  ;;  %v4112_v30 = vpop.f32.mrb[175].mxu0  ;;  %v10352_v23 = vpop.eup %10351  ;;  %v13451_v31 = vadd.f32 %v10350_v15, %v10346_v42 }
 0x36e   : > { %9846 = vrot.lane.b32.xlu0 %v9845_v60, %s10561_s0  ;;  %10371 = vtanh.f32 %v4089_v35  ;;  %v4113_v58 = vadd.f32 %v4112_v30, %v11775_v59  ;;  %v10354_v57 = vpop.eup %10353  ;;  %v4526_v14 = vadd.f32 %v10352_v23, %v10348_v47  ;;  %v9860_v35 = vpack.i.bf16 %v13443_v13, %v13087_v55  ;;  %v13467_v47 = vld [vmem:[#allocation2 + $0x228] sm:$0xff] }
 0x36f   : > { %9851 = vrot.lane.b32.xlu1 %v9850_v34, %s10560_s29  ;;  %10373 = vtanh.f32 %v4111_v12  ;;  %v10356_v0 = vpop.eup %10355  ;;  %4534 = vst [vmem:[#allocation2 + $0x280] sm:$0xff] %v13451_v31  ;;  %v9855_v30 = vpack.i.bf16 %v13449_v17, %v13447_v38 }
 0x370   : > { %v13457_v41 = vpop.permute.xlu0 %9626  ;;  %10375 = vtanh.f32 %v4113_v58  ;;  %v10358_v42 = vpop.eup %10357  ;;  %4535 = vst.msk [vmem:[#allocation2 + $0x288] sm:$0xff] %vm4364_vm8, %v4526_v14  ;;  %v9875_v14 = vpack.i.bf16 %v13467_v47, %v13140_v43 }
 0x371   : > { %15155 = vst [vmem:[#allocation18_spill] sm:$0xff] %v13457_v41  ;;  %v15094_v15 = vunpack.i.l.bf16 %v13457_v41  ;;  %v10360_v34 = vpop.eup %10359  ;;  %v13470_v12 = vadd.f32 %v10358_v42, %v10354_v57  ;;  %v13482_v42 = vpop.permute.xlu1 %9646 }
 0x372   : > { %9861 = vrot.lane.b32.xlu0 %v9860_v35, %s10561_s0  ;;  %v10362_v55 = vpop.eup %10361  ;;  %v4528_v23 = vadd.f32 %v10360_v34, %v10356_v0  ;;  %v9865_v34 = vpack.i.bf16 %v13417_v29, %v13397_v24 }
 0x373   : > { %9856 = vrot.lane.b32.xlu1 %v9855_v30, %s10561_s0  ;;  %v6026_v58 = vsel %vm4364_vm8, %v13343_v21, %v15094_v15  ;;  %v10364_v60 = vpop.eup %10363  ;;  %4536 = vst [vmem:[#allocation2 + $0x290] sm:$0xff] %v13470_v12  ;;  %v15156_v30 = vunpack.i.h.bf16 %v13457_v41  ;;  %v4738_v15 = vld [vmem:[#allocation2 + $0x218] sm:$0xff]  ;;  %v4752_v41 = vld [vmem:[#allocation2 + $0xc8] sm:$0xff] }
 0x374   : > { %6476 = vmatprep.mubr.f32.mxu1 %v6026_v58  ;;  %4537 = vst.msk [vmem:[#allocation2 + $0x298] sm:$0xff] %vm4364_vm8, %v4528_v23  ;;  %v4754_v58 = vld [vmem:[#allocation2 + $0xd8] sm:$0xff] }
 0x375   : > { %v10366_v35 = vpop.eup %10365  ;;  %6477 = vmatmul.mubr.f32.gmra.mrb[48].mxu1 %v13341_v51  ;;  %v6027_v0 = vsel %vm4364_vm8, %v13371_v20, %v15156_v30  ;;  %v9890_v30 = vpack.i.bf16 %v4754_v58, %v4752_v41  ;;  %v4758_v58 = vld [vmem:[#allocation2 + $0xf8] sm:$0xff] }
 0x376   : > { %v10368_v43 = vpop.eup %10367  ;;  %9876 = vrot.lane.b32.xlu0 %v9875_v14, %s10561_s0  ;;  %6481 = vmatprep.mubr.f32.mxu1 %v6027_v0  ;;  %v13493_v57 = vadd.f32 %v10366_v35, %v10362_v55  ;;  %v9870_v14 = vpack.i.bf16 %v4738_v15, %v13103_v50  ;;  %v9880_v50 = vpack.i.bf16 %v13449_v17, %v13428_v53 }
 0x377   : > { %v10370_v59 = vpop.eup %10369  ;;  %9866 = vrot.lane.b32.xlu1 %v9865_v34, %s10560_s29  ;;  %v4530_v11 = vadd.f32 %v10368_v43, %v10364_v60 }
 0x378   : > { %v10372_v54 = vpop.eup %10371  ;;  %4538 = vst [vmem:[#allocation2 + $0x2a0] sm:$0xff] %v13493_v57 }
 0x379   : > { %v10374_v23 = vpop.eup %10373  ;;  %v13497_v18 = vpop.permute.xlu1 %9656  ;;  %6482 = vmatmul.mubr.f32.gmra.mrb[50].mxu1 %v13369_v61  ;;  %4539 = vst.msk [vmem:[#allocation2 + $0x2a8] sm:$0xff] %vm4364_vm8, %v4530_v11 }
 0x37a   : > { %v10376_v55 = vpop.eup %10375  ;;  %v15126_v35 = vunpack.i.h.bf16 %v13497_v18  ;;  %v9658_v0 = vunpack.i.l.bf16 %v13497_v18  ;;  %9891 = vrot.lane.b32.xlu0 %v9890_v30, %s10562_s15  ;;  %v13505_v60 = vadd.f32 %v10374_v23, %v10370_v59  ;;  %v4756_v30 = vld [vmem:[#allocation2 + $0xe8] sm:$0xff] }
 0x37b   : > { %9871 = vrot.lane.b32.xlu1 %v9870_v14, %s10561_s0  ;;  %v4532_v41 = vadd.f32 %v10376_v55, %v10372_v54  ;;  %v9885_v54 = vpack.i.bf16 %v4738_v15, %v13443_v13  ;;  %v7031_v13 = vld [vmem:[%s15041_s5 + $0x80] sm:$0xff]  ;;  %v9895_v23 = vpack.i.bf16 %v4758_v58, %v4756_v30  ;;  %v4744_v14 = vld [vmem:[#allocation2 + $0x248] sm:$0xff]  ;;  %v4762_v30 = vld [vmem:[#allocation2 + $0x118] sm:$0xff] }
 0x37c   : > { %v6028_v34 = vsel %vm4364_vm8, %v13379_v39, %v9658_v0  ;;  %4540 = vst [vmem:[#allocation2 + $0x2b0] sm:$0xff] %v13505_v60  ;;  %v9955_v11 = vpack.i.bf16 %v13505_v60, %v13493_v57  ;;  %v6029_v59 = vsel %vm4364_vm8, %v13390_v3, %v15126_v35 }
 0x37d   : > { %6486 = vmatprep.mubr.f32.mxu1 %v6028_v34  ;;  %4541 = vst.msk [vmem:[#allocation2 + $0x2b8] sm:$0xff] %vm4364_vm8, %v4532_v41  ;;  %v13563_v41 = vpop.permute.xlu1 %9661  ;;  %v13567_v34 = vld [vmem:[#allocation2 + $0x238] sm:$0xff] }
 0x37e   : > { %5811 = vrot.lane.b32.xlu0 %v13100_v26, %s10563_s26  ;;  %6487 = vmatmul.mubr.f32.gmra.mrb[52].mxu1 %v13328_v46  ;;  %v13535_v26 = vpop.permute.xlu0 %9631  ;;  %v13537_v46 = vld [vmem:[#allocation2 + $0x230] sm:$0xff] }
 0x37f   : > { %9881 = vrot.lane.b32.xlu1 %v9880_v50, %s10560_s29  ;;  %6491 = vmatprep.mubr.f32.mxu1 %v6029_v59  ;;  %v9905_v59 = vpack.i.bf16 %v13567_v34, %v13537_v46 }
 0x381   : > { %v13575_v58 = vpop.permute.xlu1 %9676 }
 0x382   : > { %5815 = vrot.lane.b32.xlu0 %v13111_v28, %s10563_s26  ;;  %6492 = vmatmul.mubr.f32.gmra.mrb[54].mxu1 %v13316_v6  ;;  %v7032_v28 = vld [vmem:[%s15041_s5 + $0x88] sm:$0xff]  ;;  %v13555_v6 = vld [vmem:[#allocation2 + $0x220] sm:$0xff]  ;;  %v13559_v55 = vpop.permute.xlu0 %9641 }
 0x383   : > { %9886 = vrot.lane.b32.xlu1 %v9885_v54, %s10560_s29  ;;  %v8488_v15 = vpack.c.bf16 %v7032_v28, %v7031_v13  ;;  %v4748_v54 = vld [vmem:[#allocation2 + $0x268] sm:$0xff]  ;;  %v15157_v13 = vpack.i.bf16 %v13292_v10, %v13274_v32 }
 0x385   : > { %8489 = vmatprep.subr.bf16.mxu0 %v8488_v15  ;;  %v9910_v15 = vpack.i.bf16 %v13567_v34, %v13467_v47 }
 0x386   : > { %5817 = vrot.lane.b32.xlu0 %v13181_v36, %s10563_s26  ;;  %v7015_v36 = vld [vmem:[%s15041_s5] sm:$0xff]  ;;  %v13571_v50 = vpop.permute.xlu0 %9651 }
 0x387   : > { %5809 = vrot.lane.b32.xlu1 %v13109_v9, %s10563_s26  ;;  %v7016_v9 = vld [vmem:[%s15041_s5 + $0x8] sm:$0xff] }
 0x388   : > { %v8490_v43 = vpack.c.bf16 %v7016_v9, %v7015_v36  ;;  %v9930_v36 = vpack.i.bf16 %v4748_v54, %v13325_v63 }
 0x38a   : > { %5821 = vrot.lane.b32.xlu0 %v13189_v8, %s10563_s26  ;;  %v9900_v8 = vpack.i.bf16 %v13537_v46, %v13555_v6  ;;  %8491 = vmatpush3.bf16.msra.mxu0 %v8490_v43  ;;  %v13595_v43 = vpop.permute.xlu1 %9686 }
 0x38b   : > { %5813 = vrot.lane.b32.xlu1 %v13138_v16, %s10563_s26  ;;  %v9915_v16 = vpack.i.bf16 %v4744_v14, %v13274_v32  ;;  %v13610_v14 = vld [vmem:[#allocation2 + $0x258] sm:$0xff] }
 0x38e   : > { %9901 = vrot.lane.b32.xlu0 %v9900_v8, %s10562_s15 }
 0x38f   : > { %9896 = vrot.lane.b32.xlu1 %v9895_v23, %s10562_s15  ;;  %v15158_v23 = vpack.i.bf16 %v13346_v5, %v13325_v63  ;;  %v9925_v63 = vpack.i.bf16 %v13610_v14, %v13292_v10  ;;  %v15106_v10 = vunpack.i.l.bf16 %v13437_v2 }
 0x392   : > { %9916 = vrot.lane.b32.xlu0 %v9915_v16, %s10561_s0 }
 0x393   : > { %5819 = vrot.lane.b32.xlu1 %v13163_v40, %s10563_s26 }
 0x396   : > { %9921 = vrot.lane.b32.xlu0 %v15157_v13, %s10562_s15 }
 0x397   : > { %9906 = vrot.lane.b32.xlu1 %v9905_v59, %s10561_s0 }
 0x398   : > { %v13582_v28 = vpop.permute.xlu0 %9666 }
 0x399   : > { %v15111_v40 = vunpack.i.h.bf16 %v13582_v28  ;;  %v15122_v9 = vunpack.i.l.bf16 %v13582_v28 }
 0x39a   : > { %9931 = vrot.lane.b32.xlu0 %v9930_v36, %s10561_s0 }
 0x39b   : > { %9911 = vrot.lane.b32.xlu1 %v9910_v15, %s10560_s29  ;;  %v6030_v32 = vsel %vm4364_vm8, %v13397_v24, %v15122_v9  ;;  %v6031_v47 = vsel %vm4364_vm8, %v13417_v29, %v15111_v40  ;;  %v13608_v24 = vld [vmem:[#allocation2 + $0x138] sm:$0xff]  ;;  %v9604_v15 = vunpack.i.h.bf16 %v13412_v25  ;;  %v9678_v40 = vunpack.i.l.bf16 %v13575_v58  ;;  %v4845_v9 = vld [vmem:[#allocation2 + $0x1f0] sm:$0xff]  ;;  %s863_s29 = scalar_lea.vmem [#allocation4], %s7594_s13  ;;  %s10494_s13 = sshll.u32 %s10564_s12, 4  ;;  %s10495_s13 = int_to_ptr.vmem [resolvable:$false] %s10494_s13 }
 0x39c   : > { %v13597_v8 = vpop.permute.xlu0 %9671  ;;  %6496 = vmatprep.mubr.f32.mxu1 %v6030_v32  ;;  %v9603_v32 = vunpack.i.l.bf16 %v13412_v25  ;;  %v15159_v25 = vpack.i.bf16 %v13470_v12, %v13451_v31  ;;  %v6195_v31 = vld [vmem:[%s15039_s3 + $0x208] sm:$0xff]  ;;  %s7520_s21 = sshll.u32 %s863_s29, 4  ;;  %s14987_s21 = int_to_ptr.vmem [resolvable:$true] %s7520_s21 }
 0x39d   : > { %6497 = vmatmul.mubr.f32.gmra.mrb[56].mxu1 %v13366_v27  ;;  %v4760_v27 = vld [vmem:[#allocation2 + $0x108] sm:$0xff]  ;;  %s10490_s24 = scalar_lea.vmem %s14987_s21, 512  ;;  %p10497_p2 = scmp.lt.s32.totalorder %s14987_s21, %s10495_s13 }
 0x39e   : > { %9936 = vrot.lane.b32.xlu0 %v15158_v23, %s10562_s15  ;;  %6501 = vmatprep.mubr.f32.mxu1 %v6031_v47  ;;  %v9940_v29 = vpack.i.bf16 %v4762_v30, %v4760_v27  ;;  %v9623_v23 = vunpack.i.l.bf16 %v13422_v37  ;;  %v4823_v27 = vld [vmem:[#allocation2 + $0x140] sm:$0xff]  ;;  %p10491_p13 = scmp.ne.s32.totalorder %s14987_s21, %s10490_s24 }
 0x39f   : > { %5823 = vrot.lane.b32.xlu1 %v13608_v24, %s10563_s26 }
 0x3a0   : > { %v13614_v16 = vpop.permute.xlu0 %9681  ;;  %v13616_v59 = vpop.permute.xlu1 %9696  ;;  %p10492_p0 = pnand %p10491_p13, %p10665_p6 }
 0x3a1   : > { %v15105_v54 = vunpack.i.h.bf16 %v13616_v59  ;;  %v15110_v13 = vunpack.i.l.bf16 %v13616_v59  ;;  %6502 = vmatmul.mubr.f32.gmra.mrb[58].mxu1 %v13415_v4 }
 0x3a2   : > { %9941 = vrot.lane.b32.xlu0 %v9940_v29, %s10562_s15  ;;  %v4750_v29 = vld [vmem:[#allocation2 + $0x278] sm:$0xff]  ;;  %p10493_p1 = pneg %p10492_p0 }
 0x3a3   : > { %9926 = vrot.lane.b32.xlu1 %v9925_v63, %s10561_s0  ;;  %v6032_v36 = vsel %vm4364_vm8, %v13428_v53, %v15110_v13  ;;  %v6033_v4 = vsel %vm4364_vm8, %v13449_v17, %v15105_v54  ;;  %v9624_v53 = vunpack.i.h.bf16 %v13422_v37  ;;  %v6194_v37 = vld [vmem:[%s15039_s3 + $0x200] sm:$0xff]  ;;  %v9945_v12 = vpack.i.bf16 %v4750_v29, %v13346_v5 }
 0x3a4   : > { %v13631_v47 = vpop.permute.xlu0 %9691  ;;  %v13633_v30 = vpop.permute.xlu1 %9701  ;;  %6506 = vmatprep.mubr.f32.mxu1 %v6032_v36  ;;  %v5360_v36 = vsel %vm5359_vm9, %v9603_v32, %v9604_v15  ;;  %v8450_v29 = vpack.c.bf16 %v6195_v31, %v6194_v37  ;;  %v9634_v54 = vunpack.i.h.bf16 %v13535_v26  ;;  %v15161_v37 = vunpack.i.h.bf16 %v12625_v33 }
 0x3a5   : > { %6507 = vmatmul.mubr.f32.gmra.mrb[60].mxu1 %v13426_v19  ;;  %v9608_v19 = vunpack.i.l.bf16 %v13294_v62  ;;  %v5361_v15 = vsel %vm5359_vm9, %v9623_v23, %v9624_v53  ;;  %v6196_v53 = vld [vmem:[%s15039_s3 + $0x210] sm:$0xff]  ;;  %v9679_v13 = vunpack.i.h.bf16 %v13575_v58  ;;  %v15121_v58 = vunpack.i.h.bf16 %v13597_v8 }
 0x3a6   : > { %9951 = vrot.lane.b32.xlu0 %v15159_v25, %s10562_s15  ;;  %6511 = vmatprep.mubr.f32.mxu1 %v6033_v4  ;;  %v6066_v4 = vsel %vm5648_vm10, %v5360_v36, %v15106_v10  ;;  %v9609_v25 = vunpack.i.h.bf16 %v13294_v62  ;;  %v9633_v36 = vunpack.i.l.bf16 %v13535_v26 }
 0x3a7   : > { %5825 = vrot.lane.b32.xlu1 %v4823_v27, %s10563_s26  ;;  %v15108_v27 = vunpack.i.h.bf16 %v13437_v2 }
 0x3a8   : > { %v13649_v63 = vpop.permute.xlu0 %9706  ;;  %v13651_v17 = vpop.permute.xlu1 %9711  ;;  %v5072_v31 = vsel %vm4364_vm8, %v15161_v37, %v9609_v25  ;;  %v15162_v25 = vmov 0.0|0.0   ;;  %v15163_v37 = vunpack.i.l.bf16 %v12634_v48 }
 0x3a9   : > { %6512 = vmatmul.mubr.f32.gmra.mrb[62].mxu1 %v13447_v38  ;;  %v15160_v38 = vunpack.i.l.bf16 %v12625_v33  ;;  %v6067_v26 = vsel %vm5648_vm10, %v5361_v15, %v15108_v27  ;;  %v6035_v60 = vsel %vm5359_vm9, %v5072_v31, %v9623_v23  ;;  %v5362_v33 = vsel %vm5359_vm9, %v9633_v36, %v9634_v54 }
 0x3aa   : > { %5827 = vrot.lane.b32.xlu0 %v13253_v52, %s10563_s26  ;;  %6581 = vmatprep.mubr.f32.mxu1 %v6066_v4  ;;  %v9638_v4 = vunpack.i.l.bf16 %v13454_v1 }
 0x3ab   : > { %9946 = vrot.lane.b32.xlu1 %v9945_v12, %s10561_s0  ;;  %v5071_v5 = vsel %vm4364_vm8, %v15160_v38, %v9608_v19  ;;  %v6197_v12 = vld [vmem:[%s15039_s3 + $0x218] sm:$0xff]  ;;  %v15107_v19 = vunpack.i.l.bf16 %v13559_v55  ;;  %v9649_v38 = vunpack.i.h.bf16 %v13482_v42  ;;  %s7507_s0 = scalar_lea.sflag [#allocation5], %s10912_s22 }
 0x3ac   : > { %v13676_v62 = vpop.permute.xlu0 %9716  ;;  %v13678_v10 = vpop.permute.xlu1 %9721  ;;  %v6034_v52 = vsel %vm5359_vm9, %v5071_v5, %v9603_v32  ;;  %v4825_v32 = vld [vmem:[#allocation2 + $0x150] sm:$0xff]  ;;  %v9648_v5 = vunpack.i.l.bf16 %v13482_v42  ;;  %v8453_v15 = vpack.c.bf16 %v6197_v12, %v6196_v53  ;;  %v6199_v42 = vld [vmem:[%s15039_s3 + $0x228] sm:$0xff]  ;;  %v5073_v31 = vsel %vm4364_vm8, %v15163_v37, %v9638_v4  ;;  %v7018_v37 = vld [vmem:[%s15041_s5 + $0x18] sm:$0xff] }
 0x3ad   : > { %6582 = vmatmul.mubr.f32.vlgmr.msra.gmra.mrb[0].mxu1 %v6034_v52  ;;  %v6068_v23 = vsel %vm5648_vm10, %v5362_v33, %v15107_v19  ;;  %v7033_v12 = vld [vmem:[%s15041_s5 + $0x90] sm:$0xff]  ;;  %v9654_v33 = vunpack.i.h.bf16 %v13571_v50 }
 0x3ae   : > { %9956 = vrot.lane.b32.xlu0 %v9955_v11, %s10562_s15  ;;  %6586 = vmatprep.mubr.f32.mxu1 %v6067_v26  ;;  %v4764_v11 = vld [vmem:[#allocation2 + $0x128] sm:$0xff]  ;;  %v6198_v26 = vld [vmem:[%s15039_s3 + $0x220] sm:$0xff]  ;;  %v6200_v4 = vld [vmem:[%s15039_s3 + $0x230] sm:$0xff] }
 0x3af   : > { %5829 = vrot.lane.b32.xlu1 %v4825_v32, %s10563_s26  ;;  %8451 = vmatpush1.bf16.msra.mxu1 %v8450_v29  ;;  %v15109_v29 = vunpack.i.h.bf16 %v13559_v55  ;;  %v9960_v53 = vpack.i.bf16 %v13608_v24, %v4764_v11  ;;  %v7034_v32 = vld [vmem:[%s15041_s5 + $0x98] sm:$0xff]  ;;  %v9639_v24 = vunpack.i.h.bf16 %v13454_v1  ;;  %v6036_v1 = vsel %vm5359_vm9, %v5073_v31, %v9633_v36 }
 0x3b0   : > { %v13702_v52 = vpop.permute.xlu0 %9726  ;;  %v13704_v57 = vpop.permute.xlu1 %9731  ;;  %8452 = vmatprep.subr.bf16.mxu1 %v15162_v25  ;;  %v15164_v31 = vunpack.i.h.bf16 %v12634_v48  ;;  %v6202_v48 = vld [vmem:[%s15039_s3 + $0x240] sm:$0xff] }
 0x3b1   : > { %6587 = vmatmul.mubr.f32.gmra.mrb[2].mxu1 %v6035_v60  ;;  %v8456_v60 = vpack.c.bf16 %v6199_v42, %v6198_v26  ;;  %v9663_v26 = vunpack.i.l.bf16 %v13563_v41  ;;  %v4827_v42 = vld [vmem:[#allocation2 + $0x160] sm:$0xff] }
 0x3b2   : > { %5831 = vrot.lane.b32.xlu0 %v13268_v45, %s10563_s26  ;;  %6591 = vmatprep.mubr.f32.mxu1 %v6068_v23  ;;  %v5363_v45 = vsel %vm5359_vm9, %v9648_v5, %v9649_v38  ;;  %v9653_v23 = vunpack.i.l.bf16 %v13571_v50  ;;  %v6201_v38 = vld [vmem:[%s15039_s3 + $0x238] sm:$0xff]  ;;  %v15112_v50 = vunpack.i.l.bf16 %v13597_v8 }
 0x3b3   : > { %v13722_v54 = vpop.f32.mrb[176].mxu0  ;;  %9961 = vrot.lane.b32.xlu1 %v9960_v53, %s10562_s15  ;;  %8454 = vmatpush1.bf16.msra.mxu1 %v8453_v15  ;;  %v8492_v15 = vpack.c.bf16 %v7034_v32, %v7033_v12  ;;  %v6069_v36 = vsel %vm5648_vm10, %v5363_v45, %v15109_v29  ;;  %v7017_v53 = vld [vmem:[%s15041_s5 + $0x10] sm:$0xff]  ;;  %v5074_v45 = vsel %vm4364_vm8, %v15164_v31, %v9639_v24  ;;  %v6203_v24 = vld [vmem:[%s15039_s3 + $0x248] sm:$0xff]  ;;  %v9664_v31 = vunpack.i.h.bf16 %v13563_v41  ;;  %v6205_v41 = vld [vmem:[%s15039_s3 + $0x258] sm:$0xff] }
 0x3b4   : > { %v13736_v11 = vpop.f32.mrb[177].mxu0  ;;  %v13740_v19 = vpop.permute.xlu0 %9736  ;;  %8455 = vmatprep.subr.bf16.mxu1 %v15162_v25  ;;  %v8494_v32 = vpack.c.bf16 %v7018_v37, %v7017_v53  ;;  %v6037_v53 = vsel %vm5359_vm9, %v5074_v45, %v9648_v5  ;;  %v4770_v37 = vld [vmem:[#allocation2 + $0x158] sm:$0xff]  ;;  %v8462_v45 = vpack.c.bf16 %v6203_v24, %v6202_v48  ;;  %v9688_v24 = vunpack.i.l.bf16 %v13595_v43 }
 0x3b5   : > { %v13742_v27 = vpop.permute.xlu1 %9741  ;;  %6592 = vmatmul.mubr.f32.gmra.mrb[4].mxu1 %v6036_v1  ;;  %v8459_v1 = vpack.c.bf16 %v6201_v38, %v6200_v4  ;;  %8493 = vmatprep.subr.bf16.mxu0 %v8492_v15  ;;  %v4768_v38 = vld [vmem:[#allocation2 + $0x148] sm:$0xff] }
 0x3b6   : > { %5833 = vrot.lane.b32.xlu0 %v4827_v42, %s10563_s26  ;;  %6596 = vmatprep.mubr.f32.mxu1 %v6069_v36  ;;  %v9965_v15 = vpack.i.bf16 %v4770_v37, %v4768_v38  ;;  %v9703_v37 = vunpack.i.l.bf16 %v13633_v30 }
 0x3b7   : > { %v13764_v12 = vpop.f32.mrb[178].mxu0  ;;  %5835 = vrot.lane.b32.xlu1 %v13285_v56, %s10563_s26  ;;  %8457 = vmatpush1.bf16.msra.mxu1 %v8456_v60  ;;  %v5364_v56 = vsel %vm5359_vm9, %v9653_v23, %v9654_v33  ;;  %v4829_v60 = vld [vmem:[#allocation2 + $0x170] sm:$0xff]  ;;  %v15165_v33 = vunpack.i.l.bf16 %v12664_v22 }
 0x3b8   : > { %v13771_v29 = vpop.f32.mrb[179].mxu0  ;;  %v13775_v42 = vpop.permute.xlu0 %9746  ;;  %8458 = vmatprep.subr.bf16.mxu1 %v15162_v25  ;;  %v6070_v5 = vsel %vm5648_vm10, %v5364_v56, %v15112_v50  ;;  %8495 = vmatpush3.bf16.msra.mxu0 %v8494_v32  ;;  %v9683_v56 = vunpack.i.l.bf16 %v13614_v16 }
 0x3b9   : > { %v13777_v36 = vpop.permute.xlu1 %9751  ;;  %6597 = vmatmul.mubr.f32.gmra.mrb[6].mxu1 %v6037_v53  ;;  %v5075_v4 = vsel %vm4364_vm8, %v15165_v33, %v9663_v26  ;;  %v9684_v53 = vunpack.i.h.bf16 %v13614_v16  ;;  %v15118_v16 = vunpack.i.l.bf16 %v13631_v47 }
 0x3ba   : > { %5837 = vrot.lane.b32.xlu0 %v4829_v60, %s10563_s26  ;;  %6601 = vmatprep.mubr.f32.mxu1 %v6070_v5  ;;  %v6038_v32 = vsel %vm5359_vm9, %v5075_v4, %v9653_v23  ;;  %v5365_v60 = vsel %vm5359_vm9, %v9678_v40, %v9679_v13  ;;  %v9704_v13 = vunpack.i.h.bf16 %v13633_v30  ;;  %v15166_v5 = vunpack.i.h.bf16 %v12664_v22  ;;  %v6207_v22 = vld [vmem:[%s15039_s3 + $0x268] sm:$0xff] }
 0x3bb   : > { %5839 = vrot.lane.b32.xlu1 %v13323_v49, %s10563_s26  ;;  %8460 = vmatpush1.bf16.msra.mxu1 %v8459_v1  ;;  %v6204_v49 = vld [vmem:[%s15039_s3 + $0x250] sm:$0xff]  ;;  %v6071_v1 = vsel %vm5648_vm10, %v5365_v60, %v15121_v58  ;;  %v15116_v60 = vunpack.i.h.bf16 %v13631_v47 }
 0x3bc   : > { %v13801_v50 = vpop.permute.xlu0 %9756  ;;  %8461 = vmatprep.subr.bf16.mxu1 %v15162_v25  ;;  %v5076_v33 = vsel %vm4364_vm8, %v15166_v5, %v9664_v31  ;;  %v8465_v4 = vpack.c.bf16 %v6205_v41, %v6204_v49  ;;  %v15167_v49 = vunpack.i.l.bf16 %v12680_v44  ;;  %v9709_v5 = vunpack.i.h.bf16 %v13649_v63 }
 0x3bd   : > { %v13803_v26 = vpop.permute.xlu1 %9761  ;;  %6602 = vmatmul.mubr.f32.gmra.mrb[8].mxu1 %v6038_v32  ;;  %v6039_v30 = vsel %vm5359_vm9, %v5076_v33, %v9678_v40  ;;  %v6206_v32 = vld [vmem:[%s15039_s3 + $0x260] sm:$0xff]  ;;  %v4774_v40 = vld [vmem:[#allocation2 + $0x178] sm:$0xff] }
 0x3be   : > { %v13818_v23 = vpop.f32.mrb[180].mxu0  ;;  %9966 = vrot.lane.b32.xlu0 %v9965_v15, %s10562_s15  ;;  %6606 = vmatprep.mubr.f32.mxu1 %v6071_v1  ;;  %v5366_v15 = vsel %vm5359_vm9, %v9683_v56, %v9684_v53  ;;  %v9689_v53 = vunpack.i.h.bf16 %v13595_v43  ;;  %v5077_v41 = vsel %vm4364_vm8, %v15167_v49, %v9688_v24  ;;  %v8468_v1 = vpack.c.bf16 %v6207_v22, %v6206_v32  ;;  %v4772_v43 = vld [vmem:[#allocation2 + $0x168] sm:$0xff]  ;;  %v6209_v24 = vld [vmem:[%s15039_s3 + $0x278] sm:$0xff] }
 0x3bf   : > { %v13823_v48 = vpop.f32.mrb[181].mxu0  ;;  %5841 = vrot.lane.b32.xlu1 %v13341_v51, %s10563_s26  ;;  %8463 = vmatpush1.bf16.msra.mxu1 %v8462_v45  ;;  %v6072_v31 = vsel %vm5648_vm10, %v5366_v15, %v15118_v16  ;;  %v5367_v45 = vsel %vm5359_vm9, %v9703_v37, %v9704_v13  ;;  %v6040_v13 = vsel %vm5359_vm9, %v5077_v41, %v9683_v56  ;;  %v9724_v32 = vunpack.i.h.bf16 %v13678_v10 }
 0x3c0   : > { %v13831_v38 = vpop.permute.xlu0 %9766  ;;  %8464 = vmatprep.subr.bf16.mxu1 %v15162_v25  ;;  %v9970_v15 = vpack.i.bf16 %v4774_v40, %v4772_v43  ;;  %v6073_v56 = vsel %vm5648_vm10, %v5367_v45, %v15116_v60  ;;  %v9723_v22 = vunpack.i.l.bf16 %v13678_v10  ;;  %v15120_v16 = vunpack.i.h.bf16 %v13801_v50 }
 0x3c1   : > { %v13842_v51 = vpop.permute.xlu1 %9771  ;;  %6607 = vmatmul.mubr.f32.gmra.mrb[10].mxu1 %v6039_v30  ;;  %v15114_v30 = vunpack.i.l.bf16 %v13676_v62 }
 0x3c2   : > { %5843 = vrot.lane.b32.xlu0 %v13343_v21, %s10563_s26  ;;  %6611 = vmatprep.mubr.f32.mxu1 %v6072_v31  ;;  %v9708_v21 = vunpack.i.l.bf16 %v13649_v63  ;;  %v15168_v31 = vunpack.i.h.bf16 %v12680_v44  ;;  %v6211_v44 = vld [vmem:[%s15039_s3 + $0x288] sm:$0xff]  ;;  %v5369_v43 = vsel %vm5359_vm9, %v9723_v22, %v9724_v32  ;;  %v9733_v32 = vunpack.i.l.bf16 %v13704_v57 }
 0x3c3   : > { %5845 = vrot.lane.b32.xlu1 %v13369_v61, %s10563_s26  ;;  %8466 = vmatpush1.bf16.msra.mxu1 %v8465_v4  ;;  %v6208_v61 = vld [vmem:[%s15039_s3 + $0x270] sm:$0xff]  ;;  %v9713_v4 = vunpack.i.l.bf16 %v13651_v17 }
 0x3c4   : > { %v13859_v33 = vpop.permute.xlu0 %9776  ;;  %8467 = vmatprep.subr.bf16.mxu1 %v15162_v25  ;;  %v5078_v49 = vsel %vm4364_vm8, %v15168_v31, %v9689_v53  ;;  %v8471_v40 = vpack.c.bf16 %v6209_v24, %v6208_v61  ;;  %v4835_v53 = vld [vmem:[#allocation2 + $0x1a0] sm:$0xff]  ;;  %v9714_v61 = vunpack.i.h.bf16 %v13651_v17  ;;  %v15113_v24 = vunpack.i.h.bf16 %v13676_v62  ;;  %v6212_v17 = vld [vmem:[%s15039_s3 + $0x290] sm:$0xff] }
 0x3c5   : > { %v13871_v63 = vpop.permute.xlu1 %9781  ;;  %6612 = vmatmul.mubr.f32.gmra.mrb[12].mxu1 %v6040_v13  ;;  %v6041_v45 = vsel %vm5359_vm9, %v5078_v49, %v9703_v37  ;;  %v5368_v13 = vsel %vm5359_vm9, %v9708_v21, %v9709_v5  ;;  %v9728_v31 = vunpack.i.l.bf16 %v13702_v52 }
 0x3c6   : > { %5847 = vrot.lane.b32.xlu0 %v13371_v20, %s10563_s26  ;;  %6616 = vmatprep.mubr.f32.mxu1 %v6073_v56  ;;  %v6210_v20 = vld [vmem:[%s15039_s3 + $0x280] sm:$0xff]  ;;  %v6074_v37 = vsel %vm5648_vm10, %v5368_v13, %v15114_v30  ;;  %v9729_v56 = vunpack.i.h.bf16 %v13702_v52  ;;  %v4837_v52 = vld [vmem:[#allocation2 + $0x1b0] sm:$0xff]  ;;  %v4778_v13 = vld [vmem:[#allocation2 + $0x198] sm:$0xff] }
 0x3c7   : > { %9971 = vrot.lane.b32.xlu1 %v9970_v15, %s10562_s15  ;;  %8469 = vmatpush1.bf16.msra.mxu1 %v8468_v1  ;;  %v15169_v1 = vunpack.i.l.bf16 %v12747_v7  ;;  %v8474_v15 = vpack.c.bf16 %v6211_v44, %v6210_v20  ;;  %v9744_v20 = vunpack.i.h.bf16 %v13742_v27  ;;  %v9743_v44 = vunpack.i.l.bf16 %v13742_v27 }
 0x3c8   : > { %v13884_v41 = vpop.permute.xlu0 %9786  ;;  %8470 = vmatprep.subr.bf16.mxu1 %v15162_v25  ;;  %v5370_v27 = vsel %vm5359_vm9, %v9728_v31, %v9729_v56 }
 0x3c9   : > { %v13895_v10 = vpop.permute.xlu1 %9791  ;;  %6617 = vmatmul.mubr.f32.gmra.mrb[14].mxu1 %v6041_v45  ;;  %v5079_v5 = vsel %vm4364_vm8, %v15169_v1, %v9713_v4 }
 0x3ca   : > { %5849 = vrot.lane.b32.xlu0 %v4835_v53, %s10563_s26  ;;  %6621 = vmatprep.mubr.f32.mxu1 %v6074_v37  ;;  %v6042_v4 = vsel %vm5359_vm9, %v5079_v5, %v9708_v21  ;;  %v6075_v21 = vsel %vm5648_vm10, %v5369_v43, %v15113_v24  ;;  %v4776_v53 = vld [vmem:[#allocation2 + $0x188] sm:$0xff]  ;;  %v15170_v37 = vunpack.i.h.bf16 %v12747_v7 }
 0x3cb   : > { %5851 = vrot.lane.b32.xlu1 %v13379_v39, %s10563_s26  ;;  %8472 = vmatpush1.bf16.msra.mxu1 %v8471_v40  ;;  %v6213_v39 = vld [vmem:[%s15039_s3 + $0x298] sm:$0xff]  ;;  %v15115_v40 = vunpack.i.l.bf16 %v13740_v19  ;;  %v9975_v43 = vpack.i.bf16 %v4778_v13, %v4776_v53  ;;  %v6215_v7 = vld [vmem:[%s15039_s3 + $0x2a8] sm:$0xff]  ;;  %v9734_v13 = vunpack.i.h.bf16 %v13704_v57  ;;  %v6216_v57 = vld [vmem:[%s15039_s3 + $0x2b0] sm:$0xff] }
 0x3cc   : > { %v13911_v49 = vpop.permute.xlu0 %9796  ;;  %8473 = vmatprep.subr.bf16.mxu1 %v15162_v25  ;;  %v5080_v1 = vsel %vm4364_vm8, %v15170_v37, %v9714_v61  ;;  %v8477_v5 = vpack.c.bf16 %v6213_v39, %v6212_v17  ;;  %v9749_v37 = vunpack.i.h.bf16 %v13775_v42 }
 0x3cd   : > { %v13923_v45 = vpop.permute.xlu1 %9801  ;;  %6622 = vmatmul.mubr.f32.gmra.mrb[16].mxu1 %v6042_v4  ;;  %v6043_v24 = vsel %vm5359_vm9, %v5080_v1, %v9723_v22  ;;  %v6076_v22 = vsel %vm5648_vm10, %v5370_v27, %v15115_v40  ;;  %v15119_v27 = vunpack.i.l.bf16 %v13801_v50 }
 0x3ce   : > { %5853 = vrot.lane.b32.xlu0 %v4837_v52, %s10563_s26  ;;  %6626 = vmatprep.mubr.f32.mxu1 %v6075_v21  ;;  %v4839_v52 = vld [vmem:[#allocation2 + $0x1c0] sm:$0xff]  ;;  %v5371_v21 = vsel %vm5359_vm9, %v9743_v44, %v9744_v20  ;;  %v6217_v20 = vld [vmem:[%s15039_s3 + $0x2b8] sm:$0xff] }
 0x3cf   : > { %5855 = vrot.lane.b32.xlu1 %v13390_v3, %s10563_s26  ;;  %8475 = vmatpush1.bf16.msra.mxu1 %v8474_v15  ;;  %v6214_v3 = vld [vmem:[%s15039_s3 + $0x2a0] sm:$0xff]  ;;  %v15171_v15 = vld [vmem:[#allocation11_spill] sm:$0xff]  ;;  %v8483_v40 = vpack.c.bf16 %v6217_v20, %v6216_v57 }
 0x3d0   : > { %v13936_v4 = vpop.permute.xlu0 %9806  ;;  %v13940_v30 = vpop.f32.mrb[182].mxu0  ;;  %8476 = vmatprep.subr.bf16.mxu1 %v15162_v25  ;;  %v15172_v56 = vunpack.i.l.bf16 %v15171_v15  ;;  %v8480_v53 = vpack.c.bf16 %v6215_v7, %v6214_v3  ;;  %v9764_v7 = vunpack.i.h.bf16 %v13803_v26 }
 0x3d1   : > { %v13949_v61 = vpop.permute.xlu1 %9811  ;;  %6627 = vmatmul.mubr.f32.gmra.mrb[18].mxu1 %v6043_v24  ;;  %v13957_v39 = vpop.f32.mrb[183].mxu0  ;;  %v15117_v24 = vunpack.i.h.bf16 %v13740_v19 }
 0x3d2   : > { %v5081_v17 = vsel %vm4364_vm8, %v15172_v56, %v9733_v32  ;;  %9976 = vrot.lane.b32.xlu0 %v9975_v43, %s10562_s15  ;;  %6631 = vmatprep.mubr.f32.mxu1 %v6076_v22  ;;  %v9748_v32 = vunpack.i.l.bf16 %v13775_v42  ;;  %v13980_v42 = vld [vmem:[#allocation2 + $0x1c8] sm:$0xff]  ;;  %v9763_v22 = vunpack.i.l.bf16 %v13803_v26  ;;  %v4841_v56 = vld [vmem:[#allocation2 + $0x1d0] sm:$0xff] }
 0x3d3   : > { %5857 = vrot.lane.b32.xlu1 %v4839_v52, %s10563_s26  ;;  %8478 = vmatpush1.bf16.msra.mxu1 %v8477_v5  ;;  %v6044_v43 = vsel %vm5359_vm9, %v5081_v17, %v9728_v31  ;;  %v9753_v5 = vunpack.i.l.bf16 %v13777_v36  ;;  %v6077_v31 = vsel %vm5648_vm10, %v5371_v21, %v15117_v24  ;;  %v4782_v17 = vld [vmem:[#allocation2 + $0x1b8] sm:$0xff]  ;;  %v15173_v52 = vunpack.i.h.bf16 %v15171_v15  ;;  %v4780_v24 = vld [vmem:[#allocation2 + $0x1a8] sm:$0xff] }
 0x3d4   : > { %v13966_v1 = vpop.permute.xlu0 %9816  ;;  %8479 = vmatprep.subr.bf16.mxu1 %v15162_v25  ;;  %v5372_v26 = vsel %vm5359_vm9, %v9748_v32, %v9749_v37  ;;  %v6219_v15 = vld [vmem:[%s15039_s3 + $0x2c8] sm:$0xff]  ;;  %v9980_v57 = vpack.i.bf16 %v4782_v17, %v4780_v24  ;;  %v15174_v37 = vld [vmem:[#allocation12_spill] sm:$0xff]  ;;  %v15176_v24 = vld [vmem:[#allocation9_spill] sm:$0xff] }
 0x3d5   : > { %v13978_v3 = vpop.permute.xlu1 %9821  ;;  %6632 = vmatmul.mubr.f32.gmra.mrb[20].mxu1 %v6044_v43  ;;  %v5082_v43 = vsel %vm4364_vm8, %v15173_v52, %v9734_v13  ;;  %v15175_v20 = vunpack.i.l.bf16 %v15174_v37  ;;  %v5373_v52 = vsel %vm5359_vm9, %v9763_v22, %v9764_v7  ;;  %v4117_v17 = vadd.f32 %v13722_v54, %v15176_v24  ;;  %v15177_v7 = vld [vmem:[#allocation10_spill] sm:$0xff] }
 0x3d6   : > { %5859 = vrot.lane.b32.xlu0 %v13980_v42, %s10563_s26  ;;  %6636 = vmatprep.mubr.f32.mxu1 %v6077_v31  ;;  %v6045_v21 = vsel %vm5359_vm9, %v5082_v43, %v9743_v44  ;;  %v6218_v31 = vld [vmem:[%s15039_s3 + $0x2c0] sm:$0xff]  ;;  %v6078_v44 = vsel %vm5648_vm10, %v5372_v26, %v15119_v27  ;;  %v9754_v43 = vunpack.i.h.bf16 %v13777_v36  ;;  %v9769_v26 = vunpack.i.h.bf16 %v13831_v38 }
 0x3d7   : > { %5861 = vrot.lane.b32.xlu1 %v4841_v56, %s10563_s26  ;;  %8481 = vmatpush1.bf16.msra.mxu1 %v8480_v53  ;;  %v14006_v53 = vld [vmem:[#allocation2 + $0x1d8] sm:$0xff]  ;;  %v5083_v56 = vsel %vm4364_vm8, %v15175_v20, %v9753_v5  ;;  %v9768_v5 = vunpack.i.l.bf16 %v13831_v38  ;;  %v4119_v36 = vadd.f32 %v13736_v11, %v15177_v7  ;;  %v15125_v27 = vunpack.i.l.bf16 %v13859_v33  ;;  %v14040_v11 = vld [vmem:[#allocation2 + $0x1e8] sm:$0xff] }
 0x3d8   : > { %v13993_v60 = vpop.permute.xlu0 %9826  ;;  %8482 = vmatprep.subr.bf16.mxu1 %v15162_v25  ;;  %v6079_v38 = vsel %vm5648_vm10, %v5373_v52, %v15120_v16  ;;  %10377 = vtanh.f32 %v4117_v17  ;;  %v9823_v35 = vunpack.i.l.bf16 %v13978_v3 }
 0x3d9   : > { %v14004_v13 = vpop.permute.xlu1 %9831  ;;  %6637 = vmatmul.mubr.f32.gmra.mrb[22].mxu1 %v6045_v21  ;;  %v8486_v21 = vpack.c.bf16 %v6219_v15, %v6218_v31  ;;  %v9784_v31 = vunpack.i.h.bf16 %v13871_v63  ;;  %v15178_v15 = vunpack.i.h.bf16 %v15174_v37  ;;  %10379 = vtanh.f32 %v4119_v36  ;;  %v7035_v36 = vld [vmem:[%s15041_s5 + $0xa0] sm:$0xff] }
 0x3da   : > { %5863 = vrot.lane.b32.xlu0 %v14006_v53, %s10563_s26  ;;  %6641 = vmatprep.mubr.f32.mxu1 %v6078_v44  ;;  %v6046_v44 = vsel %vm5359_vm9, %v5083_v56, %v9748_v32  ;;  %v9783_v32 = vunpack.i.l.bf16 %v13871_v63 }
 0x3db   : > { %9981 = vrot.lane.b32.xlu1 %v9980_v57, %s10562_s15  ;;  %8484 = vmatpush1.bf16.msra.mxu1 %v8483_v40  ;;  %v9773_v57 = vunpack.i.l.bf16 %v13842_v51  ;;  %v4843_v40 = vld [vmem:[#allocation2 + $0x1e0] sm:$0xff]  ;;  %v5084_v56 = vsel %vm4364_vm8, %v15178_v15, %v9754_v43  ;;  %v9774_v15 = vunpack.i.h.bf16 %v13842_v51 }
 0x3dc   : > { %v14024_v20 = vpop.permute.xlu0 %9836  ;;  %8485 = vmatprep.subr.bf16.mxu1 %v15162_v25  ;;  %v6047_v63 = vsel %vm5359_vm9, %v5084_v56, %v9763_v22  ;;  %v15179_v43 = vld [vmem:[#allocation13_spill] sm:$0xff]  ;;  %v14062_v22 = vld [vmem:[#allocation2 + $0x1f8] sm:$0xff]  ;;  %v9789_v56 = vunpack.i.h.bf16 %v13884_v41 }
 0x3dd   : > { %v14032_v54 = vpop.permute.xlu1 %9841  ;;  %6642 = vmatmul.mubr.f32.gmra.mrb[24].mxu1 %v6046_v44  ;;  %v15180_v17 = vunpack.i.l.bf16 %v15179_v43  ;;  %v7019_v51 = vld [vmem:[%s15041_s5 + $0x20] sm:$0xff] }
 0x3de   : > { %5865 = vrot.lane.b32.xlu0 %v4843_v40, %s10563_s26  ;;  %6646 = vmatprep.mubr.f32.mxu1 %v6079_v38  ;;  %v4140_v25 = vpop.f32.mrb[184].mxu0  ;;  %v5374_v40 = vsel %vm5359_vm9, %v9768_v5, %v9769_v26  ;;  %v5375_v26 = vsel %vm5359_vm9, %v9783_v32, %v9784_v31  ;;  %v9788_v31 = vunpack.i.l.bf16 %v13884_v41 }
 0x3df   : > { %5867 = vrot.lane.b32.xlu1 %v14040_v11, %s10563_s26  ;;  %v4141_v52 = vadd.f32 %v4140_v25, %v15176_v24  ;;  %v4142_v44 = vpop.f32.mrb[185].mxu0  ;;  %8487 = vmatpush1.bf16.msra.mxu1 %v8486_v21  ;;  %v6080_v37 = vsel %vm5648_vm10, %v5374_v40, %v15125_v27  ;;  %v5085_v21 = vsel %vm4364_vm8, %v15180_v17, %v9773_v57  ;;  %v7036_v25 = vld [vmem:[%s15041_s5 + $0xa8] sm:$0xff]  ;;  %v15124_v57 = vunpack.i.h.bf16 %v13859_v33 }
 0x3e0   : > { %v14048_v16 = vpop.permute.xlu0 %9846  ;;  %v4143_v38 = vadd.f32 %v4142_v44, %v15177_v7  ;;  %v9985_v44 = vpack.i.bf16 %v14006_v53, %v13980_v42  ;;  %v7020_v40 = vld [vmem:[%s15041_s5 + $0x28] sm:$0xff]  ;;  %v9803_v17 = vunpack.i.l.bf16 %v13923_v45 }
 0x3e1   : > { %v14053_v58 = vpop.permute.xlu1 %9851  ;;  %6647 = vmatmul.mubr.f32.gmra.mrb[26].mxu1 %v6047_v63  ;;  %10381 = vtanh.f32 %v4141_v52  ;;  %v6048_v63 = vsel %vm5359_vm9, %v5085_v21, %v9768_v5  ;;  %v6081_v42 = vsel %vm5648_vm10, %v5375_v26, %v15124_v57  ;;  %v8498_v53 = vpack.c.bf16 %v7020_v40, %v7019_v51  ;;  %v4847_v21 = vld [vmem:[#allocation2 + $0x200] sm:$0xff] }
 0x3e2   : > { %5869 = vrot.lane.b32.xlu0 %v4845_v9, %s10563_s26  ;;  %6651 = vmatprep.mubr.f32.mxu1 %v6080_v37  ;;  %10383 = vtanh.f32 %v4143_v38  ;;  %v8496_v9 = vpack.c.bf16 %v7036_v25, %v7035_v36  ;;  %v9793_v38 = vunpack.i.l.bf16 %v13895_v10  ;;  %v15123_v37 = vunpack.i.l.bf16 %v13911_v49  ;;  %v10378_v51 = vpop.eup %10377 }
 0x3e3   : > { %5871 = vrot.lane.b32.xlu1 %v14062_v22, %s10563_s26  ;;  %v9804_v5 = vunpack.i.h.bf16 %v13923_v45  ;;  %v15181_v36 = vunpack.i.h.bf16 %v15179_v43  ;;  %v14108_v45 = vld [vmem:[#allocation2 + $0x208] sm:$0xff]  ;;  %v15134_v57 = vunpack.i.l.bf16 %v13966_v1 }
 0x3e4   : > { %v14077_v52 = vpop.permute.xlu0 %9861  ;;  %8497 = vmatprep.subr.bf16.mxu0 %v8496_v9  ;;  %v5376_v9 = vsel %vm5359_vm9, %v9788_v31, %v9789_v56  ;;  %v15182_v43 = vld [vmem:[#allocation14_spill] sm:$0xff] }
 0x3e5   : > { %v14090_v41 = vpop.permute.xlu1 %9856  ;;  %6652 = vmatmul.mubr.f32.gmra.mrb[28].mxu1 %v6048_v63  ;;  %v5086_v25 = vsel %vm4364_vm8, %v15181_v36, %v9774_v15  ;;  %8499 = vmatpush3.bf16.msra.mxu0 %v8498_v53  ;;  %v10380_v53 = vpop.eup %10379  ;;  %v5377_v56 = vsel %vm5359_vm9, %v9803_v17, %v9804_v5  ;;  %v9794_v36 = vunpack.i.h.bf16 %v13895_v10  ;;  %v9813_v10 = vunpack.i.l.bf16 %v13949_v61 }
 0x3e6   : > { %9986 = vrot.lane.b32.xlu0 %v9985_v44, %s10562_s15  ;;  %6656 = vmatprep.mubr.f32.mxu1 %v6081_v42  ;;  %v6049_v26 = vsel %vm5359_vm9, %v5086_v25, %v9783_v32  ;;  %v6082_v44 = vsel %vm5648_vm10, %v5376_v9, %v15123_v37  ;;  %v15183_v42 = vunpack.i.l.bf16 %v15182_v43  ;;  %v4849_v32 = vld [vmem:[#allocation2 + $0x210] sm:$0xff]  ;;  %v15135_v25 = vunpack.i.h.bf16 %v13911_v49 }
 0x3e7   : > { %5873 = vrot.lane.b32.xlu1 %v4847_v21, %s10563_s26 }
 0x3e8   : > { %v14102_v63 = vpop.permute.xlu0 %9876  ;;  %v5087_v15 = vsel %vm4364_vm8, %v15183_v42, %v9793_v38  ;;  %v9809_v38 = vunpack.i.h.bf16 %v13936_v4  ;;  %v9808_v42 = vunpack.i.l.bf16 %v13936_v4  ;;  %v9824_v4 = vunpack.i.h.bf16 %v13978_v3 }
 0x3e9   : > { %v14106_v40 = vpop.permute.xlu1 %9866  ;;  %6657 = vmatmul.mubr.f32.gmra.mrb[30].mxu1 %v6049_v26  ;;  %v9990_v26 = vpack.i.bf16 %v14062_v22, %v14040_v11  ;;  %v6083_v11 = vsel %vm5648_vm10, %v5377_v56, %v15135_v25 }
 0x3ea   : > { %5875 = vrot.lane.b32.xlu0 %v14108_v45, %s10563_s26  ;;  %6661 = vmatprep.mubr.f32.mxu1 %v6082_v44  ;;  %v6050_v44 = vsel %vm5359_vm9, %v5087_v15, %v9788_v31  ;;  %v15184_v31 = vunpack.i.h.bf16 %v15182_v43  ;;  %v14160_v43 = vld [vmem:[#allocation2 + $0x228] sm:$0xff] }
 0x3eb   : > { %v10382_v21 = vpop.eup %10381  ;;  %5877 = vrot.lane.b32.xlu1 %v4849_v32, %s10563_s26  ;;  %v4850_v32 = vld [vmem:[#allocation2 + $0x218] sm:$0xff] }
 0x3ec   : > { %v10384_v9 = vpop.eup %10383  ;;  %v14126_v37 = vpop.permute.xlu0 %9891  ;;  %v14129_v5 = vadd.f32 %v10382_v21, %v10378_v51  ;;  %v5088_v51 = vsel %vm4364_vm8, %v15184_v31, %v9794_v36  ;;  %v9814_v36 = vunpack.i.h.bf16 %v13949_v61  ;;  %v9833_v31 = vunpack.i.l.bf16 %v14004_v13 }
 0x3ed   : > { %v14133_v27 = vpop.permute.xlu1 %9871  ;;  %6662 = vmatmul.mubr.f32.gmra.mrb[32].mxu1 %v6050_v44  ;;  %v4543_v22 = vadd.f32 %v10384_v9, %v10380_v53  ;;  %v6051_v56 = vsel %vm5359_vm9, %v5088_v51, %v9803_v17  ;;  %v5378_v53 = vsel %vm5359_vm9, %v9808_v42, %v9809_v38  ;;  %v5379_v17 = vsel %vm5359_vm9, %v9823_v35, %v9824_v4 }
 0x3ee   : > { %5879 = vrot.lane.b32.xlu0 %v4850_v32, %s10563_s26  ;;  %6666 = vmatprep.mubr.f32.mxu1 %v6083_v11  ;;  %v6084_v3 = vsel %vm5648_vm10, %v5378_v53, %v15134_v57  ;;  %v15133_v38 = vunpack.i.h.bf16 %v13966_v1  ;;  %v9829_v11 = vunpack.i.h.bf16 %v13993_v60  ;;  %v15132_v51 = vunpack.i.l.bf16 %v14024_v20 }
 0x3ef   : > { %9991 = vrot.lane.b32.xlu1 %v9990_v26, %s10562_s15  ;;  %4552 = vst.msk [vmem:[#allocation2 + $0x2c8] sm:$0xff] %vm4364_vm8, %v4543_v22  ;;  %v15185_v26 = vld [vmem:[#allocation15_spill] sm:$0xff]  ;;  %v9828_v22 = vunpack.i.l.bf16 %v13993_v60  ;;  %v4123_v61 = vadd.f32 %v13764_v12, %v15176_v24  ;;  %v9844_v60 = vunpack.i.h.bf16 %v14032_v54  ;;  %v9843_v53 = vunpack.i.l.bf16 %v14032_v54 }
 0x3f0   : > { %v14146_v15 = vpop.permute.xlu0 %5811  ;;  %v15186_v9 = vunpack.i.l.bf16 %v15185_v26  ;;  %v15187_v12 = vunpack.i.h.bf16 %v15185_v26  ;;  %v15188_v26 = vld [vmem:[#allocation16_spill] sm:$0xff] }
 0x3f1   : > { %v14150_v21 = vpop.permute.xlu1 %9881  ;;  %6667 = vmatmul.mubr.f32.gmra.mrb[34].mxu1 %v6051_v56  ;;  %v6085_v56 = vsel %vm5648_vm10, %v5379_v17, %v15133_v38  ;;  %v9995_v17 = vpack.i.bf16 %v4850_v32, %v14108_v45  ;;  %10385 = vtanh.f32 %v4123_v61  ;;  %v4855_v45 = vld [vmem:[#allocation2 + $0x240] sm:$0xff]  ;;  %v5381_v32 = vsel %vm5359_vm9, %v9843_v53, %v9844_v60 }
 0x3f2   : > { %v5089_v44 = vsel %vm4364_vm8, %v15186_v9, %v9813_v10  ;;  %5881 = vrot.lane.b32.xlu0 %v13555_v6, %s10563_s26  ;;  %6671 = vmatprep.mubr.f32.mxu1 %v6084_v3  ;;  %v5090_v3 = vsel %vm4364_vm8, %v15187_v12, %v9814_v36  ;;  %v15189_v36 = vunpack.i.l.bf16 %v15188_v26  ;;  %v15131_v61 = vunpack.i.h.bf16 %v14024_v20 }
 0x3f3   : > { %5883 = vrot.lane.b32.xlu1 %v14160_v43, %s10563_s26  ;;  %v6052_v6 = vsel %vm5359_vm9, %v5089_v44, %v9808_v42  ;;  %v4125_v42 = vadd.f32 %v13771_v29, %v15177_v7  ;;  %v6053_v54 = vsel %vm5359_vm9, %v5090_v3, %v9823_v35  ;;  %v5380_v29 = vsel %vm5359_vm9, %v9828_v22, %v9829_v11 }
 0x3f4   : > { %v14169_v10 = vpop.permute.xlu0 %5815  ;;  %v5091_v12 = vsel %vm4364_vm8, %v15189_v36, %v9833_v31  ;;  %v9834_v11 = vunpack.i.h.bf16 %v14004_v13  ;;  %v6087_v13 = vsel %vm5648_vm10, %v5381_v32, %v15131_v61  ;;  %v9849_v60 = vunpack.i.h.bf16 %v14048_v16 }
 0x3f5   : > { %v14176_v4 = vpop.permute.xlu1 %9886  ;;  %6672 = vmatmul.mubr.f32.gmra.mrb[36].mxu1 %v6052_v6  ;;  %10387 = vtanh.f32 %v4125_v42  ;;  %v6054_v31 = vsel %vm5359_vm9, %v5091_v12, %v9828_v22  ;;  %v9853_v42 = vunpack.i.l.bf16 %v14053_v58  ;;  %v4798_v22 = vld [vmem:[#allocation2 + $0x238] sm:$0xff]  ;;  %v9858_v36 = vunpack.i.l.bf16 %v14090_v41 }
 0x3f6   : > { %5885 = vrot.lane.b32.xlu0 %v13537_v46, %s10563_s26  ;;  %6676 = vmatprep.mubr.f32.mxu1 %v6085_v56 }
 0x3f7   : > { %5887 = vrot.lane.b32.xlu1 %v13567_v34, %s10563_s26  ;;  %v6086_v34 = vsel %vm5648_vm10, %v5380_v29, %v15132_v51  ;;  %v4857_v29 = vld [vmem:[#allocation2 + $0x250] sm:$0xff] }
 0x3f8   : > { %v14192_v9 = vpop.permute.xlu0 %5817  ;;  %v4146_v44 = vpop.f32.mrb[186].mxu0 }
 0x3f9   : > { %v14197_v6 = vpop.permute.xlu1 %5809  ;;  %v4147_v46 = vadd.f32 %v4146_v44, %v15176_v24  ;;  %v4148_v56 = vpop.f32.mrb[187].mxu0  ;;  %6677 = vmatmul.mubr.f32.gmra.mrb[38].mxu1 %v6053_v54  ;;  %v9848_v54 = vunpack.i.l.bf16 %v14048_v16 }
 0x3fa   : > { %9996 = vrot.lane.b32.xlu0 %v9995_v17, %s10562_s15  ;;  %v4149_v35 = vadd.f32 %v4148_v56, %v15177_v7  ;;  %6681 = vmatprep.mubr.f32.mxu1 %v6086_v34  ;;  %v14218_v17 = vld [vmem:[#allocation2 + $0x248] sm:$0xff]  ;;  %v9859_v34 = vunpack.i.h.bf16 %v14090_v41  ;;  %v4129_v41 = vadd.f32 %v13818_v23, %v15176_v24 }
 0x3fb   : > { %10389 = vtanh.f32 %v4147_v46  ;;  %5889 = vrot.lane.b32.xlu1 %v4855_v45, %s10563_s26  ;;  %v15190_v46 = vunpack.i.h.bf16 %v15188_v26  ;;  %v15191_v26 = vld [vmem:[#allocation17_spill] sm:$0xff] }
 0x3fc   : > { %10391 = vtanh.f32 %v4149_v35  ;;  %v14212_v3 = vpop.permute.xlu0 %5821  ;;  %v5383_v23 = vsel %vm5359_vm9, %v9858_v36, %v9859_v34 }
 0x3fd   : > { %v14216_v44 = vpop.permute.xlu1 %5813  ;;  %6682 = vmatmul.mubr.f32.gmra.mrb[40].mxu1 %v6054_v31  ;;  %v5092_v56 = vsel %vm4364_vm8, %v15190_v46, %v9834_v11  ;;  %v10000_v31 = vpack.i.bf16 %v4798_v22, %v14160_v43  ;;  %v9854_v46 = vunpack.i.h.bf16 %v14053_v58  ;;  %v9868_v58 = vunpack.i.l.bf16 %v14106_v40 }
 0x3fe   : > { %5891 = vrot.lane.b32.xlu0 %v14218_v17, %s10563_s26  ;;  %6686 = vmatprep.mubr.f32.mxu1 %v6087_v13  ;;  %v6055_v16 = vsel %vm5359_vm9, %v5092_v56, %v9843_v53  ;;  %v15192_v13 = vunpack.i.l.bf16 %v15191_v26  ;;  %v5382_v53 = vsel %vm5359_vm9, %v9848_v54, %v9849_v60  ;;  %v4131_v56 = vadd.f32 %v13823_v48, %v15177_v7  ;;  %v4859_v48 = vld [vmem:[#allocation2 + $0x260] sm:$0xff] }
 0x3ff   : > { %5893 = vrot.lane.b32.xlu1 %v4857_v29, %s10563_s26  ;;  %v10386_v29 = vpop.eup %10385  ;;  %10393 = vtanh.f32 %v4129_v41  ;;  %v9874_v41 = vunpack.i.h.bf16 %v14133_v27 }
 0x400   : > { %v14233_v12 = vpop.permute.xlu0 %9901  ;;  %v5093_v11 = vsel %vm4364_vm8, %v15192_v13, %v9853_v42  ;;  %v10388_v42 = vpop.eup %10387  ;;  %10395 = vtanh.f32 %v4131_v56 }
 0x401   : > { %v15128_v35 = vunpack.i.h.bf16 %v14233_v12  ;;  %v15127_v45 = vunpack.i.l.bf16 %v14233_v12  ;;  %v14238_v32 = vpop.permute.xlu1 %9896  ;;  %6687 = vmatmul.mubr.f32.gmra.mrb[42].mxu1 %v6055_v16 }
 0x402   : > { %5895 = vrot.lane.b32.xlu0 %v13610_v14, %s10563_s26  ;;  %v6056_v14 = vsel %vm5359_vm9, %v5093_v11, %v9848_v54  ;;  %v14271_v11 = vld [vmem:[#allocation2 + $0x268] sm:$0xff] }
 0x403   : > { %10001 = vrot.lane.b32.xlu1 %v10000_v31, %s10562_s15  ;;  %v6088_v43 = vsel %vm5648_vm10, %v5382_v53, %v15127_v45  ;;  %v6089_v31 = vsel %vm5648_vm10, %v5383_v23, %v15128_v35  ;;  %v9864_v53 = vunpack.i.h.bf16 %v14077_v52  ;;  %v15193_v35 = vunpack.i.h.bf16 %v15191_v26 }
 0x404   : > { %v14256_v22 = vpop.permute.xlu0 %9916  ;;  %6691 = vmatprep.mubr.f32.mxu1 %v6088_v43  ;;  %v9863_v43 = vunpack.i.l.bf16 %v14077_v52 }
 0x405   : > { %v10390_v60 = vpop.eup %10389  ;;  %v14261_v16 = vpop.permute.xlu1 %5819  ;;  %6692 = vmatmul.mubr.f32.gmra.mrb[44].mxu1 %v6056_v14  ;;  %v5094_v52 = vsel %vm4364_vm8, %v15193_v35, %v9854_v46  ;;  %v4861_v35 = vld [vmem:[#allocation2 + $0x270] sm:$0xff]  ;;  %v4802_v46 = vld [vmem:[#allocation2 + $0x258] sm:$0xff] }
 0x406   : > { %v10392_v13 = vpop.eup %10391  ;;  %v14268_v54 = vadd.f32 %v10390_v60, %v10386_v29  ;;  %5897 = vrot.lane.b32.xlu0 %v4859_v48, %s10563_s26  ;;  %v4152_v34 = vpop.f32.mrb[188].mxu0  ;;  %6696 = vmatprep.mubr.f32.mxu1 %v6089_v31  ;;  %v9873_v29 = vunpack.i.l.bf16 %v14133_v27  ;;  %v6057_v56 = vsel %vm5359_vm9, %v5094_v52, %v9858_v36  ;;  %v5384_v36 = vsel %vm5359_vm9, %v9863_v43, %v9864_v53 }
 0x407   : > { %v4545_v14 = vadd.f32 %v10392_v13, %v10388_v42  ;;  %v4153_v45 = vadd.f32 %v4152_v34, %v15176_v24  ;;  %5899 = vrot.lane.b32.xlu1 %v14271_v11, %s10563_s26  ;;  %v4154_v23 = vpop.f32.mrb[189].mxu0  ;;  %v15194_v13 = vld [vmem:[#allocation18_spill] sm:$0xff]  ;;  %v9883_v53 = vunpack.i.l.bf16 %v14150_v21 }
 0x408   : > { %v4155_v60 = vadd.f32 %v4154_v23, %v15177_v7  ;;  %v14282_v48 = vpop.permute.xlu0 %9921  ;;  %v15195_v27 = vunpack.i.l.bf16 %v15194_v13 }
 0x409   : > { %4554 = vst.msk [vmem:[#allocation2 + $0x2d8] sm:$0xff] %vm4364_vm8, %v4545_v14  ;;  %10397 = vtanh.f32 %v4153_v45  ;;  %v15129_v42 = vunpack.i.h.bf16 %v14282_v48  ;;  %v15130_v31 = vunpack.i.l.bf16 %v14282_v48  ;;  %v14288_v26 = vpop.permute.xlu1 %9906  ;;  %6697 = vmatmul.mubr.f32.gmra.mrb[46].mxu1 %v6057_v56  ;;  %v9869_v45 = vunpack.i.h.bf16 %v14106_v40  ;;  %v10489_v14 = vld [vmem:[#allocation2 + $0x278] sm:$0xff] }
 0x40a   : > { %v5095_v34 = vsel %vm4364_vm8, %v15195_v27, %v9868_v58  ;;  %10399 = vtanh.f32 %v4155_v60  ;;  %5901 = vrot.lane.b32.xlu0 %v4861_v35, %s10563_s26  ;;  %v10005_v56 = vpack.i.bf16 %v4802_v46, %v14218_v17  ;;  %v5385_v60 = vsel %vm5359_vm9, %v9873_v29, %v9874_v41  ;;  %v4863_v17 = vld [vmem:[#allocation2 + $0x280] sm:$0xff]  ;;  %v10394_v46 = vpop.eup %10393 }
 0x40b   : > { %5903 = vrot.lane.b32.xlu1 %v10489_v14, %s10563_s26  ;;  %v6090_v23 = vsel %vm5648_vm10, %v5384_v36, %v15130_v31  ;;  %v6058_v58 = vsel %vm5359_vm9, %v5095_v34, %v9863_v43  ;;  %v6091_v40 = vsel %vm5648_vm10, %v5385_v60, %v15129_v42  ;;  %v9879_v27 = vunpack.i.h.bf16 %v14102_v63 }
 0x40c   : > { %v14300_v52 = vpop.permute.xlu0 %9931  ;;  %6701 = vmatprep.mubr.f32.mxu1 %v6090_v23  ;;  %v9878_v36 = vunpack.i.l.bf16 %v14102_v63  ;;  %v15196_v43 = vunpack.i.h.bf16 %v15194_v13  ;;  %v9909_v34 = vunpack.i.h.bf16 %v14288_v26  ;;  %v9908_v14 = vunpack.i.l.bf16 %v14288_v26  ;;  %v10396_v63 = vpop.eup %10395  ;;  %v4865_v26 = vld [vmem:[#allocation2 + $0x290] sm:$0xff] }
 0x40d   : > { %v14306_v35 = vpop.permute.xlu1 %9911  ;;  %6702 = vmatmul.mubr.f32.gmra.mrb[48].mxu1 %v6058_v58  ;;  %v5097_v13 = vsel %vm4364_vm8, %v9658_v0, %v9883_v53  ;;  %v9884_v42 = vunpack.i.h.bf16 %v14150_v21  ;;  %v14352_v21 = vld [vmem:[#allocation2 + $0x298] sm:$0xff] }
 0x40e   : > { %10006 = vrot.lane.b32.xlu0 %v10005_v56, %s10562_s15  ;;  %6706 = vmatprep.mubr.f32.mxu1 %v6091_v40  ;;  %v5096_v41 = vsel %vm4364_vm8, %v15196_v43, %v9869_v45  ;;  %v4806_v45 = vld [vmem:[#allocation2 + $0x278] sm:$0xff]  ;;  %v7037_v43 = vld [vmem:[%s15041_s5 + $0xb0] sm:$0xff]  ;;  %v6060_v51 = vsel %vm5359_vm9, %v5097_v13, %v9878_v36  ;;  %v5387_v38 = vsel %vm5359_vm9, %v9908_v14, %v9909_v34  ;;  %v9918_v34 = vunpack.i.l.bf16 %v14256_v22 }
 0x40f   : > { %5905 = vrot.lane.b32.xlu1 %v4863_v17, %s10563_s26  ;;  %v6059_v58 = vsel %vm5359_vm9, %v5096_v41, %v9873_v29  ;;  %v14327_v17 = vld [vmem:[#allocation2 + $0x288] sm:$0xff]  ;;  %v5386_v29 = vsel %vm5359_vm9, %v9878_v36, %v9879_v27  ;;  %v7038_v41 = vld [vmem:[%s15041_s5 + $0xb8] sm:$0xff] }
 0x410   : > { %v14320_v23 = vpop.permute.xlu0 %9936  ;;  %v8500_v53 = vpack.c.bf16 %v7038_v41, %v7037_v43  ;;  %v7022_v36 = vld [vmem:[%s15041_s5 + $0x38] sm:$0xff] }
 0x411   : > { %v9939_v56 = vunpack.i.h.bf16 %v14320_v23  ;;  %v9938_v60 = vunpack.i.l.bf16 %v14320_v23  ;;  %v14325_v40 = vpop.permute.xlu1 %5823  ;;  %6707 = vmatmul.mubr.f32.gmra.mrb[50].mxu1 %v6059_v58  ;;  %v7050_v23 = vld [vmem:[%s15041_s5 + $0x118] sm:$0xff] }
 0x412   : > { %5907 = vrot.lane.b32.xlu0 %v14327_v17, %s10563_s26  ;;  %8501 = vmatprep.subr.bf16.mxu0 %v8500_v53  ;;  %v15198_v53 = vunpack.i.l.bf16 %v13582_v28 }
 0x413   : > { %v10398_v58 = vpop.eup %10397  ;;  %5909 = vrot.lane.b32.xlu1 %v4865_v26, %s10563_s26  ;;  %v6092_v0 = vsel %vm5648_vm10, %v5386_v29, %v9938_v60  ;;  %v10010_v26 = vpack.i.bf16 %v4806_v45, %v14271_v11  ;;  %v6093_v29 = vsel %vm5648_vm10, %v5387_v38, %v9939_v56  ;;  %v9888_v38 = vunpack.i.l.bf16 %v14176_v4 }
 0x414   : > { %v10400_v31 = vpop.eup %10399  ;;  %v14346_v27 = vadd.f32 %v10398_v58, %v10394_v46  ;;  %v14348_v61 = vpop.permute.xlu0 %9941  ;;  %6711 = vmatprep.mubr.f32.mxu1 %v6092_v0  ;;  %v7021_v46 = vld [vmem:[%s15041_s5 + $0x30] sm:$0xff]  ;;  %v15197_v11 = vunpack.i.h.bf16 %v13497_v18  ;;  %v14382_v18 = vld [vmem:[#allocation2 + $0x2a8] sm:$0xff] }
 0x415   : > { %v4547_v57 = vadd.f32 %v10400_v31, %v10396_v63  ;;  %v9927_v25 = vpop.permute.xlu1 %9926  ;;  %6712 = vmatmul.mubr.f32.gmra.mrb[52].mxu1 %v6060_v51  ;;  %v9919_v31 = vunpack.i.h.bf16 %v14256_v22  ;;  %v8502_v51 = vpack.c.bf16 %v7022_v36, %v7021_v46 }
 0x416   : > { %5911 = vrot.lane.b32.xlu0 %v14352_v21, %s10563_s26  ;;  %6716 = vmatprep.mubr.f32.mxu1 %v6093_v29  ;;  %v5098_v63 = vsel %vm4364_vm8, %v15197_v11, %v9884_v42  ;;  %v9929_v13 = vunpack.i.h.bf16 %v9927_v25  ;;  %v9928_v45 = vunpack.i.l.bf16 %v9927_v25  ;;  %v9889_v25 = vunpack.i.h.bf16 %v14176_v4 }
 0x417   : > { %4556 = vst.msk [vmem:[#allocation2 + $0x2e8] sm:$0xff] %vm4364_vm8, %v4547_v57  ;;  %10011 = vrot.lane.b32.xlu1 %v10010_v26, %s10562_s15  ;;  %v6061_v22 = vsel %vm5359_vm9, %v5098_v63, %v9908_v14  ;;  %8503 = vmatpush3.bf16.msra.mxu0 %v8502_v51  ;;  %v4867_v57 = vld [vmem:[#allocation2 + $0x2a0] sm:$0xff]  ;;  %v5388_v42 = vsel %vm5359_vm9, %v9918_v34, %v9919_v31  ;;  %v9913_v4 = vunpack.i.l.bf16 %v14306_v35  ;;  %v4869_v51 = vld [vmem:[#allocation2 + $0x2b0] sm:$0xff] }
 0x418   : > { %v14374_v43 = vpop.permute.xlu0 %9951  ;;  %v5099_v26 = vsel %vm4364_vm8, %v15198_v53, %v9888_v38  ;;  %v5389_v36 = vsel %vm5359_vm9, %v9928_v45, %v9929_v13  ;;  %v4135_v63 = vadd.f32 %v13940_v30, %v15176_v24  ;;  %v9934_v38 = vunpack.i.h.bf16 %v14300_v52 }
 0x419   : > { %v9954_v41 = vunpack.i.h.bf16 %v14374_v43  ;;  %v9953_v58 = vunpack.i.l.bf16 %v14374_v43  ;;  %v14379_v0 = vpop.permute.xlu1 %5825  ;;  %6717 = vmatmul.mubr.f32.gmra.mrb[54].mxu1 %v6061_v22  ;;  %v6062_v46 = vsel %vm5359_vm9, %v5099_v26, %v9918_v34  ;;  %v9933_v22 = vunpack.i.l.bf16 %v14300_v52  ;;  %v4870_v34 = vld [vmem:[#allocation2 + $0x2b8] sm:$0xff]  ;;  %v7044_v43 = vld [vmem:[%s15041_s5 + $0xe8] sm:$0xff] }
 0x41a   : > { %5913 = vrot.lane.b32.xlu0 %v4867_v57, %s10563_s26  ;;  %v4137_v13 = vadd.f32 %v13957_v39, %v15177_v7  ;;  %v15199_v57 = vunpack.i.h.bf16 %v13582_v28  ;;  %v10015_v52 = vpack.i.bf16 %v14352_v21, %v14327_v17  ;;  %v15200_v28 = vunpack.i.l.bf16 %v13616_v59 }
 0x41b   : > { %5915 = vrot.lane.b32.xlu1 %v14382_v18, %s10563_s26  ;;  %v6094_v14 = vsel %vm5648_vm10, %v5388_v42, %v9953_v58  ;;  %v6095_v11 = vsel %vm5648_vm10, %v5389_v36, %v9954_v41  ;;  %10401 = vtanh.f32 %v4135_v63  ;;  %v5390_v21 = vsel %vm5359_vm9, %v9933_v22, %v9934_v38 }
 0x41c   : > { %v14394_v29 = vpop.permute.xlu0 %5827  ;;  %6721 = vmatprep.mubr.f32.mxu1 %v6094_v14  ;;  %v5100_v42 = vsel %vm4364_vm8, %v15199_v57, %v9889_v25  ;;  %v5101_v25 = vsel %vm4364_vm8, %v15200_v28, %v9913_v4  ;;  %10403 = vtanh.f32 %v4137_v13  ;;  %v10020_v28 = vpack.i.bf16 %v4870_v34, %v14382_v18 }
 0x41d   : > { %v9947_v31 = vpop.permute.xlu1 %9946  ;;  %6722 = vmatmul.mubr.f32.gmra.mrb[56].mxu1 %v6062_v46  ;;  %v6063_v26 = vsel %vm5359_vm9, %v5100_v42, %v9928_v45  ;;  %v9914_v45 = vunpack.i.h.bf16 %v14306_v35  ;;  %v4872_v35 = vld [vmem:[#allocation2 + $0x2c8] sm:$0xff]  ;;  %v5939_v18 = vsel %vm5937_vm11, %v14216_v44, %v14169_v10 }
 0x41e   : > { %5917 = vrot.lane.b32.xlu0 %v4869_v51, %s10563_s26  ;;  %6726 = vmatprep.mubr.f32.mxu1 %v6095_v11  ;;  %v9949_v14 = vunpack.i.h.bf16 %v9947_v31  ;;  %v9948_v53 = vunpack.i.l.bf16 %v9947_v31 }
 0x41f   : > { %5919 = vrot.lane.b32.xlu1 %v4870_v34, %s10563_s26  ;;  %v9898_v34 = vunpack.i.l.bf16 %v14238_v32 }
 0x420   : > { %v14413_v30 = vpop.permute.xlu0 %9956  ;;  %v5391_v38 = vsel %vm5359_vm9, %v9948_v53, %v9949_v14 }
 0x421   : > { %v9959_v46 = vunpack.i.h.bf16 %v14413_v30  ;;  %v9958_v36 = vunpack.i.l.bf16 %v14413_v30  ;;  %v14420_v39 = vpop.permute.xlu1 %5829  ;;  %v4158_v51 = vpop.f32.mrb[190].mxu0  ;;  %6727 = vmatmul.mubr.f32.gmra.mrb[58].mxu1 %v6063_v26 }
 0x422   : > { %v4159_v31 = vadd.f32 %v4158_v51, %v15176_v24  ;;  %10016 = vrot.lane.b32.xlu0 %v10015_v52, %s10562_s15  ;;  %v4160_v17 = vpop.f32.mrb[191].mxu0  ;;  %v6064_v24 = vsel %vm5359_vm9, %v5101_v25, %v9933_v22  ;;  %v15201_v22 = vunpack.i.h.bf16 %v13616_v59  ;;  %v5938_v52 = vsel %vm5937_vm11, %v14197_v6, %v14146_v15  ;;  %v4874_v51 = vld [vmem:[#allocation2 + $0x2d8] sm:$0xff] }
 0x423   : > { %v4161_v11 = vadd.f32 %v4160_v17, %v15177_v7  ;;  %5921 = vrot.lane.b32.xlu1 %v14129_v5, %s10563_s26  ;;  %v6096_v4 = vsel %vm5648_vm10, %v5390_v21, %v9958_v36  ;;  %v6097_v7 = vsel %vm5648_vm10, %v5391_v38, %v9959_v46  ;;  %v9893_v5 = vunpack.i.l.bf16 %v14126_v37  ;;  %v7040_v38 = vld [vmem:[%s15041_s5 + $0xc8] sm:$0xff] }
 0x424   : > { %10405 = vtanh.f32 %v4159_v31  ;;  %v14435_v63 = vpop.permute.xlu0 %5831  ;;  %6731 = vmatprep.mubr.f32.mxu1 %v6096_v4  ;;  %v5102_v57 = vsel %vm4364_vm8, %v15201_v22, %v9914_v45  ;;  %v9894_v59 = vunpack.i.h.bf16 %v14126_v37  ;;  %v4876_v45 = vld [vmem:[#allocation2 + $0x2e8] sm:$0xff]  ;;  %v15203_v4 = vunpack.i.h.bf16 %v13437_v2 }
 0x425   : > { %10407 = vtanh.f32 %v4161_v11  ;;  %v14439_v13 = vpop.permute.xlu1 %9961  ;;  %6732 = vmatmul.mubr.f32.gmra.mrb[60].mxu1 %v6064_v24  ;;  %v6065_v14 = vsel %vm5359_vm9, %v5102_v57, %v9948_v53  ;;  %v10402_v25 = vpop.eup %10401  ;;  %v7039_v24 = vld [vmem:[%s15041_s5 + $0xc0] sm:$0xff]  ;;  %v7024_v57 = vld [vmem:[%s15041_s5 + $0x48] sm:$0xff] }
 0x426   : > { %5923 = vrot.lane.b32.xlu0 %v4872_v35, %s10563_s26  ;;  %6736 = vmatprep.mubr.f32.mxu1 %v6097_v7  ;;  %v10404_v17 = vpop.eup %10403  ;;  %v5650_v10 = vsel %vm5648_vm10, %v15203_v4, %v9894_v59  ;;  %v9899_v35 = vunpack.i.h.bf16 %v14238_v32  ;;  %v8504_v22 = vpack.c.bf16 %v7040_v38, %v7039_v24  ;;  %v5940_v32 = vsel %vm5937_vm11, %v14192_v9, %v14261_v16 }
 0x427   : > { %5925 = vrot.lane.b32.xlu1 %v14268_v54, %s10563_s26  ;;  %v15202_v54 = vunpack.i.l.bf16 %v13437_v2  ;;  %v6099_v2 = vsel %vm5937_vm11, %v5650_v10, %v14216_v44  ;;  %v15204_v44 = vunpack.i.l.bf16 %v13559_v55  ;;  %v15206_v24 = vunpack.i.l.bf16 %v13597_v8 }
 0x428   : > { %v14451_v42 = vpop.permute.xlu0 %5833  ;;  %8505 = vmatprep.subr.bf16.mxu0 %v8504_v22 }
 0x429   : > { %v14457_v26 = vpop.permute.xlu1 %5835  ;;  %6737 = vmatmul.mubr.f32.gmra.mrb[62].mxu1 %v6065_v14  ;;  %v5649_v53 = vsel %vm5648_vm10, %v15202_v54, %v9893_v5  ;;  %v7041_v14 = vld [vmem:[%s15041_s5 + $0xd0] sm:$0xff] }
 0x42a   : > { %5927 = vrot.lane.b32.xlu0 %v4874_v51, %s10563_s26  ;;  %8078 = vmatprep.mubr.msk.f32.mxu1 %vm6227_vm12, %v5938_v52  ;;  %v6098_v15 = vsel %vm5937_vm11, %v5649_v53, %v14197_v6  ;;  %v7042_v52 = vld [vmem:[%s15041_s5 + $0xd8] sm:$0xff]  ;;  %v7025_v53 = vld [vmem:[%s15041_s5 + $0x50] sm:$0xff] }
 0x42b   : > { %10021 = vrot.lane.b32.xlu1 %v10020_v28, %s10562_s15  ;;  %v5651_v28 = vsel %vm5648_vm10, %v15204_v44, %v9898_v34  ;;  %v8508_v54 = vpack.c.bf16 %v7042_v52, %v7041_v14  ;;  %s10496_s15 = scalar_lea.vmem %s10495_s13, 1024 }
 0x42c   : > { %v14469_v31 = vpop.permute.xlu0 %5837  ;;  %p10498_p3 = scmp.lt.s32.totalorder %s10496_s15, %s10490_s24 }
 0x42d   : > { %v14475_v37 = vpop.permute.xlu1 %5839  ;;  %6807 = vmatmul.mubr.f32.vlgmr.msra.gmra.mrb[0].mxu1 %v6098_v15  ;;  %v6100_v15 = vsel %vm5937_vm11, %v5651_v28, %v14192_v9 }
 0x42e   : > { %v10406_v21 = vpop.eup %10405  ;;  %5929 = vrot.lane.b32.xlu0 %v14346_v27, %s10563_s26  ;;  %8079 = vmatprep.mubr.msk.f32.mxu1 %vm6227_vm12, %v5939_v18  ;;  %v7023_v27 = vld [vmem:[%s15041_s5 + $0x40] sm:$0xff]  ;;  %v5941_v18 = vsel %vm5937_vm11, %v14212_v3, %v14325_v40  ;;  %v5942_v40 = vsel %vm5937_vm11, %v14379_v0, %v14394_v29  ;;  %v5943_v29 = vsel %vm5937_vm11, %v14420_v39, %v14435_v63  ;;  %v15208_v63 = vunpack.i.l.bf16 %v13631_v47  ;;  %p10499_p4 = por %p10498_p3, %p10497_p2 }
 0x42f   : > { %v10408_v6 = vpop.eup %10407  ;;  %v4548_v11 = vadd.f32 %v10406_v21, %v10402_v25  ;;  %5931 = vrot.lane.b32.xlu1 %v4876_v45, %s10563_s26  ;;  %v8506_v59 = vpack.c.bf16 %v7024_v57, %v7023_v27  ;;  %v7026_v25 = vld [vmem:[%s15041_s5 + $0x58] sm:$0xff]  ;;  %v15205_v21 = vunpack.i.h.bf16 %v13559_v55  ;;  %v9944_v55 = vunpack.i.h.bf16 %v14348_v61 }
 0x430   : > { %v4549_v7 = vadd.f32 %v10408_v6, %v10404_v17  ;;  %v14494_v5 = vpop.permute.xlu0 %9966  ;;  %v8510_v17 = vpack.c.bf16 %v7026_v25, %v7025_v53  ;;  %v9943_v6 = vunpack.i.l.bf16 %v14348_v61  ;;  %v15207_v61 = vunpack.i.h.bf16 %v13597_v8  ;;  %p10500_p5 = pnand %p10499_p4, %p10493_p1 }
 0x431   : > { %v14510_v51 = vpop.permute.xlu1 %5841  ;;  %6812 = vmatmul.mubr.f32.gmra.mrb[2].mxu1 %v6099_v2  ;;  %8507 = vmatpush3.bf16.msra.mxu0 %v8506_v59  ;;  %v5652_v45 = vsel %vm5648_vm10, %v15205_v21, %v9899_v35  ;;  %v9963_v35 = vunpack.i.l.bf16 %v14439_v13  ;;  %v9964_v8 = vunpack.i.h.bf16 %v14439_v13  ;;  %v15209_v59 = vunpack.i.h.bf16 %v13631_v47 }
 0x432   : > { %4558 = vst.msk [vmem:[#allocation2 + $0x2f8] sm:$0xff] %vm4364_vm8, %v4549_v7  ;;  %8080 = vmatprep.mubr.msk.f32.mxu1 %vm6227_vm12, %v5940_v32  ;;  %5933 = vrot.lane.b32.xlu0 %v4548_v11, %s10563_s26  ;;  %v6101_v9 = vsel %vm5937_vm11, %v5652_v45, %v14212_v3  ;;  %v5653_v38 = vsel %vm5648_vm10, %v15206_v24, %v9943_v6 }
 0x433   : > { %8509 = vmatprep.subr.bf16.mxu0 %v8508_v54  ;;  %v6102_v27 = vsel %vm5937_vm11, %v5653_v38, %v14379_v0  ;;  %v5654_v2 = vsel %vm5648_vm10, %v15207_v61, %v9944_v55  ;;  %v5944_v0 = vsel %vm5937_vm11, %v14451_v42, %v14457_v26  ;;  %v5655_v52 = vsel %vm5648_vm10, %v15208_v63, %v9963_v35 }
 0x434   : > { %v5844_v16 = vpop.permute.xlu0 %5843  ;;  %v6103_v57 = vsel %vm5937_vm11, %v5654_v2, %v14420_v39  ;;  %v6104_v44 = vsel %vm5937_vm11, %v5655_v52, %v14451_v42  ;;  %v5945_v39 = vsel %vm5937_vm11, %v14469_v31, %v14475_v37  ;;  %v9968_v26 = vunpack.i.l.bf16 %v14494_v5 }
 0x435   : > { %v5846_v34 = vpop.permute.xlu1 %5845  ;;  %6817 = vmatmul.mubr.f32.gmra.mrb[4].mxu1 %v6100_v15  ;;  %8511 = vmatpush3.bf16.msra.mxu0 %v8510_v17  ;;  %v5656_v54 = vsel %vm5648_vm10, %v15209_v59, %v9964_v8  ;;  %v5946_v42 = vsel %vm5937_vm11, %v14510_v51, %v5844_v16  ;;  %v15210_v37 = vunpack.i.l.bf16 %v13676_v62  ;;  %v9969_v17 = vunpack.i.h.bf16 %v14494_v5 }
 0x436   : > { %8081 = vmatprep.mubr.msk.f32.mxu1 %vm6227_vm12, %v5941_v18  ;;  %v6105_v13 = vsel %vm5937_vm11, %v5656_v54, %v14469_v31  ;;  %v15211_v16 = vunpack.i.h.bf16 %v13676_v62 }
 0x437   : > { %v5657_v15 = vsel %vm5648_vm10, %v15210_v37, %v9968_v26 }
 0x438   : > { %v5848_v11 = vpop.permute.xlu0 %5847  ;;  %v6106_v18 = vsel %vm5937_vm11, %v5657_v15, %v14510_v51  ;;  %v5658_v6 = vsel %vm5648_vm10, %v15211_v16, %v9969_v17  ;;  %v15212_v51 = vunpack.i.l.bf16 %v13740_v19 }
 0x439   : > { %v14539_v4 = vpop.permute.xlu1 %9971  ;;  %v4878_v10 = vld [vmem:[#allocation2 + $0x2f8] sm:$0xff]  ;;  %6822 = vmatmul.mubr.f32.gmra.mrb[6].mxu1 %v6101_v9  ;;  %v5947_v21 = vsel %vm5937_vm11, %v5846_v34, %v5848_v11 }
 0x43a   : > { %5935 = vrot.lane.b32.xlu1 %v4878_v10, %s10563_s26  ;;  %8082 = vmatprep.mubr.msk.f32.mxu1 %vm6227_vm12, %v5942_v40  ;;  %v9973_v31 = vunpack.i.l.bf16 %v14539_v4  ;;  %v6107_v40 = vsel %vm5937_vm11, %v5658_v6, %v5846_v34  ;;  %v9974_v55 = vunpack.i.h.bf16 %v14539_v4  ;;  %v15213_v34 = vunpack.i.h.bf16 %v13740_v19  ;;  %s15228_s26 = sadd.s32 4294967295, %s10552_s20  }
 0x43b   : > { %s8128_s14 = sshll.u32 %s15228_s26, 9 }
 0x43c   : > { %v5850_v3 = vpop.permute.xlu0 %5849  ;;  %v5659_v11 = vsel %vm5648_vm10, %v15212_v51, %v9973_v31  ;;  %v5660_v35 = vsel %vm5648_vm10, %v15213_v34, %v9974_v55  ;;  %v15219_v51 = vunpack.i.h.bf16 %v13911_v49  ;;  %s14992_s16 = scalar_lea.hbm %s15047_s11, %s8128_s14 }
 0x43d   : > { %v5852_v7 = vpop.permute.xlu1 %5851  ;;  %6827 = vmatmul.mubr.f32.gmra.mrb[8].mxu1 %v6102_v27  ;;  %v6108_v62 = vsel %vm5937_vm11, %v5659_v11, %v5850_v3 }
 0x43e   : > { %8083 = vmatprep.mubr.msk.f32.mxu1 %vm6227_vm12, %v5943_v29  ;;  %v5948_v5 = vsel %vm5937_vm11, %v5850_v3, %v5852_v7  ;;  %v15214_v3 = vunpack.i.l.bf16 %v13801_v50 }
 0x440   : > { %v5854_v22 = vpop.permute.xlu0 %5853 }
 0x441   : > { %v5856_v14 = vpop.permute.xlu1 %5855  ;;  %6832 = vmatmul.mubr.f32.gmra.mrb[10].mxu1 %v6103_v57  ;;  %v6109_v61 = vsel %vm5937_vm11, %v5660_v35, %v5854_v22 }
 0x442   : > { %8084 = vmatprep.mubr.msk.f32.mxu1 %vm6227_vm12, %v5944_v0  ;;  %v5949_v38 = vsel %vm5937_vm11, %v5854_v22, %v5856_v14  ;;  %v15215_v22 = vunpack.i.h.bf16 %v13801_v50 }
 0x444   : > { %v9977_v32 = vpop.permute.xlu0 %9976 }
 0x445   : > { %v5858_v28 = vpop.permute.xlu1 %5857  ;;  %6837 = vmatmul.mubr.f32.gmra.mrb[12].mxu1 %v6104_v44  ;;  %v9978_v27 = vunpack.i.l.bf16 %v9977_v32  ;;  %v9979_v0 = vunpack.i.h.bf16 %v9977_v32 }
 0x446   : > { %8085 = vmatprep.mubr.msk.f32.mxu1 %vm6227_vm12, %v5945_v39 }
 0x447   : > { %v5661_v57 = vsel %vm5648_vm10, %v15214_v3, %v9978_v27  ;;  %v5662_v44 = vsel %vm5648_vm10, %v15215_v22, %v9979_v0  ;;  %v15220_v27 = vunpack.i.l.bf16 %v13966_v1 }
 0x448   : > { %v5860_v53 = vpop.permute.xlu0 %5859  ;;  %v6110_v63 = vsel %vm5937_vm11, %v5661_v57, %v5858_v28 }
 0x449   : > { %v5862_v25 = vpop.permute.xlu1 %5861  ;;  %6842 = vmatmul.mubr.f32.gmra.mrb[14].mxu1 %v6105_v13  ;;  %v5950_v2 = vsel %vm5937_vm11, %v5858_v28, %v5860_v53  ;;  %v15216_v28 = vunpack.i.l.bf16 %v13859_v33 }
 0x44a   : > { %8086 = vmatprep.mubr.msk.f32.mxu1 %vm6227_vm12, %v5946_v42  ;;  %v6111_v26 = vsel %vm5937_vm11, %v5662_v44, %v5862_v25 }
 0x44c   : > { %v5864_v47 = vpop.permute.xlu0 %5863 }
 0x44d   : > { %v9982_v45 = vpop.permute.xlu1 %9981  ;;  %6847 = vmatmul.mubr.f32.gmra.mrb[16].mxu1 %v6106_v18  ;;  %v5951_v19 = vsel %vm5937_vm11, %v5862_v25, %v5864_v47  ;;  %v15217_v25 = vunpack.i.h.bf16 %v13859_v33 }
 0x44e   : > { %8087 = vmatprep.mubr.msk.f32.mxu1 %vm6227_vm12, %v5947_v21  ;;  %v9983_v52 = vunpack.i.l.bf16 %v9982_v45  ;;  %v9984_v53 = vunpack.i.h.bf16 %v9982_v45  ;;  %v15218_v45 = vunpack.i.l.bf16 %v13911_v49 }
 0x450   : > { %v5866_v9 = vpop.permute.xlu0 %5865  ;;  %v5663_v54 = vsel %vm5648_vm10, %v15216_v28, %v9983_v52  ;;  %v5664_v17 = vsel %vm5648_vm10, %v15217_v25, %v9984_v53 }
 0x451   : > { %v5868_v10 = vpop.permute.xlu1 %5867  ;;  %6852 = vmatmul.mubr.f32.gmra.mrb[18].mxu1 %v6107_v40  ;;  %v6112_v42 = vsel %vm5937_vm11, %v5663_v54, %v5866_v9 }
 0x452   : > { %8088 = vmatprep.mubr.msk.f32.mxu1 %vm6227_vm12, %v5948_v5  ;;  %v5952_v59 = vsel %vm5937_vm11, %v5866_v9, %v5868_v10 }
 0x454   : > { %v5870_v24 = vpop.permute.xlu0 %5869 }
 0x455   : > { %v5872_v29 = vpop.permute.xlu1 %5871  ;;  %6857 = vmatmul.mubr.f32.gmra.mrb[20].mxu1 %v6108_v62  ;;  %v6113_v18 = vsel %vm5937_vm11, %v5664_v17, %v5870_v24 }
 0x456   : > { %8089 = vmatprep.mubr.msk.f32.mxu1 %vm6227_vm12, %v5949_v38  ;;  %v5953_v50 = vsel %vm5937_vm11, %v5870_v24, %v5872_v29 }
 0x458   : > { %v9987_v7 = vpop.permute.xlu0 %9986 }
 0x459   : > { %v5874_v4 = vpop.permute.xlu1 %5873  ;;  %6862 = vmatmul.mubr.f32.gmra.mrb[22].mxu1 %v6109_v61  ;;  %v9988_v37 = vunpack.i.l.bf16 %v9987_v7  ;;  %v9989_v6 = vunpack.i.h.bf16 %v9987_v7 }
 0x45a   : > { %8090 = vmatprep.mubr.msk.f32.mxu1 %vm6227_vm12, %v5950_v2 }
 0x45b   : > { %v5665_v16 = vsel %vm5648_vm10, %v15218_v45, %v9988_v37  ;;  %v5666_v11 = vsel %vm5648_vm10, %v15219_v51, %v9989_v6  ;;  %v7064_v45 = vld [vmem:[%s15041_s5 + $0x188] sm:$0xff] }
 0x45c   : > { %v5876_v14 = vpop.permute.xlu0 %5875  ;;  %v6114_v40 = vsel %vm5937_vm11, %v5665_v16, %v5874_v4  ;;  %v7047_v16 = vld [vmem:[%s15041_s5 + $0x100] sm:$0xff] }
 0x45d   : > { %v5878_v8 = vpop.permute.xlu1 %5877  ;;  %6867 = vmatmul.mubr.f32.gmra.mrb[24].mxu1 %v6110_v63  ;;  %v5954_v21 = vsel %vm5937_vm11, %v5874_v4, %v5876_v14  ;;  %v15221_v4 = vunpack.i.h.bf16 %v13966_v1 }
 0x45e   : > { %8091 = vmatprep.mubr.msk.f32.mxu1 %vm6227_vm12, %v5951_v19  ;;  %v6115_v24 = vsel %vm5937_vm11, %v5666_v11, %v5878_v8  ;;  %v15222_v19 = vunpack.i.l.bf16 %v14024_v20 }
 0x460   : > { %v5880_v39 = vpop.permute.xlu0 %5879 }
 0x461   : > { %v9992_v32 = vpop.permute.xlu1 %9991  ;;  %6872 = vmatmul.mubr.f32.gmra.mrb[26].mxu1 %v6111_v26  ;;  %v5955_v33 = vsel %vm5937_vm11, %v5878_v8, %v5880_v39 }
 0x462   : > { %8092 = vmatprep.mubr.msk.f32.mxu1 %vm6227_vm12, %v5952_v59  ;;  %v9993_v5 = vunpack.i.l.bf16 %v9992_v32  ;;  %v9994_v34 = vunpack.i.h.bf16 %v9992_v32  ;;  %v15223_v59 = vunpack.i.h.bf16 %v14024_v20 }
 0x464   : > { %v5882_v13 = vpop.permute.xlu0 %5881  ;;  %v5667_v29 = vsel %vm5648_vm10, %v15220_v27, %v9993_v5  ;;  %v5668_v3 = vsel %vm5648_vm10, %v15221_v4, %v9994_v34  ;;  %v15227_v34 = vunpack.i.h.bf16 %v14282_v48 }
 0x465   : > { %v5884_v15 = vpop.permute.xlu1 %5883  ;;  %6877 = vmatmul.mubr.f32.gmra.mrb[28].mxu1 %v6112_v42  ;;  %v6116_v7 = vsel %vm5937_vm11, %v5667_v29, %v5882_v13  ;;  %v15224_v42 = vunpack.i.l.bf16 %v14233_v12 }
 0x466   : > { %8093 = vmatprep.mubr.msk.f32.mxu1 %vm6227_vm12, %v5953_v50  ;;  %v5956_v62 = vsel %vm5937_vm11, %v5882_v13, %v5884_v15 }
 0x468   : > { %v5886_v47 = vpop.permute.xlu0 %5885 }
 0x469   : > { %v5888_v31 = vpop.permute.xlu1 %5887  ;;  %6882 = vmatmul.mubr.f32.gmra.mrb[30].mxu1 %v6113_v18  ;;  %v6117_v0 = vsel %vm5937_vm11, %v5668_v3, %v5886_v47  ;;  %v15225_v18 = vunpack.i.h.bf16 %v14233_v12  ;;  %v7048_v12 = vld [vmem:[%s15041_s5 + $0x108] sm:$0xff] }
 0x46a   : > { %8094 = vmatprep.mubr.msk.f32.mxu1 %vm6227_vm12, %v5954_v21  ;;  %v5957_v49 = vsel %vm5937_vm11, %v5886_v47, %v5888_v31  ;;  %v7063_v31 = vld [vmem:[%s15041_s5 + $0x180] sm:$0xff]  ;;  %v8522_v11 = vpack.c.bf16 %v7048_v12, %v7047_v16 }
 0x46b   : > { %v7051_v16 = vld [vmem:[%s15041_s5 + $0x120] sm:$0xff] }
 0x46c   : > { %v9997_v9 = vpop.permute.xlu0 %9996 }
 0x46d   : > { %v5890_v10 = vpop.permute.xlu1 %5889  ;;  %6887 = vmatmul.mubr.f32.gmra.mrb[32].mxu1 %v6114_v40  ;;  %v9998_v61 = vunpack.i.l.bf16 %v9997_v9  ;;  %v9999_v8 = vunpack.i.h.bf16 %v9997_v9  ;;  %v8520_v40 = vpack.c.bf16 %v7064_v45, %v7063_v31  ;;  %v7068_v45 = vld [vmem:[%s15041_s5 + $0x1a8] sm:$0xff] }
 0x46e   : > { %8095 = vmatprep.mubr.msk.f32.mxu1 %vm6227_vm12, %v5955_v33 }
 0x46f   : > { %v5669_v52 = vsel %vm5648_vm10, %v15222_v19, %v9998_v61  ;;  %v5670_v32 = vsel %vm5648_vm10, %v15223_v59, %v9999_v8  ;;  %8521 = vmatprep.subr.bf16.mxu1 %v8520_v40  ;;  %v7049_v8 = vld [vmem:[%s15041_s5 + $0x110] sm:$0xff] }
 0x470   : > { %v5892_v55 = vpop.permute.xlu0 %5891  ;;  %v6118_v44 = vsel %vm5937_vm11, %v5669_v52, %v5890_v10  ;;  %8523 = vmatpush3.bf16.msra.mxu1 %v8522_v11  ;;  %v7066_v52 = vld [vmem:[%s15041_s5 + $0x198] sm:$0xff]  ;;  %v8526_v59 = vpack.c.bf16 %v7050_v23, %v7049_v8  ;;  %v7075_v8 = vld [vmem:[%s15041_s5 + $0x1e0] sm:$0xff]  ;;  %v7060_v23 = vld [vmem:[%s15041_s5 + $0x168] sm:$0xff] }
 0x471   : > { %v5894_v38 = vpop.permute.xlu1 %5893  ;;  %6892 = vmatmul.mubr.f32.gmra.mrb[34].mxu1 %v6115_v24  ;;  %v5958_v14 = vsel %vm5937_vm11, %v5890_v10, %v5892_v55  ;;  %v15226_v10 = vunpack.i.l.bf16 %v14282_v48 }
 0x472   : > { %8096 = vmatprep.mubr.msk.f32.mxu1 %vm6227_vm12, %v5956_v62  ;;  %v6119_v54 = vsel %vm5937_vm11, %v5670_v32, %v5894_v38 }
 0x474   : > { %v5896_v35 = vpop.permute.xlu0 %5895 }
 0x475   : > { %v10002_v2 = vpop.permute.xlu1 %10001  ;;  %6897 = vmatmul.mubr.f32.gmra.mrb[36].mxu1 %v6116_v7  ;;  %v5959_v1 = vsel %vm5937_vm11, %v5894_v38, %v5896_v35 }
 0x476   : > { %8097 = vmatprep.mubr.msk.f32.mxu1 %vm6227_vm12, %v5957_v49  ;;  %v10003_v39 = vunpack.i.l.bf16 %v10002_v2  ;;  %v10004_v37 = vunpack.i.h.bf16 %v10002_v2 }
 0x478   : > { %v5898_v57 = vpop.permute.xlu0 %5897  ;;  %v5671_v50 = vsel %vm5648_vm10, %v15224_v42, %v10003_v39  ;;  %v5672_v21 = vsel %vm5648_vm10, %v15225_v18, %v10004_v37  ;;  %v7028_v18 = vld [vmem:[%s15041_s5 + $0x68] sm:$0xff] }
 0x479   : > { %v5900_v63 = vpop.permute.xlu1 %5899  ;;  %6902 = vmatmul.mubr.f32.gmra.mrb[38].mxu1 %v6117_v0  ;;  %v6120_v25 = vsel %vm5937_vm11, %v5671_v50, %v5898_v57 }
 0x47a   : > { %8098 = vmatprep.mubr.msk.f32.mxu1 %vm6227_vm12, %v5958_v14  ;;  %v5960_v53 = vsel %vm5937_vm11, %v5898_v57, %v5900_v63 }
 0x47c   : > { %v5902_v22 = vpop.permute.xlu0 %5901 }
 0x47d   : > { %v5904_v26 = vpop.permute.xlu1 %5903  ;;  %6907 = vmatmul.mubr.f32.gmra.mrb[40].mxu1 %v6118_v44  ;;  %v6121_v9 = vsel %vm5937_vm11, %v5672_v21, %v5902_v22  ;;  %v7067_v21 = vld [vmem:[%s15041_s5 + $0x1a0] sm:$0xff] }
 0x47e   : > { %8099 = vmatprep.mubr.msk.f32.mxu1 %vm6227_vm12, %v5959_v1  ;;  %v5961_v20 = vsel %vm5937_vm11, %v5902_v22, %v5904_v26  ;;  %v8528_v40 = vpack.c.bf16 %v7068_v45, %v7067_v21 }
 0x480   : > { %v10007_v28 = vpop.permute.xlu0 %10006 }
 0x481   : > { %v5906_v13 = vpop.permute.xlu1 %5905  ;;  %6912 = vmatmul.mubr.f32.gmra.mrb[42].mxu1 %v6119_v54  ;;  %v10008_v17 = vunpack.i.l.bf16 %v10007_v28  ;;  %v10009_v55 = vunpack.i.h.bf16 %v10007_v28 }
 0x482   : > { %8100 = vmatprep.mubr.msk.f32.mxu1 %vm6227_vm12, %v5960_v53 }
 0x483   : > { %v5673_v51 = vsel %vm5648_vm10, %v15226_v10, %v10008_v17  ;;  %v5674_v35 = vsel %vm5648_vm10, %v15227_v34, %v10009_v55  ;;  %v7043_v17 = vld [vmem:[%s15041_s5 + $0xe0] sm:$0xff]  ;;  %v7069_v55 = vld [vmem:[%s15041_s5 + $0x1b0] sm:$0xff] }
 0x484   : > { %v5908_v15 = vpop.permute.xlu0 %5907  ;;  %v6122_v62 = vsel %vm5937_vm11, %v5673_v51, %v5906_v13 }
 0x485   : > { %v5910_v47 = vpop.permute.xlu1 %5909  ;;  %6917 = vmatmul.mubr.f32.gmra.mrb[44].mxu1 %v6120_v25  ;;  %v5962_v33 = vsel %vm5937_vm11, %v5906_v13, %v5908_v15 }
 0x486   : > { %8101 = vmatprep.mubr.msk.f32.mxu1 %vm6227_vm12, %v5961_v20  ;;  %v6123_v49 = vsel %vm5937_vm11, %v5674_v35, %v5910_v47  ;;  %v7029_v35 = vld [vmem:[%s15041_s5 + $0x70] sm:$0xff] }
 0x488   : > { %v5912_v6 = vpop.permute.xlu0 %5911 }
 0x489   : > { %v10012_v5 = vpop.permute.xlu1 %10011  ;;  %6922 = vmatmul.mubr.f32.gmra.mrb[46].mxu1 %v6121_v9  ;;  %v5963_v38 = vsel %vm5937_vm11, %v5910_v47, %v5912_v6  ;;  %v8512_v47 = vpack.c.bf16 %v7044_v43, %v7043_v17  ;;  %v7052_v6 = vld [vmem:[%s15041_s5 + $0x128] sm:$0xff] }
 0x48a   : > { %8102 = vmatprep.mubr.msk.f32.mxu1 %vm6227_vm12, %v5962_v33  ;;  %v10013_v27 = vunpack.i.l.bf16 %v10012_v5  ;;  %v10014_v3 = vunpack.i.h.bf16 %v10012_v5  ;;  %v8530_v12 = vpack.c.bf16 %v7052_v6, %v7051_v16 }
 0x48b   : > { %8513 = vmatprep.subr.bf16.mxu0 %v8512_v47 }
 0x48c   : > { %v5914_v24 = vpop.permute.xlu0 %5913  ;;  %v5675_v4 = vsel %vm5648_vm10, %v9938_v60, %v10013_v27  ;;  %v5676_v19 = vsel %vm5648_vm10, %v9939_v56, %v10014_v3  ;;  %v7065_v60 = vld [vmem:[%s15041_s5 + $0x190] sm:$0xff] }
 0x48d   : > { %v5916_v29 = vpop.permute.xlu1 %5915  ;;  %6927 = vmatmul.mubr.f32.gmra.mrb[48].mxu1 %v6122_v62  ;;  %v6124_v0 = vsel %vm5937_vm11, %v5675_v4, %v5914_v24  ;;  %v8524_v1 = vpack.c.bf16 %v7066_v52, %v7065_v60  ;;  %v7053_v62 = vld [vmem:[%s15041_s5 + $0x130] sm:$0xff]  ;;  %v7055_v4 = vld [vmem:[%s15041_s5 + $0x140] sm:$0xff]  ;;  %v7058_v60 = vld [vmem:[%s15041_s5 + $0x158] sm:$0xff] }
 0x48e   : > { %8103 = vmatprep.mubr.msk.f32.mxu1 %vm6227_vm12, %v5963_v38  ;;  %v5964_v61 = vsel %vm5937_vm11, %v5914_v24, %v5916_v29  ;;  %v7070_v24 = vld [vmem:[%s15041_s5 + $0x1b8] sm:$0xff]  ;;  %v7045_v27 = vld [vmem:[%s15041_s5 + $0xf0] sm:$0xff] }
 0x48f   : > { %8525 = vmatprep.subr.bf16.mxu1 %v8524_v1  ;;  %v8532_v30 = vpack.c.bf16 %v7070_v24, %v7069_v55  ;;  %v7046_v29 = vld [vmem:[%s15041_s5 + $0xf8] sm:$0xff] }
 0x490   : > { %v5918_v7 = vpop.permute.xlu0 %5917  ;;  %8527 = vmatpush3.bf16.msra.mxu1 %v8526_v59  ;;  %v8516_v34 = vpack.c.bf16 %v7046_v29, %v7045_v27  ;;  %v7061_v59 = vld [vmem:[%s15041_s5 + $0x170] sm:$0xff] }
 0x491   : > { %v5920_v2 = vpop.permute.xlu1 %5919  ;;  %6932 = vmatmul.mubr.f32.gmra.mrb[50].mxu1 %v6123_v49  ;;  %v6125_v44 = vsel %vm5937_vm11, %v5676_v19, %v5918_v7  ;;  %8529 = vmatprep.subr.bf16.mxu1 %v8528_v40 }
 0x492   : > { %8104 = vmatprep.mubr.msk.f32.mxu1 %vm6227_vm12, %v5964_v61  ;;  %v5965_v48 = vsel %vm5937_vm11, %v5918_v7, %v5920_v2  ;;  %v7030_v7 = vld [vmem:[%s15041_s5 + $0x78] sm:$0xff]  ;;  %v7071_v61 = vld [vmem:[%s15041_s5 + $0x1c0] sm:$0xff]  ;;  %v7072_v2 = vld [vmem:[%s15041_s5 + $0x1c8] sm:$0xff] }
 0x493   : > { %v8518_v49 = vpack.c.bf16 %v7030_v7, %v7029_v35  ;;  %v8536_v3 = vpack.c.bf16 %v7072_v2, %v7071_v61 }
 0x494   : > { %v10017_v57 = vpop.permute.xlu0 %10016  ;;  %8531 = vmatpush3.bf16.msra.mxu1 %v8530_v12 }
 0x495   : > { %v10018_v14 = vunpack.i.l.bf16 %v10017_v57  ;;  %v5922_v63 = vpop.permute.xlu1 %5921  ;;  %6937 = vmatmul.mubr.f32.gmra.mrb[52].mxu1 %v6124_v0  ;;  %v10019_v32 = vunpack.i.h.bf16 %v10017_v57  ;;  %8533 = vmatprep.subr.bf16.mxu1 %v8532_v30  ;;  %v7056_v57 = vld [vmem:[%s15041_s5 + $0x148] sm:$0xff] }
 0x496   : > { %8105 = vmatprep.mubr.msk.f32.mxu1 %vm6227_vm12, %v5965_v48  ;;  %v8538_v0 = vpack.c.bf16 %v7056_v57, %v7055_v4  ;;  %v7073_v48 = vld [vmem:[%s15041_s5 + $0x1d0] sm:$0xff] }
 0x497   : > { %v5677_v26 = vsel %vm5648_vm10, %v9953_v58, %v10018_v14  ;;  %v5678_v58 = vsel %vm5648_vm10, %v9954_v41, %v10019_v32  ;;  %v7074_v14 = vld [vmem:[%s15041_s5 + $0x1d8] sm:$0xff] }
 0x498   : > { %v5924_v22 = vpop.permute.xlu0 %5923  ;;  %v6126_v54 = vsel %vm5937_vm11, %v5677_v26, %v5922_v63  ;;  %v8540_v19 = vpack.c.bf16 %v7074_v14, %v7073_v48  ;;  %v7078_v26 = vld [vmem:[%s15041_s5 + $0x1f8] sm:$0xff] }
 0x499   : > { %v5966_v56 = vsel %vm5937_vm11, %v5922_v63, %v5924_v22  ;;  %v5926_v39 = vpop.permute.xlu1 %5925  ;;  %6942 = vmatmul.mubr.f32.gmra.mrb[54].mxu1 %v6125_v44  ;;  %v7057_v63 = vld [vmem:[%s15041_s5 + $0x150] sm:$0xff]  ;;  %v7076_v22 = vld [vmem:[%s15041_s5 + $0x1e8] sm:$0xff]  ;;  %v7059_v44 = vld [vmem:[%s15041_s5 + $0x160] sm:$0xff] }
 0x49a   : > { %8106 = vmatprep.mubr.msk.f32.mxu1 %vm6227_vm12, %v5966_v56  ;;  %v6127_v37 = vsel %vm5937_vm11, %v5678_v58, %v5926_v39  ;;  %v8542_v52 = vpack.c.bf16 %v7058_v60, %v7057_v63  ;;  %v8544_v1 = vpack.c.bf16 %v7076_v22, %v7075_v8  ;;  %v8546_v56 = vpack.c.bf16 %v7060_v23, %v7059_v44 }
 0x49c   : > { %v5928_v28 = vpop.permute.xlu0 %5927 }
 0x49d   : > { %v5967_v53 = vsel %vm5937_vm11, %v5926_v39, %v5928_v28  ;;  %v10022_v13 = vpop.permute.xlu1 %10021  ;;  %6947 = vmatmul.mubr.f32.gmra.mrb[56].mxu1 %v6126_v54  ;;  %v7077_v39 = vld [vmem:[%s15041_s5 + $0x1f0] sm:$0xff]  ;;  %v7062_v28 = vld [vmem:[%s15041_s5 + $0x178] sm:$0xff] }
 0x49e   : > { %v10023_v42 = vunpack.i.l.bf16 %v10022_v13  ;;  %8107 = vmatprep.mubr.msk.f32.mxu1 %vm6227_vm12, %v5967_v53  ;;  %v10024_v9 = vunpack.i.h.bf16 %v10022_v13  ;;  %v8548_v32 = vpack.c.bf16 %v7078_v26, %v7077_v39  ;;  %v8550_v54 = vpack.c.bf16 %v7062_v28, %v7061_v59 }
 0x4a0   : > { %v5930_v50 = vpop.permute.xlu0 %5929  ;;  %v5679_v25 = vsel %vm5648_vm10, %v9958_v36, %v10023_v42  ;;  %v7027_v36 = vld [vmem:[%s15041_s5 + $0x60] sm:$0xff]  ;;  %v5680_v51 = vsel %vm5648_vm10, %v9959_v46, %v10024_v9  ;;  %v7054_v46 = vld [vmem:[%s15041_s5 + $0x138] sm:$0xff] }
 0x4a1   : > { %v5932_v15 = vpop.permute.xlu1 %5931  ;;  %6952 = vmatmul.mubr.f32.gmra.mrb[58].mxu1 %v6127_v37  ;;  %v6128_v41 = vsel %vm5937_vm11, %v5679_v25, %v5930_v50  ;;  %v8514_v31 = vpack.c.bf16 %v7028_v18, %v7027_v36  ;;  %v8534_v38 = vpack.c.bf16 %v7054_v46, %v7053_v62 }
 0x4a2   : > { %v5968_v20 = vsel %vm5937_vm11, %v5930_v50, %v5932_v15  ;;  %v14851_v15 = vld [vmem:[%s15040_s4] ss:$0 sm:$0xff] }
 0x4a3   : > { %8108 = vmatprep.mubr.msk.f32.mxu1 %vm6227_vm12, %v5968_v20  ;;  %8515 = vmatpush3.bf16.msra.mxu0 %v8514_v31 }
 0x4a4   : > { %v5934_v33 = vpop.permute.xlu0 %5933  ;;  %8535 = vmatpush3.bf16.msra.mxu1 %v8534_v38  ;;  %8517 = vmatprep.subr.bf16.mxu0 %v8516_v34 }
 0x4a5   : > { %6957 = vmatmul.mubr.f32.gmra.mrb[60].mxu1 %v6128_v41  ;;  %v6129_v11 = vsel %vm5937_vm11, %v5680_v51, %v5934_v33  ;;  %8537 = vmatprep.subr.bf16.mxu1 %v8536_v3 }
 0x4a7   : > { %8519 = vmatpush3.bf16.msra.mxu0 %v8518_v49 }
 0x4a8   : > { %8539 = vmatpush3.bf16.msra.mxu1 %v8538_v0 }
 0x4a9   : > { %8541 = vmatprep.subr.bf16.mxu1 %v8540_v19 }
 0x4ac   : > { %v5936_v5 = vpop.permute.xlu1 %5935  ;;  %8543 = vmatpush3.bf16.msra.mxu1 %v8542_v52 }
 0x4ad   : > { %v5969_v10 = vsel %vm5937_vm11, %v5934_v33, %v5936_v5  ;;  %8545 = vmatprep.subr.bf16.mxu1 %v8544_v1 }
 0x4ae   : > { %8109 = vmatprep.mubr.msk.f32.mxu1 %vm6227_vm12, %v5969_v10 }
 0x4af   : > { %6962 = vmatmul.mubr.f32.gmra.mrb[62].mxu1 %v6129_v11 }
 0x4b0   : > { %8547 = vmatpush3.bf16.msra.mxu1 %v8546_v56 }
 0x4b1   : > { %8549 = vmatprep.subr.bf16.mxu1 %v8548_v32 }
 0x4b4   : > { %8551 = vmatpush3.bf16.msra.mxu1 %v8550_v54 }
 0x500   : > { %v6808_v53 = vpop.f32.mrb[0].mxu1 }
 0x501   : > { %v6810_v13 = vpop.f32.mrb[1].mxu1  ;;  %v8612_v17 = vadd.f32 %v14851_v15, %v6808_v53 }
 0x503   : > { %10409 = vtanh.f32 %v8612_v17 }
 0x504   : > { %v6813_v42 = vpop.f32.mrb[2].mxu1 }
 0x505   : > { %v6815_v58 = vpop.f32.mrb[3].mxu1  ;;  %v8613_v36 = vadd.f32 %v14851_v15, %v6813_v42 }
 0x508   : > { %v6818_v50 = vpop.f32.mrb[4].mxu1 }
 0x509   : > { %v6820_v37 = vpop.f32.mrb[5].mxu1  ;;  %v8614_v45 = vadd.f32 %v14851_v15, %v6818_v50 }
 0x50c   : > { %v6823_v25 = vpop.f32.mrb[6].mxu1 }
 0x50d   : > { %v6825_v20 = vpop.f32.mrb[7].mxu1  ;;  %v8615_v40 = vadd.f32 %v14851_v15, %v6823_v25  ;;  %v10410_v12 = vpop.eup %10409 }
 0x510   : > { %v6828_v43 = vpop.f32.mrb[8].mxu1 }
 0x511   : > { %v8616_v41 = vadd.f32 %v14851_v15, %v6828_v43  ;;  %v6830_v47 = vpop.f32.mrb[9].mxu1 }
 0x513   : > { %10411 = vtanh.f32 %v8616_v41 }
 0x514   : > { %v6833_v18 = vpop.f32.mrb[10].mxu1  ;;  %10413 = vtanh.f32 %v8613_v36 }
 0x515   : > { %v8617_v21 = vadd.f32 %v14851_v15, %v6833_v18  ;;  %v6835_v31 = vpop.f32.mrb[11].mxu1 }
 0x517   : > { %10415 = vtanh.f32 %v8617_v21 }
 0x518   : > { %v6838_v16 = vpop.f32.mrb[12].mxu1  ;;  %10417 = vtanh.f32 %v8614_v45 }
 0x519   : > { %v8618_v6 = vadd.f32 %v14851_v15, %v6838_v16  ;;  %v6840_v9 = vpop.f32.mrb[13].mxu1 }
 0x51b   : > { %10419 = vtanh.f32 %v8618_v6 }
 0x51c   : > { %v6843_v33 = vpop.f32.mrb[14].mxu1  ;;  %10421 = vtanh.f32 %v8615_v40 }
 0x51d   : > { %v10412_v5 = vpop.eup %10411  ;;  %v8619_v10 = vadd.f32 %v14851_v15, %v6843_v33  ;;  %v6845_v51 = vpop.f32.mrb[15].mxu1 }
 0x51e   : > { %v6999_v11 = vadd.f32 %v10412_v5, %v10410_v12  ;;  %v10414_v55 = vpop.eup %10413 }
 0x51f   : > { %10423 = vtanh.f32 %v8619_v10 }
 0x520   : > { %v6848_v24 = vpop.f32.mrb[16].mxu1 }
 0x521   : > { %v10416_v62 = vpop.eup %10415  ;;  %v6850_v30 = vpop.f32.mrb[17].mxu1  ;;  %v8620_v0 = vadd.f32 %v14851_v15, %v6848_v24 }
 0x522   : > { %v7000_v46 = vadd.f32 %v10416_v62, %v10414_v55  ;;  %v10418_v38 = vpop.eup %10417 }
 0x523   : > { %10425 = vtanh.f32 %v8620_v0 }
 0x524   : > { %v6853_v27 = vpop.f32.mrb[18].mxu1 }
 0x525   : > { %v10420_v29 = vpop.eup %10419  ;;  %v6855_v34 = vpop.f32.mrb[19].mxu1  ;;  %v8621_v19 = vadd.f32 %v14851_v15, %v6853_v27 }
 0x526   : > { %v7001_v35 = vadd.f32 %v10420_v29, %v10418_v38  ;;  %v10422_v7 = vpop.eup %10421 }
 0x528   : > { %v6858_v49 = vpop.f32.mrb[20].mxu1 }
 0x529   : > { %v10424_v61 = vpop.eup %10423  ;;  %v6860_v2 = vpop.f32.mrb[21].mxu1  ;;  %v8622_v22 = vadd.f32 %v14851_v15, %v6858_v49 }
 0x52a   : > { %v7002_v4 = vadd.f32 %v10424_v61, %v10422_v7 }
 0x52c   : > { %v6863_v3 = vpop.f32.mrb[22].mxu1 }
 0x52d   : > { %v6865_v57 = vpop.f32.mrb[23].mxu1  ;;  %v8623_v56 = vadd.f32 %v14851_v15, %v6863_v3  ;;  %v10426_v39 = vpop.eup %10425 }
 0x530   : > { %v6868_v48 = vpop.f32.mrb[24].mxu1 }
 0x531   : > { %v8624_v14 = vadd.f32 %v14851_v15, %v6868_v48  ;;  %v6870_v63 = vpop.f32.mrb[25].mxu1 }
 0x533   : > { %10427 = vtanh.f32 %v8624_v14 }
 0x534   : > { %v6873_v60 = vpop.f32.mrb[26].mxu1  ;;  %10429 = vtanh.f32 %v8621_v19 }
 0x535   : > { %v8625_v52 = vadd.f32 %v14851_v15, %v6873_v60  ;;  %v6875_v8 = vpop.f32.mrb[27].mxu1 }
 0x537   : > { %10431 = vtanh.f32 %v8625_v52 }
 0x538   : > { %v6878_v44 = vpop.f32.mrb[28].mxu1  ;;  %10433 = vtanh.f32 %v8622_v22 }
 0x539   : > { %v8626_v1 = vadd.f32 %v14851_v15, %v6878_v44  ;;  %v6880_v23 = vpop.f32.mrb[29].mxu1 }
 0x53b   : > { %10435 = vtanh.f32 %v8626_v1 }
 0x53c   : > { %v6883_v26 = vpop.f32.mrb[30].mxu1  ;;  %10437 = vtanh.f32 %v8623_v56 }
 0x53d   : > { %v10428_v59 = vpop.eup %10427  ;;  %v8627_v32 = vadd.f32 %v14851_v15, %v6883_v26  ;;  %v6885_v28 = vpop.f32.mrb[31].mxu1 }
 0x53e   : > { %v7003_v54 = vadd.f32 %v10428_v59, %v10426_v39  ;;  %v10430_v53 = vpop.eup %10429 }
 0x53f   : > { %10439 = vtanh.f32 %v8627_v32 }
 0x540   : > { %v6888_v13 = vpop.f32.mrb[32].mxu1  ;;  %7150 = vmatprep.mubr.f32.mxu0 %v7003_v54 }
 0x541   : > { %v10432_v42 = vpop.eup %10431  ;;  %v6890_v58 = vpop.f32.mrb[33].mxu1  ;;  %7151 = vmatmul.mubr.f32.vlgmr.msra.gmra.mrb[192].mxu0 %v6999_v11  ;;  %v8628_v16 = vadd.f32 %v14851_v15, %v6888_v13 }
 0x542   : > { %v7004_v50 = vadd.f32 %v10432_v42, %v10430_v53  ;;  %v10434_v37 = vpop.eup %10433 }
 0x543   : > { %10441 = vtanh.f32 %v8628_v16 }
 0x544   : > { %v6893_v25 = vpop.f32.mrb[34].mxu1  ;;  %7155 = vmatprep.mubr.f32.mxu0 %v7004_v50 }
 0x545   : > { %v10436_v20 = vpop.eup %10435  ;;  %v6895_v17 = vpop.f32.mrb[35].mxu1  ;;  %7156 = vmatmul.mubr.f32.gmra.mrb[194].mxu0 %v7000_v46  ;;  %v8629_v12 = vadd.f32 %v14851_v15, %v6893_v25 }
 0x546   : > { %v7005_v43 = vadd.f32 %v10436_v20, %v10434_v37  ;;  %v10438_v41 = vpop.eup %10437 }
 0x548   : > { %v6898_v47 = vpop.f32.mrb[36].mxu1  ;;  %7160 = vmatprep.mubr.f32.mxu0 %v7005_v43 }
 0x549   : > { %v10440_v36 = vpop.eup %10439  ;;  %v6900_v18 = vpop.f32.mrb[37].mxu1  ;;  %7161 = vmatmul.mubr.f32.gmra.mrb[196].mxu0 %v7001_v35  ;;  %v8630_v51 = vadd.f32 %v14851_v15, %v6898_v47 }
 0x54a   : > { %v7006_v21 = vadd.f32 %v10440_v36, %v10438_v41 }
 0x54c   : > { %v6903_v31 = vpop.f32.mrb[38].mxu1  ;;  %7165 = vmatprep.mubr.f32.mxu0 %v7006_v21 }
 0x54d   : > { %v6905_v45 = vpop.f32.mrb[39].mxu1  ;;  %7166 = vmatmul.mubr.f32.gmra.mrb[198].mxu0 %v7002_v4  ;;  %v8631_v62 = vadd.f32 %v14851_v15, %v6903_v31  ;;  %v10442_v30 = vpop.eup %10441 }
 0x550   : > { %v6908_v6 = vpop.f32.mrb[40].mxu1 }
 0x551   : > { %v8632_v9 = vadd.f32 %v14851_v15, %v6908_v6  ;;  %v6910_v40 = vpop.f32.mrb[41].mxu1  ;;  %v7260_v6 = vld [vmem:[%s15043_s7] sm:$0xff] }
 0x553   : > { %10443 = vtanh.f32 %v8632_v9  ;;  %v7262_v9 = vld [vmem:[%s15043_s7 + $0x10] sm:$0xff] }
 0x554   : > { %v6913_v33 = vpop.f32.mrb[42].mxu1  ;;  %10445 = vtanh.f32 %v8629_v12  ;;  %v7263_v12 = vld [vmem:[%s15043_s7 + $0x18] sm:$0xff] }
 0x555   : > { %v8633_v5 = vadd.f32 %v14851_v15, %v6913_v33  ;;  %v6915_v10 = vpop.f32.mrb[43].mxu1  ;;  %v8556_v33 = vpack.c.bf16 %v7263_v12, %v7262_v9  ;;  %v7389_v9 = vld [vmem:[%s15045_s9 + $0x28] sm:$0xff]  ;;  %v7390_v12 = vld [vmem:[%s15045_s9 + $0x30] sm:$0xff] }
 0x556   : > { %v7265_v10 = vld [vmem:[%s15043_s7 + $0x28] sm:$0xff] }
 0x557   : > { %10447 = vtanh.f32 %v8633_v5  ;;  %v7264_v5 = vld [vmem:[%s15043_s7 + $0x20] sm:$0xff] }
 0x558   : > { %v6918_v11 = vpop.f32.mrb[44].mxu1  ;;  %10449 = vtanh.f32 %v8630_v51  ;;  %v8560_v51 = vpack.c.bf16 %v7265_v10, %v7264_v5  ;;  %v7392_v5 = vld [vmem:[%s15045_s9 + $0x40] sm:$0xff] }
 0x559   : > { %v8634_v55 = vadd.f32 %v14851_v15, %v6918_v11  ;;  %v6920_v24 = vpop.f32.mrb[45].mxu1  ;;  %v7266_v11 = vld [vmem:[%s15043_s7 + $0x30] sm:$0xff] }
 0x55b   : > { %10451 = vtanh.f32 %v8634_v55  ;;  %v7267_v55 = vld [vmem:[%s15043_s7 + $0x38] sm:$0xff] }
 0x55c   : > { %v6923_v46 = vpop.f32.mrb[46].mxu1  ;;  %10453 = vtanh.f32 %v8631_v62  ;;  %v8564_v24 = vpack.c.bf16 %v7267_v55, %v7266_v11  ;;  %v7268_v62 = vld [vmem:[%s15043_s7 + $0x40] sm:$0xff]  ;;  %v7394_v55 = vld [vmem:[%s15045_s9 + $0x50] sm:$0xf] }
 0x55d   : > { %v10444_v38 = vpop.eup %10443  ;;  %v8635_v27 = vadd.f32 %v14851_v15, %v6923_v46  ;;  %v6925_v29 = vpop.f32.mrb[47].mxu1 }
 0x55e   : > { %v7007_v34 = vadd.f32 %v10444_v38, %v10442_v30  ;;  %v10446_v35 = vpop.eup %10445  ;;  %v7269_v30 = vld [vmem:[%s15043_s7 + $0x48] sm:$0xff]  ;;  %v7270_v38 = vld [vmem:[%s15043_s7 + $0x50] sm:$0xff] }
 0x55f   : > { %10455 = vtanh.f32 %v8635_v27  ;;  %v8568_v46 = vpack.c.bf16 %v7269_v30, %v7268_v62  ;;  %v7271_v27 = vld [vmem:[%s15043_s7 + $0x58] sm:$0xff] }
 0x560   : > { %v6928_v7 = vpop.f32.mrb[48].mxu1  ;;  %v8572_v29 = vpack.c.bf16 %v7271_v27, %v7270_v38 }
 0x561   : > { %v10448_v49 = vpop.eup %10447  ;;  %v6930_v61 = vpop.f32.mrb[49].mxu1  ;;  %v8636_v44 = vadd.f32 %v14851_v15, %v6928_v7 }
 0x562   : > { %v7008_v2 = vadd.f32 %v10448_v49, %v10446_v35  ;;  %v10450_v4 = vpop.eup %10449  ;;  %v7273_v35 = vld [vmem:[%s15043_s7 + $0x68] sm:$0xff]  ;;  %v7274_v49 = vld [vmem:[%s15043_s7 + $0x70] sm:$0xff]  ;;  %v7384_v61 = vld [vmem:[%s15045_s9] sm:$0xff] }
 0x563   : > { %10457 = vtanh.f32 %v8636_v44 }
 0x564   : > { %v6933_v3 = vpop.f32.mrb[50].mxu1 }
 0x565   : > { %v10452_v57 = vpop.eup %10451  ;;  %v6935_v0 = vpop.f32.mrb[51].mxu1  ;;  %v8637_v39 = vadd.f32 %v14851_v15, %v6933_v3 }
 0x566   : > { %v7009_v48 = vadd.f32 %v10452_v57, %v10450_v4  ;;  %v10454_v14 = vpop.eup %10453  ;;  %v7386_v4 = vld [vmem:[%s15045_s9 + $0x10] sm:$0xff]  ;;  %v7387_v57 = vld [vmem:[%s15045_s9 + $0x18] sm:$0xff] }
 0x567   : > { %v8584_v0 = vpack.c.bf16 %v7387_v57, %v7386_v4  ;;  %v8116_v4 = vld [vmem:[%s15046_s10] ss:$0 sm:$0xff] }
 0x568   : > { %v6938_v63 = vpop.f32.mrb[52].mxu1 }
 0x569   : > { %v10456_v19 = vpop.eup %10455  ;;  %v6940_v60 = vpop.f32.mrb[53].mxu1  ;;  %v8638_v28 = vadd.f32 %v14851_v15, %v6938_v63 }
 0x56a   : > { %v7010_v52 = vadd.f32 %v10456_v19, %v10454_v14 }
 0x56c   : > { %v6943_v8 = vpop.f32.mrb[54].mxu1 }
 0x56d   : > { %v6945_v22 = vpop.f32.mrb[55].mxu1  ;;  %v10458_v42 = vpop.eup %10457  ;;  %v8639_v25 = vadd.f32 %v14851_v15, %v6943_v8 }
 0x570   : > { %v6948_v1 = vpop.f32.mrb[56].mxu1 }
 0x571   : > { %v8640_v23 = vadd.f32 %v14851_v15, %v6948_v1  ;;  %v6950_v56 = vpop.f32.mrb[57].mxu1 }
 0x573   : > { %10459 = vtanh.f32 %v8640_v23 }
 0x574   : > { %v6953_v26 = vpop.f32.mrb[58].mxu1  ;;  %10461 = vtanh.f32 %v8637_v39  ;;  %v8110_v39 = vld [vmem:[%s15042_s6] ss:$0 sm:$0xff] }
 0x575   : > { %v8641_v59 = vadd.f32 %v14851_v15, %v6953_v26  ;;  %v6955_v32 = vpop.f32.mrb[59].mxu1 }
 0x577   : > { %10463 = vtanh.f32 %v8641_v59 }
 0x578   : > { %v6958_v54 = vpop.f32.mrb[60].mxu1  ;;  %10465 = vtanh.f32 %v8638_v28 }
 0x579   : > { %v8642_v53 = vadd.f32 %v14851_v15, %v6958_v54  ;;  %v6960_v13 = vpop.f32.mrb[61].mxu1 }
 0x57b   : > { %10467 = vtanh.f32 %v8642_v53 }
 0x57c   : > { %10469 = vtanh.f32 %v8639_v25 }
 0x57d   : > { %v10460_v58 = vpop.eup %10459 }
 0x57e   : > { %v7011_v50 = vadd.f32 %v10460_v58, %v10458_v42  ;;  %v10462_v37 = vpop.eup %10461 }
 0x580   : > { %7235 = vmatprep.mubr.f32.mxu1 %v7011_v50 }
 0x581   : > { %v10464_v20 = vpop.eup %10463  ;;  %7236 = vmatmul.mubr.f32.vlgmr.msra.gmra.mrb[64].mxu1 %v7007_v34  ;;  %v7272_v34 = vld [vmem:[%s15043_s7 + $0x60] sm:$0xff] }
 0x582   : > { %v6963_v17 = vpop.f32.mrb[62].mxu1  ;;  %v7012_v43 = vadd.f32 %v10464_v20, %v10462_v37  ;;  %v10466_v36 = vpop.eup %10465  ;;  %v8576_v7 = vpack.c.bf16 %v7273_v35, %v7272_v34 }
 0x583   : > { %v8643_v41 = vadd.f32 %v14851_v15, %v6963_v17  ;;  %v6965_v47 = vpop.f32.mrb[63].mxu1  ;;  %v7261_v15 = vld [vmem:[%s15043_s7 + $0x8] sm:$0xff] }
 0x584   : > { %7240 = vmatprep.mubr.f32.mxu1 %v7012_v43  ;;  %v8552_v40 = vpack.c.bf16 %v7261_v15, %v7260_v6  ;;  %v7388_v15 = vld [vmem:[%s15045_s9 + $0x20] sm:$0xff] }
 0x585   : > { %v10468_v18 = vpop.eup %10467  ;;  %10471 = vtanh.f32 %v8643_v41  ;;  %7241 = vmatmul.mubr.f32.gmra.mrb[66].mxu1 %v7008_v2  ;;  %v7385_v2 = vld [vmem:[%s15045_s9 + $0x8] sm:$0xff] }
 0x586   : > { %v7013_v21 = vadd.f32 %v10468_v18, %v10466_v36  ;;  %v10470_v31 = vpop.eup %10469  ;;  %8553 = vmatprep.subr.bf16.mxu0 %v8552_v40  ;;  %v8580_v3 = vpack.c.bf16 %v7385_v2, %v7384_v61 }
 0x587   : > { %8555 = vmatpush3.bf16.msra.mxu0 %v8552_v40  ;;  %v8588_v40 = vpack.c.bf16 %v7389_v9, %v7388_v15 }
 0x588   : > { %7245 = vmatprep.mubr.f32.mxu1 %v7013_v21  ;;  %8557 = vmatprep.subr.bf16.mxu0 %v8556_v33 }
 0x589   : > { %7246 = vmatmul.mubr.f32.gmra.mrb[68].mxu1 %v7009_v48  ;;  %8600 = vmatprep.subr.bf16.mxu1 %v8580_v3 }
 0x58a   : > { %8606 = vmatpush3.bf16.msra.mxu1 %v8580_v3 }
 0x58b   : > { %8559 = vmatpush3.bf16.msra.mxu0 %v8556_v33  ;;  %8601 = vmatprep.subr.bf16.mxu1 %v8584_v0  ;;  %v7391_v33 = vld [vmem:[%s15045_s9 + $0x38] sm:$0xff] }
 0x58c   : > { %8561 = vmatprep.subr.bf16.mxu0 %v8560_v51  ;;  %v8592_v10 = vpack.c.bf16 %v7391_v33, %v7390_v12 }
 0x58e   : > { %8607 = vmatpush3.bf16.msra.mxu1 %v8584_v0 }
 0x58f   : > { %v10472_v45 = vpop.eup %10471  ;;  %8563 = vmatpush3.bf16.msra.mxu0 %v8560_v51  ;;  %v7393_v51 = vld [vmem:[%s15045_s9 + $0x48] sm:$0xff]  ;;  %8602 = vmatprep.subr.bf16.mxu1 %v8588_v40 }
 0x590   : > { %v7014_v16 = vadd.f32 %v10472_v45, %v10470_v31  ;;  %8565 = vmatprep.subr.bf16.mxu0 %v8564_v24  ;;  %v8596_v11 = vpack.c.bf16 %v7393_v51, %v7392_v5 }
 0x592   : > { %7250 = vmatprep.mubr.f32.mxu1 %v7014_v16  ;;  %8608 = vmatpush3.bf16.msra.mxu1 %v8588_v40 }
 0x593   : > { %7251 = vmatmul.mubr.f32.gmra.mrb[70].mxu1 %v7010_v52  ;;  %8567 = vmatpush3.bf16.msra.mxu0 %v8564_v24  ;;  %v8111_v24 = vld [vmem:[%s15044_s8] ss:$0 sm:$0xff] }
 0x594   : > { %8569 = vmatprep.subr.bf16.mxu0 %v8568_v46  ;;  %8603 = vmatprep.subr.bf16.mxu1 %v8592_v10 }
 0x596   : > { %8609 = vmatpush3.bf16.msra.mxu1 %v8592_v10 }
 0x597   : > { %8571 = vmatpush3.bf16.msra.mxu0 %v8568_v46  ;;  %8604 = vmatprep.subr.bf16.mxu1 %v8596_v11 }
 0x598   : > { %8573 = vmatprep.subr.bf16.mxu0 %v8572_v29 }
 0x59a   : > { %8610 = vmatpush3.bf16.msra.mxu1 %v8596_v11 }
 0x59b   : > { %8575 = vmatpush3.bf16.msra.mxu0 %v8572_v29  ;;  %8605 = vmatprep.subr.msk.mxu1 %vm3515_vm0, %v7394_v55 }
 0x59c   : > { %8577 = vmatprep.subr.bf16.mxu0 %v8576_v7 }
 0x59e   : > { %8611 = vmatpush3.msk.msra.mxu1 %vm3515_vm0, %v7394_v55 }
 0x59f   : > { %8579 = vmatpush3.bf16.msra.mxu0 %v8576_v7 }
 0x5a0   : > { %8279 = vmatprep.subr.mxu0 %v7274_v49 }
 0x5a3   : > { %8280 = vmatpush3.msra.mxu0 %v7274_v49 }
 0x5a4   : > { %8581 = vmatprep.subr.bf16.mxu0 %v8580_v3 }
 0x614   : > { %v8161_v48 = vpop.f32.mrb[192].mxu0 }
 0x615   : > { %v8162_v14 = vpop.f32.mrb[193].mxu0 }
 0x616   : > { %v8163_v63 = vadd.f32 %v8162_v14, %v8161_v48 }
 0x618   : > { %v8164_v19 = vpop.f32.mrb[194].mxu0  ;;  %v7153_v32 = vadd.f32 %v8163_v63, %v8110_v39 }
 0x619   : > { %v8165_v60 = vpop.f32.mrb[195].mxu0 }
 0x61a   : > { %v8166_v52 = vadd.f32 %v8165_v60, %v8164_v19 }
 0x61c   : > { %v8167_v8 = vpop.f32.mrb[196].mxu0  ;;  %v7158_v42 = vadd.f32 %v8166_v52, %v8110_v39 }
 0x61d   : > { %v8168_v22 = vpop.f32.mrb[197].mxu0 }
 0x61e   : > { %v8169_v44 = vadd.f32 %v8168_v22, %v8167_v8 }
 0x620   : > { %v8170_v1 = vpop.f32.mrb[198].mxu0  ;;  %v7163_v20 = vadd.f32 %v8169_v44, %v8110_v39 }
 0x621   : > { %v8171_v23 = vpop.f32.mrb[199].mxu0 }
 0x622   : > { %v8172_v56 = vadd.f32 %v8171_v23, %v8170_v1 }
 0x624   : > { %v7168_v21 = vadd.f32 %v8172_v56, %v8110_v39 }
 0x654   : > { %v8205_v26 = vpop.f32.mrb[64].mxu1 }
 0x655   : > { %v8206_v59 = vpop.f32.mrb[65].mxu1 }
 0x656   : > { %v8207_v28 = vadd.f32 %v8206_v59, %v8205_v26 }
 0x658   : > { %v7238_v54 = vadd.f32 %v8207_v28, %v7153_v32  ;;  %v8208_v53 = vpop.f32.mrb[66].mxu1 }
 0x659   : > { %v8209_v13 = vpop.f32.mrb[67].mxu1 }
 0x65a   : > { %10473 = vtanh.f32 %v7238_v54  ;;  %v8210_v58 = vadd.f32 %v8209_v13, %v8208_v53 }
 0x65c   : > { %v7243_v50 = vadd.f32 %v8210_v58, %v7158_v42  ;;  %v8211_v37 = vpop.f32.mrb[68].mxu1 }
 0x65d   : > { %v8212_v25 = vpop.f32.mrb[69].mxu1 }
 0x65e   : > { %10475 = vtanh.f32 %v7243_v50  ;;  %v8213_v17 = vadd.f32 %v8212_v25, %v8211_v37 }
 0x660   : > { %v7248_v43 = vadd.f32 %v8213_v17, %v7163_v20 }
 0x662   : > { %10477 = vtanh.f32 %v7248_v43 }
 0x664   : > { %v10474_v41 = vpop.eup %10473 }
 0x665   : > { %8281 = vmatprep.mubr.msk.f32.mxu0 %vm7282_vm13, %v10474_v41 }
 0x666   : > { %v8214_v47 = vpop.f32.mrb[70].mxu1 }
 0x667   : > { %v8215_v36 = vpop.f32.mrb[71].mxu1 }
 0x668   : > { %v10476_v18 = vpop.eup %10475  ;;  %v8216_v31 = vadd.f32 %v8215_v36, %v8214_v47 }
 0x669   : > { %8282 = vmatmul.mubr.msk.f32.vlgmr.msra.gmra.mrb[200].mxu0 %vm7282_vm13, %v10476_v18 }
 0x66a   : > { %v7253_v45 = vadd.f32 %v8216_v31, %v7168_v21  ;;  %8583 = vmatpush3.bf16.msra.mxu0 %v8580_v3 }
 0x66b   : > { %8585 = vmatprep.subr.bf16.mxu0 %v8584_v0 }
 0x66c   : > { %v10478_v16 = vpop.eup %10477  ;;  %10479 = vtanh.f32 %v7253_v45 }
 0x66d   : > { %8284 = vmatprep.mubr.msk.f32.mxu0 %vm7282_vm13, %v10478_v16 }
 0x66e   : > { %8587 = vmatpush3.bf16.msra.mxu0 %v8584_v0 }
 0x66f   : > { %8589 = vmatprep.subr.bf16.mxu0 %v8588_v40 }
 0x672   : > { %8591 = vmatpush3.bf16.msra.mxu0 %v8588_v40 }
 0x673   : > { %8593 = vmatprep.subr.bf16.mxu0 %v8592_v10 }
 0x676   : > { %v10480_v6 = vpop.eup %10479  ;;  %8595 = vmatpush3.bf16.msra.mxu0 %v8592_v10 }
 0x677   : > { %8285 = vmatmul.mubr.msk.f32.gmra.mrb[202].mxu0 %vm7282_vm13, %v10480_v6  ;;  %8597 = vmatprep.subr.bf16.mxu0 %v8596_v11 }
 0x67a   : > { %8599 = vmatpush3.bf16.msra.mxu0 %v8596_v11 }
 0x67b   : > { %8307 = vmatprep.subr.msk.mxu0 %vm3515_vm0, %v7394_v55 }
 0x67e   : > { %8308 = vmatpush3.msk.msra.mxu0 %vm3515_vm0, %v7394_v55 }
 0x73c   : > { %v8283_v62 = vpop.f32.mrb[200].mxu0 }
 0x73d   : > { %v7367_v30 = vadd.f32 %v8283_v62, %v8111_v24  ;;  %v7361_v46 = vpop.f32.mrb[201].mxu0 }
 0x73e   : > { %v7362_v38 = vadd.f32 %v8111_v24, %v7361_v46 }
 0x740   : > { %10481 = vtanh.f32 %v7362_v38 }
 0x741   : > { %10483 = vtanh.f32 %v7367_v30 }
 0x74a   : > { %v10482_v27 = vpop.eup %10481  ;;  %v8286_v29 = vpop.f32.mrb[202].mxu0 }
 0x74b   : > { %v10484_v34 = vpop.eup %10483  ;;  %v7377_v35 = vadd.f32 %v8286_v29, %v8111_v24  ;;  %v7371_v7 = vpop.f32.mrb[203].mxu0  ;;  %8309 = vmatprep.mubr.msk.f32.mxu0 %vm3080_vm6, %v10482_v27 }
 0x74c   : > { %v7372_v49 = vadd.f32 %v8111_v24, %v7371_v7  ;;  %8310 = vmatmul.mubr.msk.f32.vlgmr.msra.gmra.mrb[204].mxu0 %vm3080_vm6, %v10484_v34 }
 0x74e   : > { %10485 = vtanh.f32 %v7372_v49 }
 0x74f   : > { %10487 = vtanh.f32 %v7377_v35 }
 0x758   : > { %v10486_v61 = vpop.eup %10485 }
 0x759   : > { %v10488_v2 = vpop.eup %10487  ;;  %8312 = vmatprep.mubr.msk.f32.mxu1 %vm3080_vm6, %v10486_v61 }
 0x75a   : > { %8313 = vmatmul.mubr.msk.f32.vlgmr.msra.gmra.mrb[72].mxu1 %vm3080_vm6, %v10488_v2 }
 0x81f   : > { %v8311_v3 = vpop.f32.mrb[204].mxu0 }
 0x820   : > { %v7489_v57 = vadd.f32 %v8311_v3, %v8116_v4  ;;  %v7483_v0 = vpop.f32.mrb[205].mxu0 }
 0x821   : > { %v7484_v48 = vadd.f32 %v8116_v4, %v7483_v0 }
 0x822   : > { %7503 = vst [vmem:[%s863_s29 + $0x8] sm:$0xff] %v7489_v57 }
 0x823   : > { %7502 = vst [vmem:[%s863_s29] sm:$0xff] %v7484_v48 }
 0x82d   : > { %v8314_v14 = vpop.f32.mrb[72].mxu1 }
 0x82e   : > { %v7499_v63 = vadd.f32 %v8314_v14, %v8116_v4  ;;  %v7493_v19 = vpop.f32.mrb[73].mxu1 }
 0x82f   : > { %v7494_v60 = vadd.f32 %v8116_v4, %v7493_v19 }
 0x830   : > { %7505 = vst [vmem:[%s863_s29 + $0x18] sm:$0xff] %v7499_v63 }
 0x831   : > { %7504 = vst [vmem:[%s863_s29 + $0x10] sm:$0xff] %v7494_v60 }
 0x832   : > { %10503 = shalt.err (!%p10500_p5)
}
 0x833   : > { %s10504_s25 = scalar_lea.hbm %s14992_s16, 512  ;;  %s10508_s14 = scalar_lea.hbm %s15047_s11, 1024 }
 0x834   : > { %p10505_p7 = scmp.ne.s32.totalorder %s14992_s16, %s10504_s25  ;;  %p10509_p12 = scmp.lt.u32.totalorder %s14992_s16, %s15047_s11 }
 0x835   : > { %p10510_p13 = scmp.lt.u32.totalorder %s10508_s14, %s10504_s25  ;;  %p10512_p1 = scmp.lt.u32.totalorder %s10504_s25, %s14992_s16 }
 0x836   : > { %p10506_p10 = pnand %p10505_p7, %p10665_p6 }
 0x837   : > { %p10511_p0 = por %p10510_p13, %p10509_p12 }
 0x838   : > { %p10507_p11 = pneg %p10506_p10 }
 0x839   : > { %p10513_p2 = por %p10512_p1, %p10511_p0 }
 0x83b   : > { %p10514_p3 = pnand %p10513_p2, %p10507_p11 }
 0x83d   : > { %10517 = shalt.err (!%p10514_p3)
}
 0x83e   : > { %s10565_s24 = smov 128   ;;  %s10566_s12 = smov 8  }
 0x83f   : > { %8774 = dma.vmem_to_hbm [thread:$0]  (%p10665_p6), %s14987_s21, 512, %s14992_s16, %s7507_s0, %s10565_s24, %s10565_s24, %s10566_s12  }
 0x840 PF: > { %s7535_s13 = sand.u32 1, %s10540_s17   ;;  %p8777_p4 = pnand %p7590_p9, %p10669_p8 }
 0x841   : > { %s7536_s15 = scalar_lea.sflag [#allocation5], %s7535_s13 }
 0x842   : > { %10535 = dma.done.wait (!%p8777_p4), %s7536_s15, 512  }
 0x843   : > { %10537 = vsyncadd (!%p8777_p4), %s7536_s15, 4294966784  ;;  %s15229_s25 = sld [smem:[#allocation7_spill]]  ;;  %s15230_s19 = sld [smem:[#allocation8_spill]] }
 0x844   : > { %p21_p5 = scmp.ge.s32.totalorder %s10650_s23, 4   ;;  %s15231_s17 = smov %s10544_s18 }
 0x845   : > { %s15233_s20 = smov %s10650_s23 }
 0x846   :  { %23 = sbr.rel (!%p21_p5) target bundleno = 5 (0x5), region = 157 }
 0x849   : > { %s15232_s18 = smov %s15229_s25 }
 0x84d   :  { %7541 = vsyncpa [#allocation5], 1 }
 0x84e   :  { %7543 = vsyncpa [#allocation5 + $0x1], 1 }

</bundles_post_ra>
